<compile_context>
chip_gen: v7x
topology: tpu7x:2x2x1
jax: 0.10.0
libtpu: 0.0.40
codegen_flags: <defaults>
</compile_context>

<pallas_src>
import jax
import jax.numpy as jnp
from jax.experimental import pallas as pl
from jax.experimental.pallas import tpu as pltpu

NEG_SLOPE = 0.01  # torch.nn.LeakyReLU default negative_slope
VMEM_LIMIT = 48 << 20


def _leaky(z):
    return jnp.where(z >= 0, z, NEG_SLOPE * z)


# ----------------------------------------------------------------------------
# Kernel 1: y = leaky_relu(x @ w + b), grid (N//tn, K//tk), whole batch per tile.
# Output block index is (0, j) for every k, so it stays resident in VMEM and we
# accumulate straight into it (f32 output == accumulator dtype) -- no scratch.
# ----------------------------------------------------------------------------
def _linear_leaky_kernel(x_ref, w_ref, b_ref, o_ref):
    k = pl.program_id(1)
    part = jnp.dot(x_ref[...], w_ref[...], preferred_element_type=jnp.float32)

    @pl.when(k == 0)
    def _():
        o_ref[...] = part

    @pl.when(k != 0)
    def _():
        o_ref[...] += part

    @pl.when(k == pl.num_programs(1) - 1)
    def _():
        o_ref[...] = _leaky(o_ref[...] + b_ref[...]).astype(o_ref.dtype)


def linear_leaky(x, w, b, *, tn, tk):
    M, K = x.shape
    Kw, N = w.shape
    assert K == Kw and K % tk == 0 and N % tn == 0
    grid = (N // tn, K // tk)

    return pl.pallas_call(
        _linear_leaky_kernel,
        out_shape=jax.ShapeDtypeStruct((M, N), jnp.float32),
        grid_spec=pltpu.PrefetchScalarGridSpec(
            num_scalar_prefetch=0,
            grid=grid,
            in_specs=[
                pl.BlockSpec((M, tk), lambda j, k: (0, k)),   # x
                pl.BlockSpec((tk, tn), lambda j, k: (k, j)),  # w
                pl.BlockSpec((1, tn), lambda j, k: (0, j)),   # b (broadcasts over rows)
            ],
            out_specs=pl.BlockSpec((M, tn), lambda j, k: (0, j)),
        ),
        compiler_params=pltpu.CompilerParams(
            dimension_semantics=("parallel", "arbitrary"),
            vmem_limit_bytes=VMEM_LIMIT,
        ),
    )(x, w, b.reshape(1, N))


# ----------------------------------------------------------------------------
# Kernel 2: fused fc2 + fc3:
#   y = leaky( leaky(x @ w2 + b2) @ w3 + b3 )
# Grid is only the fc2 K axis; fc2 runs full-N (1024) with an f32 accumulator
# scratch, and the tiny fc3 (1024x2) is applied in the last-K epilogue, so the
# lane-width-2 layer never gets its own pallas_call / weight-stream grid.
# ----------------------------------------------------------------------------
def _fc2_fc3_kernel(x_ref, w2_ref, b2_ref, w3_ref, b3_ref, o_ref, acc_ref):
    k = pl.program_id(0)
    part = jnp.dot(x_ref[...], w2_ref[...], preferred_element_type=jnp.float32)

    @pl.when(k == 0)
    def _():
        acc_ref[...] = part

    @pl.when(k != 0)
    def _():
        acc_ref[...] += part

    @pl.when(k == pl.num_programs(0) - 1)
    def _():
        h2 = _leaky(acc_ref[...] + b2_ref[...])
        z3 = jnp.dot(h2, w3_ref[...], preferred_element_type=jnp.float32) + b3_ref[...]
        o_ref[...] = _leaky(z3).astype(o_ref.dtype)


def fc2_fc3_fused(x, w2, b2, w3, b3, *, tk):
    M, K = x.shape
    Kw2, N2 = w2.shape
    N2w3, N3 = w3.shape
    assert K == Kw2 and N2 == N2w3 and K % tk == 0
    grid = (K // tk,)

    return pl.pallas_call(
        _fc2_fc3_kernel,
        out_shape=jax.ShapeDtypeStruct((M, N3), jnp.float32),
        grid_spec=pltpu.PrefetchScalarGridSpec(
            num_scalar_prefetch=0,
            grid=grid,
            in_specs=[
                pl.BlockSpec((M, tk), lambda k: (0, k)),    # x
                pl.BlockSpec((tk, N2), lambda k: (k, 0)),   # w2
                pl.BlockSpec((1, N2), lambda k: (0, 0)),    # b2
                pl.BlockSpec((N2, N3), lambda k: (0, 0)),   # w3 (8 KiB, full block)
                pl.BlockSpec((1, N3), lambda k: (0, 0)),    # b3
            ],
            out_specs=pl.BlockSpec((M, N3), lambda k: (0, 0)),
            scratch_shapes=[pltpu.VMEM((M, N2), jnp.float32)],
        ),
        compiler_params=pltpu.CompilerParams(
            dimension_semantics=("arbitrary",),
            vmem_limit_bytes=VMEM_LIMIT,
        ),
    )(x, w2, b2.reshape(1, N2), w3, b3.reshape(1, N3))


def init_params(key):
    """Deterministic synthetic parameters matching nn.Linear shapes (stored transposed)."""
    dims = [(4096, 2048), (2048, 1024), (1024, 2)]
    params = []
    for d_in, d_out in dims:
        key, kw, kb = jax.random.split(key, 3)
        bound = 1.0 / jnp.sqrt(d_in)
        w = jax.random.uniform(kw, (d_in, d_out), jnp.float32, -bound, bound)
        b = jax.random.uniform(kb, (d_out,), jnp.float32, -bound, bound)
        params.append((w, b))
    return params


@jax.jit
def mynn_forward(x, params):
    (w1, b1), (w2, b2), (w3, b3) = params
    h = linear_leaky(x, w1, b1, tn=1024, tk=1024)   # fc1 + LeakyReLU, grid (2, 4)
    # Dropout(p=0.5): identity at inference time.
    # TODO(synk): training-mode dropout (pltpu.prng_random_bits mask) not implemented.
    out = fc2_fc3_fused(h, w2, b2, w3, b3, tk=1024)  # fc2 + LeakyReLU + fc3 + LeakyReLU
    return out


if __name__ == "__main__":
    key = jax.random.PRNGKey(0)
    kx, kp = jax.random.split(key)
    batch = 8
    x = jax.random.normal(kx, (batch, 4096), jnp.float32)
    params = init_params(kp)

    out = mynn_forward(x, params)
    jax.block_until_ready(out)
    assert out.shape == (batch, 2) and out.dtype == jnp.float32

    # reference check in plain JAX
    def ref(x, params):
        h = x
        for w, b in params:
            h = h @ w + b
            h = jnp.where(h >= 0, h, NEG_SLOPE * h)
        return h

    ref_out = ref(x, params)
    assert jnp.allclose(out, ref_out, atol=1e-3, rtol=1e-3)
    print("KERNEL_OK")
</pallas_src>

<mosaic_0001>
module attributes {stable_mosaic.version = 11 : i64} {
  func.func @_linear_leaky_kernel(%arg0: i32, %arg1: i32, %arg2: memref<8x1024xf32, #tpu.memory_space<vmem>>, %arg3: memref<1024x1024xf32, #tpu.memory_space<vmem>>, %arg4: memref<1x1024xf32, #tpu.memory_space<vmem>>, %arg5: memref<8x1024xf32, #tpu.memory_space<vmem>>) attributes {dimension_semantics = [#tpu.dimension_semantics<parallel>, #tpu.dimension_semantics<arbitrary>], iteration_bounds = array<i64: 2, 4>, scalar_prefetch = 0 : i64, scratch_operands = 0 : i64, tpu.core_type = #tpu.core_type<tc>, window_params = [{transform_indices = @transform_0, window_bounds = array<i64: 8, 1024>}, {transform_indices = @transform_1, window_bounds = array<i64: 1024, 1024>}, {transform_indices = @transform_2, window_bounds = array<i64: 1, 1024>}, {transform_indices = @transform_3, window_bounds = array<i64: 8, 1024>}]} {
    %c0 = arith.constant 0 : index
    %c0_0 = arith.constant 0 : index
    %0 = vector.load %arg2[%c0, %c0_0] : memref<8x1024xf32, #tpu.memory_space<vmem>>, vector<8x1024xf32>
    %c0_1 = arith.constant 0 : index
    %c0_2 = arith.constant 0 : index
    %1 = vector.load %arg3[%c0_1, %c0_2] : memref<1024x1024xf32, #tpu.memory_space<vmem>>, vector<1024x1024xf32>
    %cst = arith.constant dense<0.000000e+00> : vector<8x1024xf32>
    %2 = tpu.matmul %0, %1, %cst {dimension_numbers = #tpu.dot_dimension_numbers<[1], [0], [0], [1], [0, 0, 1, 1], [], []>} : vector<8x1024xf32>, vector<1024x1024xf32>, vector<8x1024xf32> -> vector<8x1024xf32>
    %c0_i32 = arith.constant 0 : i32
    %3 = arith.cmpi eq, %arg1, %c0_i32 : i32
    %4 = arith.extui %3 : i1 to i32
    %c0_i32_3 = arith.constant 0 : i32
    %5 = arith.cmpi ne, %4, %c0_i32_3 : i32
    scf.if %5 {
      %c0_7 = arith.constant 0 : index
      %c0_8 = arith.constant 0 : index
      %12 = vector.load %arg5[%c0_7, %c0_8] : memref<8x1024xf32, #tpu.memory_space<vmem>>, vector<8x1024xf32>
      tpu.vector_store %arg5[%c0_7, %c0_8], %2 {strides = array<i32>} : memref<8x1024xf32, #tpu.memory_space<vmem>>, vector<8x1024xf32>,
    } else {
    }
    %c0_i32_4 = arith.constant 0 : i32
    %6 = arith.cmpi ne, %arg1, %c0_i32_4 : i32
    %7 = arith.extui %6 : i1 to i32
    %c0_i32_5 = arith.constant 0 : i32
    %8 = arith.cmpi ne, %7, %c0_i32_5 : i32
    scf.if %8 {
      %c0_7 = arith.constant 0 : index
      %c0_8 = arith.constant 0 : index
      %12 = vector.load %arg5[%c0_7, %c0_8] : memref<8x1024xf32, #tpu.memory_space<vmem>>, vector<8x1024xf32>
      %13 = arith.addf %12, %2 : vector<8x1024xf32>
      %c0_9 = arith.constant 0 : index
      %c0_10 = arith.constant 0 : index
      %14 = vector.load %arg5[%c0_9, %c0_10] : memref<8x1024xf32, #tpu.memory_space<vmem>>, vector<8x1024xf32>
      tpu.vector_store %arg5[%c0_9, %c0_10], %13 {strides = array<i32>} : memref<8x1024xf32, #tpu.memory_space<vmem>>, vector<8x1024xf32>,
    } else {
    }
    %c3_i32 = arith.constant 3 : i32
    %9 = arith.cmpi eq, %arg1, %c3_i32 : i32
    %10 = arith.extui %9 : i1 to i32
    %c0_i32_6 = arith.constant 0 : i32
    %11 = arith.cmpi ne, %10, %c0_i32_6 : i32
    scf.if %11 {
      %c0_7 = arith.constant 0 : index
      %c0_8 = arith.constant 0 : index
      %12 = vector.load %arg5[%c0_7, %c0_8] : memref<8x1024xf32, #tpu.memory_space<vmem>>, vector<8x1024xf32>
      %c0_9 = arith.constant 0 : index
      %c0_10 = arith.constant 0 : index
      %13 = vector.load %arg4[%c0_9, %c0_10] : memref<1x1024xf32, #tpu.memory_space<vmem>>, vector<1x1024xf32>
      %14 = vector.broadcast %13 : vector<1x1024xf32> to vector<8x1024xf32>
      %15 = arith.addf %12, %14 : vector<8x1024xf32>
      %cst_11 = arith.constant 0.000000e+00 : f32
      %16 = vector.broadcast %cst_11 : f32 to vector<8x1024xf32>
      %17 = arith.cmpf oge, %15, %16 : vector<8x1024xf32>
      %cst_12 = arith.constant 0.00999999977 : f32
      %18 = vector.broadcast %cst_12 : f32 to vector<8x1024xf32>
      %19 = arith.mulf %18, %15 : vector<8x1024xf32>
      %20 = arith.select %17, %15, %19 : vector<8x1024xi1>, vector<8x1024xf32>
      %c0_13 = arith.constant 0 : index
      %c0_14 = arith.constant 0 : index
      %21 = vector.load %arg5[%c0_13, %c0_14] : memref<8x1024xf32, #tpu.memory_space<vmem>>, vector<8x1024xf32>
      tpu.vector_store %arg5[%c0_13, %c0_14], %20 {strides = array<i32>} : memref<8x1024xf32, #tpu.memory_space<vmem>>, vector<8x1024xf32>,
    } else {
    }
    return
  }
  func.func @transform_0(%arg0: i32, %arg1: i32) -> (i32, i32) {
    %c0_i32 = arith.constant 0 : i32
    %c0_i32_0 = arith.constant 0 : i32
    return %c0_i32, %arg1 : i32, i32
  }
  func.func @transform_1(%arg0: i32, %arg1: i32) -> (i32, i32) {
    %c0_i32 = arith.constant 0 : i32
    return %arg1, %arg0 : i32, i32
  }
  func.func @transform_2(%arg0: i32, %arg1: i32) -> (i32, i32) {
    %c0_i32 = arith.constant 0 : i32
    %c0_i32_0 = arith.constant 0 : i32
    return %c0_i32, %arg0 : i32, i32
  }
  func.func @transform_3(%arg0: i32, %arg1: i32) -> (i32, i32) {
    %c0_i32 = arith.constant 0 : i32
    %c0_i32_0 = arith.constant 0 : i32
    return %c0_i32, %arg0 : i32, i32
  }
}

module attributes {stable_mosaic.version = 11 : i64} {
  func.func @_fc2_fc3_kernel(%arg0: i32, %arg1: memref<8x1024xf32, #tpu.memory_space<vmem>>, %arg2: memref<1024x1024xf32, #tpu.memory_space<vmem>>, %arg3: memref<1x1024xf32, #tpu.memory_space<vmem>>, %arg4: memref<1024x2xf32, #tpu.memory_space<vmem>>, %arg5: memref<1x2xf32, #tpu.memory_space<vmem>>, %arg6: memref<8x2xf32, #tpu.memory_space<vmem>>, %arg7: memref<8x1024xf32, #tpu.memory_space<vmem>>) attributes {dimension_semantics = [#tpu.dimension_semantics<arbitrary>], iteration_bounds = array<i64: 2>, scalar_prefetch = 0 : i64, scratch_operands = 1 : i64, tpu.core_type = #tpu.core_type<tc>, window_params = [{transform_indices = @transform_0, window_bounds = array<i64: 8, 1024>}, {transform_indices = @transform_1, window_bounds = array<i64: 1024, 1024>}, {pipeline_mode = #tpu.pipeline_mode<synchronous>, transform_indices = @transform_2, window_bounds = array<i64: 1, 1024>}, {pipeline_mode = #tpu.pipeline_mode<synchronous>, transform_indices = @transform_3, window_bounds = array<i64: 1024, 2>}, {pipeline_mode = #tpu.pipeline_mode<synchronous>, transform_indices = @transform_4, window_bounds = array<i64: 1, 2>}, {pipeline_mode = #tpu.pipeline_mode<synchronous>, transform_indices = @transform_5, window_bounds = array<i64: 8, 2>}]} {
    %c0 = arith.constant 0 : index
    %c0_0 = arith.constant 0 : index
    %0 = vector.load %arg1[%c0, %c0_0] : memref<8x1024xf32, #tpu.memory_space<vmem>>, vector<8x1024xf32>
    %c0_1 = arith.constant 0 : index
    %c0_2 = arith.constant 0 : index
    %1 = vector.load %arg2[%c0_1, %c0_2] : memref<1024x1024xf32, #tpu.memory_space<vmem>>, vector<1024x1024xf32>
    %cst = arith.constant dense<0.000000e+00> : vector<8x1024xf32>
    %2 = tpu.matmul %0, %1, %cst {dimension_numbers = #tpu.dot_dimension_numbers<[1], [0], [0], [1], [0, 0, 1, 1], [], []>} : vector<8x1024xf32>, vector<1024x1024xf32>, vector<8x1024xf32> -> vector<8x1024xf32>
    %c0_i32 = arith.constant 0 : i32
    %3 = arith.cmpi eq, %arg0, %c0_i32 : i32
    %4 = arith.extui %3 : i1 to i32
    %c0_i32_3 = arith.constant 0 : i32
    %5 = arith.cmpi ne, %4, %c0_i32_3 : i32
    scf.if %5 {
      %c0_7 = arith.constant 0 : index
      %c0_8 = arith.constant 0 : index
      %12 = vector.load %arg7[%c0_7, %c0_8] : memref<8x1024xf32, #tpu.memory_space<vmem>>, vector<8x1024xf32>
      tpu.vector_store %arg7[%c0_7, %c0_8], %2 {strides = array<i32>} : memref<8x1024xf32, #tpu.memory_space<vmem>>, vector<8x1024xf32>,
    } else {
    }
    %c0_i32_4 = arith.constant 0 : i32
    %6 = arith.cmpi ne, %arg0, %c0_i32_4 : i32
    %7 = arith.extui %6 : i1 to i32
    %c0_i32_5 = arith.constant 0 : i32
    %8 = arith.cmpi ne, %7, %c0_i32_5 : i32
    scf.if %8 {
      %c0_7 = arith.constant 0 : index
      %c0_8 = arith.constant 0 : index
      %12 = vector.load %arg7[%c0_7, %c0_8] : memref<8x1024xf32, #tpu.memory_space<vmem>>, vector<8x1024xf32>
      %13 = arith.addf %12, %2 : vector<8x1024xf32>
      %c0_9 = arith.constant 0 : index
      %c0_10 = arith.constant 0 : index
      %14 = vector.load %arg7[%c0_9, %c0_10] : memref<8x1024xf32, #tpu.memory_space<vmem>>, vector<8x1024xf32>
      tpu.vector_store %arg7[%c0_9, %c0_10], %13 {strides = array<i32>} : memref<8x1024xf32, #tpu.memory_space<vmem>>, vector<8x1024xf32>,
    } else {
    }
    %c1_i32 = arith.constant 1 : i32
    %9 = arith.cmpi eq, %arg0, %c1_i32 : i32
    %10 = arith.extui %9 : i1 to i32
    %c0_i32_6 = arith.constant 0 : i32
    %11 = arith.cmpi ne, %10, %c0_i32_6 : i32
    scf.if %11 {
      %c0_7 = arith.constant 0 : index
      %c0_8 = arith.constant 0 : index
      %12 = vector.load %arg7[%c0_7, %c0_8] : memref<8x1024xf32, #tpu.memory_space<vmem>>, vector<8x1024xf32>
      %c0_9 = arith.constant 0 : index
      %c0_10 = arith.constant 0 : index
      %13 = vector.load %arg3[%c0_9, %c0_10] : memref<1x1024xf32, #tpu.memory_space<vmem>>, vector<1x1024xf32>
      %14 = vector.broadcast %13 : vector<1x1024xf32> to vector<8x1024xf32>
      %15 = arith.addf %12, %14 : vector<8x1024xf32>
      %cst_11 = arith.constant 0.000000e+00 : f32
      %16 = vector.broadcast %cst_11 : f32 to vector<8x1024xf32>
      %17 = arith.cmpf oge, %15, %16 : vector<8x1024xf32>
      %cst_12 = arith.constant 0.00999999977 : f32
      %18 = vector.broadcast %cst_12 : f32 to vector<8x1024xf32>
      %19 = arith.mulf %18, %15 : vector<8x1024xf32>
      %20 = arith.select %17, %15, %19 : vector<8x1024xi1>, vector<8x1024xf32>
      %c0_13 = arith.constant 0 : index
      %c0_14 = arith.constant 0 : index
      %21 = vector.load %arg4[%c0_13, %c0_14] : memref<1024x2xf32, #tpu.memory_space<vmem>>, vector<1024x2xf32>
      %cst_15 = arith.constant dense<0.000000e+00> : vector<8x2xf32>
      %22 = tpu.matmul %20, %21, %cst_15 {dimension_numbers = #tpu.dot_dimension_numbers<[1], [0], [0], [1], [0, 0, 1, 1], [], []>} : vector<8x1024xf32>, vector<1024x2xf32>, vector<8x2xf32> -> vector<8x2xf32>
      %c0_16 = arith.constant 0 : index
      %c0_17 = arith.constant 0 : index
      %23 = vector.load %arg5[%c0_16, %c0_17] : memref<1x2xf32, #tpu.memory_space<vmem>>, vector<1x2xf32>
      %24 = vector.broadcast %23 : vector<1x2xf32> to vector<8x2xf32>
      %25 = arith.addf %22, %24 : vector<8x2xf32>
      %cst_18 = arith.constant 0.000000e+00 : f32
      %26 = vector.broadcast %cst_18 : f32 to vector<8x2xf32>
      %27 = arith.cmpf oge, %25, %26 : vector<8x2xf32>
      %cst_19 = arith.constant 0.00999999977 : f32
      %28 = vector.broadcast %cst_19 : f32 to vector<8x2xf32>
      %29 = arith.mulf %28, %25 : vector<8x2xf32>
      %30 = arith.select %27, %25, %29 : vector<8x2xi1>, vector<8x2xf32>
      %c0_20 = arith.constant 0 : index
      %c0_21 = arith.constant 0 : index
      %31 = vector.load %arg6[%c0_20, %c0_21] : memref<8x2xf32, #tpu.memory_space<vmem>>, vector<8x2xf32>
      tpu.vector_store %arg6[%c0_20, %c0_21], %30 {strides = array<i32>} : memref<8x2xf32, #tpu.memory_space<vmem>>, vector<8x2xf32>,
    } else {
    }
    return
  }
  func.func @transform_0(%arg0: i32) -> (i32, i32) {
    %c0_i32 = arith.constant 0 : i32
    %c0_i32_0 = arith.constant 0 : i32
    return %c0_i32, %arg0 : i32, i32
  }
  func.func @transform_1(%arg0: i32) -> (i32, i32) {
    %c0_i32 = arith.constant 0 : i32
    %c0_i32_0 = arith.constant 0 : i32
    return %arg0, %c0_i32 : i32, i32
  }
  func.func @transform_2(%arg0: i32) -> (i32, i32) {
    %c0_i32 = arith.constant 0 : i32
    %c0_i32_0 = arith.constant 0 : i32
    %c0_i32_1 = arith.constant 0 : i32
    return %c0_i32, %c0_i32_0 : i32, i32
  }
  func.func @transform_3(%arg0: i32) -> (i32, i32) {
    %c0_i32 = arith.constant 0 : i32
    %c0_i32_0 = arith.constant 0 : i32
    %c0_i32_1 = arith.constant 0 : i32
    return %c0_i32, %c0_i32_0 : i32, i32
  }
  func.func @transform_4(%arg0: i32) -> (i32, i32) {
    %c0_i32 = arith.constant 0 : i32
    %c0_i32_0 = arith.constant 0 : i32
    %c0_i32_1 = arith.constant 0 : i32
    return %c0_i32, %c0_i32_0 : i32, i32
  }
  func.func @transform_5(%arg0: i32) -> (i32, i32) {
    %c0_i32 = arith.constant 0 : i32
    %c0_i32_0 = arith.constant 0 : i32
    %c0_i32_1 = arith.constant 0 : i32
    return %c0_i32, %c0_i32_0 : i32, i32
  }
}

</mosaic_0001>

<bundles_post_ra>
// kernel: mynn_forward.2
= control target key start
LH: loop header
LB: loop body
LE: loop exit
PB: predicated region body
PF: predicated region fallthrough
CT: control target
= control target key end

     0   :  { %s5634_s0 = inlined_call_operand.hbm [shape: f32[8,4096], index: 0, kind: input, shape index: {}]   ;;  %s5635_s1 = inlined_call_operand.hbm [shape: f32[4096,2048], index: 1, kind: input, shape index: {}]   ;;  %s5636_s2 = inlined_call_operand.hbm [shape: f32[1,2048], index: 2, kind: input, shape index: {}]   ;;  %s5637_s3 = inlined_call_operand.vmem [shape: f32[8,2048], index: 3, kind: output, shape index: {}]  }
   0x1   :  { %5646 = sst [smem:[#allocation14_spill]] %s5635_s1 }
   0x2   :  { %5647 = sst [smem:[#allocation15_spill]] %s5637_s3 }
   0x3   :  { %8 = vsyncpa [#allocation3], 0 }
   0x4   :  { %10 = vsyncpa [#allocation3 + $0x1], 0 }
   0x5   :  { %11 = vsyncpa [#allocation5], 0 }
   0x6   :  { %13 = vsyncpa [#allocation5 + $0x1], 0  ;;  %s4170_s12 = smov 0   ;;  %s4172_s13 = smov 0  }
   0x7   :  { %s4174_s14 = smov 0   ;;  %s4176_s15 = smov 0  }
   0x8   :  { %s4178_s16 = smov 0   ;;  %s4180_s17 = smov 0  }
   0x9   :  { %s4182_s18 = smov 0   ;;  %s4184_s19 = smov 0  }
   0xa   :  { %s4186_s20 = smov 0   ;;  %s4188_s21 = smov 0  }
   0xb   :  { %s4190_s22 = smov 0   ;;  %s4192_s23 = smov 0  }
   0xc   :  { %s4194_s24 = smov 0   ;;  %s4196_s25 = smov 0  }
   0xd LB: > { %5648 = sst [smem:[#allocation10_spill]] %s4122_s20  ;;  %p5639_p0 = scmp.eq.s32.totalorder %s4142_s25, 0  ;;  %s4142_s25 = sphi %s4196_s25, %s19_s25   ;;  %s4138_s24 = sphi %s4194_s24, %s5694_s24   ;;  %s4134_s23 = sphi %s4192_s23, %s5693_s23   ;;  %s4130_s22 = sphi %s4190_s22, %s5692_s22   ;;  %s4126_s21 = sphi %s4188_s21, %s5691_s21   ;;  %s4122_s20 = sphi %s4186_s20, %s5680_s20   ;;  %s4118_s19 = sphi %s4184_s19, %s5690_s19   ;;  %s4114_s18 = sphi %s4182_s18, %s5689_s18   ;;  %s4110_s17 = sphi %s4180_s17, %s5688_s17   ;;  %s4106_s16 = sphi %s4178_s16, %s5687_s16   ;;  %s4102_s15 = sphi %s4176_s15, %s5686_s15   ;;  %s4098_s14 = sphi %s4174_s14, %s5685_s14   ;;  %s4094_s13 = sphi %s4172_s13, %s5684_s13   ;;  %s4090_s12 = sphi %s4170_s12, %s5683_s12  }
   0xe   : > { %5649 = sst [smem:[#allocation11_spill]] %s4126_s21  ;;  %p73_p1 = scmp.ne.s32.totalorder %s4110_s17, %s4106_s16 }
   0xf   : > { %p5638_p4 = scmp.lt.s32.totalorder %s4142_s25, 8  ;;  %s174_s28 = sand.u32 1, %s4142_s25  }
  0x10   : > { %p75_p3 = por %p73_p1, %p5639_p0  ;;  %s176_s29 = sand.u32 1, %s4110_s17  }
  0x11   : > { %s2720_s30 = sshll.u32 %s176_s29, 13  ;;  %s2722_s4 = sshll.u32 %s4138_s24, 3 }
  0x12   : > { %s2740_s5 = sshll.u32 %s4134_s23, 11  ;;  %s178_s6 = scalar_lea.vmem [#allocation4], %s2720_s30 }
  0x13   : > { %s188_s7 = sshll.u32 %s178_s6, 4  ;;  %s185_s8 = sadd.s32 %s2740_s5, %s2722_s4  ;;  %s4254_s7 = int_to_ptr.vmem [resolvable:$true] %s188_s7 }
  0x14   : > { %s2724_s9 = sshll.u32 %s185_s8, 7  ;;  %p4258_p5 = pnand %p5638_p4, %p75_p3 }
  0x15   : > { %s5651_s1 = sld [smem:[#allocation14_spill]]  ;;  %p2728_p6 = scmp.ge.s32.totalorder %s4142_s25, 1 }
  0x16   : > { %s4268_s29 = scalar_lea.sflag [#allocation5], %s174_s28  ;;  %p3932_p8 = pneg %p4258_p5 }
  0x1b   : > { %s4265_s26 = scalar_lea.hbm %s5651_s1, %s2724_s9  ;;  %s3935_s5 = scalar_lea.hbm %s5651_s1, 1048576 }
  0x1c   : > { %s3930_s30 = scalar_lea.hbm %s4265_s26, 131072  ;;  %p3936_p11 = scmp.lt.u32.totalorder %s4265_s26, %s5651_s1 }
  0x1d   : > { %p3931_p7 = scmp.ne.s32.totalorder %s4265_s26, %s3930_s30  ;;  %p3937_p12 = scmp.lt.u32.totalorder %s3935_s5, %s3930_s30 }
  0x1e   : > { %p3939_p1 = scmp.lt.u32.totalorder %s3930_s30, %s4265_s26 }
  0x1f   : > { %p3933_p9 = pnand %p3932_p8, %p3931_p7  ;;  %p3938_p13 = por %p3937_p12, %p3936_p11 }
  0x21   : > { %p3934_p10 = pneg %p3933_p9  ;;  %p3940_p3 = por %p3939_p1, %p3938_p13 }
  0x23   : > { %p3941_p4 = pnand %p3940_p3, %p3934_p10 }
  0x25   : > { %3944 = shalt.err (!%p3941_p4)
}
  0x26   : > { %s3945_s28 = scalar_lea.vmem %s4254_s7, 131072  ;;  %s4144_s9 = smov [#allocation4]  }
  0x27   : > { %p3946_p7 = scmp.ne.s32.totalorder %s4254_s7, %s3945_s28  ;;  %s3950_s11 = sshll.u32 %s4144_s9, 4  ;;  %s3951_s11 = int_to_ptr.vmem [resolvable:$false] %s3950_s11 }
  0x28   : > { %s3952_s27 = scalar_lea.vmem %s3951_s11, 262144  ;;  %p3953_p0 = scmp.lt.s32.totalorder %s4254_s7, %s3951_s11 }
  0x29   : > { %p3948_p9 = pnand %p3946_p7, %p3932_p8  ;;  %p3954_p11 = scmp.lt.s32.totalorder %s3952_s27, %s3945_s28 }
  0x2b   : > { %p3949_p2 = pneg %p3948_p9  ;;  %p3955_p12 = por %p3954_p11, %p3953_p0 }
  0x2d   : > { %p3956_p13 = pnand %p3955_p12, %p3949_p2 }
  0x2f   : > { %3959 = shalt.err (!%p3956_p13)
}
  0x30   : > { %s4145_s30 = smov 2048   ;;  %s4146_s4 = smov 1024  }
  0x31   : > { %s4147_s5 = smov 64   ;;  %p215_p0 = scmp.lt.s32.totalorder %s4142_s25, 9 }
  0x32   : > { %3802 = dma.hbm_to_vmem [thread:$0]  (!%p4258_p5), %s4265_s26, 131072, %s4254_s7, %s4268_s29, %s4145_s30, %s4146_s4, %s4147_s5  }
  0x33   : > { %p4299_p2 = pnand %p2728_p6, %p215_p0  ;;  %s5640_s8 = sadd.s32 4294967295, %s4142_s25  }
  0x34   : > { %s28_s28 = sadd.s32 1, %s4134_s23  ;;  %s38_s9 = sadd.s32 1, %s4122_s20 }
  0x35   : > { %s5652_s6 = scalar_select %p4299_p2, 1, 0 }
  0x36   : > { %p29_p4 = scmp.ge.s32.totalorder %s28_s28, 4  ;;  %p45_p8 = scmp.ne.s32.totalorder %s4122_s20, %s4118_s19 }
  0x37   : > { %p51_p10 = scmp.ne.s32.totalorder %s4118_s19, %s4114_s18  ;;  %s5654_s26 = sadd.s32 1, %s4138_s24 }
  0x38   : > { %s5696_s28 = smov (%p29_p4, %s28_s28), 0  ;;  %s5698_s26 = smov (!%p29_p4, %s5654_s26), %s4138_s24 }
  0x39   : > { %5653 = sst [smem:[#allocation12_spill]] %s5696_s28  ;;  %s35_s7 = ssub.s32 %s4134_s23, %s5696_s28 }
  0x3a   : > { %p5655_p5 = scmp.eq.s32.totalorder %s4142_s25, 0  ;;  %p33_p1 = scmp.ge.s32.totalorder %s5698_s26, 2 }
  0x3b   : > { %p36_p3 = scmp.eq.s32.totalorder %s35_s7, 0  ;;  %p4325_p7 = scmp.eq.s32.totalorder %s5640_s8, 0 }
  0x3c   : > { %p4319_p6 = por %p5655_p5, %p45_p8  ;;  %s155_s11 = sand.u32 1, %s4122_s20  }
  0x3d   : > { %s5700_s26 = smov (%p33_p1, %s5698_s26), 0  ;;  %p4337_p9 = por %p4325_p7, %p51_p10 }
  0x3e   : > { %s4333_s27 = scalar_select %p36_p3, %s4122_s20, %s38_s9  }
  0x3f   : > { %s5659_s30 = scalar_select %p4337_p9, 1, 0 }
  0x40   : > { %5658 = sst [smem:[#allocation13_spill]] %s4333_s27  ;;  %s4343_s4 = ssub.s32 %s4138_s24, %s5700_s26 }
  0x41   : > { %s63_s5 = sor.u32 %s4343_s4, %s35_s7  ;;  %p5660_p11 = scmp.ne.s32.totalorder %s4106_s16, %s4102_s15 }
  0x42   : > { %p64_p13 = scmp.eq.s32.totalorder %s63_s5, 0  ;;  %s2717_s1 = sshll.u32 %s155_s11, 6 }
  0x43   : > { %p4351_p12 = por %p5660_p11, %p4325_p7  ;;  %s2739_s28 = sshll.u32 %s4134_s23, 10 }
  0x44   : > { %s5662_s9 = sadd.s32 1, %s4110_s17  ;;  %s4364_s3 = scalar_lea.hbm %s5634_s0, %s2739_s28 }
  0x45   : > { %s5661_s8 = scalar_select %p4351_p12, 1, 0 }
  0x46   : > { %s4359_s27 = scalar_select %p64_p13, %s4110_s17, %s5662_s9  }
  0x47   : > { %s159_s15 = scalar_lea.vmem [#allocation2], %s2717_s1  ;;  %p5663_p0 = scmp.lt.s32.totalorder %s4142_s25, 8 }
  0x48   : > { %s167_s7 = sshll.u32 %s159_s15, 4  ;;  %s156_s9 = scalar_lea.sflag [#allocation3], %s155_s11  ;;  %s4374_s7 = int_to_ptr.vmem [resolvable:$true] %s167_s7 }
  0x49   : > { %p4370_p4 = pnand %p5663_p0, %p4319_p6  ;;  %s3960_s20 = scalar_lea.hbm %s4364_s3, 1024 }
  0x4a   : > { %p3961_p8 = scmp.ne.s32.totalorder %s4364_s3, %s3960_s20  ;;  %s3965_s28 = scalar_lea.hbm %s5634_s0, 4096 }
  0x4b   : > { %p3962_p10 = pneg %p4370_p4  ;;  %p3966_p6 = scmp.lt.u32.totalorder %s4364_s3, %s5634_s0 }
  0x4c   : > { %p3967_p3 = scmp.lt.u32.totalorder %s3965_s28, %s3960_s20  ;;  %p3969_p13 = scmp.lt.u32.totalorder %s3960_s20, %s4364_s3 }
  0x4d   : > { %p3963_p5 = pnand %p3962_p10, %p3961_p8 }
  0x4e   : > { %p3968_p11 = por %p3967_p3, %p3966_p6 }
  0x4f   : > { %p3964_p1 = pneg %p3963_p5 }
  0x50   : > { %p3970_p0 = por %p3969_p13, %p3968_p11 }
  0x52   : > { %p3971_p12 = pnand %p3970_p0, %p3964_p1 }
  0x54   : > { %3974 = shalt.err (!%p3971_p12)
}
  0x55   : > { %s3975_s11 = scalar_lea.vmem %s4374_s7, 1024  ;;  %s4148_s1 = smov [#allocation2]  }
  0x56   : > { %p3976_p8 = scmp.ne.s32.totalorder %s4374_s7, %s3975_s11  ;;  %s3980_s21 = sshll.u32 %s4148_s1, 4  ;;  %s3981_s21 = int_to_ptr.vmem [resolvable:$false] %s3980_s21 }
  0x57   : > { %s3982_s10 = scalar_lea.vmem %s3981_s21, 2048  ;;  %p3983_p2 = scmp.lt.s32.totalorder %s4374_s7, %s3981_s21 }
  0x58   : > { %p3978_p5 = pnand %p3976_p8, %p3962_p10  ;;  %p3984_p6 = scmp.lt.s32.totalorder %s3982_s10, %s3975_s11 }
  0x5a   : > { %p3979_p9 = pneg %p3978_p5  ;;  %p3985_p3 = por %p3984_p6, %p3983_p2 }
  0x5c   : > { %p3986_p11 = pnand %p3985_p3, %p3979_p9 }
  0x5e   : > { %3989 = shalt.err (!%p3986_p11)
}
  0x5f   : > { %3799 = dma.hbm_to_vmem [thread:$0]  (!%p4370_p4), %s4364_s3, 1024, %s4374_s7, %s156_s9  }
  0x60   : > { %p90_p2 = scmp.eq.s32.totalorder %s4343_s4, 0  ;;  %s92_s20 = sadd.s32 1, %s4098_s14 }
  0x61   : > { %p99_p9 = scmp.ne.s32.totalorder %s4098_s14, %s4094_s13  ;;  %p105_p12 = scmp.ne.s32.totalorder %s4094_s13, %s4090_s12 }
  0x62   : > { %s4408_s5 = scalar_select %p90_p2, %s4098_s14, %s92_s20  }
  0x63   : > { %p5665_p10 = scmp.eq.s32.totalorder %s4142_s25, 0  ;;  %p4414_p13 = por %p105_p12, %p4325_p7 }
  0x64   : > { %s200_s15 = sand.u32 1, %s4098_s14   ;;  %s2741_s11 = sshll.u32 %s4138_s24, 7 }
  0x65   : > { %p101_p1 = por %p99_p9, %p5665_p10  ;;  %s2725_s1 = sshll.u32 %s200_s15, 3 }
  0x66   : > { %s5666_s28 = scalar_select %p4414_p13, 1, 0 }
  0x67   : > { %s4423_s3 = scalar_lea.hbm %s5636_s2, %s2741_s11  ;;  %p5667_p4 = scmp.lt.s32.totalorder %s4142_s25, 8 }
  0x68   : > { %s202_s18 = scalar_lea.vmem [#allocation6], %s2725_s1  ;;  %s3990_s7 = scalar_lea.hbm %s4423_s3, 128 }
  0x69   : > { %p4427_p0 = pnand %p5667_p4, %p101_p1  ;;  %s210_s4 = sshll.u32 %s202_s18, 4  ;;  %s211_s4 = int_to_ptr.vmem [resolvable:$true] %s210_s4 }
  0x6a   : > { %p3991_p7 = scmp.ne.s32.totalorder %s4423_s3, %s3990_s7  ;;  %s3995_s15 = scalar_lea.hbm %s5636_s2, 256 }
  0x6b   : > { %p3992_p8 = pneg %p4427_p0  ;;  %p3996_p3 = scmp.lt.u32.totalorder %s4423_s3, %s5636_s2 }
  0x6c   : > { %p3997_p11 = scmp.lt.u32.totalorder %s3995_s15, %s3990_s7  ;;  %p3999_p9 = scmp.lt.u32.totalorder %s3990_s7, %s4423_s3 }
  0x6d   : > { %p3993_p5 = pnand %p3992_p8, %p3991_p7 }
  0x6e   : > { %p3998_p2 = por %p3997_p11, %p3996_p3 }
  0x6f   : > { %p3994_p6 = pneg %p3993_p5 }
  0x70   : > { %p4000_p12 = por %p3999_p9, %p3998_p2 }
  0x72   : > { %p4001_p10 = pnand %p4000_p12, %p3994_p6 }
  0x74   : > { %4004 = shalt.err (!%p4001_p10)
}
  0x75   : > { %s4005_s1 = scalar_lea.vmem %s211_s4, 128  ;;  %s4149_s10 = smov [#allocation6]  }
  0x76   : > { %p4006_p1 = scmp.ne.s32.totalorder %s211_s4, %s4005_s1  ;;  %s4010_s18 = sshll.u32 %s4149_s10, 4  ;;  %s4011_s18 = int_to_ptr.vmem [resolvable:$false] %s4010_s18 }
  0x77   : > { %s4012_s9 = scalar_lea.vmem %s4011_s18, 256  ;;  %p4013_p5 = scmp.lt.s32.totalorder %s211_s4, %s4011_s18 }
  0x78   : > { %p4008_p4 = pnand %p4006_p1, %p3992_p8  ;;  %p4014_p13 = scmp.lt.s32.totalorder %s4012_s9, %s4005_s1 }
  0x7a   : > { %p4009_p7 = pneg %p4008_p4  ;;  %p4015_p3 = por %p4014_p13, %p4013_p5 }
  0x7c   : > { %p4016_p11 = pnand %p4015_p3, %p4009_p7 }
  0x7e   : > { %4019 = shalt.err (!%p4016_p11)
}
  0x7f   : > { %3805 = dma.hbm_to_vmem [thread:$0]  (!%p4427_p0), %s4423_s3, 128, %s211_s4, %s4268_s29  }
  0x80   : > { %p5669_p6 = scmp.ne.s32.totalorder %s5652_s6, 0 }
  0x81   : > { %s221_s7 = sand.u32 (!%p5669_p6), 1, %s4118_s19   ;;  %p5670_p8 = scmp.ne.s32.totalorder (!%p5669_p6), %s5659_s30, 0 }
  0x82   : > { %219 = sbr.rel (%p5669_p6) target bundleno = 920 (0x398), region = 32  ;;  %s2729_s20 = sshll.u32 (!%p5669_p6), %s221_s7, 6 }
  0x83   : > { %s222_s15 = scalar_lea.sflag (!%p5669_p6), [#allocation3], %s221_s7  ;;  %s4456_s11 = scalar_lea.vmem (!%p5669_p6), [#allocation2], %s2729_s20 }
  0x89   : > { %4077 = dma.done.wait (%p5670_p8), %s222_s15, 1024  }
  0x8a   : > { %4079 = vsyncadd (%p5670_p8), %s222_s15, 4294966272  ;;  %s5671_s12 = sadd.s32 4294967295, %s4142_s25   ;;  %s232_s3 = sand.u32 1, %s4106_s16  }
  0x8b   : > { %s230_s29 = sand.u32 1, %s5671_s12   ;;  %s2730_s6 = sshll.u32 %s232_s3, 13 }
  0x8c   : > { %s231_s4 = scalar_lea.sflag [#allocation5], %s230_s29  ;;  %s4465_s21 = scalar_lea.vmem [#allocation4], %s2730_s6 }
  0x8d   : > { %p5672_p13 = scmp.ne.s32.totalorder %s5661_s8, 0 }
  0x8f   : > { %4081 = dma.done.wait (%p5672_p13), %s231_s4, 131072  }
  0x90   : > { %4083 = vsyncadd (%p5672_p13), %s231_s4, 4294836224  ;;  %s241_s1 = sand.u32 1, %s4094_s13   ;;  %p5673_p0 = scmp.ne.s32.totalorder %s5666_s28, 0 }
  0x91   : > { %s4472_s30 = sshll.u32 %s241_s1, 3 }
  0x92   : > { %s243_s10 = scalar_lea.vmem [#allocation6], %s4472_s30 }
  0x93   : > { %4085 = dma.done.wait (%p5673_p0), %s231_s4, 128  }
  0x94   : > { %4087 = vsyncadd (%p5673_p0), %s231_s4, 4294967168  ;;  %s2732_s8 = sshll.u32 %s4130_s22, 3  ;;  %s5674_s20 = sld [smem:[#allocation15_spill]]  ;;  %v295_v0 = vld [vmem:[%s4465_s21 + $0x8] sm:$0xff]  ;;  %v297_v2 = vld [vmem:[%s4465_s21 + $0x18] sm:$0xff] }
  0x95   : > { %p281_p2 = scmp.lt.s32.totalorder %s2732_s8, 15  ;;  %v303_v1 = vld [vmem:[%s4465_s21 + $0x48] sm:$0xff]  ;;  %v305_v4 = vld [vmem:[%s4465_s21 + $0x58] sm:$0xff]  ;;  %v294_v5 = vld [vmem:[%s4465_s21] sm:$0xff]  ;;  %s5675_s22 = sld [smem:[#allocation11_spill]] }
  0x96   : > { %v2742_v3 = vpack.c.bf16 %v303_v1, %v295_v0  ;;  %v302_v6 = vld [vmem:[%s4465_s21 + $0x40] sm:$0xff]  ;;  %v2998_v7 = vpack.c.bf16 %v305_v4, %v297_v2  ;;  %v296_v9 = vld [vmem:[%s4465_s21 + $0x10] sm:$0xff]  ;;  %v311_v11 = vld [vmem:[%s4465_s21 + $0x88] sm:$0xff] }
  0x97   : > { %s5702_s8 = smov (!%p281_p2, %s2732_s8), 15  ;;  %v2744_v8 = vpack.c.bf16 %v302_v6, %v294_v5  ;;  %v304_v10 = vld [vmem:[%s4465_s21 + $0x50] sm:$0xff]  ;;  %v319_v13 = vld [vmem:[%s4465_s21 + $0xc8] sm:$0xff]  ;;  %v313_v14 = vld [vmem:[%s4465_s21 + $0x98] sm:$0xff] }
  0x98   : > { %s2733_s18 = sshll.u32 %s5702_s8, 3  ;;  %2743 = vmatprep.subr.bf16.mxu0 %v2742_v3  ;;  %v3000_v12 = vpack.c.bf16 %v304_v10, %v296_v9  ;;  %v321_v15 = vld [vmem:[%s4465_s21 + $0xd8] sm:$0xff]  ;;  %2999 = vmatprep.subr.bf16.mxu1 %v2998_v7  ;;  %v2746_v16 = vpack.c.bf16 %v319_v13, %v311_v11  ;;  %v310_v18 = vld [vmem:[%s4465_s21 + $0x80] sm:$0xff]  ;;  %v312_v20 = vld [vmem:[%s4465_s21 + $0x90] sm:$0xff] }
  0x99   : > { %2745 = vmatpush1.bf16.msra.mxu0 %v2744_v8  ;;  %v3002_v17 = vpack.c.bf16 %v321_v15, %v313_v14  ;;  %v318_v19 = vld [vmem:[%s4465_s21 + $0xc0] sm:$0xff]  ;;  %v320_v22 = vld [vmem:[%s4465_s21 + $0xd0] sm:$0xff]  ;;  %v327_v23 = vld [vmem:[%s4465_s21 + $0x108] sm:$0xff] }
  0x9a   : > { %s4483_s28 = scalar_lea.vmem %s5674_s20, %s2733_s18  ;;  %3001 = vmatpush1.bf16.msra.mxu1 %v3000_v12  ;;  %v2748_v21 = vpack.c.bf16 %v318_v19, %v310_v18  ;;  %v335_v24 = vld [vmem:[%s4465_s21 + $0x148] sm:$0xff]  ;;  %2747 = vmatprep.subr.bf16.mxu0 %v2746_v16  ;;  %v3004_v25 = vpack.c.bf16 %v320_v22, %v312_v20  ;;  %v329_v27 = vld [vmem:[%s4465_s21 + $0x118] sm:$0xff]  ;;  %v326_v29 = vld [vmem:[%s4465_s21 + $0x100] sm:$0xff] }
  0x9b   : > { %3003 = vmatprep.subr.bf16.mxu1 %v3002_v17  ;;  %v2750_v26 = vpack.c.bf16 %v335_v24, %v327_v23  ;;  %v337_v28 = vld [vmem:[%s4465_s21 + $0x158] sm:$0xff]  ;;  %v334_v31 = vld [vmem:[%s4465_s21 + $0x140] sm:$0xff]  ;;  %v328_v32 = vld [vmem:[%s4465_s21 + $0x110] sm:$0xff]  ;;  %p2734_p9 = scmp.ne.s32.totalorder %s5675_s22, 0 }
  0x9c   : > { %v3006_v30 = vpack.c.bf16 %v337_v28, %v329_v27  ;;  %v336_v33 = vld [vmem:[%s4465_s21 + $0x150] sm:$0xff]  ;;  %v2752_v34 = vpack.c.bf16 %v334_v31, %v326_v29  ;;  %v343_v35 = vld [vmem:[%s4465_s21 + $0x188] sm:$0xff]  ;;  %v345_v37 = vld [vmem:[%s4465_s21 + $0x198] sm:$0xff] }
  0x9d   : > { %2749 = vmatpush1.bf16.msra.mxu0 %v2748_v21  ;;  %v351_v36 = vld [vmem:[%s4465_s21 + $0x1c8] sm:$0xff]  ;;  %v3008_v38 = vpack.c.bf16 %v336_v33, %v328_v32  ;;  %v353_v40 = vld [vmem:[%s4465_s21 + $0x1d8] sm:$0xff]  ;;  %v342_v41 = vld [vmem:[%s4465_s21 + $0x180] sm:$0xff] }
  0x9e   : > { %3005 = vmatpush1.bf16.msra.mxu1 %v3004_v25  ;;  %2751 = vmatprep.subr.bf16.mxu0 %v2750_v26  ;;  %v2754_v39 = vpack.c.bf16 %v351_v36, %v343_v35  ;;  %v350_v42 = vld [vmem:[%s4465_s21 + $0x1c0] sm:$0xff]  ;;  %v3010_v43 = vpack.c.bf16 %v353_v40, %v345_v37  ;;  %v344_v44 = vld [vmem:[%s4465_s21 + $0x190] sm:$0xff]  ;;  %v359_v46 = vld [vmem:[%s4465_s21 + $0x208] sm:$0xff] }
  0x9f   : > { %3007 = vmatprep.subr.bf16.mxu1 %v3006_v30  ;;  %v352_v45 = vld [vmem:[%s4465_s21 + $0x1d0] sm:$0xff]  ;;  %v367_v47 = vld [vmem:[%s4465_s21 + $0x248] sm:$0xff]  ;;  %v361_v48 = vld [vmem:[%s4465_s21 + $0x218] sm:$0xff]  ;;  %v2756_v50 = vpack.c.bf16 %v350_v42, %v342_v41 }
  0xa0   : > { %v369_v49 = vld [vmem:[%s4465_s21 + $0x258] sm:$0xff]  ;;  %v3012_v51 = vpack.c.bf16 %v352_v45, %v344_v44  ;;  %v2758_v52 = vpack.c.bf16 %v367_v47, %v359_v46  ;;  %v358_v53 = vld [vmem:[%s4465_s21 + $0x200] sm:$0xff]  ;;  %v360_v55 = vld [vmem:[%s4465_s21 + $0x210] sm:$0xff] }
  0xa1   : > { %2753 = vmatpush1.bf16.msra.mxu0 %v2752_v34  ;;  %v366_v54 = vld [vmem:[%s4465_s21 + $0x240] sm:$0xff]  ;;  %v3014_v56 = vpack.c.bf16 %v369_v49, %v361_v48  ;;  %v368_v57 = vld [vmem:[%s4465_s21 + $0x250] sm:$0xff]  ;;  %v375_v58 = vld [vmem:[%s4465_s21 + $0x288] sm:$0xff] }
  0xa2   : > { %3009 = vmatpush1.bf16.msra.mxu1 %v3008_v38  ;;  %2755 = vmatprep.subr.bf16.mxu0 %v2754_v39  ;;  %v383_v59 = vld [vmem:[%s4465_s21 + $0x2c8] sm:$0xff]  ;;  %v377_v60 = vld [vmem:[%s4465_s21 + $0x298] sm:$0xff]  ;;  %v2760_v62 = vpack.c.bf16 %v366_v54, %v358_v53  ;;  %v3016_v63 = vpack.c.bf16 %v368_v57, %v360_v55  ;;  %v374_v1 = vld [vmem:[%s4465_s21 + $0x280] sm:$0xff] }
  0xa3   : > { %3011 = vmatprep.subr.bf16.mxu1 %v3010_v43  ;;  %v385_v61 = vld [vmem:[%s4465_s21 + $0x2d8] sm:$0xff]  ;;  %v2762_v0 = vpack.c.bf16 %v383_v59, %v375_v58  ;;  %v382_v2 = vld [vmem:[%s4465_s21 + $0x2c0] sm:$0xff]  ;;  %v376_v3 = vld [vmem:[%s4465_s21 + $0x290] sm:$0xff] }
  0xa4   : > { %v3018_v4 = vpack.c.bf16 %v385_v61, %v377_v60  ;;  %v384_v5 = vld [vmem:[%s4465_s21 + $0x2d0] sm:$0xff]  ;;  %v391_v6 = vld [vmem:[%s4465_s21 + $0x308] sm:$0xff]  ;;  %v393_v8 = vld [vmem:[%s4465_s21 + $0x318] sm:$0xff]  ;;  %v2764_v10 = vpack.c.bf16 %v382_v2, %v374_v1 }
  0xa5   : > { %2757 = vmatpush1.bf16.msra.mxu0 %v2756_v50  ;;  %v399_v7 = vld [vmem:[%s4465_s21 + $0x348] sm:$0xff]  ;;  %v401_v9 = vld [vmem:[%s4465_s21 + $0x358] sm:$0xff]  ;;  %v3020_v11 = vpack.c.bf16 %v384_v5, %v376_v3  ;;  %v390_v13 = vld [vmem:[%s4465_s21 + $0x300] sm:$0xff] }
  0xa6   : > { %3013 = vmatpush1.bf16.msra.mxu1 %v3012_v51  ;;  %2759 = vmatprep.subr.bf16.mxu0 %v2758_v52  ;;  %v2766_v12 = vpack.c.bf16 %v399_v7, %v391_v6  ;;  %v398_v14 = vld [vmem:[%s4465_s21 + $0x340] sm:$0xff]  ;;  %v392_v15 = vld [vmem:[%s4465_s21 + $0x310] sm:$0xff]  ;;  %v3022_v16 = vpack.c.bf16 %v401_v9, %v393_v8  ;;  %v407_v18 = vld [vmem:[%s4465_s21 + $0x388] sm:$0xff] }
  0xa7   : > { %3015 = vmatprep.subr.bf16.mxu1 %v3014_v56  ;;  %v400_v17 = vld [vmem:[%s4465_s21 + $0x350] sm:$0xff]  ;;  %v415_v19 = vld [vmem:[%s4465_s21 + $0x3c8] sm:$0xff]  ;;  %v409_v20 = vld [vmem:[%s4465_s21 + $0x398] sm:$0xff]  ;;  %v2768_v22 = vpack.c.bf16 %v398_v14, %v390_v13 }
  0xa8   : > { %v417_v21 = vld [vmem:[%s4465_s21 + $0x3d8] sm:$0xff]  ;;  %v3024_v23 = vpack.c.bf16 %v400_v17, %v392_v15  ;;  %v2770_v24 = vpack.c.bf16 %v415_v19, %v407_v18  ;;  %v406_v25 = vld [vmem:[%s4465_s21 + $0x380] sm:$0xff]  ;;  %v408_v27 = vld [vmem:[%s4465_s21 + $0x390] sm:$0xff] }
  0xa9   : > { %2761 = vmatpush1.bf16.msra.mxu0 %v2760_v62  ;;  %v414_v26 = vld [vmem:[%s4465_s21 + $0x3c0] sm:$0xff]  ;;  %v3026_v28 = vpack.c.bf16 %v417_v21, %v409_v20  ;;  %v416_v29 = vld [vmem:[%s4465_s21 + $0x3d0] sm:$0xff]  ;;  %v423_v30 = vld [vmem:[%s4465_s21 + $0x408] sm:$0xff] }
  0xaa   : > { %3017 = vmatpush1.bf16.msra.mxu1 %v3016_v63  ;;  %2763 = vmatprep.subr.bf16.mxu0 %v2762_v0  ;;  %v431_v31 = vld [vmem:[%s4465_s21 + $0x448] sm:$0xff]  ;;  %v425_v32 = vld [vmem:[%s4465_s21 + $0x418] sm:$0xff]  ;;  %v2772_v34 = vpack.c.bf16 %v414_v26, %v406_v25  ;;  %v3028_v35 = vpack.c.bf16 %v416_v29, %v408_v27  ;;  %v422_v37 = vld [vmem:[%s4465_s21 + $0x400] sm:$0xff] }
  0xab   : > { %3019 = vmatprep.subr.bf16.mxu1 %v3018_v4  ;;  %v433_v33 = vld [vmem:[%s4465_s21 + $0x458] sm:$0xff]  ;;  %v2774_v36 = vpack.c.bf16 %v431_v31, %v423_v30  ;;  %v430_v38 = vld [vmem:[%s4465_s21 + $0x440] sm:$0xff]  ;;  %v424_v39 = vld [vmem:[%s4465_s21 + $0x410] sm:$0xff] }
  0xac   : > { %v3030_v40 = vpack.c.bf16 %v433_v33, %v425_v32  ;;  %v432_v41 = vld [vmem:[%s4465_s21 + $0x450] sm:$0xff]  ;;  %v439_v42 = vld [vmem:[%s4465_s21 + $0x488] sm:$0xff]  ;;  %v441_v44 = vld [vmem:[%s4465_s21 + $0x498] sm:$0xff]  ;;  %v2776_v46 = vpack.c.bf16 %v430_v38, %v422_v37 }
  0xad   : > { %2765 = vmatpush1.bf16.msra.mxu0 %v2764_v10  ;;  %v447_v43 = vld [vmem:[%s4465_s21 + $0x4c8] sm:$0xff]  ;;  %v449_v45 = vld [vmem:[%s4465_s21 + $0x4d8] sm:$0xff]  ;;  %v3032_v47 = vpack.c.bf16 %v432_v41, %v424_v39  ;;  %v438_v49 = vld [vmem:[%s4465_s21 + $0x480] sm:$0xff] }
  0xae   : > { %3021 = vmatpush1.bf16.msra.mxu1 %v3020_v11  ;;  %2767 = vmatprep.subr.bf16.mxu0 %v2766_v12  ;;  %v2778_v48 = vpack.c.bf16 %v447_v43, %v439_v42  ;;  %v446_v50 = vld [vmem:[%s4465_s21 + $0x4c0] sm:$0xff]  ;;  %v440_v51 = vld [vmem:[%s4465_s21 + $0x490] sm:$0xff]  ;;  %v3034_v52 = vpack.c.bf16 %v449_v45, %v441_v44  ;;  %v455_v54 = vld [vmem:[%s4465_s21 + $0x508] sm:$0xff] }
  0xaf   : > { %3023 = vmatprep.subr.bf16.mxu1 %v3022_v16  ;;  %v448_v53 = vld [vmem:[%s4465_s21 + $0x4d0] sm:$0xff]  ;;  %v463_v55 = vld [vmem:[%s4465_s21 + $0x548] sm:$0xff]  ;;  %v457_v56 = vld [vmem:[%s4465_s21 + $0x518] sm:$0xff]  ;;  %v2780_v58 = vpack.c.bf16 %v446_v50, %v438_v49 }
  0xb0   : > { %v465_v57 = vld [vmem:[%s4465_s21 + $0x558] sm:$0xff]  ;;  %v3036_v59 = vpack.c.bf16 %v448_v53, %v440_v51  ;;  %v2782_v60 = vpack.c.bf16 %v463_v55, %v455_v54  ;;  %v454_v61 = vld [vmem:[%s4465_s21 + $0x500] sm:$0xff]  ;;  %v456_v63 = vld [vmem:[%s4465_s21 + $0x510] sm:$0xff] }
  0xb1   : > { %2769 = vmatpush1.bf16.msra.mxu0 %v2768_v22  ;;  %v462_v62 = vld [vmem:[%s4465_s21 + $0x540] sm:$0xff]  ;;  %v3038_v0 = vpack.c.bf16 %v465_v57, %v457_v56  ;;  %v464_v1 = vld [vmem:[%s4465_s21 + $0x550] sm:$0xff]  ;;  %v471_v2 = vld [vmem:[%s4465_s21 + $0x588] sm:$0xff] }
  0xb2   : > { %3025 = vmatpush1.bf16.msra.mxu1 %v3024_v23  ;;  %2771 = vmatprep.subr.bf16.mxu0 %v2770_v24  ;;  %v479_v3 = vld [vmem:[%s4465_s21 + $0x5c8] sm:$0xff]  ;;  %v473_v4 = vld [vmem:[%s4465_s21 + $0x598] sm:$0xff]  ;;  %v2784_v6 = vpack.c.bf16 %v462_v62, %v454_v61  ;;  %v470_v7 = vld [vmem:[%s4465_s21 + $0x580] sm:$0xff]  ;;  %v3040_v8 = vpack.c.bf16 %v464_v1, %v456_v63 }
  0xb3   : > { %3027 = vmatprep.subr.bf16.mxu1 %v3026_v28  ;;  %v481_v5 = vld [vmem:[%s4465_s21 + $0x5d8] sm:$0xff]  ;;  %v2786_v9 = vpack.c.bf16 %v479_v3, %v471_v2  ;;  %v478_v10 = vld [vmem:[%s4465_s21 + $0x5c0] sm:$0xff]  ;;  %v472_v11 = vld [vmem:[%s4465_s21 + $0x590] sm:$0xff] }
  0xb4   : > { %v480_v12 = vld [vmem:[%s4465_s21 + $0x5d0] sm:$0xff]  ;;  %v3042_v13 = vpack.c.bf16 %v481_v5, %v473_v4  ;;  %v487_v14 = vld [vmem:[%s4465_s21 + $0x608] sm:$0xff]  ;;  %v489_v17 = vld [vmem:[%s4465_s21 + $0x618] sm:$0xff]  ;;  %v2788_v19 = vpack.c.bf16 %v478_v10, %v470_v7 }
  0xb5   : > { %2773 = vmatpush1.bf16.msra.mxu0 %v2772_v34  ;;  %v495_v15 = vld [vmem:[%s4465_s21 + $0x648] sm:$0xff]  ;;  %v497_v18 = vld [vmem:[%s4465_s21 + $0x658] sm:$0xff]  ;;  %v3044_v20 = vpack.c.bf16 %v480_v12, %v472_v11  ;;  %v486_v22 = vld [vmem:[%s4465_s21 + $0x600] sm:$0xff] }
  0xb6   : > { %3029 = vmatpush1.bf16.msra.mxu1 %v3028_v35  ;;  %2775 = vmatprep.subr.bf16.mxu0 %v2774_v36  ;;  %v287_v16 = vld [vmem:[%s4456_s11 + $0x8] sm:$0xff]  ;;  %v2790_v21 = vpack.c.bf16 %v495_v15, %v487_v14  ;;  %v494_v23 = vld [vmem:[%s4465_s21 + $0x640] sm:$0xff]  ;;  %v488_v24 = vld [vmem:[%s4465_s21 + $0x610] sm:$0xff]  ;;  %v3046_v25 = vpack.c.bf16 %v497_v18, %v489_v17 }
  0xb7   : > { %3031 = vmatprep.subr.bf16.mxu1 %v3030_v40  ;;  %1382 = vmatprep.mubr.f32.mxu0 %v287_v16  ;;  %v496_v26 = vld [vmem:[%s4465_s21 + $0x650] sm:$0xff]  ;;  %v503_v27 = vld [vmem:[%s4465_s21 + $0x688] sm:$0xff]  ;;  %v505_v29 = vld [vmem:[%s4465_s21 + $0x698] sm:$0xff]  ;;  %v2792_v31 = vpack.c.bf16 %v494_v23, %v486_v22 }
  0xb8   : > { %1666 = vmatprep.mubr.f32.mxu1 %v287_v16  ;;  %v511_v28 = vld [vmem:[%s4465_s21 + $0x6c8] sm:$0xff]  ;;  %v513_v30 = vld [vmem:[%s4465_s21 + $0x6d8] sm:$0xff]  ;;  %v3048_v32 = vpack.c.bf16 %v496_v26, %v488_v24  ;;  %v502_v34 = vld [vmem:[%s4465_s21 + $0x680] sm:$0xff] }
  0xb9   : > { %2777 = vmatpush1.bf16.msra.mxu0 %v2776_v46  ;;  %v2794_v33 = vpack.c.bf16 %v511_v28, %v503_v27  ;;  %v510_v35 = vld [vmem:[%s4465_s21 + $0x6c0] sm:$0xff]  ;;  %v504_v36 = vld [vmem:[%s4465_s21 + $0x690] sm:$0xff]  ;;  %v3050_v37 = vpack.c.bf16 %v513_v30, %v505_v29  ;;  %v519_v39 = vld [vmem:[%s4465_s21 + $0x708] sm:$0xff] }
  0xba   : > { %3033 = vmatpush1.bf16.msra.mxu1 %v3032_v47  ;;  %2779 = vmatprep.subr.bf16.mxu0 %v2778_v48  ;;  %v512_v38 = vld [vmem:[%s4465_s21 + $0x6d0] sm:$0xff]  ;;  %v527_v40 = vld [vmem:[%s4465_s21 + $0x748] sm:$0xff]  ;;  %v521_v41 = vld [vmem:[%s4465_s21 + $0x718] sm:$0xff]  ;;  %v2796_v43 = vpack.c.bf16 %v510_v35, %v502_v34 }
  0xbb   : > { %3035 = vmatprep.subr.bf16.mxu1 %v3034_v52  ;;  %v529_v42 = vld [vmem:[%s4465_s21 + $0x758] sm:$0xff]  ;;  %v3052_v44 = vpack.c.bf16 %v512_v38, %v504_v36  ;;  %v2798_v45 = vpack.c.bf16 %v527_v40, %v519_v39  ;;  %v518_v46 = vld [vmem:[%s4465_s21 + $0x700] sm:$0xff]  ;;  %v520_v48 = vld [vmem:[%s4465_s21 + $0x710] sm:$0xff] }
  0xbc   : > { %v526_v47 = vld [vmem:[%s4465_s21 + $0x740] sm:$0xff]  ;;  %v3054_v49 = vpack.c.bf16 %v529_v42, %v521_v41  ;;  %v528_v50 = vld [vmem:[%s4465_s21 + $0x750] sm:$0xff]  ;;  %v535_v51 = vld [vmem:[%s4465_s21 + $0x788] sm:$0xff] }
  0xbd   : > { %2781 = vmatpush1.bf16.msra.mxu0 %v2780_v58  ;;  %v543_v52 = vld [vmem:[%s4465_s21 + $0x7c8] sm:$0xff]  ;;  %v537_v53 = vld [vmem:[%s4465_s21 + $0x798] sm:$0xff]  ;;  %v2800_v55 = vpack.c.bf16 %v526_v47, %v518_v46  ;;  %v3056_v56 = vpack.c.bf16 %v528_v50, %v520_v48  ;;  %v534_v58 = vld [vmem:[%s4465_s21 + $0x780] sm:$0xff] }
  0xbe   : > { %3037 = vmatpush1.bf16.msra.mxu1 %v3036_v59  ;;  %2783 = vmatprep.subr.bf16.mxu0 %v2782_v60  ;;  %v545_v54 = vld [vmem:[%s4465_s21 + $0x7d8] sm:$0xff]  ;;  %v2802_v57 = vpack.c.bf16 %v543_v52, %v535_v51  ;;  %v542_v59 = vld [vmem:[%s4465_s21 + $0x7c0] sm:$0xff]  ;;  %v536_v60 = vld [vmem:[%s4465_s21 + $0x790] sm:$0xff] }
  0xbf   : > { %3039 = vmatprep.subr.bf16.mxu1 %v3038_v0  ;;  %v3058_v61 = vpack.c.bf16 %v545_v54, %v537_v53  ;;  %v544_v62 = vld [vmem:[%s4465_s21 + $0x7d0] sm:$0xff]  ;;  %v551_v63 = vld [vmem:[%s4465_s21 + $0x808] sm:$0xff]  ;;  %v553_v1 = vld [vmem:[%s4465_s21 + $0x818] sm:$0xff]  ;;  %v2804_v3 = vpack.c.bf16 %v542_v59, %v534_v58 }
  0xc0   : > { %v559_v0 = vld [vmem:[%s4465_s21 + $0x848] sm:$0xff]  ;;  %v561_v2 = vld [vmem:[%s4465_s21 + $0x858] sm:$0xff]  ;;  %v3060_v4 = vpack.c.bf16 %v544_v62, %v536_v60  ;;  %v558_v7 = vld [vmem:[%s4465_s21 + $0x840] sm:$0xff] }
  0xc1   : > { %2785 = vmatpush1.bf16.msra.mxu0 %v2784_v6  ;;  %v2806_v5 = vpack.c.bf16 %v559_v0, %v551_v63  ;;  %v550_v6 = vld [vmem:[%s4465_s21 + $0x800] sm:$0xff]  ;;  %v560_v10 = vld [vmem:[%s4465_s21 + $0x850] sm:$0xff]  ;;  %v567_v11 = vld [vmem:[%s4465_s21 + $0x888] sm:$0xff] }
  0xc2   : > { %3041 = vmatpush1.bf16.msra.mxu1 %v3040_v8  ;;  %2787 = vmatprep.subr.bf16.mxu0 %v2786_v9  ;;  %v552_v8 = vld [vmem:[%s4465_s21 + $0x810] sm:$0xff]  ;;  %v3062_v9 = vpack.c.bf16 %v561_v2, %v553_v1  ;;  %v575_v12 = vld [vmem:[%s4465_s21 + $0x8c8] sm:$0xff]  ;;  %v577_v14 = vld [vmem:[%s4465_s21 + $0x8d8] sm:$0xff]  ;;  %v2808_v16 = vpack.c.bf16 %v558_v7, %v550_v6 }
  0xc3   : > { %3043 = vmatprep.subr.bf16.mxu1 %v3042_v13  ;;  %v569_v13 = vld [vmem:[%s4465_s21 + $0x898] sm:$0xff]  ;;  %v286_v15 = vld [vmem:[%s4456_s11] sm:$0xff]  ;;  %v3064_v17 = vpack.c.bf16 %v560_v10, %v552_v8  ;;  %v2810_v18 = vpack.c.bf16 %v575_v12, %v567_v11  ;;  %v576_v23 = vld [vmem:[%s4465_s21 + $0x8d0] sm:$0xff] }
  0xc4   : > { %v3066_v22 = vpack.c.bf16 %v577_v14, %v569_v13  ;;  %v583_v24 = vld [vmem:[%s4465_s21 + $0x908] sm:$0xff]  ;;  %v585_v26 = vld [vmem:[%s4465_s21 + $0x918] sm:$0xff]  ;;  %v592_v35 = vld [vmem:[%s4465_s21 + $0x950] sm:$0xff] }
  0xc5   : > { %2789 = vmatpush1.bf16.msra.mxu0 %v2788_v19  ;;  %v566_v19 = vld [vmem:[%s4465_s21 + $0x880] sm:$0xff]  ;;  %v593_v27 = vld [vmem:[%s4465_s21 + $0x958] sm:$0xff]  ;;  %v599_v36 = vld [vmem:[%s4465_s21 + $0x988] sm:$0xff] }
  0xc6   : > { %3045 = vmatpush1.bf16.msra.mxu1 %v3044_v20  ;;  %2791 = vmatprep.subr.bf16.mxu0 %v2790_v21  ;;  %v574_v20 = vld [vmem:[%s4465_s21 + $0x8c0] sm:$0xff]  ;;  %v568_v21 = vld [vmem:[%s4465_s21 + $0x890] sm:$0xff]  ;;  %v3070_v34 = vpack.c.bf16 %v593_v27, %v585_v26  ;;  %v601_v38 = vld [vmem:[%s4465_s21 + $0x998] sm:$0xff] }
  0xc7   : > { %3047 = vmatprep.subr.bf16.mxu1 %v3046_v25  ;;  %v591_v25 = vld [vmem:[%s4465_s21 + $0x948] sm:$0xff]  ;;  %v2812_v28 = vpack.c.bf16 %v574_v20, %v566_v19  ;;  %v3068_v29 = vpack.c.bf16 %v576_v23, %v568_v21  ;;  %v609_v39 = vld [vmem:[%s4465_s21 + $0x9d8] sm:$0xff]  ;;  %v608_v47 = vld [vmem:[%s4465_s21 + $0x9d0] sm:$0xff] }
  0xc8   : > { %v2814_v30 = vpack.c.bf16 %v591_v25, %v583_v24  ;;  %v3074_v46 = vpack.c.bf16 %v609_v39, %v601_v38  ;;  %v615_v48 = vld [vmem:[%s4465_s21 + $0xa08] sm:$0xff]  ;;  %v617_v50 = vld [vmem:[%s4465_s21 + $0xa18] sm:$0xff]  ;;  %v624_v59 = vld [vmem:[%s4465_s21 + $0xa50] sm:$0xff] }
  0xc9   : > { %2793 = vmatpush1.bf16.msra.mxu0 %v2792_v31  ;;  %v582_v31 = vld [vmem:[%s4465_s21 + $0x900] sm:$0xff]  ;;  %v625_v51 = vld [vmem:[%s4465_s21 + $0xa58] sm:$0xff]  ;;  %v631_v60 = vld [vmem:[%s4465_s21 + $0xa88] sm:$0xff] }
  0xca   : > { %3049 = vmatpush1.bf16.msra.mxu1 %v3048_v32  ;;  %2795 = vmatprep.subr.bf16.mxu0 %v2794_v33  ;;  %v590_v32 = vld [vmem:[%s4465_s21 + $0x940] sm:$0xff]  ;;  %v584_v33 = vld [vmem:[%s4465_s21 + $0x910] sm:$0xff]  ;;  %v3078_v58 = vpack.c.bf16 %v625_v51, %v617_v50  ;;  %v633_v62 = vld [vmem:[%s4465_s21 + $0xa98] sm:$0xff] }
  0xcb   : > { %3051 = vmatprep.subr.bf16.mxu1 %v3050_v37  ;;  %v607_v37 = vld [vmem:[%s4465_s21 + $0x9c8] sm:$0xff]  ;;  %v2816_v40 = vpack.c.bf16 %v590_v32, %v582_v31  ;;  %v3072_v41 = vpack.c.bf16 %v592_v35, %v584_v33  ;;  %v641_v63 = vld [vmem:[%s4465_s21 + $0xad8] sm:$0xff]  ;;  %v640_v7 = vld [vmem:[%s4465_s21 + $0xad0] sm:$0xff] }
  0xcc   : > { %v2818_v42 = vpack.c.bf16 %v607_v37, %v599_v36  ;;  %v3082_v6 = vpack.c.bf16 %v641_v63, %v633_v62  ;;  %v647_v8 = vld [vmem:[%s4465_s21 + $0xb08] sm:$0xff]  ;;  %v649_v10 = vld [vmem:[%s4465_s21 + $0xb18] sm:$0xff]  ;;  %v646_v13 = vld [vmem:[%s4465_s21 + $0xb00] sm:$0xff] }
  0xcd   : > { %2797 = vmatpush1.bf16.msra.mxu0 %v2796_v43  ;;  %v598_v43 = vld [vmem:[%s4465_s21 + $0x980] sm:$0xff]  ;;  %v657_v11 = vld [vmem:[%s4465_s21 + $0xb58] sm:$0xff]  ;;  %v663_v20 = vld [vmem:[%s4465_s21 + $0xb88] sm:$0xff] }
  0xce   : > { %3053 = vmatpush1.bf16.msra.mxu1 %v3052_v44  ;;  %2799 = vmatprep.subr.bf16.mxu0 %v2798_v45  ;;  %v606_v44 = vld [vmem:[%s4465_s21 + $0x9c0] sm:$0xff]  ;;  %v600_v45 = vld [vmem:[%s4465_s21 + $0x990] sm:$0xff]  ;;  %v3086_v19 = vpack.c.bf16 %v657_v11, %v649_v10  ;;  %v671_v21 = vld [vmem:[%s4465_s21 + $0xbc8] sm:$0xff] }
  0xcf   : > { %3055 = vmatprep.subr.bf16.mxu1 %v3054_v49  ;;  %v623_v49 = vld [vmem:[%s4465_s21 + $0xa48] sm:$0xff]  ;;  %v2820_v52 = vpack.c.bf16 %v606_v44, %v598_v43  ;;  %v3076_v53 = vpack.c.bf16 %v608_v47, %v600_v45  ;;  %v665_v23 = vld [vmem:[%s4465_s21 + $0xb98] sm:$0xff]  ;;  %v2834_v27 = vpack.c.bf16 %v671_v21, %v663_v20  ;;  %v672_v32 = vld [vmem:[%s4465_s21 + $0xbd0] sm:$0xff] }
  0xd0   : > { %v2822_v54 = vpack.c.bf16 %v623_v49, %v615_v48  ;;  %v673_v24 = vld [vmem:[%s4465_s21 + $0xbd8] sm:$0xff]  ;;  %v679_v33 = vld [vmem:[%s4465_s21 + $0xc08] sm:$0xff]  ;;  %v688_v44 = vld [vmem:[%s4465_s21 + $0xc50] sm:$0xff] }
  0xd1   : > { %2801 = vmatpush1.bf16.msra.mxu0 %v2800_v55  ;;  %v614_v55 = vld [vmem:[%s4465_s21 + $0xa00] sm:$0xff]  ;;  %v3090_v31 = vpack.c.bf16 %v673_v24, %v665_v23  ;;  %v681_v35 = vld [vmem:[%s4465_s21 + $0xc18] sm:$0xff]  ;;  %v695_v45 = vld [vmem:[%s4465_s21 + $0xc88] sm:$0xff] }
  0xd2   : > { %3057 = vmatpush1.bf16.msra.mxu1 %v3056_v56  ;;  %2803 = vmatprep.subr.bf16.mxu0 %v2802_v57  ;;  %v622_v56 = vld [vmem:[%s4465_s21 + $0xa40] sm:$0xff]  ;;  %v616_v57 = vld [vmem:[%s4465_s21 + $0xa10] sm:$0xff]  ;;  %v689_v36 = vld [vmem:[%s4465_s21 + $0xc58] sm:$0xff] }
  0xd3   : > { %3059 = vmatprep.subr.bf16.mxu1 %v3058_v61  ;;  %v639_v61 = vld [vmem:[%s4465_s21 + $0xac8] sm:$0xff]  ;;  %v2824_v0 = vpack.c.bf16 %v622_v56, %v614_v55  ;;  %v3080_v1 = vpack.c.bf16 %v624_v59, %v616_v57  ;;  %v3094_v43 = vpack.c.bf16 %v689_v36, %v681_v35  ;;  %v697_v47 = vld [vmem:[%s4465_s21 + $0xc98] sm:$0xff]  ;;  %v704_v56 = vld [vmem:[%s4465_s21 + $0xcd0] sm:$0xff] }
  0xd4   : > { %v2826_v2 = vpack.c.bf16 %v639_v61, %v631_v60  ;;  %v705_v48 = vld [vmem:[%s4465_s21 + $0xcd8] sm:$0xff]  ;;  %v711_v57 = vld [vmem:[%s4465_s21 + $0xd08] sm:$0xff]  ;;  %v742_v24 = vld [vmem:[%s4465_s21 + $0xe00] sm:$0xff] }
  0xd5   : > { %2805 = vmatpush1.bf16.msra.mxu0 %v2804_v3  ;;  %v630_v3 = vld [vmem:[%s4465_s21 + $0xa80] sm:$0xff]  ;;  %v3098_v55 = vpack.c.bf16 %v705_v48, %v697_v47  ;;  %v713_v59 = vld [vmem:[%s4465_s21 + $0xd18] sm:$0xff] }
  0xd6   : > { %3061 = vmatpush1.bf16.msra.mxu1 %v3060_v4  ;;  %2807 = vmatprep.subr.bf16.mxu0 %v2806_v5  ;;  %v638_v4 = vld [vmem:[%s4465_s21 + $0xac0] sm:$0xff]  ;;  %v632_v5 = vld [vmem:[%s4465_s21 + $0xa90] sm:$0xff]  ;;  %v721_v60 = vld [vmem:[%s4465_s21 + $0xd58] sm:$0xff] }
  0xd7   : > { %3063 = vmatprep.subr.bf16.mxu1 %v3062_v9  ;;  %v655_v9 = vld [vmem:[%s4465_s21 + $0xb48] sm:$0xff]  ;;  %v2828_v12 = vpack.c.bf16 %v638_v4, %v630_v3  ;;  %v3084_v14 = vpack.c.bf16 %v640_v7, %v632_v5  ;;  %v3102_v3 = vpack.c.bf16 %v721_v60, %v713_v59  ;;  %v720_v4 = vld [vmem:[%s4465_s21 + $0xd50] sm:$0xff]  ;;  %v729_v7 = vld [vmem:[%s4465_s21 + $0xd98] sm:$0xff] }
  0xd8   : > { %1383 = vmatmul.mubr.f32.vlgmr.msra.gmra.mrb[0].mxu0 %v286_v15  ;;  %v727_v5 = vld [vmem:[%s4465_s21 + $0xd88] sm:$0xff]  ;;  %v753_v20 = vld [vmem:[%s4465_s21 + $0xe58] sm:$0xff]  ;;  %v758_v36 = vld [vmem:[%s4465_s21 + $0xe80] sm:$0xff] }
  0xd9   : > { %2809 = vmatpush1.bf16.msra.mxu0 %v2808_v16  ;;  %1667 = vmatmul.mubr.f32.vlgmr.msra.gmra.mrb[0].mxu1 %v286_v15  ;;  %v2830_v15 = vpack.c.bf16 %v655_v9, %v647_v8  ;;  %v654_v16 = vld [vmem:[%s4465_s21 + $0xb40] sm:$0xff]  ;;  %v737_v8 = vld [vmem:[%s4465_s21 + $0xdd8] sm:$0xff] }
  0xda   : > { %3065 = vmatpush1.bf16.msra.mxu1 %v3064_v17  ;;  %2811 = vmatprep.subr.bf16.mxu0 %v2810_v18  ;;  %v648_v17 = vld [vmem:[%s4465_s21 + $0xb10] sm:$0xff]  ;;  %v2832_v25 = vpack.c.bf16 %v654_v16, %v646_v13  ;;  %v734_v13 = vld [vmem:[%s4465_s21 + $0xdc0] sm:$0xff] }
  0xdb   : > { %3067 = vmatprep.subr.bf16.mxu1 %v3066_v22  ;;  %v656_v18 = vld [vmem:[%s4465_s21 + $0xb50] sm:$0xff]  ;;  %v289_v22 = vld [vmem:[%s4456_s11 + $0x18] sm:$0xff]  ;;  %v774_v48 = vld [vmem:[%s4465_s21 + $0xf00] sm:$0xff] }
  0xdc   : > { %1453 = vmatprep.mubr.f32.mxu0 %v289_v22  ;;  %1737 = vmatprep.mubr.f32.mxu1 %v289_v22  ;;  %v3088_v26 = vpack.c.bf16 %v656_v18, %v648_v17  ;;  %v736_v16 = vld [vmem:[%s4465_s21 + $0xdd0] sm:$0xff]  ;;  %v743_v17 = vld [vmem:[%s4465_s21 + $0xe08] sm:$0xff]  ;;  %v790_v60 = vld [vmem:[%s4465_s21 + $0xf80] sm:$0xff] }
  0xdd   : > { %2813 = vmatpush1.bf16.msra.mxu0 %v2812_v28  ;;  %v662_v28 = vld [vmem:[%s4465_s21 + $0xb80] sm:$0xff]  ;;  %v751_v18 = vld [vmem:[%s4465_s21 + $0xe48] sm:$0xff] }
  0xde   : > { %3069 = vmatpush1.bf16.msra.mxu1 %v3068_v29  ;;  %2815 = vmatprep.subr.bf16.mxu0 %v2814_v30  ;;  %v670_v29 = vld [vmem:[%s4465_s21 + $0xbc0] sm:$0xff]  ;;  %v664_v30 = vld [vmem:[%s4465_s21 + $0xb90] sm:$0xff]  ;;  %v2854_v23 = vpack.c.bf16 %v751_v18, %v743_v17 }
  0xdf   : > { %3071 = vmatprep.subr.bf16.mxu1 %v3070_v34  ;;  %v687_v34 = vld [vmem:[%s4465_s21 + $0xc48] sm:$0xff]  ;;  %v2836_v37 = vpack.c.bf16 %v670_v29, %v662_v28  ;;  %v3092_v38 = vpack.c.bf16 %v672_v32, %v664_v30  ;;  %v752_v28 = vld [vmem:[%s4465_s21 + $0xe50] sm:$0xff]  ;;  %v769_v32 = vld [vmem:[%s4465_s21 + $0xed8] sm:$0xff] }
  0xe0   : > { %v2838_v39 = vpack.c.bf16 %v687_v34, %v679_v33  ;;  %v759_v29 = vld [vmem:[%s4465_s21 + $0xe88] sm:$0xff]  ;;  %v288_v17 = vld [vmem:[%s4456_s11 + $0x10] sm:$0xff] }
  0xe1   : > { %2817 = vmatpush1.bf16.msra.mxu0 %v2816_v40  ;;  %v678_v40 = vld [vmem:[%s4465_s21 + $0xc00] sm:$0xff]  ;;  %v767_v30 = vld [vmem:[%s4465_s21 + $0xec8] sm:$0xff] }
  0xe2   : > { %3073 = vmatpush1.bf16.msra.mxu1 %v3072_v41  ;;  %2819 = vmatprep.subr.bf16.mxu0 %v2818_v42  ;;  %v686_v41 = vld [vmem:[%s4465_s21 + $0xc40] sm:$0xff]  ;;  %v680_v42 = vld [vmem:[%s4465_s21 + $0xc10] sm:$0xff]  ;;  %v2858_v35 = vpack.c.bf16 %v767_v30, %v759_v29  ;;  %v849_v29 = vld [vmem:[%s4465_s21 + $0x1158] sm:$0xff] }
  0xe3   : > { %3075 = vmatprep.subr.bf16.mxu1 %v3074_v46  ;;  %v703_v46 = vld [vmem:[%s4465_s21 + $0xcc8] sm:$0xff]  ;;  %v2840_v49 = vpack.c.bf16 %v686_v41, %v678_v40  ;;  %v3096_v50 = vpack.c.bf16 %v688_v44, %v680_v42  ;;  %v768_v40 = vld [vmem:[%s4465_s21 + $0xed0] sm:$0xff]  ;;  %v785_v44 = vld [vmem:[%s4465_s21 + $0xf58] sm:$0xff] }
  0xe4   : > { %v2842_v51 = vpack.c.bf16 %v703_v46, %v695_v45  ;;  %v775_v41 = vld [vmem:[%s4465_s21 + $0xf08] sm:$0xff] }
  0xe5   : > { %2821 = vmatpush1.bf16.msra.mxu0 %v2820_v52  ;;  %v694_v52 = vld [vmem:[%s4465_s21 + $0xc80] sm:$0xff]  ;;  %v783_v42 = vld [vmem:[%s4465_s21 + $0xf48] sm:$0xff] }
  0xe6   : > { %3077 = vmatpush1.bf16.msra.mxu1 %v3076_v53  ;;  %2823 = vmatprep.subr.bf16.mxu0 %v2822_v54  ;;  %v702_v53 = vld [vmem:[%s4465_s21 + $0xcc0] sm:$0xff]  ;;  %v696_v54 = vld [vmem:[%s4465_s21 + $0xc90] sm:$0xff]  ;;  %v2862_v47 = vpack.c.bf16 %v783_v42, %v775_v41  ;;  %v291_v30 = vld [vmem:[%s4456_s11 + $0x28] sm:$0xff] }
  0xe7   : > { %3079 = vmatprep.subr.bf16.mxu1 %v3078_v58  ;;  %v719_v58 = vld [vmem:[%s4465_s21 + $0xd48] sm:$0xff]  ;;  %v2844_v61 = vpack.c.bf16 %v702_v53, %v694_v52  ;;  %v3100_v62 = vpack.c.bf16 %v704_v56, %v696_v54  ;;  %v784_v52 = vld [vmem:[%s4465_s21 + $0xf50] sm:$0xff]  ;;  %v801_v56 = vld [vmem:[%s4465_s21 + $0xfd8] sm:$0xff] }
  0xe8   : > { %v2846_v63 = vpack.c.bf16 %v719_v58, %v711_v57  ;;  %v791_v53 = vld [vmem:[%s4465_s21 + $0xf88] sm:$0xff]  ;;  %v857_v41 = vld [vmem:[%s4465_s21 + $0x1198] sm:$0xff] }
  0xe9   : > { %2825 = vmatpush1.bf16.msra.mxu0 %v2824_v0  ;;  %v710_v0 = vld [vmem:[%s4465_s21 + $0xd00] sm:$0xff]  ;;  %v799_v54 = vld [vmem:[%s4465_s21 + $0xfc8] sm:$0xff]  ;;  %v865_v42 = vld [vmem:[%s4465_s21 + $0x11d8] sm:$0xff] }
  0xea   : > { %3081 = vmatpush1.bf16.msra.mxu1 %v3080_v1  ;;  %2827 = vmatprep.subr.bf16.mxu0 %v2826_v2  ;;  %v718_v1 = vld [vmem:[%s4465_s21 + $0xd40] sm:$0xff]  ;;  %v712_v2 = vld [vmem:[%s4465_s21 + $0xd10] sm:$0xff]  ;;  %v2866_v59 = vpack.c.bf16 %v799_v54, %v791_v53  ;;  %v873_v53 = vld [vmem:[%s4465_s21 + $0x1218] sm:$0xff] }
  0xeb   : > { %3083 = vmatprep.subr.bf16.mxu1 %v3082_v6  ;;  %v735_v6 = vld [vmem:[%s4465_s21 + $0xdc8] sm:$0xff]  ;;  %v2848_v9 = vpack.c.bf16 %v718_v1, %v710_v0  ;;  %v3104_v10 = vpack.c.bf16 %v720_v4, %v712_v2  ;;  %v800_v0 = vld [vmem:[%s4465_s21 + $0xfd0] sm:$0xff]  ;;  %v817_v4 = vld [vmem:[%s4465_s21 + $0x1058] sm:$0xff] }
  0xec   : > { %v2850_v11 = vpack.c.bf16 %v735_v6, %v727_v5  ;;  %v807_v1 = vld [vmem:[%s4465_s21 + $0x1008] sm:$0xff]  ;;  %v881_v54 = vld [vmem:[%s4465_s21 + $0x1258] sm:$0xff] }
  0xed   : > { %2829 = vmatpush1.bf16.msra.mxu0 %v2828_v12  ;;  %v726_v12 = vld [vmem:[%s4465_s21 + $0xd80] sm:$0xff]  ;;  %v815_v2 = vld [vmem:[%s4465_s21 + $0x1048] sm:$0xff] }
  0xee   : > { %3085 = vmatpush1.bf16.msra.mxu1 %v3084_v14  ;;  %2831 = vmatprep.subr.bf16.mxu0 %v2830_v15  ;;  %v728_v14 = vld [vmem:[%s4465_s21 + $0xd90] sm:$0xff]  ;;  %v3106_v15 = vpack.c.bf16 %v737_v8, %v729_v7  ;;  %v2852_v21 = vpack.c.bf16 %v734_v13, %v726_v12  ;;  %v2870_v7 = vpack.c.bf16 %v815_v2, %v807_v1  ;;  %v806_v8 = vld [vmem:[%s4465_s21 + $0x1000] sm:$0xff]  ;;  %v823_v13 = vld [vmem:[%s4465_s21 + $0x1088] sm:$0xff] }
  0xef   : > { %3087 = vmatprep.subr.bf16.mxu1 %v3086_v19  ;;  %v745_v19 = vld [vmem:[%s4465_s21 + $0xe18] sm:$0xff]  ;;  %v3108_v22 = vpack.c.bf16 %v736_v16, %v728_v14  ;;  %v816_v12 = vld [vmem:[%s4465_s21 + $0x1050] sm:$0xff]  ;;  %v831_v14 = vld [vmem:[%s4465_s21 + $0x10c8] sm:$0xff] }
  0xf0   : > { %v833_v16 = vld [vmem:[%s4465_s21 + $0x10d8] sm:$0xff] }
  0xf1   : > { %2833 = vmatpush1.bf16.msra.mxu0 %v2832_v25  ;;  %v750_v25 = vld [vmem:[%s4465_s21 + $0xe40] sm:$0xff]  ;;  %v889_v1 = vld [vmem:[%s4465_s21 + $0x1298] sm:$0xff] }
  0xf2   : > { %3089 = vmatpush1.bf16.msra.mxu1 %v3088_v26  ;;  %2835 = vmatprep.subr.bf16.mxu0 %v2834_v27  ;;  %v744_v26 = vld [vmem:[%s4465_s21 + $0xe10] sm:$0xff]  ;;  %v3110_v27 = vpack.c.bf16 %v753_v20, %v745_v19  ;;  %v2856_v33 = vpack.c.bf16 %v750_v25, %v742_v24  ;;  %v2874_v20 = vpack.c.bf16 %v831_v14, %v823_v13  ;;  %v897_v2 = vld [vmem:[%s4465_s21 + $0x12d8] sm:$0xff] }
  0xf3   : > { %3091 = vmatprep.subr.bf16.mxu1 %v3090_v31  ;;  %v761_v31 = vld [vmem:[%s4465_s21 + $0xe98] sm:$0xff]  ;;  %v3112_v34 = vpack.c.bf16 %v752_v28, %v744_v26  ;;  %v832_v25 = vld [vmem:[%s4465_s21 + $0x10d0] sm:$0xff]  ;;  %v839_v26 = vld [vmem:[%s4465_s21 + $0x1108] sm:$0xff] }
  0xf4   : > { %v841_v28 = vld [vmem:[%s4465_s21 + $0x1118] sm:$0xff] }
  0xf5   : > { %2837 = vmatpush1.bf16.msra.mxu0 %v2836_v37  ;;  %v766_v37 = vld [vmem:[%s4465_s21 + $0xec0] sm:$0xff]  ;;  %v905_v13 = vld [vmem:[%s4465_s21 + $0x1318] sm:$0xff] }
  0xf6   : > { %3093 = vmatpush1.bf16.msra.mxu1 %v3092_v38  ;;  %2839 = vmatprep.subr.bf16.mxu0 %v2838_v39  ;;  %v760_v38 = vld [vmem:[%s4465_s21 + $0xe90] sm:$0xff]  ;;  %v3114_v39 = vpack.c.bf16 %v769_v32, %v761_v31  ;;  %v2860_v45 = vpack.c.bf16 %v766_v37, %v758_v36  ;;  %v3134_v37 = vpack.c.bf16 %v849_v29, %v841_v28  ;;  %v913_v14 = vld [vmem:[%s4465_s21 + $0x1358] sm:$0xff] }
  0xf7   : > { %3095 = vmatprep.subr.bf16.mxu1 %v3094_v43  ;;  %v777_v43 = vld [vmem:[%s4465_s21 + $0xf18] sm:$0xff]  ;;  %v3116_v46 = vpack.c.bf16 %v768_v40, %v760_v38  ;;  %v840_v36 = vld [vmem:[%s4465_s21 + $0x1110] sm:$0xff]  ;;  %v863_v40 = vld [vmem:[%s4465_s21 + $0x11c8] sm:$0xff] }
  0xf8   : > { %v848_v38 = vld [vmem:[%s4465_s21 + $0x1150] sm:$0xff] }
  0xf9   : > { %2841 = vmatpush1.bf16.msra.mxu0 %v2840_v49  ;;  %v782_v49 = vld [vmem:[%s4465_s21 + $0xf40] sm:$0xff] }
  0xfa   : > { %3097 = vmatpush1.bf16.msra.mxu1 %v3096_v50  ;;  %2843 = vmatprep.subr.bf16.mxu0 %v2842_v51  ;;  %v776_v50 = vld [vmem:[%s4465_s21 + $0xf10] sm:$0xff]  ;;  %v3118_v51 = vpack.c.bf16 %v785_v44, %v777_v43  ;;  %v2864_v57 = vpack.c.bf16 %v782_v49, %v774_v48  ;;  %v3136_v44 = vpack.c.bf16 %v848_v38, %v840_v36  ;;  %v943_v36 = vld [vmem:[%s4465_s21 + $0x1448] sm:$0xff]  ;;  %v945_v38 = vld [vmem:[%s4465_s21 + $0x1458] sm:$0xff] }
  0xfb   : > { %3099 = vmatprep.subr.bf16.mxu1 %v3098_v55  ;;  %v793_v55 = vld [vmem:[%s4465_s21 + $0xf98] sm:$0xff]  ;;  %v3120_v58 = vpack.c.bf16 %v784_v52, %v776_v50  ;;  %v856_v48 = vld [vmem:[%s4465_s21 + $0x1190] sm:$0xff]  ;;  %v3138_v49 = vpack.c.bf16 %v865_v42, %v857_v41  ;;  %v879_v52 = vld [vmem:[%s4465_s21 + $0x1248] sm:$0xff] }
  0xfc   : > { %v864_v50 = vld [vmem:[%s4465_s21 + $0x11d0] sm:$0xff]  ;;  %v934_v42 = vld [vmem:[%s4465_s21 + $0x1400] sm:$0xff] }
  0xfd   : > { %2845 = vmatpush1.bf16.msra.mxu0 %v2844_v61  ;;  %v798_v61 = vld [vmem:[%s4465_s21 + $0xfc0] sm:$0xff] }
  0xfe   : > { %3101 = vmatpush1.bf16.msra.mxu1 %v3100_v62  ;;  %2847 = vmatprep.subr.bf16.mxu0 %v2846_v63  ;;  %v792_v62 = vld [vmem:[%s4465_s21 + $0xf90] sm:$0xff]  ;;  %v3122_v63 = vpack.c.bf16 %v801_v56, %v793_v55  ;;  %v2868_v5 = vpack.c.bf16 %v798_v61, %v790_v60  ;;  %v3140_v56 = vpack.c.bf16 %v864_v50, %v856_v48  ;;  %v959_v48 = vld [vmem:[%s4465_s21 + $0x14c8] sm:$0xff]  ;;  %v961_v50 = vld [vmem:[%s4465_s21 + $0x14d8] sm:$0xff] }
  0xff   : > { %3103 = vmatprep.subr.bf16.mxu1 %v3102_v3  ;;  %v809_v3 = vld [vmem:[%s4465_s21 + $0x1018] sm:$0xff]  ;;  %v3124_v6 = vpack.c.bf16 %v800_v0, %v792_v62  ;;  %v872_v60 = vld [vmem:[%s4465_s21 + $0x1210] sm:$0xff]  ;;  %v3142_v61 = vpack.c.bf16 %v881_v54, %v873_v53  ;;  %v895_v0 = vld [vmem:[%s4465_s21 + $0x12c8] sm:$0xff] }
 0x100   : > { %v880_v62 = vld [vmem:[%s4465_s21 + $0x1250] sm:$0xff]  ;;  %v950_v54 = vld [vmem:[%s4465_s21 + $0x1480] sm:$0xff] }
 0x101   : > { %2849 = vmatpush1.bf16.msra.mxu0 %v2848_v9  ;;  %v814_v9 = vld [vmem:[%s4465_s21 + $0x1040] sm:$0xff] }
 0x102   : > { %3105 = vmatpush1.bf16.msra.mxu1 %v3104_v10  ;;  %2851 = vmatprep.subr.bf16.mxu0 %v2850_v11  ;;  %v808_v10 = vld [vmem:[%s4465_s21 + $0x1010] sm:$0xff]  ;;  %v3126_v11 = vpack.c.bf16 %v817_v4, %v809_v3  ;;  %v2872_v18 = vpack.c.bf16 %v814_v9, %v806_v8  ;;  %v3144_v4 = vpack.c.bf16 %v880_v62, %v872_v60  ;;  %v975_v60 = vld [vmem:[%s4465_s21 + $0x1548] sm:$0xff]  ;;  %v977_v62 = vld [vmem:[%s4465_s21 + $0x1558] sm:$0xff] }
 0x103   : > { %3107 = vmatprep.subr.bf16.mxu1 %v3106_v15  ;;  %v825_v15 = vld [vmem:[%s4465_s21 + $0x1098] sm:$0xff]  ;;  %v3128_v19 = vpack.c.bf16 %v816_v12, %v808_v10  ;;  %v888_v8 = vld [vmem:[%s4465_s21 + $0x1290] sm:$0xff]  ;;  %v3146_v9 = vpack.c.bf16 %v897_v2, %v889_v1  ;;  %v911_v12 = vld [vmem:[%s4465_s21 + $0x1348] sm:$0xff] }
 0x104   : > { %v3130_v24 = vpack.c.bf16 %v833_v16, %v825_v15  ;;  %v896_v10 = vld [vmem:[%s4465_s21 + $0x12d0] sm:$0xff]  ;;  %v966_v2 = vld [vmem:[%s4465_s21 + $0x1500] sm:$0xff] }
 0x105   : > { %2853 = vmatpush1.bf16.msra.mxu0 %v2852_v21  ;;  %v822_v21 = vld [vmem:[%s4465_s21 + $0x1080] sm:$0xff]  ;;  %v3148_v16 = vpack.c.bf16 %v896_v10, %v888_v8  ;;  %v991_v8 = vld [vmem:[%s4465_s21 + $0x15c8] sm:$0xff]  ;;  %v993_v10 = vld [vmem:[%s4465_s21 + $0x15d8] sm:$0xff] }
 0x106   : > { %3109 = vmatpush1.bf16.msra.mxu1 %v3108_v22  ;;  %2855 = vmatprep.subr.bf16.mxu0 %v2854_v23  ;;  %v830_v22 = vld [vmem:[%s4465_s21 + $0x10c0] sm:$0xff]  ;;  %v824_v23 = vld [vmem:[%s4465_s21 + $0x1090] sm:$0xff] }
 0x107   : > { %3111 = vmatprep.subr.bf16.mxu1 %v3110_v27  ;;  %v847_v27 = vld [vmem:[%s4465_s21 + $0x1148] sm:$0xff]  ;;  %v2876_v31 = vpack.c.bf16 %v830_v22, %v822_v21  ;;  %v3132_v32 = vpack.c.bf16 %v832_v25, %v824_v23  ;;  %v3150_v21 = vpack.c.bf16 %v913_v14, %v905_v13  ;;  %v912_v22 = vld [vmem:[%s4465_s21 + $0x1350] sm:$0xff]  ;;  %v921_v25 = vld [vmem:[%s4465_s21 + $0x1398] sm:$0xff] }
 0x108   : > { %v919_v23 = vld [vmem:[%s4465_s21 + $0x1388] sm:$0xff]  ;;  %v982_v14 = vld [vmem:[%s4465_s21 + $0x1580] sm:$0xff] }
 0x109   : > { %2857 = vmatpush1.bf16.msra.mxu0 %v2856_v33  ;;  %v2878_v33 = vpack.c.bf16 %v847_v27, %v839_v26  ;;  %v929_v26 = vld [vmem:[%s4465_s21 + $0x13d8] sm:$0xff] }
 0x10a   : > { %3113 = vmatpush1.bf16.msra.mxu1 %v3112_v34  ;;  %2859 = vmatprep.subr.bf16.mxu0 %v2858_v35  ;;  %v838_v34 = vld [vmem:[%s4465_s21 + $0x1100] sm:$0xff] }
 0x10b   : > { %3115 = vmatprep.subr.bf16.mxu1 %v3114_v39  ;;  %v846_v35 = vld [vmem:[%s4465_s21 + $0x1140] sm:$0xff]  ;;  %v855_v39 = vld [vmem:[%s4465_s21 + $0x1188] sm:$0xff] }
 0x10c   : > { %v2880_v43 = vpack.c.bf16 %v846_v35, %v838_v34  ;;  %v928_v34 = vld [vmem:[%s4465_s21 + $0x13d0] sm:$0xff]  ;;  %v935_v35 = vld [vmem:[%s4465_s21 + $0x1408] sm:$0xff] }
 0x10d   : > { %2861 = vmatpush1.bf16.msra.mxu0 %v2860_v45  ;;  %v2882_v45 = vpack.c.bf16 %v863_v40, %v855_v39  ;;  %v2902_v41 = vpack.c.bf16 %v943_v36, %v935_v35 }
 0x10e   : > { %3117 = vmatpush1.bf16.msra.mxu1 %v3116_v46  ;;  %2863 = vmatprep.subr.bf16.mxu0 %v2862_v47  ;;  %v854_v46 = vld [vmem:[%s4465_s21 + $0x1180] sm:$0xff] }
 0x10f   : > { %3119 = vmatprep.subr.bf16.mxu1 %v3118_v51  ;;  %v862_v47 = vld [vmem:[%s4465_s21 + $0x11c0] sm:$0xff]  ;;  %v871_v51 = vld [vmem:[%s4465_s21 + $0x1208] sm:$0xff] }
 0x110   : > { %v2884_v55 = vpack.c.bf16 %v862_v47, %v854_v46  ;;  %v944_v46 = vld [vmem:[%s4465_s21 + $0x1450] sm:$0xff]  ;;  %v951_v47 = vld [vmem:[%s4465_s21 + $0x1488] sm:$0xff] }
 0x111   : > { %2865 = vmatpush1.bf16.msra.mxu0 %v2864_v57  ;;  %v2886_v57 = vpack.c.bf16 %v879_v52, %v871_v51  ;;  %v2906_v53 = vpack.c.bf16 %v959_v48, %v951_v47 }
 0x112   : > { %3121 = vmatpush1.bf16.msra.mxu1 %v3120_v58  ;;  %2867 = vmatprep.subr.bf16.mxu0 %v2866_v59  ;;  %v870_v58 = vld [vmem:[%s4465_s21 + $0x1200] sm:$0xff] }
 0x113   : > { %3123 = vmatprep.subr.bf16.mxu1 %v3122_v63  ;;  %v878_v59 = vld [vmem:[%s4465_s21 + $0x1240] sm:$0xff]  ;;  %v887_v63 = vld [vmem:[%s4465_s21 + $0x1288] sm:$0xff] }
 0x114   : > { %v2888_v3 = vpack.c.bf16 %v878_v59, %v870_v58  ;;  %v960_v58 = vld [vmem:[%s4465_s21 + $0x14d0] sm:$0xff]  ;;  %v967_v59 = vld [vmem:[%s4465_s21 + $0x1508] sm:$0xff] }
 0x115   : > { %2869 = vmatpush1.bf16.msra.mxu0 %v2868_v5  ;;  %v2890_v5 = vpack.c.bf16 %v895_v0, %v887_v63  ;;  %v2910_v1 = vpack.c.bf16 %v975_v60, %v967_v59 }
 0x116   : > { %3125 = vmatpush1.bf16.msra.mxu1 %v3124_v6  ;;  %2871 = vmatprep.subr.bf16.mxu0 %v2870_v7  ;;  %v886_v6 = vld [vmem:[%s4465_s21 + $0x1280] sm:$0xff] }
 0x117   : > { %3127 = vmatprep.subr.bf16.mxu1 %v3126_v11  ;;  %v894_v7 = vld [vmem:[%s4465_s21 + $0x12c0] sm:$0xff]  ;;  %v903_v11 = vld [vmem:[%s4465_s21 + $0x1308] sm:$0xff] }
 0x118   : > { %1454 = vmatmul.mubr.f32.vlgmr.msra.gmra.mrb[0].mxu0 %v288_v17  ;;  %v2892_v15 = vpack.c.bf16 %v894_v7, %v886_v6  ;;  %v976_v6 = vld [vmem:[%s4465_s21 + $0x1550] sm:$0xff]  ;;  %v983_v7 = vld [vmem:[%s4465_s21 + $0x1588] sm:$0xff] }
 0x119   : > { %2873 = vmatpush1.bf16.msra.mxu0 %v2872_v18  ;;  %1738 = vmatmul.mubr.f32.vlgmr.msra.gmra.mrb[0].mxu1 %v288_v17  ;;  %v2894_v17 = vpack.c.bf16 %v911_v12, %v903_v11  ;;  %v902_v18 = vld [vmem:[%s4465_s21 + $0x1300] sm:$0xff]  ;;  %v2914_v13 = vpack.c.bf16 %v991_v8, %v983_v7 }
 0x11a   : > { %3129 = vmatpush1.bf16.msra.mxu1 %v3128_v19  ;;  %2875 = vmatprep.subr.bf16.mxu0 %v2874_v20  ;;  %v910_v19 = vld [vmem:[%s4465_s21 + $0x1340] sm:$0xff]  ;;  %v904_v20 = vld [vmem:[%s4465_s21 + $0x1310] sm:$0xff] }
 0x11b   : > { %3131 = vmatprep.subr.bf16.mxu1 %v3130_v24  ;;  %1524 = vmatprep.mubr.f32.mxu0 %v291_v30  ;;  %v927_v24 = vld [vmem:[%s4465_s21 + $0x13c8] sm:$0xff]  ;;  %v2896_v27 = vpack.c.bf16 %v910_v19, %v902_v18  ;;  %v3152_v28 = vpack.c.bf16 %v912_v22, %v904_v20  ;;  %v992_v18 = vld [vmem:[%s4465_s21 + $0x15d0] sm:$0xff]  ;;  %v1009_v22 = vld [vmem:[%s4465_s21 + $0x1658] sm:$0xff] }
 0x11c   : > { %1808 = vmatprep.mubr.f32.mxu1 %v291_v30  ;;  %v2898_v29 = vpack.c.bf16 %v927_v24, %v919_v23  ;;  %v918_v30 = vld [vmem:[%s4465_s21 + $0x1380] sm:$0xff]  ;;  %v999_v19 = vld [vmem:[%s4465_s21 + $0x1608] sm:$0xff] }
 0x11d   : > { %2877 = vmatpush1.bf16.msra.mxu0 %v2876_v31  ;;  %v926_v31 = vld [vmem:[%s4465_s21 + $0x13c0] sm:$0xff]  ;;  %v1007_v20 = vld [vmem:[%s4465_s21 + $0x1648] sm:$0xff] }
 0x11e   : > { %3133 = vmatpush1.bf16.msra.mxu1 %v3132_v32  ;;  %2879 = vmatprep.subr.bf16.mxu0 %v2878_v33  ;;  %v920_v32 = vld [vmem:[%s4465_s21 + $0x1390] sm:$0xff]  ;;  %v3154_v33 = vpack.c.bf16 %v929_v26, %v921_v25  ;;  %v2900_v39 = vpack.c.bf16 %v926_v31, %v918_v30  ;;  %v2918_v25 = vpack.c.bf16 %v1007_v20, %v999_v19  ;;  %v998_v26 = vld [vmem:[%s4465_s21 + $0x1600] sm:$0xff]  ;;  %v1015_v31 = vld [vmem:[%s4465_s21 + $0x1688] sm:$0xff] }
 0x11f   : > { %3135 = vmatprep.subr.bf16.mxu1 %v3134_v37  ;;  %v937_v37 = vld [vmem:[%s4465_s21 + $0x1418] sm:$0xff]  ;;  %v3156_v40 = vpack.c.bf16 %v928_v34, %v920_v32  ;;  %v1008_v30 = vld [vmem:[%s4465_s21 + $0x1650] sm:$0xff]  ;;  %v1023_v32 = vld [vmem:[%s4465_s21 + $0x16c8] sm:$0xff] }
 0x120   : > { %v1025_v34 = vld [vmem:[%s4465_s21 + $0x16d8] sm:$0xff]  ;;  %v290_v19 = vld [vmem:[%s4456_s11 + $0x20] sm:$0xff] }
 0x121   : > { %2881 = vmatpush1.bf16.msra.mxu0 %v2880_v43  ;;  %v942_v43 = vld [vmem:[%s4465_s21 + $0x1440] sm:$0xff] }
 0x122   : > { %3137 = vmatpush1.bf16.msra.mxu1 %v3136_v44  ;;  %2883 = vmatprep.subr.bf16.mxu0 %v2882_v45  ;;  %v936_v44 = vld [vmem:[%s4465_s21 + $0x1410] sm:$0xff]  ;;  %v3158_v45 = vpack.c.bf16 %v945_v38, %v937_v37  ;;  %v2904_v51 = vpack.c.bf16 %v942_v43, %v934_v42  ;;  %v2922_v37 = vpack.c.bf16 %v1023_v32, %v1015_v31  ;;  %v1014_v38 = vld [vmem:[%s4465_s21 + $0x1680] sm:$0xff]  ;;  %v1031_v43 = vld [vmem:[%s4465_s21 + $0x1708] sm:$0xff] }
 0x123   : > { %3139 = vmatprep.subr.bf16.mxu1 %v3138_v49  ;;  %v953_v49 = vld [vmem:[%s4465_s21 + $0x1498] sm:$0xff]  ;;  %v3160_v52 = vpack.c.bf16 %v944_v46, %v936_v44  ;;  %v1024_v42 = vld [vmem:[%s4465_s21 + $0x16d0] sm:$0xff]  ;;  %v1039_v44 = vld [vmem:[%s4465_s21 + $0x1748] sm:$0xff] }
 0x124   : > { %v1041_v46 = vld [vmem:[%s4465_s21 + $0x1758] sm:$0xff] }
 0x125   : > { %2885 = vmatpush1.bf16.msra.mxu0 %v2884_v55  ;;  %v958_v55 = vld [vmem:[%s4465_s21 + $0x14c0] sm:$0xff]  ;;  %v1105_v31 = vld [vmem:[%s4465_s21 + $0x1958] sm:$0xff] }
 0x126   : > { %3141 = vmatpush1.bf16.msra.mxu1 %v3140_v56  ;;  %2887 = vmatprep.subr.bf16.mxu0 %v2886_v57  ;;  %v952_v56 = vld [vmem:[%s4465_s21 + $0x1490] sm:$0xff]  ;;  %v3162_v57 = vpack.c.bf16 %v961_v50, %v953_v49  ;;  %v2908_v63 = vpack.c.bf16 %v958_v55, %v950_v54  ;;  %v2926_v49 = vpack.c.bf16 %v1039_v44, %v1031_v43  ;;  %v1030_v50 = vld [vmem:[%s4465_s21 + $0x1700] sm:$0xff]  ;;  %v1047_v55 = vld [vmem:[%s4465_s21 + $0x1788] sm:$0xff] }
 0x127   : > { %3143 = vmatprep.subr.bf16.mxu1 %v3142_v61  ;;  %v969_v61 = vld [vmem:[%s4465_s21 + $0x1518] sm:$0xff]  ;;  %v3164_v0 = vpack.c.bf16 %v960_v58, %v952_v56  ;;  %v1040_v54 = vld [vmem:[%s4465_s21 + $0x1750] sm:$0xff]  ;;  %v1055_v56 = vld [vmem:[%s4465_s21 + $0x17c8] sm:$0xff] }
 0x128   : > { %v1057_v58 = vld [vmem:[%s4465_s21 + $0x17d8] sm:$0xff] }
 0x129   : > { %2889 = vmatpush1.bf16.msra.mxu0 %v2888_v3  ;;  %v974_v3 = vld [vmem:[%s4465_s21 + $0x1540] sm:$0xff]  ;;  %v293_v32 = vld [vmem:[%s4456_s11 + $0x38] sm:$0xff] }
 0x12a   : > { %3145 = vmatpush1.bf16.msra.mxu1 %v3144_v4  ;;  %2891 = vmatprep.subr.bf16.mxu0 %v2890_v5  ;;  %v968_v4 = vld [vmem:[%s4465_s21 + $0x1510] sm:$0xff]  ;;  %v3166_v5 = vpack.c.bf16 %v977_v62, %v969_v61  ;;  %v2912_v11 = vpack.c.bf16 %v974_v3, %v966_v2  ;;  %v2930_v61 = vpack.c.bf16 %v1055_v56, %v1047_v55  ;;  %v1046_v62 = vld [vmem:[%s4465_s21 + $0x1780] sm:$0xff]  ;;  %v1063_v3 = vld [vmem:[%s4465_s21 + $0x1808] sm:$0xff] }
 0x12b   : > { %3147 = vmatprep.subr.bf16.mxu1 %v3146_v9  ;;  %v985_v9 = vld [vmem:[%s4465_s21 + $0x1598] sm:$0xff]  ;;  %v3168_v12 = vpack.c.bf16 %v976_v6, %v968_v4  ;;  %v1056_v2 = vld [vmem:[%s4465_s21 + $0x17d0] sm:$0xff]  ;;  %v1071_v4 = vld [vmem:[%s4465_s21 + $0x1848] sm:$0xff] }
 0x12c   : > { %v1073_v6 = vld [vmem:[%s4465_s21 + $0x1858] sm:$0xff] }
 0x12d   : > { %2893 = vmatpush1.bf16.msra.mxu0 %v2892_v15  ;;  %v990_v15 = vld [vmem:[%s4465_s21 + $0x15c0] sm:$0xff]  ;;  %v1113_v43 = vld [vmem:[%s4465_s21 + $0x1998] sm:$0xff] }
 0x12e   : > { %3149 = vmatpush1.bf16.msra.mxu1 %v3148_v16  ;;  %2895 = vmatprep.subr.bf16.mxu0 %v2894_v17  ;;  %v984_v16 = vld [vmem:[%s4465_s21 + $0x1590] sm:$0xff]  ;;  %v3170_v17 = vpack.c.bf16 %v993_v10, %v985_v9  ;;  %v2916_v23 = vpack.c.bf16 %v990_v15, %v982_v14  ;;  %v2934_v9 = vpack.c.bf16 %v1071_v4, %v1063_v3  ;;  %v1062_v10 = vld [vmem:[%s4465_s21 + $0x1800] sm:$0xff]  ;;  %v1079_v15 = vld [vmem:[%s4465_s21 + $0x1888] sm:$0xff] }
 0x12f   : > { %3151 = vmatprep.subr.bf16.mxu1 %v3150_v21  ;;  %v1001_v21 = vld [vmem:[%s4465_s21 + $0x1618] sm:$0xff]  ;;  %v3172_v24 = vpack.c.bf16 %v992_v18, %v984_v16  ;;  %v1072_v14 = vld [vmem:[%s4465_s21 + $0x1850] sm:$0xff]  ;;  %v1087_v16 = vld [vmem:[%s4465_s21 + $0x18c8] sm:$0xff] }
 0x130   : > { %v1089_v18 = vld [vmem:[%s4465_s21 + $0x18d8] sm:$0xff] }
 0x131   : > { %2897 = vmatpush1.bf16.msra.mxu0 %v2896_v27  ;;  %v1006_v27 = vld [vmem:[%s4465_s21 + $0x1640] sm:$0xff]  ;;  %v1121_v44 = vld [vmem:[%s4465_s21 + $0x19d8] sm:$0xff] }
 0x132   : > { %3153 = vmatpush1.bf16.msra.mxu1 %v3152_v28  ;;  %2899 = vmatprep.subr.bf16.mxu0 %v2898_v29  ;;  %v1000_v28 = vld [vmem:[%s4465_s21 + $0x1610] sm:$0xff]  ;;  %v3174_v29 = vpack.c.bf16 %v1009_v22, %v1001_v21  ;;  %v2920_v35 = vpack.c.bf16 %v1006_v27, %v998_v26  ;;  %v2938_v22 = vpack.c.bf16 %v1087_v16, %v1079_v15  ;;  %v1129_v55 = vld [vmem:[%s4465_s21 + $0x1a18] sm:$0xff] }
 0x133   : > { %3155 = vmatprep.subr.bf16.mxu1 %v3154_v33  ;;  %v1017_v33 = vld [vmem:[%s4465_s21 + $0x1698] sm:$0xff]  ;;  %v3176_v36 = vpack.c.bf16 %v1008_v30, %v1000_v28  ;;  %v1088_v27 = vld [vmem:[%s4465_s21 + $0x18d0] sm:$0xff]  ;;  %v1095_v28 = vld [vmem:[%s4465_s21 + $0x1908] sm:$0xff] }
 0x134   : > { %v1097_v30 = vld [vmem:[%s4465_s21 + $0x1918] sm:$0xff] }
 0x135   : > { %2901 = vmatpush1.bf16.msra.mxu0 %v2900_v39  ;;  %v1022_v39 = vld [vmem:[%s4465_s21 + $0x16c0] sm:$0xff]  ;;  %v1137_v56 = vld [vmem:[%s4465_s21 + $0x1a58] sm:$0xff] }
 0x136   : > { %3157 = vmatpush1.bf16.msra.mxu1 %v3156_v40  ;;  %2903 = vmatprep.subr.bf16.mxu0 %v2902_v41  ;;  %v1016_v40 = vld [vmem:[%s4465_s21 + $0x1690] sm:$0xff]  ;;  %v3178_v41 = vpack.c.bf16 %v1025_v34, %v1017_v33  ;;  %v2924_v47 = vpack.c.bf16 %v1022_v39, %v1014_v38  ;;  %v3198_v39 = vpack.c.bf16 %v1105_v31, %v1097_v30  ;;  %v1145_v3 = vld [vmem:[%s4465_s21 + $0x1a98] sm:$0xff] }
 0x137   : > { %3159 = vmatprep.subr.bf16.mxu1 %v3158_v45  ;;  %v1033_v45 = vld [vmem:[%s4465_s21 + $0x1718] sm:$0xff]  ;;  %v3180_v48 = vpack.c.bf16 %v1024_v42, %v1016_v40  ;;  %v1096_v38 = vld [vmem:[%s4465_s21 + $0x1910] sm:$0xff]  ;;  %v1119_v42 = vld [vmem:[%s4465_s21 + $0x19c8] sm:$0xff] }
 0x138   : > { %v1104_v40 = vld [vmem:[%s4465_s21 + $0x1950] sm:$0xff]  ;;  %v1153_v4 = vld [vmem:[%s4465_s21 + $0x1ad8] sm:$0xff] }
 0x139   : > { %2905 = vmatpush1.bf16.msra.mxu0 %v2904_v51  ;;  %v1038_v51 = vld [vmem:[%s4465_s21 + $0x1740] sm:$0xff]  ;;  %v1161_v15 = vld [vmem:[%s4465_s21 + $0x1b18] sm:$0xff] }
 0x13a   : > { %3161 = vmatpush1.bf16.msra.mxu1 %v3160_v52  ;;  %2907 = vmatprep.subr.bf16.mxu0 %v2906_v53  ;;  %v1032_v52 = vld [vmem:[%s4465_s21 + $0x1710] sm:$0xff]  ;;  %v3182_v53 = vpack.c.bf16 %v1041_v46, %v1033_v45  ;;  %v2928_v59 = vpack.c.bf16 %v1038_v51, %v1030_v50  ;;  %v3200_v46 = vpack.c.bf16 %v1104_v40, %v1096_v38  ;;  %v1169_v16 = vld [vmem:[%s4465_s21 + $0x1b58] sm:$0xff]  ;;  %v1199_v38 = vld [vmem:[%s4465_s21 + $0x1c48] sm:$0xff] }
 0x13b   : > { %3163 = vmatprep.subr.bf16.mxu1 %v3162_v57  ;;  %v1049_v57 = vld [vmem:[%s4465_s21 + $0x1798] sm:$0xff]  ;;  %v3184_v60 = vpack.c.bf16 %v1040_v54, %v1032_v52  ;;  %v1112_v50 = vld [vmem:[%s4465_s21 + $0x1990] sm:$0xff]  ;;  %v3202_v51 = vpack.c.bf16 %v1121_v44, %v1113_v43  ;;  %v1135_v54 = vld [vmem:[%s4465_s21 + $0x1a48] sm:$0xff] }
 0x13c   : > { %v1120_v52 = vld [vmem:[%s4465_s21 + $0x19d0] sm:$0xff]  ;;  %v1201_v40 = vld [vmem:[%s4465_s21 + $0x1c58] sm:$0xff]  ;;  %v1190_v44 = vld [vmem:[%s4465_s21 + $0x1c00] sm:$0xff] }
 0x13d   : > { %2909 = vmatpush1.bf16.msra.mxu0 %v2908_v63  ;;  %v1054_v63 = vld [vmem:[%s4465_s21 + $0x17c0] sm:$0xff] }
 0x13e   : > { %3165 = vmatpush1.bf16.msra.mxu1 %v3164_v0  ;;  %2911 = vmatprep.subr.bf16.mxu0 %v2910_v1  ;;  %v1048_v0 = vld [vmem:[%s4465_s21 + $0x1790] sm:$0xff]  ;;  %v3186_v1 = vpack.c.bf16 %v1057_v58, %v1049_v57  ;;  %v2932_v7 = vpack.c.bf16 %v1054_v63, %v1046_v62  ;;  %v3204_v58 = vpack.c.bf16 %v1120_v52, %v1112_v50  ;;  %v1215_v50 = vld [vmem:[%s4465_s21 + $0x1cc8] sm:$0xff]  ;;  %v1217_v52 = vld [vmem:[%s4465_s21 + $0x1cd8] sm:$0xff] }
 0x13f   : > { %3167 = vmatprep.subr.bf16.mxu1 %v3166_v5  ;;  %v1065_v5 = vld [vmem:[%s4465_s21 + $0x1818] sm:$0xff]  ;;  %v3188_v8 = vpack.c.bf16 %v1056_v2, %v1048_v0  ;;  %v1128_v62 = vld [vmem:[%s4465_s21 + $0x1a10] sm:$0xff]  ;;  %v3206_v63 = vpack.c.bf16 %v1137_v56, %v1129_v55  ;;  %v1151_v2 = vld [vmem:[%s4465_s21 + $0x1ac8] sm:$0xff] }
 0x140   : > { %v1136_v0 = vld [vmem:[%s4465_s21 + $0x1a50] sm:$0xff]  ;;  %v1206_v56 = vld [vmem:[%s4465_s21 + $0x1c80] sm:$0xff] }
 0x141   : > { %2913 = vmatpush1.bf16.msra.mxu0 %v2912_v11  ;;  %v1070_v11 = vld [vmem:[%s4465_s21 + $0x1840] sm:$0xff] }
 0x142   : > { %3169 = vmatpush1.bf16.msra.mxu1 %v3168_v12  ;;  %2915 = vmatprep.subr.bf16.mxu0 %v2914_v13  ;;  %v1064_v12 = vld [vmem:[%s4465_s21 + $0x1810] sm:$0xff]  ;;  %v3190_v13 = vpack.c.bf16 %v1073_v6, %v1065_v5  ;;  %v2936_v20 = vpack.c.bf16 %v1070_v11, %v1062_v10  ;;  %v3208_v6 = vpack.c.bf16 %v1136_v0, %v1128_v62  ;;  %v1231_v62 = vld [vmem:[%s4465_s21 + $0x1d48] sm:$0xff]  ;;  %v1233_v0 = vld [vmem:[%s4465_s21 + $0x1d58] sm:$0xff] }
 0x143   : > { %3171 = vmatprep.subr.bf16.mxu1 %v3170_v17  ;;  %v1081_v17 = vld [vmem:[%s4465_s21 + $0x1898] sm:$0xff]  ;;  %v3192_v21 = vpack.c.bf16 %v1072_v14, %v1064_v12  ;;  %v1144_v10 = vld [vmem:[%s4465_s21 + $0x1a90] sm:$0xff]  ;;  %v3210_v11 = vpack.c.bf16 %v1153_v4, %v1145_v3  ;;  %v1167_v14 = vld [vmem:[%s4465_s21 + $0x1b48] sm:$0xff] }
 0x144   : > { %v3194_v26 = vpack.c.bf16 %v1089_v18, %v1081_v17  ;;  %v1152_v12 = vld [vmem:[%s4465_s21 + $0x1ad0] sm:$0xff]  ;;  %v1222_v4 = vld [vmem:[%s4465_s21 + $0x1d00] sm:$0xff] }
 0x145   : > { %2917 = vmatpush1.bf16.msra.mxu0 %v2916_v23  ;;  %v1078_v23 = vld [vmem:[%s4465_s21 + $0x1880] sm:$0xff]  ;;  %v3212_v18 = vpack.c.bf16 %v1152_v12, %v1144_v10  ;;  %v1247_v10 = vld [vmem:[%s4465_s21 + $0x1dc8] sm:$0xff]  ;;  %v1249_v12 = vld [vmem:[%s4465_s21 + $0x1dd8] sm:$0xff] }
 0x146   : > { %3173 = vmatpush1.bf16.msra.mxu1 %v3172_v24  ;;  %2919 = vmatprep.subr.bf16.mxu0 %v2918_v25  ;;  %v1086_v24 = vld [vmem:[%s4465_s21 + $0x18c0] sm:$0xff]  ;;  %v1080_v25 = vld [vmem:[%s4465_s21 + $0x1890] sm:$0xff] }
 0x147   : > { %3175 = vmatprep.subr.bf16.mxu1 %v3174_v29  ;;  %v1103_v29 = vld [vmem:[%s4465_s21 + $0x1948] sm:$0xff]  ;;  %v2940_v33 = vpack.c.bf16 %v1086_v24, %v1078_v23  ;;  %v3196_v34 = vpack.c.bf16 %v1088_v27, %v1080_v25  ;;  %v3214_v23 = vpack.c.bf16 %v1169_v16, %v1161_v15  ;;  %v1168_v24 = vld [vmem:[%s4465_s21 + $0x1b50] sm:$0xff]  ;;  %v1177_v27 = vld [vmem:[%s4465_s21 + $0x1b98] sm:$0xff] }
 0x148   : > { %v1175_v25 = vld [vmem:[%s4465_s21 + $0x1b88] sm:$0xff]  ;;  %v1238_v16 = vld [vmem:[%s4465_s21 + $0x1d80] sm:$0xff] }
 0x149   : > { %2921 = vmatpush1.bf16.msra.mxu0 %v2920_v35  ;;  %v2942_v35 = vpack.c.bf16 %v1103_v29, %v1095_v28  ;;  %v1185_v28 = vld [vmem:[%s4465_s21 + $0x1bd8] sm:$0xff] }
 0x14a   : > { %3177 = vmatpush1.bf16.msra.mxu1 %v3176_v36  ;;  %2923 = vmatprep.subr.bf16.mxu0 %v2922_v37  ;;  %v1094_v36 = vld [vmem:[%s4465_s21 + $0x1900] sm:$0xff] }
 0x14b   : > { %3179 = vmatprep.subr.bf16.mxu1 %v3178_v41  ;;  %v1102_v37 = vld [vmem:[%s4465_s21 + $0x1940] sm:$0xff]  ;;  %v1111_v41 = vld [vmem:[%s4465_s21 + $0x1988] sm:$0xff] }
 0x14c   : > { %v2944_v45 = vpack.c.bf16 %v1102_v37, %v1094_v36  ;;  %v1184_v36 = vld [vmem:[%s4465_s21 + $0x1bd0] sm:$0xff]  ;;  %v1191_v37 = vld [vmem:[%s4465_s21 + $0x1c08] sm:$0xff] }
 0x14d   : > { %2925 = vmatpush1.bf16.msra.mxu0 %v2924_v47  ;;  %v2946_v47 = vpack.c.bf16 %v1119_v42, %v1111_v41  ;;  %v2966_v43 = vpack.c.bf16 %v1199_v38, %v1191_v37 }
 0x14e   : > { %3181 = vmatpush1.bf16.msra.mxu1 %v3180_v48  ;;  %2927 = vmatprep.subr.bf16.mxu0 %v2926_v49  ;;  %v1110_v48 = vld [vmem:[%s4465_s21 + $0x1980] sm:$0xff] }
 0x14f   : > { %3183 = vmatprep.subr.bf16.mxu1 %v3182_v53  ;;  %v1118_v49 = vld [vmem:[%s4465_s21 + $0x19c0] sm:$0xff]  ;;  %v1127_v53 = vld [vmem:[%s4465_s21 + $0x1a08] sm:$0xff] }
 0x150   : > { %v2948_v57 = vpack.c.bf16 %v1118_v49, %v1110_v48  ;;  %v1200_v48 = vld [vmem:[%s4465_s21 + $0x1c50] sm:$0xff]  ;;  %v1207_v49 = vld [vmem:[%s4465_s21 + $0x1c88] sm:$0xff] }
 0x151   : > { %2929 = vmatpush1.bf16.msra.mxu0 %v2928_v59  ;;  %v2950_v59 = vpack.c.bf16 %v1135_v54, %v1127_v53  ;;  %v2970_v55 = vpack.c.bf16 %v1215_v50, %v1207_v49 }
 0x152   : > { %3185 = vmatpush1.bf16.msra.mxu1 %v3184_v60  ;;  %2931 = vmatprep.subr.bf16.mxu0 %v2930_v61  ;;  %v1126_v60 = vld [vmem:[%s4465_s21 + $0x1a00] sm:$0xff] }
 0x153   : > { %3187 = vmatprep.subr.bf16.mxu1 %v3186_v1  ;;  %v1134_v61 = vld [vmem:[%s4465_s21 + $0x1a40] sm:$0xff]  ;;  %v1143_v1 = vld [vmem:[%s4465_s21 + $0x1a88] sm:$0xff] }
 0x154   : > { %v2952_v5 = vpack.c.bf16 %v1134_v61, %v1126_v60  ;;  %v1216_v60 = vld [vmem:[%s4465_s21 + $0x1cd0] sm:$0xff]  ;;  %v1223_v61 = vld [vmem:[%s4465_s21 + $0x1d08] sm:$0xff] }
 0x155   : > { %2933 = vmatpush1.bf16.msra.mxu0 %v2932_v7  ;;  %v2954_v7 = vpack.c.bf16 %v1151_v2, %v1143_v1  ;;  %v2974_v3 = vpack.c.bf16 %v1231_v62, %v1223_v61 }
 0x156   : > { %3189 = vmatpush1.bf16.msra.mxu1 %v3188_v8  ;;  %2935 = vmatprep.subr.bf16.mxu0 %v2934_v9  ;;  %v1142_v8 = vld [vmem:[%s4465_s21 + $0x1a80] sm:$0xff] }
 0x157   : > { %3191 = vmatprep.subr.bf16.mxu1 %v3190_v13  ;;  %v1150_v9 = vld [vmem:[%s4465_s21 + $0x1ac0] sm:$0xff]  ;;  %v1159_v13 = vld [vmem:[%s4465_s21 + $0x1b08] sm:$0xff] }
 0x158   : > { %1525 = vmatmul.mubr.f32.vlgmr.msra.gmra.mrb[0].mxu0 %v290_v19  ;;  %v2956_v17 = vpack.c.bf16 %v1150_v9, %v1142_v8  ;;  %v1232_v8 = vld [vmem:[%s4465_s21 + $0x1d50] sm:$0xff]  ;;  %v1239_v9 = vld [vmem:[%s4465_s21 + $0x1d88] sm:$0xff] }
 0x159   : > { %2937 = vmatpush1.bf16.msra.mxu0 %v2936_v20  ;;  %1809 = vmatmul.mubr.f32.vlgmr.msra.gmra.mrb[0].mxu1 %v290_v19  ;;  %v2958_v19 = vpack.c.bf16 %v1167_v14, %v1159_v13  ;;  %v1158_v20 = vld [vmem:[%s4465_s21 + $0x1b00] sm:$0xff]  ;;  %v2978_v15 = vpack.c.bf16 %v1247_v10, %v1239_v9 }
 0x15a   : > { %3193 = vmatpush1.bf16.msra.mxu1 %v3192_v21  ;;  %2939 = vmatprep.subr.bf16.mxu0 %v2938_v22  ;;  %v1166_v21 = vld [vmem:[%s4465_s21 + $0x1b40] sm:$0xff]  ;;  %v1160_v22 = vld [vmem:[%s4465_s21 + $0x1b10] sm:$0xff] }
 0x15b   : > { %3195 = vmatprep.subr.bf16.mxu1 %v3194_v26  ;;  %1595 = vmatprep.mubr.f32.mxu0 %v293_v32  ;;  %v1183_v26 = vld [vmem:[%s4465_s21 + $0x1bc8] sm:$0xff]  ;;  %v2960_v29 = vpack.c.bf16 %v1166_v21, %v1158_v20  ;;  %v3216_v30 = vpack.c.bf16 %v1168_v24, %v1160_v22  ;;  %v1248_v20 = vld [vmem:[%s4465_s21 + $0x1dd0] sm:$0xff]  ;;  %v1265_v24 = vld [vmem:[%s4465_s21 + $0x1e58] sm:$0xff] }
 0x15c   : > { %1879 = vmatprep.mubr.f32.mxu1 %v293_v32  ;;  %v2962_v31 = vpack.c.bf16 %v1183_v26, %v1175_v25  ;;  %v1174_v32 = vld [vmem:[%s4465_s21 + $0x1b80] sm:$0xff]  ;;  %v1255_v21 = vld [vmem:[%s4465_s21 + $0x1e08] sm:$0xff] }
 0x15d   : > { %2941 = vmatpush1.bf16.msra.mxu0 %v2940_v33  ;;  %v1182_v33 = vld [vmem:[%s4465_s21 + $0x1bc0] sm:$0xff]  ;;  %v1263_v22 = vld [vmem:[%s4465_s21 + $0x1e48] sm:$0xff] }
 0x15e   : > { %3197 = vmatpush1.bf16.msra.mxu1 %v3196_v34  ;;  %2943 = vmatprep.subr.bf16.mxu0 %v2942_v35  ;;  %v1176_v34 = vld [vmem:[%s4465_s21 + $0x1b90] sm:$0xff]  ;;  %v3218_v35 = vpack.c.bf16 %v1185_v28, %v1177_v27  ;;  %v2964_v41 = vpack.c.bf16 %v1182_v33, %v1174_v32  ;;  %v2982_v27 = vpack.c.bf16 %v1263_v22, %v1255_v21  ;;  %v1254_v28 = vld [vmem:[%s4465_s21 + $0x1e00] sm:$0xff]  ;;  %v1271_v33 = vld [vmem:[%s4465_s21 + $0x1e88] sm:$0xff] }
 0x15f   : > { %3199 = vmatprep.subr.bf16.mxu1 %v3198_v39  ;;  %v1193_v39 = vld [vmem:[%s4465_s21 + $0x1c18] sm:$0xff]  ;;  %v3220_v42 = vpack.c.bf16 %v1184_v36, %v1176_v34  ;;  %v1264_v32 = vld [vmem:[%s4465_s21 + $0x1e50] sm:$0xff]  ;;  %v1279_v34 = vld [vmem:[%s4465_s21 + $0x1ec8] sm:$0xff] }
 0x160   : > { %v1281_v36 = vld [vmem:[%s4465_s21 + $0x1ed8] sm:$0xff]  ;;  %v292_v21 = vld [vmem:[%s4456_s11 + $0x30] sm:$0xff] }
 0x161   : > { %2945 = vmatpush1.bf16.msra.mxu0 %v2944_v45  ;;  %v1198_v45 = vld [vmem:[%s4465_s21 + $0x1c40] sm:$0xff] }
 0x162   : > { %3201 = vmatpush1.bf16.msra.mxu1 %v3200_v46  ;;  %2947 = vmatprep.subr.bf16.mxu0 %v2946_v47  ;;  %v1192_v46 = vld [vmem:[%s4465_s21 + $0x1c10] sm:$0xff]  ;;  %v3222_v47 = vpack.c.bf16 %v1201_v40, %v1193_v39  ;;  %v2968_v53 = vpack.c.bf16 %v1198_v45, %v1190_v44  ;;  %v2986_v39 = vpack.c.bf16 %v1279_v34, %v1271_v33  ;;  %v1270_v40 = vld [vmem:[%s4465_s21 + $0x1e80] sm:$0xff]  ;;  %v1287_v45 = vld [vmem:[%s4465_s21 + $0x1f08] sm:$0xff] }
 0x163   : > { %3203 = vmatprep.subr.bf16.mxu1 %v3202_v51  ;;  %v1209_v51 = vld [vmem:[%s4465_s21 + $0x1c98] sm:$0xff]  ;;  %v3224_v54 = vpack.c.bf16 %v1200_v48, %v1192_v46  ;;  %v1280_v44 = vld [vmem:[%s4465_s21 + $0x1ed0] sm:$0xff]  ;;  %v1295_v46 = vld [vmem:[%s4465_s21 + $0x1f48] sm:$0xff] }
 0x164   : > { %v1297_v48 = vld [vmem:[%s4465_s21 + $0x1f58] sm:$0xff] }
 0x165   : > { %2949 = vmatpush1.bf16.msra.mxu0 %v2948_v57  ;;  %v1214_v57 = vld [vmem:[%s4465_s21 + $0x1cc0] sm:$0xff]  ;;  %v341_v33 = vld [vmem:[%s4465_s21 + $0x178] sm:$0xff] }
 0x166   : > { %3205 = vmatpush1.bf16.msra.mxu1 %v3204_v58  ;;  %2951 = vmatprep.subr.bf16.mxu0 %v2950_v59  ;;  %v1208_v58 = vld [vmem:[%s4465_s21 + $0x1c90] sm:$0xff]  ;;  %v3226_v59 = vpack.c.bf16 %v1217_v52, %v1209_v51  ;;  %v2972_v1 = vpack.c.bf16 %v1214_v57, %v1206_v56  ;;  %v2990_v51 = vpack.c.bf16 %v1295_v46, %v1287_v45  ;;  %v1286_v52 = vld [vmem:[%s4465_s21 + $0x1f00] sm:$0xff]  ;;  %v1303_v57 = vld [vmem:[%s4465_s21 + $0x1f88] sm:$0xff] }
 0x167   : > { %3207 = vmatprep.subr.bf16.mxu1 %v3206_v63  ;;  %v1225_v63 = vld [vmem:[%s4465_s21 + $0x1d18] sm:$0xff]  ;;  %v3228_v2 = vpack.c.bf16 %v1216_v60, %v1208_v58  ;;  %v1296_v56 = vld [vmem:[%s4465_s21 + $0x1f50] sm:$0xff]  ;;  %v1311_v58 = vld [vmem:[%s4465_s21 + $0x1fc8] sm:$0xff] }
 0x168   : > { %v1313_v60 = vld [vmem:[%s4465_s21 + $0x1fd8] sm:$0xff] }
 0x169   : > { %2953 = vmatpush1.bf16.msra.mxu0 %v2952_v5  ;;  %v1230_v5 = vld [vmem:[%s4465_s21 + $0x1d40] sm:$0xff]  ;;  %v349_v45 = vld [vmem:[%s4465_s21 + $0x1b8] sm:$0xff] }
 0x16a   : > { %3209 = vmatpush1.bf16.msra.mxu1 %v3208_v6  ;;  %2955 = vmatprep.subr.bf16.mxu0 %v2954_v7  ;;  %v1224_v6 = vld [vmem:[%s4465_s21 + $0x1d10] sm:$0xff]  ;;  %v3230_v7 = vpack.c.bf16 %v1233_v0, %v1225_v63  ;;  %v2976_v13 = vpack.c.bf16 %v1230_v5, %v1222_v4  ;;  %v2994_v63 = vpack.c.bf16 %v1311_v58, %v1303_v57  ;;  %v1302_v0 = vld [vmem:[%s4465_s21 + $0x1f80] sm:$0xff]  ;;  %v299_v5 = vld [vmem:[%s4465_s21 + $0x28] sm:$0xff] }
 0x16b   : > { %3211 = vmatprep.subr.bf16.mxu1 %v3210_v11  ;;  %v1241_v11 = vld [vmem:[%s4465_s21 + $0x1d98] sm:$0xff]  ;;  %v3232_v14 = vpack.c.bf16 %v1232_v8, %v1224_v6  ;;  %v1312_v4 = vld [vmem:[%s4465_s21 + $0x1fd0] sm:$0xff]  ;;  %v307_v6 = vld [vmem:[%s4465_s21 + $0x68] sm:$0xff] }
 0x16c   : > { %v309_v8 = vld [vmem:[%s4465_s21 + $0x78] sm:$0xff] }
 0x16d   : > { %2957 = vmatpush1.bf16.msra.mxu0 %v2956_v17  ;;  %v1246_v17 = vld [vmem:[%s4465_s21 + $0x1dc0] sm:$0xff]  ;;  %v357_v46 = vld [vmem:[%s4465_s21 + $0x1f8] sm:$0xff] }
 0x16e   : > { %3213 = vmatpush1.bf16.msra.mxu1 %v3212_v18  ;;  %2959 = vmatprep.subr.bf16.mxu0 %v2958_v19  ;;  %v1240_v18 = vld [vmem:[%s4465_s21 + $0x1d90] sm:$0xff]  ;;  %v3234_v19 = vpack.c.bf16 %v1249_v12, %v1241_v11  ;;  %v2980_v25 = vpack.c.bf16 %v1246_v17, %v1238_v16  ;;  %v3254_v11 = vpack.c.bf16 %v307_v6, %v299_v5  ;;  %v298_v12 = vld [vmem:[%s4465_s21 + $0x20] sm:$0xff]  ;;  %v315_v17 = vld [vmem:[%s4465_s21 + $0xa8] sm:$0xff] }
 0x16f   : > { %3215 = vmatprep.subr.bf16.mxu1 %v3214_v23  ;;  %v1257_v23 = vld [vmem:[%s4465_s21 + $0x1e18] sm:$0xff]  ;;  %v3236_v26 = vpack.c.bf16 %v1248_v20, %v1240_v18  ;;  %v308_v16 = vld [vmem:[%s4465_s21 + $0x70] sm:$0xff]  ;;  %v323_v18 = vld [vmem:[%s4465_s21 + $0xe8] sm:$0xff] }
 0x170   : > { %v325_v20 = vld [vmem:[%s4465_s21 + $0xf8] sm:$0xff] }
 0x171   : > { %2961 = vmatpush1.bf16.msra.mxu0 %v2960_v29  ;;  %v1262_v29 = vld [vmem:[%s4465_s21 + $0x1e40] sm:$0xff]  ;;  %v365_v57 = vld [vmem:[%s4465_s21 + $0x238] sm:$0xff] }
 0x172   : > { %3217 = vmatpush1.bf16.msra.mxu1 %v3216_v30  ;;  %2963 = vmatprep.subr.bf16.mxu0 %v2962_v31  ;;  %v1256_v30 = vld [vmem:[%s4465_s21 + $0x1e10] sm:$0xff]  ;;  %v3238_v31 = vpack.c.bf16 %v1265_v24, %v1257_v23  ;;  %v2984_v37 = vpack.c.bf16 %v1262_v29, %v1254_v28  ;;  %v3258_v24 = vpack.c.bf16 %v323_v18, %v315_v17  ;;  %v373_v58 = vld [vmem:[%s4465_s21 + $0x278] sm:$0xff] }
 0x173   : > { %3219 = vmatprep.subr.bf16.mxu1 %v3218_v35  ;;  %v1273_v35 = vld [vmem:[%s4465_s21 + $0x1e98] sm:$0xff]  ;;  %v3240_v38 = vpack.c.bf16 %v1264_v32, %v1256_v30  ;;  %v324_v29 = vld [vmem:[%s4465_s21 + $0xf0] sm:$0xff]  ;;  %v331_v30 = vld [vmem:[%s4465_s21 + $0x128] sm:$0xff] }
 0x174   : > { %v333_v32 = vld [vmem:[%s4465_s21 + $0x138] sm:$0xff] }
 0x175   : > { %2965 = vmatpush1.bf16.msra.mxu0 %v2964_v41  ;;  %v1278_v41 = vld [vmem:[%s4465_s21 + $0x1ec0] sm:$0xff]  ;;  %v381_v5 = vld [vmem:[%s4465_s21 + $0x2b8] sm:$0xff] }
 0x176   : > { %3221 = vmatpush1.bf16.msra.mxu1 %v3220_v42  ;;  %2967 = vmatprep.subr.bf16.mxu0 %v2966_v43  ;;  %v1272_v42 = vld [vmem:[%s4465_s21 + $0x1e90] sm:$0xff]  ;;  %v3242_v43 = vpack.c.bf16 %v1281_v36, %v1273_v35  ;;  %v2988_v49 = vpack.c.bf16 %v1278_v41, %v1270_v40  ;;  %v3518_v40 = vpack.c.bf16 %v341_v33, %v333_v32  ;;  %v389_v6 = vld [vmem:[%s4465_s21 + $0x2f8] sm:$0xff] }
 0x177   : > { %3223 = vmatprep.subr.bf16.mxu1 %v3222_v47  ;;  %v1289_v47 = vld [vmem:[%s4465_s21 + $0x1f18] sm:$0xff]  ;;  %v3244_v50 = vpack.c.bf16 %v1280_v44, %v1272_v42  ;;  %v340_v41 = vld [vmem:[%s4465_s21 + $0x170] sm:$0xff]  ;;  %v347_v42 = vld [vmem:[%s4465_s21 + $0x1a8] sm:$0xff] }
 0x178   : > { %v3922_v44 = vld [vmem:[%s4456_s11 + $0x8] sm:$0xff]  ;;  %v397_v17 = vld [vmem:[%s4465_s21 + $0x338] sm:$0xff] }
 0x179   : > { %2969 = vmatpush1.bf16.msra.mxu0 %v2968_v53  ;;  %v1294_v53 = vld [vmem:[%s4465_s21 + $0x1f40] sm:$0xff]  ;;  %v405_v18 = vld [vmem:[%s4465_s21 + $0x378] sm:$0xff] }
 0x17a   : > { %3225 = vmatpush1.bf16.msra.mxu1 %v3224_v54  ;;  %2971 = vmatprep.subr.bf16.mxu0 %v2970_v55  ;;  %v1288_v54 = vld [vmem:[%s4465_s21 + $0x1f10] sm:$0xff]  ;;  %v3246_v55 = vpack.c.bf16 %v1297_v48, %v1289_v47  ;;  %v2992_v61 = vpack.c.bf16 %v1294_v53, %v1286_v52  ;;  %v3522_v53 = vpack.c.bf16 %v357_v46, %v349_v45  ;;  %v426_v46 = vld [vmem:[%s4465_s21 + $0x420] sm:$0xff] }
 0x17b   : > { %3227 = vmatprep.subr.bf16.mxu1 %v3226_v59  ;;  %v1305_v59 = vld [vmem:[%s4465_s21 + $0x1f98] sm:$0xff]  ;;  %v3248_v62 = vpack.c.bf16 %v1296_v56, %v1288_v54  ;;  %v348_v52 = vld [vmem:[%s4465_s21 + $0x1b0] sm:$0xff]  ;;  %v371_v56 = vld [vmem:[%s4465_s21 + $0x268] sm:$0xff] }
 0x17c   : > { %v356_v54 = vld [vmem:[%s4465_s21 + $0x1f0] sm:$0xff] }
 0x17d   : > { %2973 = vmatpush1.bf16.msra.mxu0 %v2972_v1  ;;  %v1310_v1 = vld [vmem:[%s4465_s21 + $0x1fc0] sm:$0xff] }
 0x17e   : > { %3229 = vmatpush1.bf16.msra.mxu1 %v3228_v2  ;;  %2975 = vmatprep.subr.bf16.mxu0 %v2974_v3  ;;  %v1304_v2 = vld [vmem:[%s4465_s21 + $0x1f90] sm:$0xff]  ;;  %v3250_v3 = vpack.c.bf16 %v1313_v60, %v1305_v59  ;;  %v2996_v9 = vpack.c.bf16 %v1310_v1, %v1302_v0  ;;  %v3524_v60 = vpack.c.bf16 %v356_v54, %v348_v52  ;;  %v451_v52 = vld [vmem:[%s4465_s21 + $0x4e8] sm:$0xff]  ;;  %v453_v54 = vld [vmem:[%s4465_s21 + $0x4f8] sm:$0xff] }
 0x17f   : > { %3231 = vmatprep.subr.bf16.mxu1 %v3230_v7  ;;  %v301_v7 = vld [vmem:[%s4465_s21 + $0x38] sm:$0xff]  ;;  %v3252_v10 = vpack.c.bf16 %v1312_v4, %v1304_v2  ;;  %v364_v0 = vld [vmem:[%s4465_s21 + $0x230] sm:$0xff]  ;;  %v3526_v1 = vpack.c.bf16 %v373_v58, %v365_v57  ;;  %v387_v4 = vld [vmem:[%s4465_s21 + $0x2e8] sm:$0xff] }
 0x180   : > { %v372_v2 = vld [vmem:[%s4465_s21 + $0x270] sm:$0xff]  ;;  %v442_v58 = vld [vmem:[%s4465_s21 + $0x4a0] sm:$0xff] }
 0x181   : > { %2977 = vmatpush1.bf16.msra.mxu0 %v2976_v13  ;;  %v306_v13 = vld [vmem:[%s4465_s21 + $0x60] sm:$0xff] }
 0x182   : > { %3233 = vmatpush1.bf16.msra.mxu1 %v3232_v14  ;;  %2979 = vmatprep.subr.bf16.mxu0 %v2978_v15  ;;  %v300_v14 = vld [vmem:[%s4465_s21 + $0x30] sm:$0xff]  ;;  %v3510_v15 = vpack.c.bf16 %v309_v8, %v301_v7  ;;  %v3256_v22 = vpack.c.bf16 %v306_v13, %v298_v12  ;;  %v3528_v8 = vpack.c.bf16 %v372_v2, %v364_v0  ;;  %v467_v0 = vld [vmem:[%s4465_s21 + $0x568] sm:$0xff]  ;;  %v469_v2 = vld [vmem:[%s4465_s21 + $0x578] sm:$0xff] }
 0x183   : > { %3235 = vmatprep.subr.bf16.mxu1 %v3234_v19  ;;  %v317_v19 = vld [vmem:[%s4465_s21 + $0xb8] sm:$0xff]  ;;  %v3512_v23 = vpack.c.bf16 %v308_v16, %v300_v14  ;;  %v380_v12 = vld [vmem:[%s4465_s21 + $0x2b0] sm:$0xff]  ;;  %v3530_v13 = vpack.c.bf16 %v389_v6, %v381_v5  ;;  %v403_v16 = vld [vmem:[%s4465_s21 + $0x368] sm:$0xff] }
 0x184   : > { %v3514_v28 = vpack.c.bf16 %v325_v20, %v317_v19  ;;  %v388_v14 = vld [vmem:[%s4465_s21 + $0x2f0] sm:$0xff]  ;;  %v458_v6 = vld [vmem:[%s4465_s21 + $0x520] sm:$0xff] }
 0x185   : > { %2981 = vmatpush1.bf16.msra.mxu0 %v2980_v25  ;;  %v314_v25 = vld [vmem:[%s4465_s21 + $0xa0] sm:$0xff]  ;;  %v3532_v20 = vpack.c.bf16 %v388_v14, %v380_v12  ;;  %v483_v12 = vld [vmem:[%s4465_s21 + $0x5e8] sm:$0xff]  ;;  %v485_v14 = vld [vmem:[%s4465_s21 + $0x5f8] sm:$0xff] }
 0x186   : > { %3237 = vmatpush1.bf16.msra.mxu1 %v3236_v26  ;;  %2983 = vmatprep.subr.bf16.mxu0 %v2982_v27  ;;  %v322_v26 = vld [vmem:[%s4465_s21 + $0xe0] sm:$0xff]  ;;  %v316_v27 = vld [vmem:[%s4465_s21 + $0xb0] sm:$0xff] }
 0x187   : > { %3239 = vmatprep.subr.bf16.mxu1 %v3238_v31  ;;  %v339_v31 = vld [vmem:[%s4465_s21 + $0x168] sm:$0xff]  ;;  %v3260_v34 = vpack.c.bf16 %v322_v26, %v314_v25  ;;  %v3516_v35 = vpack.c.bf16 %v324_v29, %v316_v27  ;;  %v3534_v25 = vpack.c.bf16 %v405_v18, %v397_v17  ;;  %v404_v26 = vld [vmem:[%s4465_s21 + $0x370] sm:$0xff]  ;;  %v413_v29 = vld [vmem:[%s4465_s21 + $0x3b8] sm:$0xff] }
 0x188   : > { %v3262_v36 = vpack.c.bf16 %v339_v31, %v331_v30  ;;  %v411_v27 = vld [vmem:[%s4465_s21 + $0x3a8] sm:$0xff]  ;;  %v421_v30 = vld [vmem:[%s4465_s21 + $0x3f8] sm:$0xff]  ;;  %v474_v18 = vld [vmem:[%s4465_s21 + $0x5a0] sm:$0xff] }
 0x189   : > { %2985 = vmatpush1.bf16.msra.mxu0 %v2984_v37  ;;  %v330_v37 = vld [vmem:[%s4465_s21 + $0x120] sm:$0xff] }
 0x18a   : > { %3241 = vmatpush1.bf16.msra.mxu1 %v3240_v38  ;;  %2987 = vmatprep.subr.bf16.mxu0 %v2986_v39  ;;  %v338_v38 = vld [vmem:[%s4465_s21 + $0x160] sm:$0xff]  ;;  %v332_v39 = vld [vmem:[%s4465_s21 + $0x130] sm:$0xff] }
 0x18b   : > { %3243 = vmatprep.subr.bf16.mxu1 %v3242_v43  ;;  %v355_v43 = vld [vmem:[%s4465_s21 + $0x1e8] sm:$0xff]  ;;  %v3264_v47 = vpack.c.bf16 %v338_v38, %v330_v37  ;;  %v3520_v48 = vpack.c.bf16 %v340_v41, %v332_v39  ;;  %v3538_v37 = vpack.c.bf16 %v421_v30, %v413_v29  ;;  %v420_v38 = vld [vmem:[%s4465_s21 + $0x3f0] sm:$0xff]  ;;  %v429_v41 = vld [vmem:[%s4465_s21 + $0x438] sm:$0xff] }
 0x18c   : > { %v427_v39 = vld [vmem:[%s4465_s21 + $0x428] sm:$0xff]  ;;  %v490_v30 = vld [vmem:[%s4465_s21 + $0x620] sm:$0xff] }
 0x18d   : > { %2989 = vmatpush1.bf16.msra.mxu0 %v2988_v49  ;;  %v3266_v49 = vpack.c.bf16 %v355_v43, %v347_v42  ;;  %v437_v42 = vld [vmem:[%s4465_s21 + $0x478] sm:$0xff] }
 0x18e   : > { %3245 = vmatpush1.bf16.msra.mxu1 %v3244_v50  ;;  %2991 = vmatprep.subr.bf16.mxu0 %v2990_v51  ;;  %v346_v50 = vld [vmem:[%s4465_s21 + $0x1a0] sm:$0xff] }
 0x18f   : > { %3247 = vmatprep.subr.bf16.mxu1 %v3246_v55  ;;  %v354_v51 = vld [vmem:[%s4465_s21 + $0x1e0] sm:$0xff]  ;;  %v363_v55 = vld [vmem:[%s4465_s21 + $0x228] sm:$0xff] }
 0x190   : > { %v3268_v59 = vpack.c.bf16 %v354_v51, %v346_v50  ;;  %v436_v50 = vld [vmem:[%s4465_s21 + $0x470] sm:$0xff]  ;;  %v443_v51 = vld [vmem:[%s4465_s21 + $0x4a8] sm:$0xff] }
 0x191   : > { %2993 = vmatpush1.bf16.msra.mxu0 %v2992_v61  ;;  %v3270_v61 = vpack.c.bf16 %v371_v56, %v363_v55  ;;  %v3290_v57 = vpack.c.bf16 %v451_v52, %v443_v51 }
 0x192   : > { %3249 = vmatpush1.bf16.msra.mxu1 %v3248_v62  ;;  %2995 = vmatprep.subr.bf16.mxu0 %v2994_v63  ;;  %v362_v62 = vld [vmem:[%s4465_s21 + $0x220] sm:$0xff] }
 0x193   : > { %3251 = vmatprep.subr.bf16.mxu1 %v3250_v3  ;;  %v370_v63 = vld [vmem:[%s4465_s21 + $0x260] sm:$0xff]  ;;  %v379_v3 = vld [vmem:[%s4465_s21 + $0x2a8] sm:$0xff] }
 0x194   : > { %v3272_v7 = vpack.c.bf16 %v370_v63, %v362_v62  ;;  %v452_v62 = vld [vmem:[%s4465_s21 + $0x4f0] sm:$0xff]  ;;  %v459_v63 = vld [vmem:[%s4465_s21 + $0x528] sm:$0xff] }
 0x195   : > { %2997 = vmatpush1.bf16.msra.mxu0 %v2996_v9  ;;  %v3274_v9 = vpack.c.bf16 %v387_v4, %v379_v3  ;;  %v3294_v5 = vpack.c.bf16 %v467_v0, %v459_v63 }
 0x196   : > { %3253 = vmatpush1.bf16.msra.mxu1 %v3252_v10  ;;  %3255 = vmatprep.subr.bf16.mxu0 %v3254_v11  ;;  %v378_v10 = vld [vmem:[%s4465_s21 + $0x2a0] sm:$0xff] }
 0x197   : > { %3511 = vmatprep.subr.bf16.mxu1 %v3510_v15  ;;  %v386_v11 = vld [vmem:[%s4465_s21 + $0x2e0] sm:$0xff]  ;;  %v395_v15 = vld [vmem:[%s4465_s21 + $0x328] sm:$0xff] }
 0x198   : > { %1596 = vmatmul.mubr.f32.vlgmr.msra.gmra.mrb[0].mxu0 %v292_v21  ;;  %v3276_v19 = vpack.c.bf16 %v386_v11, %v378_v10  ;;  %v468_v10 = vld [vmem:[%s4465_s21 + $0x570] sm:$0xff]  ;;  %v475_v11 = vld [vmem:[%s4465_s21 + $0x5a8] sm:$0xff] }
 0x199   : > { %1880 = vmatmul.mubr.f32.vlgmr.msra.gmra.mrb[0].mxu1 %v292_v21  ;;  %3257 = vmatpush1.bf16.msra.mxu0 %v3256_v22  ;;  %v3278_v21 = vpack.c.bf16 %v403_v16, %v395_v15  ;;  %v394_v22 = vld [vmem:[%s4465_s21 + $0x320] sm:$0xff]  ;;  %v3298_v17 = vpack.c.bf16 %v483_v12, %v475_v11 }
 0x19a   : > { %3513 = vmatpush1.bf16.msra.mxu1 %v3512_v23  ;;  %3259 = vmatprep.subr.bf16.mxu0 %v3258_v24  ;;  %v402_v23 = vld [vmem:[%s4465_s21 + $0x360] sm:$0xff]  ;;  %v396_v24 = vld [vmem:[%s4465_s21 + $0x330] sm:$0xff] }
 0x19b   : > { %3515 = vmatprep.subr.bf16.mxu1 %v3514_v28  ;;  %1950 = vmatprep.mubr.f32.mxu0 %v3922_v44  ;;  %v419_v28 = vld [vmem:[%s4465_s21 + $0x3e8] sm:$0xff]  ;;  %v3280_v31 = vpack.c.bf16 %v402_v23, %v394_v22  ;;  %v3536_v32 = vpack.c.bf16 %v404_v26, %v396_v24  ;;  %v484_v22 = vld [vmem:[%s4465_s21 + $0x5f0] sm:$0xff]  ;;  %v501_v26 = vld [vmem:[%s4465_s21 + $0x678] sm:$0xff] }
 0x19c   : > { %2234 = vmatprep.mubr.f32.mxu1 %v3922_v44  ;;  %v3282_v33 = vpack.c.bf16 %v419_v28, %v411_v27  ;;  %v491_v23 = vld [vmem:[%s4465_s21 + $0x628] sm:$0xff] }
 0x19d   : > { %3261 = vmatpush1.bf16.msra.mxu0 %v3260_v34  ;;  %v410_v34 = vld [vmem:[%s4465_s21 + $0x3a0] sm:$0xff]  ;;  %v499_v24 = vld [vmem:[%s4465_s21 + $0x668] sm:$0xff] }
 0x19e   : > { %3517 = vmatpush1.bf16.msra.mxu1 %v3516_v35  ;;  %3263 = vmatprep.subr.bf16.mxu0 %v3262_v36  ;;  %v418_v35 = vld [vmem:[%s4465_s21 + $0x3e0] sm:$0xff]  ;;  %v412_v36 = vld [vmem:[%s4465_s21 + $0x3b0] sm:$0xff]  ;;  %v3302_v29 = vpack.c.bf16 %v499_v24, %v491_v23 }
 0x19f   : > { %3519 = vmatprep.subr.bf16.mxu1 %v3518_v40  ;;  %v435_v40 = vld [vmem:[%s4465_s21 + $0x468] sm:$0xff]  ;;  %v3284_v43 = vpack.c.bf16 %v418_v35, %v410_v34  ;;  %v3540_v44 = vpack.c.bf16 %v420_v38, %v412_v36  ;;  %v500_v34 = vld [vmem:[%s4465_s21 + $0x670] sm:$0xff]  ;;  %v517_v38 = vld [vmem:[%s4465_s21 + $0x6f8] sm:$0xff] }
 0x1a0   : > { %v3286_v45 = vpack.c.bf16 %v435_v40, %v427_v39  ;;  %v507_v35 = vld [vmem:[%s4465_s21 + $0x6a8] sm:$0xff] }
 0x1a1   : > { %3265 = vmatpush1.bf16.msra.mxu0 %v3264_v47  ;;  %v434_v47 = vld [vmem:[%s4465_s21 + $0x460] sm:$0xff]  ;;  %v515_v36 = vld [vmem:[%s4465_s21 + $0x6e8] sm:$0xff] }
 0x1a2   : > { %3521 = vmatpush1.bf16.msra.mxu1 %v3520_v48  ;;  %3267 = vmatprep.subr.bf16.mxu0 %v3266_v49  ;;  %v428_v48 = vld [vmem:[%s4465_s21 + $0x430] sm:$0xff]  ;;  %v3542_v49 = vpack.c.bf16 %v437_v42, %v429_v41  ;;  %v3288_v55 = vpack.c.bf16 %v434_v47, %v426_v46  ;;  %v3306_v41 = vpack.c.bf16 %v515_v36, %v507_v35  ;;  %v506_v42 = vld [vmem:[%s4465_s21 + $0x6a0] sm:$0xff]  ;;  %v523_v47 = vld [vmem:[%s4465_s21 + $0x728] sm:$0xff] }
 0x1a3   : > { %3523 = vmatprep.subr.bf16.mxu1 %v3522_v53  ;;  %v445_v53 = vld [vmem:[%s4465_s21 + $0x4b8] sm:$0xff]  ;;  %v3544_v56 = vpack.c.bf16 %v436_v50, %v428_v48  ;;  %v516_v46 = vld [vmem:[%s4465_s21 + $0x6f0] sm:$0xff]  ;;  %v531_v48 = vld [vmem:[%s4465_s21 + $0x768] sm:$0xff] }
 0x1a4   : > { %v533_v50 = vld [vmem:[%s4465_s21 + $0x778] sm:$0xff] }
 0x1a5   : > { %3269 = vmatpush1.bf16.msra.mxu0 %v3268_v59  ;;  %v450_v59 = vld [vmem:[%s4465_s21 + $0x4e0] sm:$0xff]  ;;  %v597_v35 = vld [vmem:[%s4465_s21 + $0x978] sm:$0xff] }
 0x1a6   : > { %3525 = vmatpush1.bf16.msra.mxu1 %v3524_v60  ;;  %3271 = vmatprep.subr.bf16.mxu0 %v3270_v61  ;;  %v444_v60 = vld [vmem:[%s4465_s21 + $0x4b0] sm:$0xff]  ;;  %v3546_v61 = vpack.c.bf16 %v453_v54, %v445_v53  ;;  %v3292_v3 = vpack.c.bf16 %v450_v59, %v442_v58  ;;  %v3310_v53 = vpack.c.bf16 %v531_v48, %v523_v47  ;;  %v522_v54 = vld [vmem:[%s4465_s21 + $0x720] sm:$0xff]  ;;  %v539_v59 = vld [vmem:[%s4465_s21 + $0x7a8] sm:$0xff] }
 0x1a7   : > { %3527 = vmatprep.subr.bf16.mxu1 %v3526_v1  ;;  %v461_v1 = vld [vmem:[%s4465_s21 + $0x538] sm:$0xff]  ;;  %v3548_v4 = vpack.c.bf16 %v452_v62, %v444_v60  ;;  %v532_v58 = vld [vmem:[%s4465_s21 + $0x770] sm:$0xff]  ;;  %v547_v60 = vld [vmem:[%s4465_s21 + $0x7e8] sm:$0xff] }
 0x1a8   : > { %v549_v62 = vld [vmem:[%s4465_s21 + $0x7f8] sm:$0xff] }
 0x1a9   : > { %3273 = vmatpush1.bf16.msra.mxu0 %v3272_v7  ;;  %v466_v7 = vld [vmem:[%s4465_s21 + $0x560] sm:$0xff]  ;;  %v605_v47 = vld [vmem:[%s4465_s21 + $0x9b8] sm:$0xff] }
 0x1aa   : > { %3529 = vmatpush1.bf16.msra.mxu1 %v3528_v8  ;;  %3275 = vmatprep.subr.bf16.mxu0 %v3274_v9  ;;  %v460_v8 = vld [vmem:[%s4465_s21 + $0x530] sm:$0xff]  ;;  %v3550_v9 = vpack.c.bf16 %v469_v2, %v461_v1  ;;  %v3296_v15 = vpack.c.bf16 %v466_v7, %v458_v6  ;;  %v3314_v1 = vpack.c.bf16 %v547_v60, %v539_v59  ;;  %v538_v2 = vld [vmem:[%s4465_s21 + $0x7a0] sm:$0xff]  ;;  %v555_v7 = vld [vmem:[%s4465_s21 + $0x828] sm:$0xff] }
 0x1ab   : > { %3531 = vmatprep.subr.bf16.mxu1 %v3530_v13  ;;  %v477_v13 = vld [vmem:[%s4465_s21 + $0x5b8] sm:$0xff]  ;;  %v3552_v16 = vpack.c.bf16 %v468_v10, %v460_v8  ;;  %v548_v6 = vld [vmem:[%s4465_s21 + $0x7f0] sm:$0xff]  ;;  %v563_v8 = vld [vmem:[%s4465_s21 + $0x868] sm:$0xff] }
 0x1ac   : > { %v565_v10 = vld [vmem:[%s4465_s21 + $0x878] sm:$0xff] }
 0x1ad   : > { %3277 = vmatpush1.bf16.msra.mxu0 %v3276_v19  ;;  %v482_v19 = vld [vmem:[%s4465_s21 + $0x5e0] sm:$0xff]  ;;  %v613_v48 = vld [vmem:[%s4465_s21 + $0x9f8] sm:$0xff] }
 0x1ae   : > { %3533 = vmatpush1.bf16.msra.mxu1 %v3532_v20  ;;  %3279 = vmatprep.subr.bf16.mxu0 %v3278_v21  ;;  %v476_v20 = vld [vmem:[%s4465_s21 + $0x5b0] sm:$0xff]  ;;  %v3554_v21 = vpack.c.bf16 %v485_v14, %v477_v13  ;;  %v3300_v27 = vpack.c.bf16 %v482_v19, %v474_v18  ;;  %v3318_v13 = vpack.c.bf16 %v563_v8, %v555_v7  ;;  %v554_v14 = vld [vmem:[%s4465_s21 + $0x820] sm:$0xff]  ;;  %v571_v19 = vld [vmem:[%s4465_s21 + $0x8a8] sm:$0xff] }
 0x1af   : > { %3535 = vmatprep.subr.bf16.mxu1 %v3534_v25  ;;  %v493_v25 = vld [vmem:[%s4465_s21 + $0x638] sm:$0xff]  ;;  %v3556_v28 = vpack.c.bf16 %v484_v22, %v476_v20  ;;  %v564_v18 = vld [vmem:[%s4465_s21 + $0x870] sm:$0xff]  ;;  %v579_v20 = vld [vmem:[%s4465_s21 + $0x8e8] sm:$0xff] }
 0x1b0   : > { %v581_v22 = vld [vmem:[%s4465_s21 + $0x8f8] sm:$0xff] }
 0x1b1   : > { %3281 = vmatpush1.bf16.msra.mxu0 %v3280_v31  ;;  %v498_v31 = vld [vmem:[%s4465_s21 + $0x660] sm:$0xff]  ;;  %v621_v59 = vld [vmem:[%s4465_s21 + $0xa38] sm:$0xff] }
 0x1b2   : > { %3537 = vmatpush1.bf16.msra.mxu1 %v3536_v32  ;;  %3283 = vmatprep.subr.bf16.mxu0 %v3282_v33  ;;  %v492_v32 = vld [vmem:[%s4465_s21 + $0x630] sm:$0xff]  ;;  %v3558_v33 = vpack.c.bf16 %v501_v26, %v493_v25  ;;  %v3304_v39 = vpack.c.bf16 %v498_v31, %v490_v30  ;;  %v3322_v25 = vpack.c.bf16 %v579_v20, %v571_v19  ;;  %v570_v26 = vld [vmem:[%s4465_s21 + $0x8a0] sm:$0xff]  ;;  %v587_v31 = vld [vmem:[%s4465_s21 + $0x928] sm:$0xff] }
 0x1b3   : > { %3539 = vmatprep.subr.bf16.mxu1 %v3538_v37  ;;  %v509_v37 = vld [vmem:[%s4465_s21 + $0x6b8] sm:$0xff]  ;;  %v3560_v40 = vpack.c.bf16 %v500_v34, %v492_v32  ;;  %v580_v30 = vld [vmem:[%s4465_s21 + $0x8f0] sm:$0xff]  ;;  %v595_v32 = vld [vmem:[%s4465_s21 + $0x968] sm:$0xff] }
 0x1b4   : > { %v589_v34 = vld [vmem:[%s4465_s21 + $0x938] sm:$0xff] }
 0x1b5   : > { %3285 = vmatpush1.bf16.msra.mxu0 %v3284_v43  ;;  %v514_v43 = vld [vmem:[%s4465_s21 + $0x6e0] sm:$0xff]  ;;  %v629_v60 = vld [vmem:[%s4465_s21 + $0xa78] sm:$0xff] }
 0x1b6   : > { %3541 = vmatpush1.bf16.msra.mxu1 %v3540_v44  ;;  %3287 = vmatprep.subr.bf16.mxu0 %v3286_v45  ;;  %v508_v44 = vld [vmem:[%s4465_s21 + $0x6b0] sm:$0xff]  ;;  %v3562_v45 = vpack.c.bf16 %v517_v38, %v509_v37  ;;  %v3308_v51 = vpack.c.bf16 %v514_v43, %v506_v42  ;;  %v3326_v38 = vpack.c.bf16 %v595_v32, %v587_v31  ;;  %v637_v7 = vld [vmem:[%s4465_s21 + $0xab8] sm:$0xff] }
 0x1b7   : > { %3543 = vmatprep.subr.bf16.mxu1 %v3542_v49  ;;  %v525_v49 = vld [vmem:[%s4465_s21 + $0x738] sm:$0xff]  ;;  %v3564_v52 = vpack.c.bf16 %v516_v46, %v508_v44  ;;  %v3582_v42 = vpack.c.bf16 %v597_v35, %v589_v34  ;;  %v596_v43 = vld [vmem:[%s4465_s21 + $0x970] sm:$0xff]  ;;  %v603_v44 = vld [vmem:[%s4465_s21 + $0x9a8] sm:$0xff] }
 0x1b8   : > { %v3924_v46 = vld [vmem:[%s4456_s11 + $0x18] sm:$0xff] }
 0x1b9   : > { %3289 = vmatpush1.bf16.msra.mxu0 %v3288_v55  ;;  %v530_v55 = vld [vmem:[%s4465_s21 + $0x760] sm:$0xff]  ;;  %v645_v8 = vld [vmem:[%s4465_s21 + $0xaf8] sm:$0xff] }
 0x1ba   : > { %3545 = vmatpush1.bf16.msra.mxu1 %v3544_v56  ;;  %3291 = vmatprep.subr.bf16.mxu0 %v3290_v57  ;;  %v524_v56 = vld [vmem:[%s4465_s21 + $0x730] sm:$0xff]  ;;  %v3566_v57 = vpack.c.bf16 %v533_v50, %v525_v49  ;;  %v3312_v63 = vpack.c.bf16 %v530_v55, %v522_v54  ;;  %v3586_v55 = vpack.c.bf16 %v613_v48, %v605_v47  ;;  %v653_v19 = vld [vmem:[%s4465_s21 + $0xb38] sm:$0xff]  ;;  %v682_v48 = vld [vmem:[%s4465_s21 + $0xc20] sm:$0xff] }
 0x1bb   : > { %3547 = vmatprep.subr.bf16.mxu1 %v3546_v61  ;;  %v541_v61 = vld [vmem:[%s4465_s21 + $0x7b8] sm:$0xff]  ;;  %v3568_v0 = vpack.c.bf16 %v532_v58, %v524_v56  ;;  %v604_v54 = vld [vmem:[%s4465_s21 + $0x9b0] sm:$0xff]  ;;  %v627_v58 = vld [vmem:[%s4465_s21 + $0xa68] sm:$0xff] }
 0x1bc   : > { %v612_v56 = vld [vmem:[%s4465_s21 + $0x9f0] sm:$0xff]  ;;  %v661_v20 = vld [vmem:[%s4465_s21 + $0xb78] sm:$0xff] }
 0x1bd   : > { %3293 = vmatpush1.bf16.msra.mxu0 %v3292_v3  ;;  %v546_v3 = vld [vmem:[%s4465_s21 + $0x7e0] sm:$0xff]  ;;  %v669_v31 = vld [vmem:[%s4465_s21 + $0xbb8] sm:$0xff] }
 0x1be   : > { %3549 = vmatpush1.bf16.msra.mxu1 %v3548_v4  ;;  %3295 = vmatprep.subr.bf16.mxu0 %v3294_v5  ;;  %v540_v4 = vld [vmem:[%s4465_s21 + $0x7b0] sm:$0xff]  ;;  %v3570_v5 = vpack.c.bf16 %v549_v62, %v541_v61  ;;  %v3316_v11 = vpack.c.bf16 %v546_v3, %v538_v2  ;;  %v3588_v62 = vpack.c.bf16 %v612_v56, %v604_v54  ;;  %v677_v32 = vld [vmem:[%s4465_s21 + $0xbf8] sm:$0xff]  ;;  %v707_v54 = vld [vmem:[%s4465_s21 + $0xce8] sm:$0xff] }
 0x1bf   : > { %3551 = vmatprep.subr.bf16.mxu1 %v3550_v9  ;;  %v557_v9 = vld [vmem:[%s4465_s21 + $0x838] sm:$0xff]  ;;  %v3572_v12 = vpack.c.bf16 %v548_v6, %v540_v4  ;;  %v620_v2 = vld [vmem:[%s4465_s21 + $0xa30] sm:$0xff]  ;;  %v3590_v3 = vpack.c.bf16 %v629_v60, %v621_v59  ;;  %v643_v6 = vld [vmem:[%s4465_s21 + $0xae8] sm:$0xff] }
 0x1c0   : > { %v628_v4 = vld [vmem:[%s4465_s21 + $0xa70] sm:$0xff]  ;;  %v709_v56 = vld [vmem:[%s4465_s21 + $0xcf8] sm:$0xff]  ;;  %v698_v60 = vld [vmem:[%s4465_s21 + $0xca0] sm:$0xff] }
 0x1c1   : > { %3297 = vmatpush1.bf16.msra.mxu0 %v3296_v15  ;;  %v562_v15 = vld [vmem:[%s4465_s21 + $0x860] sm:$0xff] }
 0x1c2   : > { %3553 = vmatpush1.bf16.msra.mxu1 %v3552_v16  ;;  %3299 = vmatprep.subr.bf16.mxu0 %v3298_v17  ;;  %v556_v16 = vld [vmem:[%s4465_s21 + $0x830] sm:$0xff]  ;;  %v3574_v17 = vpack.c.bf16 %v565_v10, %v557_v9  ;;  %v3320_v23 = vpack.c.bf16 %v562_v15, %v554_v14  ;;  %v3592_v10 = vpack.c.bf16 %v628_v4, %v620_v2  ;;  %v723_v2 = vld [vmem:[%s4465_s21 + $0xd68] sm:$0xff]  ;;  %v725_v4 = vld [vmem:[%s4465_s21 + $0xd78] sm:$0xff] }
 0x1c3   : > { %3555 = vmatprep.subr.bf16.mxu1 %v3554_v21  ;;  %v573_v21 = vld [vmem:[%s4465_s21 + $0x8b8] sm:$0xff]  ;;  %v3576_v24 = vpack.c.bf16 %v564_v18, %v556_v16  ;;  %v636_v14 = vld [vmem:[%s4465_s21 + $0xab0] sm:$0xff]  ;;  %v3594_v15 = vpack.c.bf16 %v645_v8, %v637_v7  ;;  %v659_v18 = vld [vmem:[%s4465_s21 + $0xb68] sm:$0xff] }
 0x1c4   : > { %v644_v16 = vld [vmem:[%s4465_s21 + $0xaf0] sm:$0xff]  ;;  %v714_v8 = vld [vmem:[%s4465_s21 + $0xd20] sm:$0xff] }
 0x1c5   : > { %3301 = vmatpush1.bf16.msra.mxu0 %v3300_v27  ;;  %v578_v27 = vld [vmem:[%s4465_s21 + $0x8e0] sm:$0xff] }
 0x1c6   : > { %3557 = vmatpush1.bf16.msra.mxu1 %v3556_v28  ;;  %3303 = vmatprep.subr.bf16.mxu0 %v3302_v29  ;;  %v572_v28 = vld [vmem:[%s4465_s21 + $0x8b0] sm:$0xff]  ;;  %v3578_v29 = vpack.c.bf16 %v581_v22, %v573_v21  ;;  %v3324_v36 = vpack.c.bf16 %v578_v27, %v570_v26  ;;  %v3596_v22 = vpack.c.bf16 %v644_v16, %v636_v14  ;;  %v739_v14 = vld [vmem:[%s4465_s21 + $0xde8] sm:$0xff]  ;;  %v741_v16 = vld [vmem:[%s4465_s21 + $0xdf8] sm:$0xff] }
 0x1c7   : > { %3559 = vmatprep.subr.bf16.mxu1 %v3558_v33  ;;  %v3923_v33 = vld [vmem:[%s4456_s11] sm:$0xff]  ;;  %v3580_v37 = vpack.c.bf16 %v580_v30, %v572_v28  ;;  %v652_v26 = vld [vmem:[%s4465_s21 + $0xb30] sm:$0xff]  ;;  %v3598_v27 = vpack.c.bf16 %v661_v20, %v653_v19  ;;  %v675_v30 = vld [vmem:[%s4465_s21 + $0xbe8] sm:$0xff] }
 0x1c8   : > { %v660_v28 = vld [vmem:[%s4465_s21 + $0xb70] sm:$0xff]  ;;  %v730_v20 = vld [vmem:[%s4465_s21 + $0xda0] sm:$0xff] }
 0x1c9   : > { %3305 = vmatpush1.bf16.msra.mxu0 %v3304_v39  ;;  %v586_v39 = vld [vmem:[%s4465_s21 + $0x920] sm:$0xff]  ;;  %v3600_v34 = vpack.c.bf16 %v660_v28, %v652_v26  ;;  %v755_v26 = vld [vmem:[%s4465_s21 + $0xe68] sm:$0xff]  ;;  %v757_v28 = vld [vmem:[%s4465_s21 + $0xe78] sm:$0xff] }
 0x1ca   : > { %3561 = vmatpush1.bf16.msra.mxu1 %v3560_v40  ;;  %3307 = vmatprep.subr.bf16.mxu0 %v3306_v41  ;;  %v594_v40 = vld [vmem:[%s4465_s21 + $0x960] sm:$0xff]  ;;  %v588_v41 = vld [vmem:[%s4465_s21 + $0x930] sm:$0xff] }
 0x1cb   : > { %3563 = vmatprep.subr.bf16.mxu1 %v3562_v45  ;;  %v611_v45 = vld [vmem:[%s4465_s21 + $0x9e8] sm:$0xff]  ;;  %v3328_v49 = vpack.c.bf16 %v594_v40, %v586_v39  ;;  %v3584_v50 = vpack.c.bf16 %v596_v43, %v588_v41  ;;  %v3602_v39 = vpack.c.bf16 %v677_v32, %v669_v31  ;;  %v676_v40 = vld [vmem:[%s4465_s21 + $0xbf0] sm:$0xff]  ;;  %v685_v43 = vld [vmem:[%s4465_s21 + $0xc38] sm:$0xff] }
 0x1cc   : > { %v683_v41 = vld [vmem:[%s4465_s21 + $0xc28] sm:$0xff]  ;;  %v746_v32 = vld [vmem:[%s4465_s21 + $0xe20] sm:$0xff] }
 0x1cd   : > { %3309 = vmatpush1.bf16.msra.mxu0 %v3308_v51  ;;  %v3330_v51 = vpack.c.bf16 %v611_v45, %v603_v44  ;;  %v693_v44 = vld [vmem:[%s4465_s21 + $0xc78] sm:$0xff] }
 0x1ce   : > { %3565 = vmatpush1.bf16.msra.mxu1 %v3564_v52  ;;  %3311 = vmatprep.subr.bf16.mxu0 %v3310_v53  ;;  %v602_v52 = vld [vmem:[%s4465_s21 + $0x9a0] sm:$0xff] }
 0x1cf   : > { %3567 = vmatprep.subr.bf16.mxu1 %v3566_v57  ;;  %v610_v53 = vld [vmem:[%s4465_s21 + $0x9e0] sm:$0xff]  ;;  %v619_v57 = vld [vmem:[%s4465_s21 + $0xa28] sm:$0xff] }
 0x1d0   : > { %v3332_v61 = vpack.c.bf16 %v610_v53, %v602_v52  ;;  %v692_v52 = vld [vmem:[%s4465_s21 + $0xc70] sm:$0xff]  ;;  %v699_v53 = vld [vmem:[%s4465_s21 + $0xca8] sm:$0xff] }
 0x1d1   : > { %3313 = vmatpush1.bf16.msra.mxu0 %v3312_v63  ;;  %v3334_v63 = vpack.c.bf16 %v627_v58, %v619_v57  ;;  %v3354_v59 = vpack.c.bf16 %v707_v54, %v699_v53 }
 0x1d2   : > { %3569 = vmatpush1.bf16.msra.mxu1 %v3568_v0  ;;  %3315 = vmatprep.subr.bf16.mxu0 %v3314_v1  ;;  %v618_v0 = vld [vmem:[%s4465_s21 + $0xa20] sm:$0xff] }
 0x1d3   : > { %3571 = vmatprep.subr.bf16.mxu1 %v3570_v5  ;;  %v626_v1 = vld [vmem:[%s4465_s21 + $0xa60] sm:$0xff]  ;;  %v635_v5 = vld [vmem:[%s4465_s21 + $0xaa8] sm:$0xff] }
 0x1d4   : > { %v3336_v9 = vpack.c.bf16 %v626_v1, %v618_v0  ;;  %v708_v0 = vld [vmem:[%s4465_s21 + $0xcf0] sm:$0xff]  ;;  %v715_v1 = vld [vmem:[%s4465_s21 + $0xd28] sm:$0xff] }
 0x1d5   : > { %3317 = vmatpush1.bf16.msra.mxu0 %v3316_v11  ;;  %v3338_v11 = vpack.c.bf16 %v643_v6, %v635_v5  ;;  %v3358_v7 = vpack.c.bf16 %v723_v2, %v715_v1 }
 0x1d6   : > { %3573 = vmatpush1.bf16.msra.mxu1 %v3572_v12  ;;  %3319 = vmatprep.subr.bf16.mxu0 %v3318_v13  ;;  %v634_v12 = vld [vmem:[%s4465_s21 + $0xaa0] sm:$0xff] }
 0x1d7   : > { %3575 = vmatprep.subr.bf16.mxu1 %v3574_v17  ;;  %v642_v13 = vld [vmem:[%s4465_s21 + $0xae0] sm:$0xff]  ;;  %v651_v17 = vld [vmem:[%s4465_s21 + $0xb28] sm:$0xff] }
 0x1d8   : > { %1951 = vmatmul.mubr.f32.vlgmr.msra.gmra.mrb[2].mxu0 %v3923_v33  ;;  %v3340_v21 = vpack.c.bf16 %v642_v13, %v634_v12  ;;  %v724_v12 = vld [vmem:[%s4465_s21 + $0xd70] sm:$0xff]  ;;  %v731_v13 = vld [vmem:[%s4465_s21 + $0xda8] sm:$0xff] }
 0x1d9   : > { %3321 = vmatpush1.bf16.msra.mxu0 %v3320_v23  ;;  %2235 = vmatmul.mubr.f32.vlgmr.msra.gmra.mrb[2].mxu1 %v3923_v33  ;;  %v3342_v23 = vpack.c.bf16 %v659_v18, %v651_v17  ;;  %v3362_v19 = vpack.c.bf16 %v739_v14, %v731_v13 }
 0x1da   : > { %3577 = vmatpush1.bf16.msra.mxu1 %v3576_v24  ;;  %3323 = vmatprep.subr.bf16.mxu0 %v3322_v25  ;;  %v650_v24 = vld [vmem:[%s4465_s21 + $0xb20] sm:$0xff] }
 0x1db   : > { %3579 = vmatprep.subr.bf16.mxu1 %v3578_v29  ;;  %2021 = vmatprep.mubr.f32.mxu0 %v3924_v46  ;;  %v658_v25 = vld [vmem:[%s4465_s21 + $0xb60] sm:$0xff]  ;;  %v667_v29 = vld [vmem:[%s4465_s21 + $0xba8] sm:$0xff] }
 0x1dc   : > { %2305 = vmatprep.mubr.f32.mxu1 %v3924_v46  ;;  %v3344_v33 = vpack.c.bf16 %v658_v25, %v650_v24  ;;  %v3346_v35 = vpack.c.bf16 %v675_v30, %v667_v29  ;;  %v740_v24 = vld [vmem:[%s4465_s21 + $0xdf0] sm:$0xff]  ;;  %v747_v25 = vld [vmem:[%s4465_s21 + $0xe28] sm:$0xff] }
 0x1dd   : > { %3325 = vmatpush1.bf16.msra.mxu0 %v3324_v36  ;;  %v666_v36 = vld [vmem:[%s4465_s21 + $0xba0] sm:$0xff]  ;;  %v3366_v31 = vpack.c.bf16 %v755_v26, %v747_v25 }
 0x1de   : > { %3581 = vmatpush1.bf16.msra.mxu1 %v3580_v37  ;;  %3327 = vmatprep.subr.bf16.mxu0 %v3326_v38  ;;  %v674_v37 = vld [vmem:[%s4465_s21 + $0xbe0] sm:$0xff]  ;;  %v668_v38 = vld [vmem:[%s4465_s21 + $0xbb0] sm:$0xff] }
 0x1df   : > { %3583 = vmatprep.subr.bf16.mxu1 %v3582_v42  ;;  %v691_v42 = vld [vmem:[%s4465_s21 + $0xc68] sm:$0xff]  ;;  %v3348_v45 = vpack.c.bf16 %v674_v37, %v666_v36  ;;  %v3604_v46 = vpack.c.bf16 %v676_v40, %v668_v38  ;;  %v756_v36 = vld [vmem:[%s4465_s21 + $0xe70] sm:$0xff]  ;;  %v773_v40 = vld [vmem:[%s4465_s21 + $0xef8] sm:$0xff] }
 0x1e0   : > { %v3350_v47 = vpack.c.bf16 %v691_v42, %v683_v41  ;;  %v763_v37 = vld [vmem:[%s4465_s21 + $0xea8] sm:$0xff] }
 0x1e1   : > { %3329 = vmatpush1.bf16.msra.mxu0 %v3328_v49  ;;  %v690_v49 = vld [vmem:[%s4465_s21 + $0xc60] sm:$0xff]  ;;  %v771_v38 = vld [vmem:[%s4465_s21 + $0xee8] sm:$0xff] }
 0x1e2   : > { %3585 = vmatpush1.bf16.msra.mxu1 %v3584_v50  ;;  %3331 = vmatprep.subr.bf16.mxu0 %v3330_v51  ;;  %v684_v50 = vld [vmem:[%s4465_s21 + $0xc30] sm:$0xff]  ;;  %v3606_v51 = vpack.c.bf16 %v693_v44, %v685_v43  ;;  %v3352_v57 = vpack.c.bf16 %v690_v49, %v682_v48  ;;  %v3370_v43 = vpack.c.bf16 %v771_v38, %v763_v37  ;;  %v762_v44 = vld [vmem:[%s4465_s21 + $0xea0] sm:$0xff]  ;;  %v779_v49 = vld [vmem:[%s4465_s21 + $0xf28] sm:$0xff] }
 0x1e3   : > { %3587 = vmatprep.subr.bf16.mxu1 %v3586_v55  ;;  %v701_v55 = vld [vmem:[%s4465_s21 + $0xcb8] sm:$0xff]  ;;  %v3608_v58 = vpack.c.bf16 %v692_v52, %v684_v50  ;;  %v772_v48 = vld [vmem:[%s4465_s21 + $0xef0] sm:$0xff]  ;;  %v787_v50 = vld [vmem:[%s4465_s21 + $0xf68] sm:$0xff] }
 0x1e4   : > { %v789_v52 = vld [vmem:[%s4465_s21 + $0xf78] sm:$0xff] }
 0x1e5   : > { %3333 = vmatpush1.bf16.msra.mxu0 %v3332_v61  ;;  %v706_v61 = vld [vmem:[%s4465_s21 + $0xce0] sm:$0xff]  ;;  %v853_v37 = vld [vmem:[%s4465_s21 + $0x1178] sm:$0xff] }
 0x1e6   : > { %3589 = vmatpush1.bf16.msra.mxu1 %v3588_v62  ;;  %3335 = vmatprep.subr.bf16.mxu0 %v3334_v63  ;;  %v700_v62 = vld [vmem:[%s4465_s21 + $0xcb0] sm:$0xff]  ;;  %v3610_v63 = vpack.c.bf16 %v709_v56, %v701_v55  ;;  %v3356_v5 = vpack.c.bf16 %v706_v61, %v698_v60  ;;  %v3374_v55 = vpack.c.bf16 %v787_v50, %v779_v49  ;;  %v778_v56 = vld [vmem:[%s4465_s21 + $0xf20] sm:$0xff]  ;;  %v795_v61 = vld [vmem:[%s4465_s21 + $0xfa8] sm:$0xff] }
 0x1e7   : > { %3591 = vmatprep.subr.bf16.mxu1 %v3590_v3  ;;  %v717_v3 = vld [vmem:[%s4465_s21 + $0xd38] sm:$0xff]  ;;  %v3612_v6 = vpack.c.bf16 %v708_v0, %v700_v62  ;;  %v788_v60 = vld [vmem:[%s4465_s21 + $0xf70] sm:$0xff]  ;;  %v803_v62 = vld [vmem:[%s4465_s21 + $0xfe8] sm:$0xff] }
 0x1e8   : > { %v805_v0 = vld [vmem:[%s4465_s21 + $0xff8] sm:$0xff] }
 0x1e9   : > { %3337 = vmatpush1.bf16.msra.mxu0 %v3336_v9  ;;  %v722_v9 = vld [vmem:[%s4465_s21 + $0xd60] sm:$0xff]  ;;  %v861_v49 = vld [vmem:[%s4465_s21 + $0x11b8] sm:$0xff] }
 0x1ea   : > { %3593 = vmatpush1.bf16.msra.mxu1 %v3592_v10  ;;  %3339 = vmatprep.subr.bf16.mxu0 %v3338_v11  ;;  %v716_v10 = vld [vmem:[%s4465_s21 + $0xd30] sm:$0xff]  ;;  %v3614_v11 = vpack.c.bf16 %v725_v4, %v717_v3  ;;  %v3360_v17 = vpack.c.bf16 %v722_v9, %v714_v8  ;;  %v3378_v3 = vpack.c.bf16 %v803_v62, %v795_v61  ;;  %v794_v4 = vld [vmem:[%s4465_s21 + $0xfa0] sm:$0xff]  ;;  %v811_v9 = vld [vmem:[%s4465_s21 + $0x1028] sm:$0xff] }
 0x1eb   : > { %3595 = vmatprep.subr.bf16.mxu1 %v3594_v15  ;;  %v733_v15 = vld [vmem:[%s4465_s21 + $0xdb8] sm:$0xff]  ;;  %v3616_v18 = vpack.c.bf16 %v724_v12, %v716_v10  ;;  %v804_v8 = vld [vmem:[%s4465_s21 + $0xff0] sm:$0xff]  ;;  %v819_v10 = vld [vmem:[%s4465_s21 + $0x1068] sm:$0xff] }
 0x1ec   : > { %v821_v12 = vld [vmem:[%s4465_s21 + $0x1078] sm:$0xff] }
 0x1ed   : > { %3341 = vmatpush1.bf16.msra.mxu0 %v3340_v21  ;;  %v738_v21 = vld [vmem:[%s4465_s21 + $0xde0] sm:$0xff]  ;;  %v869_v50 = vld [vmem:[%s4465_s21 + $0x11f8] sm:$0xff] }
 0x1ee   : > { %3597 = vmatpush1.bf16.msra.mxu1 %v3596_v22  ;;  %3343 = vmatprep.subr.bf16.mxu0 %v3342_v23  ;;  %v732_v22 = vld [vmem:[%s4465_s21 + $0xdb0] sm:$0xff]  ;;  %v3618_v23 = vpack.c.bf16 %v741_v16, %v733_v15  ;;  %v3364_v29 = vpack.c.bf16 %v738_v21, %v730_v20  ;;  %v3382_v15 = vpack.c.bf16 %v819_v10, %v811_v9  ;;  %v810_v16 = vld [vmem:[%s4465_s21 + $0x1020] sm:$0xff]  ;;  %v827_v21 = vld [vmem:[%s4465_s21 + $0x10a8] sm:$0xff] }
 0x1ef   : > { %3599 = vmatprep.subr.bf16.mxu1 %v3598_v27  ;;  %v749_v27 = vld [vmem:[%s4465_s21 + $0xe38] sm:$0xff]  ;;  %v3620_v30 = vpack.c.bf16 %v740_v24, %v732_v22  ;;  %v820_v20 = vld [vmem:[%s4465_s21 + $0x1070] sm:$0xff]  ;;  %v835_v22 = vld [vmem:[%s4465_s21 + $0x10e8] sm:$0xff] }
 0x1f0   : > { %v837_v24 = vld [vmem:[%s4465_s21 + $0x10f8] sm:$0xff] }
 0x1f1   : > { %3345 = vmatpush1.bf16.msra.mxu0 %v3344_v33  ;;  %v754_v33 = vld [vmem:[%s4465_s21 + $0xe60] sm:$0xff]  ;;  %v877_v61 = vld [vmem:[%s4465_s21 + $0x1238] sm:$0xff] }
 0x1f2   : > { %3601 = vmatpush1.bf16.msra.mxu1 %v3600_v34  ;;  %3347 = vmatprep.subr.bf16.mxu0 %v3346_v35  ;;  %v748_v34 = vld [vmem:[%s4465_s21 + $0xe30] sm:$0xff]  ;;  %v3622_v35 = vpack.c.bf16 %v757_v28, %v749_v27  ;;  %v3368_v41 = vpack.c.bf16 %v754_v33, %v746_v32  ;;  %v3386_v27 = vpack.c.bf16 %v835_v22, %v827_v21  ;;  %v826_v28 = vld [vmem:[%s4465_s21 + $0x10a0] sm:$0xff]  ;;  %v843_v33 = vld [vmem:[%s4465_s21 + $0x1128] sm:$0xff] }
 0x1f3   : > { %3603 = vmatprep.subr.bf16.mxu1 %v3602_v39  ;;  %v765_v39 = vld [vmem:[%s4465_s21 + $0xeb8] sm:$0xff]  ;;  %v3624_v42 = vpack.c.bf16 %v756_v36, %v748_v34  ;;  %v836_v32 = vld [vmem:[%s4465_s21 + $0x10f0] sm:$0xff]  ;;  %v851_v34 = vld [vmem:[%s4465_s21 + $0x1168] sm:$0xff] }
 0x1f4   : > { %v845_v36 = vld [vmem:[%s4465_s21 + $0x1138] sm:$0xff] }
 0x1f5   : > { %3349 = vmatpush1.bf16.msra.mxu0 %v3348_v45  ;;  %v770_v45 = vld [vmem:[%s4465_s21 + $0xee0] sm:$0xff]  ;;  %v885_v62 = vld [vmem:[%s4465_s21 + $0x1278] sm:$0xff] }
 0x1f6   : > { %3605 = vmatpush1.bf16.msra.mxu1 %v3604_v46  ;;  %3351 = vmatprep.subr.bf16.mxu0 %v3350_v47  ;;  %v764_v46 = vld [vmem:[%s4465_s21 + $0xeb0] sm:$0xff]  ;;  %v3626_v47 = vpack.c.bf16 %v773_v40, %v765_v39  ;;  %v3372_v53 = vpack.c.bf16 %v770_v45, %v762_v44  ;;  %v3390_v40 = vpack.c.bf16 %v851_v34, %v843_v33  ;;  %v893_v9 = vld [vmem:[%s4465_s21 + $0x12b8] sm:$0xff] }
 0x1f7   : > { %3607 = vmatprep.subr.bf16.mxu1 %v3606_v51  ;;  %v781_v51 = vld [vmem:[%s4465_s21 + $0xf38] sm:$0xff]  ;;  %v3628_v54 = vpack.c.bf16 %v772_v48, %v764_v46  ;;  %v3646_v44 = vpack.c.bf16 %v853_v37, %v845_v36  ;;  %v852_v45 = vld [vmem:[%s4465_s21 + $0x1170] sm:$0xff]  ;;  %v859_v46 = vld [vmem:[%s4465_s21 + $0x11a8] sm:$0xff] }
 0x1f8   : > { %v3926_v48 = vld [vmem:[%s4456_s11 + $0x28] sm:$0xff]  ;;  %v901_v10 = vld [vmem:[%s4465_s21 + $0x12f8] sm:$0xff] }
 0x1f9   : > { %3353 = vmatpush1.bf16.msra.mxu0 %v3352_v57  ;;  %v786_v57 = vld [vmem:[%s4465_s21 + $0xf60] sm:$0xff]  ;;  %v909_v21 = vld [vmem:[%s4465_s21 + $0x1338] sm:$0xff] }
 0x1fa   : > { %3609 = vmatpush1.bf16.msra.mxu1 %v3608_v58  ;;  %3355 = vmatprep.subr.bf16.mxu0 %v3354_v59  ;;  %v780_v58 = vld [vmem:[%s4465_s21 + $0xf30] sm:$0xff]  ;;  %v3630_v59 = vpack.c.bf16 %v789_v52, %v781_v51  ;;  %v3376_v1 = vpack.c.bf16 %v786_v57, %v778_v56  ;;  %v3650_v57 = vpack.c.bf16 %v869_v50, %v861_v49  ;;  %v917_v22 = vld [vmem:[%s4465_s21 + $0x1378] sm:$0xff]  ;;  %v938_v50 = vld [vmem:[%s4465_s21 + $0x1420] sm:$0xff] }
 0x1fb   : > { %3611 = vmatprep.subr.bf16.mxu1 %v3610_v63  ;;  %v797_v63 = vld [vmem:[%s4465_s21 + $0xfb8] sm:$0xff]  ;;  %v3632_v2 = vpack.c.bf16 %v788_v60, %v780_v58  ;;  %v860_v56 = vld [vmem:[%s4465_s21 + $0x11b0] sm:$0xff]  ;;  %v883_v60 = vld [vmem:[%s4465_s21 + $0x1268] sm:$0xff] }
 0x1fc   : > { %v868_v58 = vld [vmem:[%s4465_s21 + $0x11f0] sm:$0xff]  ;;  %v925_v33 = vld [vmem:[%s4465_s21 + $0x13b8] sm:$0xff] }
 0x1fd   : > { %3357 = vmatpush1.bf16.msra.mxu0 %v3356_v5  ;;  %v802_v5 = vld [vmem:[%s4465_s21 + $0xfe0] sm:$0xff]  ;;  %v933_v34 = vld [vmem:[%s4465_s21 + $0x13f8] sm:$0xff] }
 0x1fe   : > { %3613 = vmatpush1.bf16.msra.mxu1 %v3612_v6  ;;  %3359 = vmatprep.subr.bf16.mxu0 %v3358_v7  ;;  %v796_v6 = vld [vmem:[%s4465_s21 + $0xfb0] sm:$0xff]  ;;  %v3634_v7 = vpack.c.bf16 %v805_v0, %v797_v63  ;;  %v3380_v13 = vpack.c.bf16 %v802_v5, %v794_v4  ;;  %v3652_v0 = vpack.c.bf16 %v868_v58, %v860_v56  ;;  %v963_v56 = vld [vmem:[%s4465_s21 + $0x14e8] sm:$0xff]  ;;  %v965_v58 = vld [vmem:[%s4465_s21 + $0x14f8] sm:$0xff] }
 0x1ff   : > { %3615 = vmatprep.subr.bf16.mxu1 %v3614_v11  ;;  %v813_v11 = vld [vmem:[%s4465_s21 + $0x1038] sm:$0xff]  ;;  %v3636_v14 = vpack.c.bf16 %v804_v8, %v796_v6  ;;  %v876_v4 = vld [vmem:[%s4465_s21 + $0x1230] sm:$0xff]  ;;  %v3654_v5 = vpack.c.bf16 %v885_v62, %v877_v61  ;;  %v899_v8 = vld [vmem:[%s4465_s21 + $0x12e8] sm:$0xff] }
 0x200   : > { %v884_v6 = vld [vmem:[%s4465_s21 + $0x1270] sm:$0xff]  ;;  %v954_v62 = vld [vmem:[%s4465_s21 + $0x14a0] sm:$0xff] }
 0x201   : > { %3361 = vmatpush1.bf16.msra.mxu0 %v3360_v17  ;;  %v818_v17 = vld [vmem:[%s4465_s21 + $0x1060] sm:$0xff] }
 0x202   : > { %3617 = vmatpush1.bf16.msra.mxu1 %v3616_v18  ;;  %3363 = vmatprep.subr.bf16.mxu0 %v3362_v19  ;;  %v812_v18 = vld [vmem:[%s4465_s21 + $0x1030] sm:$0xff]  ;;  %v3638_v19 = vpack.c.bf16 %v821_v12, %v813_v11  ;;  %v3384_v25 = vpack.c.bf16 %v818_v17, %v810_v16  ;;  %v3656_v12 = vpack.c.bf16 %v884_v6, %v876_v4  ;;  %v979_v4 = vld [vmem:[%s4465_s21 + $0x1568] sm:$0xff]  ;;  %v981_v6 = vld [vmem:[%s4465_s21 + $0x1578] sm:$0xff] }
 0x203   : > { %3619 = vmatprep.subr.bf16.mxu1 %v3618_v23  ;;  %v829_v23 = vld [vmem:[%s4465_s21 + $0x10b8] sm:$0xff]  ;;  %v3640_v26 = vpack.c.bf16 %v820_v20, %v812_v18  ;;  %v892_v16 = vld [vmem:[%s4465_s21 + $0x12b0] sm:$0xff]  ;;  %v3658_v17 = vpack.c.bf16 %v901_v10, %v893_v9  ;;  %v915_v20 = vld [vmem:[%s4465_s21 + $0x1368] sm:$0xff] }
 0x204   : > { %v900_v18 = vld [vmem:[%s4465_s21 + $0x12f0] sm:$0xff]  ;;  %v970_v10 = vld [vmem:[%s4465_s21 + $0x1520] sm:$0xff] }
 0x205   : > { %3365 = vmatpush1.bf16.msra.mxu0 %v3364_v29  ;;  %v834_v29 = vld [vmem:[%s4465_s21 + $0x10e0] sm:$0xff] }
 0x206   : > { %3621 = vmatpush1.bf16.msra.mxu1 %v3620_v30  ;;  %3367 = vmatprep.subr.bf16.mxu0 %v3366_v31  ;;  %v828_v30 = vld [vmem:[%s4465_s21 + $0x10b0] sm:$0xff]  ;;  %v3642_v31 = vpack.c.bf16 %v837_v24, %v829_v23  ;;  %v3388_v38 = vpack.c.bf16 %v834_v29, %v826_v28  ;;  %v3660_v24 = vpack.c.bf16 %v900_v18, %v892_v16  ;;  %v995_v16 = vld [vmem:[%s4465_s21 + $0x15e8] sm:$0xff]  ;;  %v997_v18 = vld [vmem:[%s4465_s21 + $0x15f8] sm:$0xff] }
 0x207   : > { %3623 = vmatprep.subr.bf16.mxu1 %v3622_v35  ;;  %v3925_v35 = vld [vmem:[%s4456_s11 + $0x10] sm:$0xff]  ;;  %v3644_v39 = vpack.c.bf16 %v836_v32, %v828_v30  ;;  %v3662_v29 = vpack.c.bf16 %v917_v22, %v909_v21  ;;  %v931_v32 = vld [vmem:[%s4465_s21 + $0x13e8] sm:$0xff]  ;;  %v986_v22 = vld [vmem:[%s4465_s21 + $0x15a0] sm:$0xff] }
 0x208   : > { %v908_v28 = vld [vmem:[%s4465_s21 + $0x1330] sm:$0xff] }
 0x209   : > { %3369 = vmatpush1.bf16.msra.mxu0 %v3368_v41  ;;  %v842_v41 = vld [vmem:[%s4465_s21 + $0x1120] sm:$0xff]  ;;  %v916_v30 = vld [vmem:[%s4465_s21 + $0x1370] sm:$0xff] }
 0x20a   : > { %3625 = vmatpush1.bf16.msra.mxu1 %v3624_v42  ;;  %3371 = vmatprep.subr.bf16.mxu0 %v3370_v43  ;;  %v850_v42 = vld [vmem:[%s4465_s21 + $0x1160] sm:$0xff]  ;;  %v844_v43 = vld [vmem:[%s4465_s21 + $0x1130] sm:$0xff]  ;;  %v3664_v36 = vpack.c.bf16 %v916_v30, %v908_v28  ;;  %v1011_v28 = vld [vmem:[%s4465_s21 + $0x1668] sm:$0xff] }
 0x20b   : > { %3627 = vmatprep.subr.bf16.mxu1 %v3626_v47  ;;  %v867_v47 = vld [vmem:[%s4465_s21 + $0x11e8] sm:$0xff]  ;;  %v3392_v51 = vpack.c.bf16 %v850_v42, %v842_v41  ;;  %v3648_v52 = vpack.c.bf16 %v852_v45, %v844_v43  ;;  %v3666_v41 = vpack.c.bf16 %v933_v34, %v925_v33  ;;  %v932_v42 = vld [vmem:[%s4465_s21 + $0x13f0] sm:$0xff]  ;;  %v941_v45 = vld [vmem:[%s4465_s21 + $0x1438] sm:$0xff] }
 0x20c   : > { %v939_v43 = vld [vmem:[%s4465_s21 + $0x1428] sm:$0xff]  ;;  %v1013_v30 = vld [vmem:[%s4465_s21 + $0x1678] sm:$0xff]  ;;  %v1002_v34 = vld [vmem:[%s4465_s21 + $0x1620] sm:$0xff] }
 0x20d   : > { %3373 = vmatpush1.bf16.msra.mxu0 %v3372_v53  ;;  %v3394_v53 = vpack.c.bf16 %v867_v47, %v859_v46  ;;  %v949_v46 = vld [vmem:[%s4465_s21 + $0x1478] sm:$0xff] }
 0x20e   : > { %3629 = vmatpush1.bf16.msra.mxu1 %v3628_v54  ;;  %3375 = vmatprep.subr.bf16.mxu0 %v3374_v55  ;;  %v858_v54 = vld [vmem:[%s4465_s21 + $0x11a0] sm:$0xff] }
 0x20f   : > { %3631 = vmatprep.subr.bf16.mxu1 %v3630_v59  ;;  %v866_v55 = vld [vmem:[%s4465_s21 + $0x11e0] sm:$0xff]  ;;  %v875_v59 = vld [vmem:[%s4465_s21 + $0x1228] sm:$0xff] }
 0x210   : > { %v3396_v63 = vpack.c.bf16 %v866_v55, %v858_v54  ;;  %v948_v54 = vld [vmem:[%s4465_s21 + $0x1470] sm:$0xff]  ;;  %v955_v55 = vld [vmem:[%s4465_s21 + $0x14a8] sm:$0xff] }
 0x211   : > { %3377 = vmatpush1.bf16.msra.mxu0 %v3376_v1  ;;  %v3398_v1 = vpack.c.bf16 %v883_v60, %v875_v59  ;;  %v3418_v61 = vpack.c.bf16 %v963_v56, %v955_v55 }
 0x212   : > { %3633 = vmatpush1.bf16.msra.mxu1 %v3632_v2  ;;  %3379 = vmatprep.subr.bf16.mxu0 %v3378_v3  ;;  %v874_v2 = vld [vmem:[%s4465_s21 + $0x1220] sm:$0xff] }
 0x213   : > { %3635 = vmatprep.subr.bf16.mxu1 %v3634_v7  ;;  %v882_v3 = vld [vmem:[%s4465_s21 + $0x1260] sm:$0xff]  ;;  %v891_v7 = vld [vmem:[%s4465_s21 + $0x12a8] sm:$0xff] }
 0x214   : > { %v3400_v11 = vpack.c.bf16 %v882_v3, %v874_v2  ;;  %v964_v2 = vld [vmem:[%s4465_s21 + $0x14f0] sm:$0xff]  ;;  %v971_v3 = vld [vmem:[%s4465_s21 + $0x1528] sm:$0xff] }
 0x215   : > { %3381 = vmatpush1.bf16.msra.mxu0 %v3380_v13  ;;  %v3402_v13 = vpack.c.bf16 %v899_v8, %v891_v7  ;;  %v3422_v9 = vpack.c.bf16 %v979_v4, %v971_v3 }
 0x216   : > { %3637 = vmatpush1.bf16.msra.mxu1 %v3636_v14  ;;  %3383 = vmatprep.subr.bf16.mxu0 %v3382_v15  ;;  %v890_v14 = vld [vmem:[%s4465_s21 + $0x12a0] sm:$0xff] }
 0x217   : > { %3639 = vmatprep.subr.bf16.mxu1 %v3638_v19  ;;  %v898_v15 = vld [vmem:[%s4465_s21 + $0x12e0] sm:$0xff]  ;;  %v907_v19 = vld [vmem:[%s4465_s21 + $0x1328] sm:$0xff] }
 0x218   : > { %2022 = vmatmul.mubr.f32.vlgmr.msra.gmra.mrb[2].mxu0 %v3925_v35  ;;  %v3404_v23 = vpack.c.bf16 %v898_v15, %v890_v14  ;;  %v980_v14 = vld [vmem:[%s4465_s21 + $0x1570] sm:$0xff]  ;;  %v987_v15 = vld [vmem:[%s4465_s21 + $0x15a8] sm:$0xff] }
 0x219   : > { %3385 = vmatpush1.bf16.msra.mxu0 %v3384_v25  ;;  %2306 = vmatmul.mubr.f32.vlgmr.msra.gmra.mrb[2].mxu1 %v3925_v35  ;;  %v3406_v25 = vpack.c.bf16 %v915_v20, %v907_v19  ;;  %v3426_v21 = vpack.c.bf16 %v995_v16, %v987_v15 }
 0x21a   : > { %3641 = vmatpush1.bf16.msra.mxu1 %v3640_v26  ;;  %3387 = vmatprep.subr.bf16.mxu0 %v3386_v27  ;;  %v906_v26 = vld [vmem:[%s4465_s21 + $0x1320] sm:$0xff] }
 0x21b   : > { %3643 = vmatprep.subr.bf16.mxu1 %v3642_v31  ;;  %2092 = vmatprep.mubr.f32.mxu0 %v3926_v48  ;;  %v914_v27 = vld [vmem:[%s4465_s21 + $0x1360] sm:$0xff]  ;;  %v923_v31 = vld [vmem:[%s4465_s21 + $0x13a8] sm:$0xff] }
 0x21c   : > { %2376 = vmatprep.mubr.f32.mxu1 %v3926_v48  ;;  %v3408_v35 = vpack.c.bf16 %v914_v27, %v906_v26  ;;  %v3410_v37 = vpack.c.bf16 %v931_v32, %v923_v31  ;;  %v996_v26 = vld [vmem:[%s4465_s21 + $0x15f0] sm:$0xff]  ;;  %v1003_v27 = vld [vmem:[%s4465_s21 + $0x1628] sm:$0xff] }
 0x21d   : > { %3389 = vmatpush1.bf16.msra.mxu0 %v3388_v38  ;;  %v922_v38 = vld [vmem:[%s4465_s21 + $0x13a0] sm:$0xff]  ;;  %v3430_v33 = vpack.c.bf16 %v1011_v28, %v1003_v27 }
 0x21e   : > { %3645 = vmatpush1.bf16.msra.mxu1 %v3644_v39  ;;  %3391 = vmatprep.subr.bf16.mxu0 %v3390_v40  ;;  %v930_v39 = vld [vmem:[%s4465_s21 + $0x13e0] sm:$0xff]  ;;  %v924_v40 = vld [vmem:[%s4465_s21 + $0x13b0] sm:$0xff] }
 0x21f   : > { %3647 = vmatprep.subr.bf16.mxu1 %v3646_v44  ;;  %v947_v44 = vld [vmem:[%s4465_s21 + $0x1468] sm:$0xff]  ;;  %v3412_v47 = vpack.c.bf16 %v930_v39, %v922_v38  ;;  %v3668_v48 = vpack.c.bf16 %v932_v42, %v924_v40  ;;  %v1012_v38 = vld [vmem:[%s4465_s21 + $0x1670] sm:$0xff]  ;;  %v1029_v42 = vld [vmem:[%s4465_s21 + $0x16f8] sm:$0xff] }
 0x220   : > { %v3414_v49 = vpack.c.bf16 %v947_v44, %v939_v43  ;;  %v1019_v39 = vld [vmem:[%s4465_s21 + $0x16a8] sm:$0xff] }
 0x221   : > { %3393 = vmatpush1.bf16.msra.mxu0 %v3392_v51  ;;  %v946_v51 = vld [vmem:[%s4465_s21 + $0x1460] sm:$0xff]  ;;  %v1027_v40 = vld [vmem:[%s4465_s21 + $0x16e8] sm:$0xff] }
 0x222   : > { %3649 = vmatpush1.bf16.msra.mxu1 %v3648_v52  ;;  %3395 = vmatprep.subr.bf16.mxu0 %v3394_v53  ;;  %v940_v52 = vld [vmem:[%s4465_s21 + $0x1430] sm:$0xff]  ;;  %v3670_v53 = vpack.c.bf16 %v949_v46, %v941_v45  ;;  %v3416_v59 = vpack.c.bf16 %v946_v51, %v938_v50  ;;  %v3434_v45 = vpack.c.bf16 %v1027_v40, %v1019_v39  ;;  %v1018_v46 = vld [vmem:[%s4465_s21 + $0x16a0] sm:$0xff]  ;;  %v1035_v51 = vld [vmem:[%s4465_s21 + $0x1728] sm:$0xff] }
 0x223   : > { %3651 = vmatprep.subr.bf16.mxu1 %v3650_v57  ;;  %v957_v57 = vld [vmem:[%s4465_s21 + $0x14b8] sm:$0xff]  ;;  %v3672_v60 = vpack.c.bf16 %v948_v54, %v940_v52  ;;  %v1028_v50 = vld [vmem:[%s4465_s21 + $0x16f0] sm:$0xff]  ;;  %v1043_v52 = vld [vmem:[%s4465_s21 + $0x1768] sm:$0xff] }
 0x224   : > { %v1045_v54 = vld [vmem:[%s4465_s21 + $0x1778] sm:$0xff] }
 0x225   : > { %3397 = vmatpush1.bf16.msra.mxu0 %v3396_v63  ;;  %v962_v63 = vld [vmem:[%s4465_s21 + $0x14e0] sm:$0xff]  ;;  %v1109_v39 = vld [vmem:[%s4465_s21 + $0x1978] sm:$0xff] }
 0x226   : > { %3653 = vmatpush1.bf16.msra.mxu1 %v3652_v0  ;;  %3399 = vmatprep.subr.bf16.mxu0 %v3398_v1  ;;  %v956_v0 = vld [vmem:[%s4465_s21 + $0x14b0] sm:$0xff]  ;;  %v3674_v1 = vpack.c.bf16 %v965_v58, %v957_v57  ;;  %v3420_v7 = vpack.c.bf16 %v962_v63, %v954_v62  ;;  %v3438_v57 = vpack.c.bf16 %v1043_v52, %v1035_v51  ;;  %v1034_v58 = vld [vmem:[%s4465_s21 + $0x1720] sm:$0xff]  ;;  %v1051_v63 = vld [vmem:[%s4465_s21 + $0x17a8] sm:$0xff] }
 0x227   : > { %3655 = vmatprep.subr.bf16.mxu1 %v3654_v5  ;;  %v973_v5 = vld [vmem:[%s4465_s21 + $0x1538] sm:$0xff]  ;;  %v3676_v8 = vpack.c.bf16 %v964_v2, %v956_v0  ;;  %v1044_v62 = vld [vmem:[%s4465_s21 + $0x1770] sm:$0xff]  ;;  %v1059_v0 = vld [vmem:[%s4465_s21 + $0x17e8] sm:$0xff] }
 0x228   : > { %v1061_v2 = vld [vmem:[%s4465_s21 + $0x17f8] sm:$0xff] }
 0x229   : > { %3401 = vmatpush1.bf16.msra.mxu0 %v3400_v11  ;;  %v978_v11 = vld [vmem:[%s4465_s21 + $0x1560] sm:$0xff]  ;;  %v1117_v51 = vld [vmem:[%s4465_s21 + $0x19b8] sm:$0xff] }
 0x22a   : > { %3657 = vmatpush1.bf16.msra.mxu1 %v3656_v12  ;;  %3403 = vmatprep.subr.bf16.mxu0 %v3402_v13  ;;  %v972_v12 = vld [vmem:[%s4465_s21 + $0x1530] sm:$0xff]  ;;  %v3678_v13 = vpack.c.bf16 %v981_v6, %v973_v5  ;;  %v3424_v19 = vpack.c.bf16 %v978_v11, %v970_v10  ;;  %v3442_v5 = vpack.c.bf16 %v1059_v0, %v1051_v63  ;;  %v1050_v6 = vld [vmem:[%s4465_s21 + $0x17a0] sm:$0xff]  ;;  %v1067_v11 = vld [vmem:[%s4465_s21 + $0x1828] sm:$0xff] }
 0x22b   : > { %3659 = vmatprep.subr.bf16.mxu1 %v3658_v17  ;;  %v989_v17 = vld [vmem:[%s4465_s21 + $0x15b8] sm:$0xff]  ;;  %v3680_v20 = vpack.c.bf16 %v980_v14, %v972_v12  ;;  %v1060_v10 = vld [vmem:[%s4465_s21 + $0x17f0] sm:$0xff]  ;;  %v1075_v12 = vld [vmem:[%s4465_s21 + $0x1868] sm:$0xff] }
 0x22c   : > { %v1077_v14 = vld [vmem:[%s4465_s21 + $0x1878] sm:$0xff] }
 0x22d   : > { %3405 = vmatpush1.bf16.msra.mxu0 %v3404_v23  ;;  %v994_v23 = vld [vmem:[%s4465_s21 + $0x15e0] sm:$0xff]  ;;  %v1125_v52 = vld [vmem:[%s4465_s21 + $0x19f8] sm:$0xff] }
 0x22e   : > { %3661 = vmatpush1.bf16.msra.mxu1 %v3660_v24  ;;  %3407 = vmatprep.subr.bf16.mxu0 %v3406_v25  ;;  %v988_v24 = vld [vmem:[%s4465_s21 + $0x15b0] sm:$0xff]  ;;  %v3682_v25 = vpack.c.bf16 %v997_v18, %v989_v17  ;;  %v3428_v31 = vpack.c.bf16 %v994_v23, %v986_v22  ;;  %v3446_v17 = vpack.c.bf16 %v1075_v12, %v1067_v11  ;;  %v1066_v18 = vld [vmem:[%s4465_s21 + $0x1820] sm:$0xff]  ;;  %v1083_v23 = vld [vmem:[%s4465_s21 + $0x18a8] sm:$0xff] }
 0x22f   : > { %3663 = vmatprep.subr.bf16.mxu1 %v3662_v29  ;;  %v1005_v29 = vld [vmem:[%s4465_s21 + $0x1638] sm:$0xff]  ;;  %v3684_v32 = vpack.c.bf16 %v996_v26, %v988_v24  ;;  %v1076_v22 = vld [vmem:[%s4465_s21 + $0x1870] sm:$0xff]  ;;  %v1091_v24 = vld [vmem:[%s4465_s21 + $0x18e8] sm:$0xff] }
 0x230   : > { %v1093_v26 = vld [vmem:[%s4465_s21 + $0x18f8] sm:$0xff] }
 0x231   : > { %3409 = vmatpush1.bf16.msra.mxu0 %v3408_v35  ;;  %v1010_v35 = vld [vmem:[%s4465_s21 + $0x1660] sm:$0xff]  ;;  %v1133_v63 = vld [vmem:[%s4465_s21 + $0x1a38] sm:$0xff] }
 0x232   : > { %3665 = vmatpush1.bf16.msra.mxu1 %v3664_v36  ;;  %3411 = vmatprep.subr.bf16.mxu0 %v3410_v37  ;;  %v1004_v36 = vld [vmem:[%s4465_s21 + $0x1630] sm:$0xff]  ;;  %v3686_v37 = vpack.c.bf16 %v1013_v30, %v1005_v29  ;;  %v3432_v43 = vpack.c.bf16 %v1010_v35, %v1002_v34  ;;  %v3450_v29 = vpack.c.bf16 %v1091_v24, %v1083_v23  ;;  %v1082_v30 = vld [vmem:[%s4465_s21 + $0x18a0] sm:$0xff]  ;;  %v1099_v35 = vld [vmem:[%s4465_s21 + $0x1928] sm:$0xff] }
 0x233   : > { %3667 = vmatprep.subr.bf16.mxu1 %v3666_v41  ;;  %v1021_v41 = vld [vmem:[%s4465_s21 + $0x16b8] sm:$0xff]  ;;  %v3688_v44 = vpack.c.bf16 %v1012_v38, %v1004_v36  ;;  %v1092_v34 = vld [vmem:[%s4465_s21 + $0x18f0] sm:$0xff]  ;;  %v1107_v36 = vld [vmem:[%s4465_s21 + $0x1968] sm:$0xff] }
 0x234   : > { %v1101_v38 = vld [vmem:[%s4465_s21 + $0x1938] sm:$0xff] }
 0x235   : > { %3413 = vmatpush1.bf16.msra.mxu0 %v3412_v47  ;;  %v1026_v47 = vld [vmem:[%s4465_s21 + $0x16e0] sm:$0xff]  ;;  %v1141_v0 = vld [vmem:[%s4465_s21 + $0x1a78] sm:$0xff] }
 0x236   : > { %3669 = vmatpush1.bf16.msra.mxu1 %v3668_v48  ;;  %3415 = vmatprep.subr.bf16.mxu0 %v3414_v49  ;;  %v1020_v48 = vld [vmem:[%s4465_s21 + $0x16b0] sm:$0xff]  ;;  %v3690_v49 = vpack.c.bf16 %v1029_v42, %v1021_v41  ;;  %v3436_v55 = vpack.c.bf16 %v1026_v47, %v1018_v46  ;;  %v3454_v42 = vpack.c.bf16 %v1107_v36, %v1099_v35  ;;  %v1149_v11 = vld [vmem:[%s4465_s21 + $0x1ab8] sm:$0xff]  ;;  %v1187_v35 = vld [vmem:[%s4465_s21 + $0x1be8] sm:$0xff] }
 0x237   : > { %3671 = vmatprep.subr.bf16.mxu1 %v3670_v53  ;;  %v1037_v53 = vld [vmem:[%s4465_s21 + $0x1738] sm:$0xff]  ;;  %v3692_v56 = vpack.c.bf16 %v1028_v50, %v1020_v48  ;;  %v3710_v46 = vpack.c.bf16 %v1109_v39, %v1101_v38  ;;  %v1108_v47 = vld [vmem:[%s4465_s21 + $0x1970] sm:$0xff]  ;;  %v1115_v48 = vld [vmem:[%s4465_s21 + $0x19a8] sm:$0xff] }
 0x238   : > { %v3928_v50 = vld [vmem:[%s4456_s11 + $0x38] sm:$0xff] }
 0x239   : > { %3417 = vmatpush1.bf16.msra.mxu0 %v3416_v59  ;;  %v1042_v59 = vld [vmem:[%s4465_s21 + $0x1760] sm:$0xff]  ;;  %v1157_v12 = vld [vmem:[%s4465_s21 + $0x1af8] sm:$0xff] }
 0x23a   : > { %3673 = vmatpush1.bf16.msra.mxu1 %v3672_v60  ;;  %3419 = vmatprep.subr.bf16.mxu0 %v3418_v61  ;;  %v1036_v60 = vld [vmem:[%s4465_s21 + $0x1730] sm:$0xff]  ;;  %v3694_v61 = vpack.c.bf16 %v1045_v54, %v1037_v53  ;;  %v3440_v3 = vpack.c.bf16 %v1042_v59, %v1034_v58  ;;  %v3714_v59 = vpack.c.bf16 %v1125_v52, %v1117_v51  ;;  %v1165_v23 = vld [vmem:[%s4465_s21 + $0x1b38] sm:$0xff] }
 0x23b   : > { %3675 = vmatprep.subr.bf16.mxu1 %v3674_v1  ;;  %v1053_v1 = vld [vmem:[%s4465_s21 + $0x17b8] sm:$0xff]  ;;  %v3696_v4 = vpack.c.bf16 %v1044_v62, %v1036_v60  ;;  %v1116_v58 = vld [vmem:[%s4465_s21 + $0x19b0] sm:$0xff]  ;;  %v1139_v62 = vld [vmem:[%s4465_s21 + $0x1a68] sm:$0xff] }
 0x23c   : > { %v1124_v60 = vld [vmem:[%s4465_s21 + $0x19f0] sm:$0xff]  ;;  %v1173_v24 = vld [vmem:[%s4465_s21 + $0x1b78] sm:$0xff] }
 0x23d   : > { %3421 = vmatpush1.bf16.msra.mxu0 %v3420_v7  ;;  %v1058_v7 = vld [vmem:[%s4465_s21 + $0x17e0] sm:$0xff]  ;;  %v1181_v38 = vld [vmem:[%s4465_s21 + $0x1bb8] sm:$0xff] }
 0x23e   : > { %3677 = vmatpush1.bf16.msra.mxu1 %v3676_v8  ;;  %3423 = vmatprep.subr.bf16.mxu0 %v3422_v9  ;;  %v1052_v8 = vld [vmem:[%s4465_s21 + $0x17b0] sm:$0xff]  ;;  %v3698_v9 = vpack.c.bf16 %v1061_v2, %v1053_v1  ;;  %v3444_v15 = vpack.c.bf16 %v1058_v7, %v1050_v6  ;;  %v3716_v2 = vpack.c.bf16 %v1124_v60, %v1116_v58  ;;  %v1189_v39 = vld [vmem:[%s4465_s21 + $0x1bf8] sm:$0xff] }
 0x23f   : > { %3679 = vmatprep.subr.bf16.mxu1 %v3678_v13  ;;  %v1069_v13 = vld [vmem:[%s4465_s21 + $0x1838] sm:$0xff]  ;;  %v3700_v16 = vpack.c.bf16 %v1060_v10, %v1052_v8  ;;  %v1132_v6 = vld [vmem:[%s4465_s21 + $0x1a30] sm:$0xff]  ;;  %v3718_v7 = vpack.c.bf16 %v1141_v0, %v1133_v63  ;;  %v1155_v10 = vld [vmem:[%s4465_s21 + $0x1ae8] sm:$0xff] }
 0x240   : > { %v1140_v8 = vld [vmem:[%s4465_s21 + $0x1a70] sm:$0xff]  ;;  %v1197_v51 = vld [vmem:[%s4465_s21 + $0x1c38] sm:$0xff] }
 0x241   : > { %3425 = vmatpush1.bf16.msra.mxu0 %v3424_v19  ;;  %v1074_v19 = vld [vmem:[%s4465_s21 + $0x1860] sm:$0xff]  ;;  %v1205_v52 = vld [vmem:[%s4465_s21 + $0x1c78] sm:$0xff]  ;;  %v1196_v58 = vld [vmem:[%s4465_s21 + $0x1c30] sm:$0xff] }
 0x242   : > { %3681 = vmatpush1.bf16.msra.mxu1 %v3680_v20  ;;  %3427 = vmatprep.subr.bf16.mxu0 %v3426_v21  ;;  %v1068_v20 = vld [vmem:[%s4465_s21 + $0x1830] sm:$0xff]  ;;  %v3702_v21 = vpack.c.bf16 %v1077_v14, %v1069_v13  ;;  %v3448_v27 = vpack.c.bf16 %v1074_v19, %v1066_v18  ;;  %v3720_v14 = vpack.c.bf16 %v1140_v8, %v1132_v6  ;;  %v1213_v63 = vld [vmem:[%s4465_s21 + $0x1cb8] sm:$0xff] }
 0x243   : > { %3683 = vmatprep.subr.bf16.mxu1 %v3682_v25  ;;  %v1085_v25 = vld [vmem:[%s4465_s21 + $0x18b8] sm:$0xff]  ;;  %v3704_v28 = vpack.c.bf16 %v1076_v22, %v1068_v20  ;;  %v1148_v18 = vld [vmem:[%s4465_s21 + $0x1ab0] sm:$0xff]  ;;  %v3722_v19 = vpack.c.bf16 %v1157_v12, %v1149_v11  ;;  %v1171_v22 = vld [vmem:[%s4465_s21 + $0x1b68] sm:$0xff] }
 0x244   : > { %v1156_v20 = vld [vmem:[%s4465_s21 + $0x1af0] sm:$0xff]  ;;  %v1221_v0 = vld [vmem:[%s4465_s21 + $0x1cf8] sm:$0xff] }
 0x245   : > { %3429 = vmatpush1.bf16.msra.mxu0 %v3428_v31  ;;  %v1090_v31 = vld [vmem:[%s4465_s21 + $0x18e0] sm:$0xff]  ;;  %v1204_v60 = vld [vmem:[%s4465_s21 + $0x1c70] sm:$0xff]  ;;  %v1229_v11 = vld [vmem:[%s4465_s21 + $0x1d38] sm:$0xff] }
 0x246   : > { %3685 = vmatpush1.bf16.msra.mxu1 %v3684_v32  ;;  %3431 = vmatprep.subr.bf16.mxu0 %v3430_v33  ;;  %v1084_v32 = vld [vmem:[%s4465_s21 + $0x18b0] sm:$0xff]  ;;  %v3706_v33 = vpack.c.bf16 %v1093_v26, %v1085_v25  ;;  %v3452_v40 = vpack.c.bf16 %v1090_v31, %v1082_v30  ;;  %v3724_v26 = vpack.c.bf16 %v1156_v20, %v1148_v18  ;;  %v1237_v12 = vld [vmem:[%s4465_s21 + $0x1d78] sm:$0xff] }
 0x247   : > { %3687 = vmatprep.subr.bf16.mxu1 %v3686_v37  ;;  %v3927_v37 = vld [vmem:[%s4456_s11 + $0x20] sm:$0xff]  ;;  %v3708_v41 = vpack.c.bf16 %v1092_v34, %v1084_v32  ;;  %v1164_v30 = vld [vmem:[%s4465_s21 + $0x1b30] sm:$0xff]  ;;  %v3726_v32 = vpack.c.bf16 %v1173_v24, %v1165_v23  ;;  %v1179_v34 = vld [vmem:[%s4465_s21 + $0x1ba8] sm:$0xff] }
 0x248   : > { %v1212_v6 = vld [vmem:[%s4465_s21 + $0x1cb0] sm:$0xff]  ;;  %v1245_v23 = vld [vmem:[%s4465_s21 + $0x1db8] sm:$0xff] }
 0x249   : > { %3433 = vmatpush1.bf16.msra.mxu0 %v3432_v43  ;;  %v1098_v43 = vld [vmem:[%s4465_s21 + $0x1920] sm:$0xff]  ;;  %v1220_v8 = vld [vmem:[%s4465_s21 + $0x1cf0] sm:$0xff]  ;;  %v1253_v24 = vld [vmem:[%s4465_s21 + $0x1df8] sm:$0xff] }
 0x24a   : > { %3689 = vmatpush1.bf16.msra.mxu1 %v3688_v44  ;;  %3435 = vmatprep.subr.bf16.mxu0 %v3434_v45  ;;  %v1106_v44 = vld [vmem:[%s4465_s21 + $0x1960] sm:$0xff]  ;;  %v1100_v45 = vld [vmem:[%s4465_s21 + $0x1930] sm:$0xff] }
 0x24b   : > { %3691 = vmatprep.subr.bf16.mxu1 %v3690_v49  ;;  %v1123_v49 = vld [vmem:[%s4465_s21 + $0x19e8] sm:$0xff]  ;;  %v3456_v53 = vpack.c.bf16 %v1106_v44, %v1098_v43  ;;  %v3712_v54 = vpack.c.bf16 %v1108_v47, %v1100_v45  ;;  %v3474_v43 = vpack.c.bf16 %v1187_v35, %v1179_v34  ;;  %v1178_v44 = vld [vmem:[%s4465_s21 + $0x1ba0] sm:$0xff]  ;;  %v3730_v47 = vpack.c.bf16 %v1189_v39, %v1181_v38  ;;  %v1228_v18 = vld [vmem:[%s4465_s21 + $0x1d30] sm:$0xff] }
 0x24c   : > { %v1186_v45 = vld [vmem:[%s4465_s21 + $0x1be0] sm:$0xff]  ;;  %v1236_v20 = vld [vmem:[%s4465_s21 + $0x1d70] sm:$0xff]  ;;  %v1259_v34 = vld [vmem:[%s4465_s21 + $0x1e28] sm:$0xff] }
 0x24d   : > { %3437 = vmatpush1.bf16.msra.mxu0 %v3436_v55  ;;  %v3458_v55 = vpack.c.bf16 %v1123_v49, %v1115_v48  ;;  %v1188_v48 = vld [vmem:[%s4465_s21 + $0x1bf0] sm:$0xff]  ;;  %v1195_v49 = vld [vmem:[%s4465_s21 + $0x1c28] sm:$0xff]  ;;  %v1261_v38 = vld [vmem:[%s4465_s21 + $0x1e38] sm:$0xff] }
 0x24e   : > { %3693 = vmatpush1.bf16.msra.mxu1 %v3692_v56  ;;  %3439 = vmatprep.subr.bf16.mxu0 %v3438_v57  ;;  %v1114_v56 = vld [vmem:[%s4465_s21 + $0x19a0] sm:$0xff]  ;;  %v1267_v35 = vld [vmem:[%s4465_s21 + $0x1e68] sm:$0xff]  ;;  %v1269_v39 = vld [vmem:[%s4465_s21 + $0x1e78] sm:$0xff] }
 0x24f   : > { %3695 = vmatprep.subr.bf16.mxu1 %v3694_v61  ;;  %v1122_v57 = vld [vmem:[%s4465_s21 + $0x19e0] sm:$0xff]  ;;  %v1131_v61 = vld [vmem:[%s4465_s21 + $0x1a28] sm:$0xff] }
 0x250   : > { %v3460_v1 = vpack.c.bf16 %v1122_v57, %v1114_v56  ;;  %v1194_v56 = vld [vmem:[%s4465_s21 + $0x1c20] sm:$0xff] }
 0x251   : > { %3441 = vmatpush1.bf16.msra.mxu0 %v3440_v3  ;;  %v3462_v3 = vpack.c.bf16 %v1139_v62, %v1131_v61  ;;  %v1202_v57 = vld [vmem:[%s4465_s21 + $0x1c60] sm:$0xff]  ;;  %v1211_v61 = vld [vmem:[%s4465_s21 + $0x1ca8] sm:$0xff] }
 0x252   : > { %3697 = vmatpush1.bf16.msra.mxu1 %v3696_v4  ;;  %3443 = vmatprep.subr.bf16.mxu0 %v3442_v5  ;;  %v1130_v4 = vld [vmem:[%s4465_s21 + $0x1a20] sm:$0xff]  ;;  %v1219_v62 = vld [vmem:[%s4465_s21 + $0x1ce8] sm:$0xff] }
 0x253   : > { %3699 = vmatprep.subr.bf16.mxu1 %v3698_v9  ;;  %v1138_v5 = vld [vmem:[%s4465_s21 + $0x1a60] sm:$0xff]  ;;  %v1147_v9 = vld [vmem:[%s4465_s21 + $0x1aa8] sm:$0xff] }
 0x254   : > { %v3464_v13 = vpack.c.bf16 %v1138_v5, %v1130_v4  ;;  %v1210_v4 = vld [vmem:[%s4465_s21 + $0x1ca0] sm:$0xff] }
 0x255   : > { %3445 = vmatpush1.bf16.msra.mxu0 %v3444_v15  ;;  %v3466_v15 = vpack.c.bf16 %v1155_v10, %v1147_v9  ;;  %v1218_v5 = vld [vmem:[%s4465_s21 + $0x1ce0] sm:$0xff]  ;;  %v1227_v9 = vld [vmem:[%s4465_s21 + $0x1d28] sm:$0xff] }
 0x256   : > { %3701 = vmatpush1.bf16.msra.mxu1 %v3700_v16  ;;  %3447 = vmatprep.subr.bf16.mxu0 %v3446_v17  ;;  %v1146_v16 = vld [vmem:[%s4465_s21 + $0x1aa0] sm:$0xff]  ;;  %v1235_v10 = vld [vmem:[%s4465_s21 + $0x1d68] sm:$0xff] }
 0x257   : > { %3703 = vmatprep.subr.bf16.mxu1 %v3702_v21  ;;  %v1154_v17 = vld [vmem:[%s4465_s21 + $0x1ae0] sm:$0xff]  ;;  %v1163_v21 = vld [vmem:[%s4465_s21 + $0x1b28] sm:$0xff] }
 0x258   : > { %2093 = vmatmul.mubr.f32.vlgmr.msra.gmra.mrb[2].mxu0 %v3927_v37  ;;  %v3468_v25 = vpack.c.bf16 %v1154_v17, %v1146_v16  ;;  %v1226_v16 = vld [vmem:[%s4465_s21 + $0x1d20] sm:$0xff] }
 0x259   : > { %3449 = vmatpush1.bf16.msra.mxu0 %v3448_v27  ;;  %2377 = vmatmul.mubr.f32.vlgmr.msra.gmra.mrb[2].mxu1 %v3927_v37  ;;  %v3470_v27 = vpack.c.bf16 %v1171_v22, %v1163_v21  ;;  %v1234_v17 = vld [vmem:[%s4465_s21 + $0x1d60] sm:$0xff]  ;;  %v1243_v21 = vld [vmem:[%s4465_s21 + $0x1da8] sm:$0xff] }
 0x25a   : > { %3705 = vmatpush1.bf16.msra.mxu1 %v3704_v28  ;;  %3451 = vmatprep.subr.bf16.mxu0 %v3450_v29  ;;  %v1162_v28 = vld [vmem:[%s4465_s21 + $0x1b20] sm:$0xff]  ;;  %v1251_v22 = vld [vmem:[%s4465_s21 + $0x1de8] sm:$0xff] }
 0x25b   : > { %3707 = vmatprep.subr.bf16.mxu1 %v3706_v33  ;;  %2163 = vmatprep.mubr.f32.mxu0 %v3928_v50  ;;  %v1170_v29 = vld [vmem:[%s4465_s21 + $0x1b60] sm:$0xff]  ;;  %v1172_v33 = vld [vmem:[%s4465_s21 + $0x1b70] sm:$0xff] }
 0x25c   : > { %2447 = vmatprep.mubr.f32.mxu1 %v3928_v50  ;;  %v1203_v50 = vld [vmem:[%s4465_s21 + $0x1c68] sm:$0xff] }
 0x25d   : > { %3453 = vmatpush1.bf16.msra.mxu0 %v3452_v40 }
 0x25e   : > { %3709 = vmatpush1.bf16.msra.mxu1 %v3708_v41  ;;  %3455 = vmatprep.subr.bf16.mxu0 %v3454_v42  ;;  %v3472_v41 = vpack.c.bf16 %v1170_v29, %v1162_v28  ;;  %v3728_v42 = vpack.c.bf16 %v1172_v33, %v1164_v30  ;;  %v1242_v28 = vld [vmem:[%s4465_s21 + $0x1da0] sm:$0xff]  ;;  %v1244_v30 = vld [vmem:[%s4465_s21 + $0x1db0] sm:$0xff] }
 0x25f   : > { %3711 = vmatprep.subr.bf16.mxu1 %v3710_v46  ;;  %v1180_v46 = vld [vmem:[%s4465_s21 + $0x1bb0] sm:$0xff]  ;;  %v1250_v29 = vld [vmem:[%s4465_s21 + $0x1de0] sm:$0xff] }
 0x260   : > { %v1252_v33 = vld [vmem:[%s4465_s21 + $0x1df0] sm:$0xff] }
 0x261   : > { %3457 = vmatpush1.bf16.msra.mxu0 %v3456_v53  ;;  %v3476_v53 = vpack.c.bf16 %v1186_v45, %v1178_v44  ;;  %v1258_v44 = vld [vmem:[%s4465_s21 + $0x1e20] sm:$0xff] }
 0x262   : > { %3713 = vmatpush1.bf16.msra.mxu1 %v3712_v54  ;;  %3459 = vmatprep.subr.bf16.mxu0 %v3458_v55  ;;  %v3732_v54 = vpack.c.bf16 %v1188_v48, %v1180_v46  ;;  %v3478_v55 = vpack.c.bf16 %v1203_v50, %v1195_v49  ;;  %v1266_v45 = vld [vmem:[%s4465_s21 + $0x1e60] sm:$0xff]  ;;  %v1260_v46 = vld [vmem:[%s4465_s21 + $0x1e30] sm:$0xff]  ;;  %v1275_v49 = vld [vmem:[%s4465_s21 + $0x1ea8] sm:$0xff] }
 0x263   : > { %3715 = vmatprep.subr.bf16.mxu1 %v3714_v59  ;;  %v3734_v59 = vpack.c.bf16 %v1205_v52, %v1197_v51  ;;  %v1268_v48 = vld [vmem:[%s4465_s21 + $0x1e70] sm:$0xff]  ;;  %v1283_v50 = vld [vmem:[%s4465_s21 + $0x1ee8] sm:$0xff]  ;;  %v1277_v51 = vld [vmem:[%s4465_s21 + $0x1eb8] sm:$0xff] }
 0x264   : > { %v1285_v52 = vld [vmem:[%s4465_s21 + $0x1ef8] sm:$0xff] }
 0x265   : > { %3461 = vmatpush1.bf16.msra.mxu0 %v3460_v1  ;;  %v3480_v1 = vpack.c.bf16 %v1202_v57, %v1194_v56  ;;  %v1274_v56 = vld [vmem:[%s4465_s21 + $0x1ea0] sm:$0xff] }
 0x266   : > { %3717 = vmatpush1.bf16.msra.mxu1 %v3716_v2  ;;  %3463 = vmatprep.subr.bf16.mxu0 %v3462_v3  ;;  %v3736_v2 = vpack.c.bf16 %v1204_v60, %v1196_v58  ;;  %v3482_v3 = vpack.c.bf16 %v1219_v62, %v1211_v61  ;;  %v1282_v57 = vld [vmem:[%s4465_s21 + $0x1ee0] sm:$0xff]  ;;  %v1276_v58 = vld [vmem:[%s4465_s21 + $0x1eb0] sm:$0xff]  ;;  %v1291_v61 = vld [vmem:[%s4465_s21 + $0x1f28] sm:$0xff] }
 0x267   : > { %3719 = vmatprep.subr.bf16.mxu1 %v3718_v7  ;;  %v3738_v7 = vpack.c.bf16 %v1221_v0, %v1213_v63  ;;  %v1284_v60 = vld [vmem:[%s4465_s21 + $0x1ef0] sm:$0xff]  ;;  %v1299_v62 = vld [vmem:[%s4465_s21 + $0x1f68] sm:$0xff]  ;;  %v1293_v63 = vld [vmem:[%s4465_s21 + $0x1f38] sm:$0xff] }
 0x268   : > { %v1301_v0 = vld [vmem:[%s4465_s21 + $0x1f78] sm:$0xff] }
 0x269   : > { %3465 = vmatpush1.bf16.msra.mxu0 %v3464_v13  ;;  %v3484_v13 = vpack.c.bf16 %v1218_v5, %v1210_v4  ;;  %v1290_v4 = vld [vmem:[%s4465_s21 + $0x1f20] sm:$0xff] }
 0x26a   : > { %3721 = vmatpush1.bf16.msra.mxu1 %v3720_v14  ;;  %3467 = vmatprep.subr.bf16.mxu0 %v3466_v15  ;;  %v3740_v14 = vpack.c.bf16 %v1220_v8, %v1212_v6  ;;  %v3486_v15 = vpack.c.bf16 %v1235_v10, %v1227_v9  ;;  %v1298_v5 = vld [vmem:[%s4465_s21 + $0x1f60] sm:$0xff]  ;;  %v1292_v6 = vld [vmem:[%s4465_s21 + $0x1f30] sm:$0xff]  ;;  %v1307_v9 = vld [vmem:[%s4465_s21 + $0x1fa8] sm:$0xff] }
 0x26b   : > { %v5451_v31 = vpop.f32.mrb[0].mxu0  ;;  %3723 = vmatprep.subr.bf16.mxu1 %v3722_v19  ;;  %v3742_v19 = vpack.c.bf16 %v1237_v12, %v1229_v11  ;;  %v1300_v8 = vld [vmem:[%s4465_s21 + $0x1f70] sm:$0xff]  ;;  %v1315_v10 = vld [vmem:[%s4465_s21 + $0x1fe8] sm:$0xff]  ;;  %v1309_v11 = vld [vmem:[%s4465_s21 + $0x1fb8] sm:$0xff] }
 0x26c   : > { %v5456_v36 = vpop.f32.mrb[0].mxu1  ;;  %v5458_v37 = vpop.f32.mrb[1].mxu0  ;;  %v1317_v12 = vld [vmem:[%s4465_s21 + $0x1ff8] sm:$0xff]  ;;  %2458 = vst [vmem:[%s4483_s28] sm:$0xff] (!%p2734_p9), %v5451_v31 }
 0x26d   : > { %v5462_v40 = vpop.f32.mrb[1].mxu1  ;;  %3469 = vmatpush1.bf16.msra.mxu0 %v3468_v25  ;;  %v3488_v25 = vpack.c.bf16 %v1234_v17, %v1226_v16  ;;  %v1306_v16 = vld [vmem:[%s4465_s21 + $0x1fa0] sm:$0xff]  ;;  %2459 = vst [vmem:[%s4483_s28 + $0x8] sm:$0xff] (!%p2734_p9), %v5458_v37  ;;  %2460 = vst [vmem:[%s4483_s28 + $0x10] sm:$0xff] (!%p2734_p9), %v5456_v36 }
 0x26e   : > { %3725 = vmatpush1.bf16.msra.mxu1 %v3724_v26  ;;  %3471 = vmatprep.subr.bf16.mxu0 %v3470_v27  ;;  %v3744_v26 = vpack.c.bf16 %v1236_v20, %v1228_v18  ;;  %v3490_v27 = vpack.c.bf16 %v1251_v22, %v1243_v21  ;;  %v1314_v17 = vld [vmem:[%s4465_s21 + $0x1fe0] sm:$0xff]  ;;  %v3762_v18 = vpack.c.bf16 %v1317_v12, %v1309_v11  ;;  %v1316_v20 = vld [vmem:[%s4465_s21 + $0x1ff0] sm:$0xff] }
 0x26f   : > { %3727 = vmatprep.subr.bf16.mxu1 %v3726_v32  ;;  %v3746_v32 = vpack.c.bf16 %v1253_v24, %v1245_v23  ;;  %v3508_v21 = vpack.c.bf16 %v1314_v17, %v1306_v16  ;;  %v3929_v23 = vld [vmem:[%s4456_s11 + $0x30] sm:$0xff]  ;;  %2461 = vst [vmem:[%s4483_s28 + $0x18] sm:$0xff] (!%p2734_p9), %v5462_v40 }
 0x271   : > { %3473 = vmatpush1.bf16.msra.mxu0 %v3472_v41  ;;  %v3492_v41 = vpack.c.bf16 %v1250_v29, %v1242_v28 }
 0x272   : > { %3729 = vmatpush1.bf16.msra.mxu1 %v3728_v42  ;;  %3475 = vmatprep.subr.bf16.mxu0 %v3474_v43  ;;  %v3748_v42 = vpack.c.bf16 %v1252_v33, %v1244_v30  ;;  %v3494_v43 = vpack.c.bf16 %v1267_v35, %v1259_v34 }
 0x273   : > { %3731 = vmatprep.subr.bf16.mxu1 %v3730_v47  ;;  %v3750_v47 = vpack.c.bf16 %v1269_v39, %v1261_v38 }
 0x275   : > { %3477 = vmatpush1.bf16.msra.mxu0 %v3476_v53  ;;  %v3496_v53 = vpack.c.bf16 %v1266_v45, %v1258_v44 }
 0x276   : > { %3733 = vmatpush1.bf16.msra.mxu1 %v3732_v54  ;;  %3479 = vmatprep.subr.bf16.mxu0 %v3478_v55  ;;  %v3752_v54 = vpack.c.bf16 %v1268_v48, %v1260_v46  ;;  %v3498_v55 = vpack.c.bf16 %v1283_v50, %v1275_v49 }
 0x277   : > { %3735 = vmatprep.subr.bf16.mxu1 %v3734_v59  ;;  %v3754_v59 = vpack.c.bf16 %v1285_v52, %v1277_v51 }
 0x279   : > { %3481 = vmatpush1.bf16.msra.mxu0 %v3480_v1  ;;  %v3500_v1 = vpack.c.bf16 %v1282_v57, %v1274_v56 }
 0x27a   : > { %3737 = vmatpush1.bf16.msra.mxu1 %v3736_v2  ;;  %3483 = vmatprep.subr.bf16.mxu0 %v3482_v3  ;;  %v3756_v2 = vpack.c.bf16 %v1284_v60, %v1276_v58  ;;  %v3502_v3 = vpack.c.bf16 %v1299_v62, %v1291_v61 }
 0x27b   : > { %3739 = vmatprep.subr.bf16.mxu1 %v3738_v7  ;;  %v3758_v7 = vpack.c.bf16 %v1301_v0, %v1293_v63 }
 0x27d   : > { %3485 = vmatpush1.bf16.msra.mxu0 %v3484_v13  ;;  %v3504_v13 = vpack.c.bf16 %v1298_v5, %v1290_v4 }
 0x27e   : > { %3741 = vmatpush1.bf16.msra.mxu1 %v3740_v14  ;;  %3487 = vmatprep.subr.bf16.mxu0 %v3486_v15  ;;  %v3760_v14 = vpack.c.bf16 %v1300_v8, %v1292_v6  ;;  %v3506_v15 = vpack.c.bf16 %v1315_v10, %v1307_v9 }
 0x27f   : > { %3743 = vmatprep.subr.bf16.mxu1 %v3742_v19  ;;  %v1308_v19 = vld [vmem:[%s4465_s21 + $0x1fb0] sm:$0xff] }
 0x280   : > { %v3764_v22 = vpack.c.bf16 %v1316_v20, %v1308_v19 }
 0x281   : > { %3489 = vmatpush1.bf16.msra.mxu0 %v3488_v25 }
 0x282   : > { %3745 = vmatpush1.bf16.msra.mxu1 %v3744_v26  ;;  %3491 = vmatprep.subr.bf16.mxu0 %v3490_v27 }
 0x283   : > { %3747 = vmatprep.subr.bf16.mxu1 %v3746_v32 }
 0x285   : > { %3493 = vmatpush1.bf16.msra.mxu0 %v3492_v41 }
 0x286   : > { %3749 = vmatpush1.bf16.msra.mxu1 %v3748_v42  ;;  %3495 = vmatprep.subr.bf16.mxu0 %v3494_v43 }
 0x287   : > { %3751 = vmatprep.subr.bf16.mxu1 %v3750_v47 }
 0x289   : > { %3497 = vmatpush1.bf16.msra.mxu0 %v3496_v53 }
 0x28a   : > { %3753 = vmatpush1.bf16.msra.mxu1 %v3752_v54  ;;  %3499 = vmatprep.subr.bf16.mxu0 %v3498_v55 }
 0x28b   : > { %3755 = vmatprep.subr.bf16.mxu1 %v3754_v59 }
 0x28d   : > { %3501 = vmatpush1.bf16.msra.mxu0 %v3500_v1 }
 0x28e   : > { %3757 = vmatpush1.bf16.msra.mxu1 %v3756_v2  ;;  %3503 = vmatprep.subr.bf16.mxu0 %v3502_v3 }
 0x28f   : > { %3759 = vmatprep.subr.bf16.mxu1 %v3758_v7 }
 0x291   : > { %3505 = vmatpush1.bf16.msra.mxu0 %v3504_v13 }
 0x292   : > { %3761 = vmatpush1.bf16.msra.mxu1 %v3760_v14  ;;  %3507 = vmatprep.subr.bf16.mxu0 %v3506_v15 }
 0x293   : > { %3763 = vmatprep.subr.bf16.mxu1 %v3762_v18 }
 0x295   : > { %3509 = vmatpush1.bf16.msra.mxu0 %v3508_v21 }
 0x296   : > { %3765 = vmatpush1.bf16.msra.mxu1 %v3764_v22 }
 0x298   : > { %2164 = vmatmul.mubr.f32.vlgmr.msra.gmra.mrb[2].mxu0 %v3929_v23 }
 0x299   : > { %2448 = vmatmul.mubr.f32.vlgmr.msra.gmra.mrb[2].mxu1 %v3929_v23 }
 0x367   : > { %2457 = sbr.rel (%p2734_p9) target bundleno = 879 (0x36f), region = 48 }
 0x36b   : > { %v2165_v24 = vpop.f32.mrb[2].mxu0 }
 0x36c   : > { %v2449_v25 = vpop.f32.mrb[2].mxu1  ;;  %v2167_v26 = vpop.f32.mrb[3].mxu0  ;;  %2462 = vst [vmem:[%s4483_s28 + $0x20] sm:$0xff] (!%p2734_p9), %v2165_v24 }
 0x36d   : > { %v2451_v27 = vpop.f32.mrb[3].mxu1  ;;  %2463 = vst [vmem:[%s4483_s28 + $0x28] sm:$0xff] (!%p2734_p9), %v2167_v26  ;;  %2464 = vst [vmem:[%s4483_s28 + $0x30] sm:$0xff] (!%p2734_p9), %v2449_v25 }
 0x36e   : > { %2465 = vst [vmem:[%s4483_s28 + $0x38] sm:$0xff] %v2451_v27 }
 0x36f PF: > { %s5676_s15 = sld [smem:[#allocation11_spill]] }
 0x375   : > { %p2735_p12 = scmp.eq.s32.totalorder %s5676_s15, 0 }
 0x376   : > { %v2470_v28 = vld [vmem:[%s4483_s28] sm:$0xff] (!%p2735_p12)  ;;  %v2471_v29 = vld [vmem:[%s4483_s28 + $0x8] sm:$0xff] (!%p2735_p12)  ;;  %v2472_v30 = vld [vmem:[%s4483_s28 + $0x10] sm:$0xff] (!%p2735_p12) }
 0x377   : > { %2469 = sbr.rel (%p2735_p12) target bundleno = 894 (0x37e), region = 52  ;;  %v2478_v32 = vadd.f32 (!%p2735_p12), %v2470_v28, %v5451_v31  ;;  %v2479_v33 = vadd.f32 (!%p2735_p12), %v2471_v29, %v5458_v37  ;;  %v2480_v34 = vadd.f32 (!%p2735_p12), %v2472_v30, %v5456_v36  ;;  %v2473_v35 = vld [vmem:[%s4483_s28 + $0x18] sm:$0xff] (!%p2735_p12)  ;;  %v2474_v38 = vld [vmem:[%s4483_s28 + $0x20] sm:$0xff] (!%p2735_p12)  ;;  %v2475_v39 = vld [vmem:[%s4483_s28 + $0x28] sm:$0xff] (!%p2735_p12) }
 0x378   : > { %v2481_v41 = vadd.f32 (!%p2735_p12), %v2473_v35, %v5462_v40  ;;  %v2482_v42 = vadd.f32 (!%p2735_p12), %v2474_v38, %v2165_v24  ;;  %v2483_v43 = vadd.f32 (!%p2735_p12), %v2475_v39, %v2167_v26  ;;  %v2476_v44 = vld [vmem:[%s4483_s28 + $0x30] sm:$0xff] (!%p2735_p12)  ;;  %v2477_v45 = vld [vmem:[%s4483_s28 + $0x38] sm:$0xff] (!%p2735_p12) }
 0x379   : > { %2486 = vst [vmem:[%s4483_s28] sm:$0xff] (!%p2735_p12), %v2478_v32  ;;  %2487 = vst [vmem:[%s4483_s28 + $0x8] sm:$0xff] (!%p2735_p12), %v2479_v33  ;;  %v2484_v31 = vadd.f32 (!%p2735_p12), %v2476_v44, %v2449_v25  ;;  %v2485_v37 = vadd.f32 (!%p2735_p12), %v2477_v45, %v2451_v27 }
 0x37a   : > { %2488 = vst [vmem:[%s4483_s28 + $0x10] sm:$0xff] (!%p2735_p12), %v2480_v34  ;;  %2489 = vst [vmem:[%s4483_s28 + $0x18] sm:$0xff] (!%p2735_p12), %v2481_v41 }
 0x37b   : > { %2490 = vst [vmem:[%s4483_s28 + $0x20] sm:$0xff] (!%p2735_p12), %v2482_v42  ;;  %2491 = vst [vmem:[%s4483_s28 + $0x28] sm:$0xff] (!%p2735_p12), %v2483_v43 }
 0x37c   : > { %2492 = vst [vmem:[%s4483_s28 + $0x30] sm:$0xff] (!%p2735_p12), %v2484_v31  ;;  %2493 = vst [vmem:[%s4483_s28 + $0x38] sm:$0xff] (!%p2735_p12), %v2485_v37 }
 0x37e PF: > { %s5677_s11 = sld [smem:[#allocation11_spill]] }
 0x384   : > { %p2736_p10 = scmp.ne.s32.totalorder %s5677_s11, 3 }
 0x385   : > { %v2508_v36 = vlaneseq (!%p2736_p10)  ;;  %v2498_v46 = vld [vmem:[%s4483_s28] sm:$0xff] (!%p2736_p10)  ;;  %v2499_v49 = vld [vmem:[%s4483_s28 + $0x8] sm:$0xff] (!%p2736_p10)  ;;  %v2500_v51 = vld [vmem:[%s4483_s28 + $0x10] sm:$0xff] (!%p2736_p10) }
 0x386   : > { %2497 = sbr.rel (%p2736_p10) target bundleno = 920 (0x398), region = 56  ;;  %v2506_v47 = vld [vmem:[%s243_s10] sm:$0xff] (!%p2736_p10)  ;;  %v2501_v54 = vld [vmem:[%s4483_s28 + $0x18] sm:$0xff] (!%p2736_p10)  ;;  %v2504_v1 = vld [vmem:[%s4483_s28 + $0x30] sm:$0xff] (!%p2736_p10) }
 0x387   : > { %v2509_v40 = vshrl.u32 (!%p2736_p10), %v2508_v36, 7  ;;  %v2502_v55 = vld [vmem:[%s4483_s28 + $0x20] sm:$0xff] (!%p2736_p10)  ;;  %v2503_v0 = vld [vmem:[%s4483_s28 + $0x28] sm:$0xff] (!%p2736_p10)  ;;  %v2505_v2 = vld [vmem:[%s4483_s28 + $0x38] sm:$0xff] (!%p2736_p10) }
 0x389   : > { %v2510_v48 = vsub.s32 (!%p2736_p10), 0, %v2509_v40  ;;  %v2514_v50 = vsub.s32 (!%p2736_p10), 1, %v2509_v40  ;;  %v2518_v52 = vsub.s32 (!%p2736_p10), 2, %v2509_v40  ;;  %v2522_v53 = vsub.s32 (!%p2736_p10), 3, %v2509_v40 }
 0x38a   : > { %v2526_v56 = vsub.s32 (!%p2736_p10), 4, %v2509_v40  ;;  %v2530_v57 = vsub.s32 (!%p2736_p10), 5, %v2509_v40  ;;  %v2534_v58 = vsub.s32 (!%p2736_p10), 6, %v2509_v40  ;;  %v2538_v59 = vsub.s32 (!%p2736_p10), 7, %v2509_v40 }
 0x38b   : > { %v2511_v60 = vrot.slane (!%p2736_p10), %v2506_v47, %v2510_v48  ;;  %v2515_v61 = vrot.slane (!%p2736_p10), %v2506_v47, %v2514_v50  ;;  %v2519_v62 = vrot.slane (!%p2736_p10), %v2506_v47, %v2518_v52  ;;  %v2523_v63 = vrot.slane (!%p2736_p10), %v2506_v47, %v2522_v53 }
 0x38c   : > { %v2527_v3 = vrot.slane (!%p2736_p10), %v2506_v47, %v2526_v56  ;;  %v2531_v4 = vrot.slane (!%p2736_p10), %v2506_v47, %v2530_v57  ;;  %v2535_v5 = vrot.slane (!%p2736_p10), %v2506_v47, %v2534_v58  ;;  %v2539_v6 = vrot.slane (!%p2736_p10), %v2506_v47, %v2538_v59 }
 0x38d   : > { %v2548_v7 = vadd.f32 %v2511_v60, %v2498_v46  ;;  %v2549_v8 = vadd.f32 %v2515_v61, %v2499_v49  ;;  %v2550_v9 = vadd.f32 %v2519_v62, %v2500_v51  ;;  %v2551_v10 = vadd.f32 %v2523_v63, %v2501_v54 }
 0x38e   : > { %v2552_v11 = vadd.f32 %v2527_v3, %v2502_v55  ;;  %v2553_v12 = vadd.f32 %v2531_v4, %v2503_v0  ;;  %v2554_v13 = vadd.f32 %v2535_v5, %v2504_v1  ;;  %v2555_v14 = vadd.f32 %v2539_v6, %v2505_v2 }
 0x38f   : > { %vm2556_vm0 = vcmp.ge.f32.partialorder %v2548_v7, 0.0  ;;  %v2564_v15 = vmul.f32 0.01, %v2548_v7  ;;  %vm2557_vm1 = vcmp.ge.f32.partialorder %v2549_v8, 0.0  ;;  %v2565_v16 = vmul.f32 0.01, %v2549_v8 }
 0x390   : > { %vm2558_vm2 = vcmp.ge.f32.partialorder %v2550_v9, 0.0  ;;  %v2566_v17 = vmul.f32 0.01, %v2550_v9  ;;  %vm2559_vm3 = vcmp.ge.f32.partialorder %v2551_v10, 0.0  ;;  %v2567_v18 = vmul.f32 0.01, %v2551_v10 }
 0x391   : > { %v2572_v19 = vsel %vm2556_vm0, %v2548_v7, %v2564_v15  ;;  %v2573_v20 = vsel %vm2557_vm1, %v2549_v8, %v2565_v16  ;;  %vm2560_vm4 = vcmp.ge.f32.partialorder %v2552_v11, 0.0  ;;  %v2568_v21 = vmul.f32 0.01, %v2552_v11 }
 0x392   : > { %2580 = vst [vmem:[%s4483_s28] sm:$0xff] %v2572_v19  ;;  %2581 = vst [vmem:[%s4483_s28 + $0x8] sm:$0xff] %v2573_v20  ;;  %v2574_v22 = vsel %vm2558_vm2, %v2550_v9, %v2566_v17  ;;  %v2575_v23 = vsel %vm2559_vm3, %v2551_v10, %v2567_v18  ;;  %vm2561_vm5 = vcmp.ge.f32.partialorder %v2553_v12, 0.0  ;;  %v2569_v24 = vmul.f32 0.01, %v2553_v12 }
 0x393   : > { %2582 = vst [vmem:[%s4483_s28 + $0x10] sm:$0xff] %v2574_v22  ;;  %2583 = vst [vmem:[%s4483_s28 + $0x18] sm:$0xff] %v2575_v23  ;;  %v2576_v25 = vsel %vm2560_vm4, %v2552_v11, %v2568_v21  ;;  %vm2562_vm6 = vcmp.ge.f32.partialorder %v2554_v13, 0.0  ;;  %v2570_v26 = vmul.f32 0.01, %v2554_v13  ;;  %vm2563_vm7 = vcmp.ge.f32.partialorder %v2555_v14, 0.0 }
 0x394   : > { %2584 = vst [vmem:[%s4483_s28 + $0x20] sm:$0xff] %v2576_v25  ;;  %v2577_v27 = vsel %vm2561_vm5, %v2553_v12, %v2569_v24  ;;  %v2571_v28 = vmul.f32 0.01, %v2555_v14 }
 0x395   : > { %2585 = vst [vmem:[%s4483_s28 + $0x28] sm:$0xff] %v2577_v27  ;;  %v2578_v29 = vsel %vm2562_vm6, %v2554_v13, %v2570_v26 }
 0x396   : > { %2586 = vst [vmem:[%s4483_s28 + $0x30] sm:$0xff] %v2578_v29  ;;  %v2579_v30 = vsel %vm2563_vm7, %v2555_v14, %v2571_v28 }
 0x397   : > { %2587 = vst [vmem:[%s4483_s28 + $0x38] sm:$0xff] %v2579_v30 }
 0x398 PF: > { %s19_s25 = sadd.s32 1, %s4142_s25   ;;  %s5679_s29 = sld [smem:[#allocation10_spill]] }
 0x399   : > { %p5587_p1 = scmp.ge.s32.totalorder %s19_s25, 10   ;;  %s5680_s20 = sld [smem:[#allocation13_spill]] }
 0x39a   : > { %s5681_s3 = sld [smem:[#allocation12_spill]]  ;;  %s5683_s12 = smov %s4094_s13 }
 0x39b   : > { %s5684_s13 = smov %s4098_s14  ;;  %s5685_s14 = smov %s4408_s5 }
 0x39c   : > { %s5686_s15 = smov %s4106_s16  ;;  %s5687_s16 = smov %s4110_s17 }
 0x39d   : > { %s5688_s17 = smov %s4359_s27  ;;  %s5689_s18 = smov %s4118_s19 }
 0x39e   : > { %s5690_s19 = smov %s5679_s29  ;;  %s5691_s21 = smov %s4134_s23 }
 0x39f   : > { %s5692_s22 = smov %s4138_s24  ;;  %s5694_s24 = smov %s5700_s26 }
 0x3a0   : > { %s5693_s23 = smov %s5681_s3  ;;  %18 = sbr.rel (!%p5587_p1) target bundleno = 13 (0xd), region = 108 }
 0x3a7   :  { %2610 = vsyncpa [#allocation3], 1 }
 0x3a8   :  { %2612 = vsyncpa [#allocation3 + $0x1], 1 }
 0x3a9   :  { %2613 = vsyncpa [#allocation5], 1 }
 0x3aa   :  { %2615 = vsyncpa [#allocation5 + $0x1], 1 }

// kernel: mynn_forward.3
= control target key start
LH: loop header
LB: loop body
LE: loop exit
PB: predicated region body
PF: predicated region fallthrough
CT: control target
= control target key end

     0   :  { %s4377_s18 = smov 0   ;;  %s5884_s0 = inlined_call_operand.vmem [shape: f32[8,2048], index: 0, kind: input, shape index: {}]   ;;  %s5885_s1 = inlined_call_operand.vmem [shape: f32[2048,1024], index: 1, kind: input, shape index: {}]   ;;  %s5886_s2 = inlined_call_operand.vmem [shape: f32[1,1024], index: 2, kind: input, shape index: {}]   ;;  %s5887_s3 = inlined_call_operand.vmem [shape: f32[1024,2], index: 3, kind: input, shape index: {}]   ;;  %s5888_s4 = inlined_call_operand.vmem [shape: f32[1,2], index: 4, kind: input, shape index: {}]   ;;  %s5889_s5 = inlined_call_operand.vmem [shape: f32[8,2], index: 5, kind: output, shape index: {}]  }
   0x1 LB: > { %s4383_s19 = sadd.s32 4294967295, %s4345_s18   ;;  %p2994_p0 = scmp.ge.s32.totalorder %s4345_s18, 1  ;;  %s4345_s18 = sphi %s4377_s18, %s15_s18  }
   0x2   : > { %p195_p1 = scmp.lt.s32.totalorder %s4345_s18, 3 }
   0x4   : > { %p196_p2 = pnand %p2994_p0, %p195_p1 }
   0x5   : > { %s2997_s20 = sshll.u32 (!%p196_p2), %s4383_s19, 7  ;;  %s2995_s25 = sshll.u32 (!%p196_p2), %s4383_s19, 3 }
   0x6   : > { %199 = sbr.rel (%p196_p2) target bundleno = 1049 (0x419), region = 40  ;;  %p231_p3 = scmp.lt.s32.totalorder (!%p196_p2), %s2997_s20, 255 }
   0x7   : > { %p4462_p4 = scmp.lt.s32.totalorder (!%p196_p2), %s2995_s25, 15  ;;  %p3000_p5 = scmp.ne.s32.totalorder (!%p196_p2), %s4383_s19, 0 }
   0xd   : > { %s5892_s20 = smov (!%p231_p3, %s2997_s20), 255  ;;  %s5894_s25 = smov (!%p4462_p4, %s2995_s25), 15 }
   0xe   : > { %s3006_s21 = sshll.u32 %s5892_s20, 6  ;;  %s2996_s27 = sshll.u32 %s5894_s25, 3 }
   0xf   : > { %s4391_s24 = scalar_lea.vmem %s5885_s1, %s3006_s21  ;;  %s4498_s30 = scalar_lea.vmem %s5884_s0, %s2996_s27 }
  0x10   : > { %v246_v0 = vld [vmem:[%s4391_s24 + $0x8] sm:$0xff]  ;;  %v248_v2 = vld [vmem:[%s4391_s24 + $0x18] sm:$0xff]  ;;  %v245_v5 = vld [vmem:[%s4391_s24] sm:$0xff] }
  0x11   : > { %v254_v1 = vld [vmem:[%s4391_s24 + $0x48] sm:$0xff]  ;;  %v256_v4 = vld [vmem:[%s4391_s24 + $0x58] sm:$0xff]  ;;  %v253_v6 = vld [vmem:[%s4391_s24 + $0x40] sm:$0xff] }
  0x12   : > { %v3147_v3 = vpack.c.bf16 %v254_v1, %v246_v0  ;;  %v3403_v7 = vpack.c.bf16 %v256_v4, %v248_v2  ;;  %v3149_v8 = vpack.c.bf16 %v253_v6, %v245_v5  ;;  %v247_v9 = vld [vmem:[%s4391_s24 + $0x10] sm:$0xff]  ;;  %v262_v11 = vld [vmem:[%s4391_s24 + $0x88] sm:$0xff]  ;;  %v264_v14 = vld [vmem:[%s4391_s24 + $0x98] sm:$0xff] }
  0x13   : > { %v255_v10 = vld [vmem:[%s4391_s24 + $0x50] sm:$0xff]  ;;  %v270_v13 = vld [vmem:[%s4391_s24 + $0xc8] sm:$0xff]  ;;  %v272_v15 = vld [vmem:[%s4391_s24 + $0xd8] sm:$0xff] }
  0x14   : > { %3148 = vmatprep.subr.bf16.mxu0 %v3147_v3  ;;  %v3405_v12 = vpack.c.bf16 %v255_v10, %v247_v9  ;;  %3404 = vmatprep.subr.bf16.mxu1 %v3403_v7  ;;  %v3151_v16 = vpack.c.bf16 %v270_v13, %v262_v11  ;;  %v3407_v17 = vpack.c.bf16 %v272_v15, %v264_v14  ;;  %v261_v18 = vld [vmem:[%s4391_s24 + $0x80] sm:$0xff]  ;;  %v263_v20 = vld [vmem:[%s4391_s24 + $0x90] sm:$0xff]  ;;  %v278_v23 = vld [vmem:[%s4391_s24 + $0x108] sm:$0xff] }
  0x15   : > { %3150 = vmatpush1.bf16.msra.mxu0 %v3149_v8  ;;  %v269_v19 = vld [vmem:[%s4391_s24 + $0xc0] sm:$0xff]  ;;  %v271_v22 = vld [vmem:[%s4391_s24 + $0xd0] sm:$0xff]  ;;  %v286_v24 = vld [vmem:[%s4391_s24 + $0x148] sm:$0xff] }
  0x16   : > { %3406 = vmatpush1.bf16.msra.mxu1 %v3405_v12  ;;  %v3153_v21 = vpack.c.bf16 %v269_v19, %v261_v18  ;;  %3152 = vmatprep.subr.bf16.mxu0 %v3151_v16  ;;  %v3409_v25 = vpack.c.bf16 %v271_v22, %v263_v20  ;;  %v3155_v26 = vpack.c.bf16 %v286_v24, %v278_v23  ;;  %v280_v27 = vld [vmem:[%s4391_s24 + $0x118] sm:$0xff]  ;;  %v277_v29 = vld [vmem:[%s4391_s24 + $0x100] sm:$0xff]  ;;  %v279_v32 = vld [vmem:[%s4391_s24 + $0x110] sm:$0xff] }
  0x17   : > { %3408 = vmatprep.subr.bf16.mxu1 %v3407_v17  ;;  %v288_v28 = vld [vmem:[%s4391_s24 + $0x158] sm:$0xff]  ;;  %v285_v31 = vld [vmem:[%s4391_s24 + $0x140] sm:$0xff]  ;;  %v287_v33 = vld [vmem:[%s4391_s24 + $0x150] sm:$0xff] }
  0x18   : > { %v3411_v30 = vpack.c.bf16 %v288_v28, %v280_v27  ;;  %v3157_v34 = vpack.c.bf16 %v285_v31, %v277_v29  ;;  %v294_v35 = vld [vmem:[%s4391_s24 + $0x188] sm:$0xff]  ;;  %v296_v37 = vld [vmem:[%s4391_s24 + $0x198] sm:$0xff]  ;;  %v3413_v38 = vpack.c.bf16 %v287_v33, %v279_v32  ;;  %v293_v41 = vld [vmem:[%s4391_s24 + $0x180] sm:$0xff] }
  0x19   : > { %3154 = vmatpush1.bf16.msra.mxu0 %v3153_v21  ;;  %v302_v36 = vld [vmem:[%s4391_s24 + $0x1c8] sm:$0xff]  ;;  %v304_v40 = vld [vmem:[%s4391_s24 + $0x1d8] sm:$0xff]  ;;  %v301_v42 = vld [vmem:[%s4391_s24 + $0x1c0] sm:$0xff] }
  0x1a   : > { %3410 = vmatpush1.bf16.msra.mxu1 %v3409_v25  ;;  %3156 = vmatprep.subr.bf16.mxu0 %v3155_v26  ;;  %v3159_v39 = vpack.c.bf16 %v302_v36, %v294_v35  ;;  %v3415_v43 = vpack.c.bf16 %v304_v40, %v296_v37  ;;  %v295_v44 = vld [vmem:[%s4391_s24 + $0x190] sm:$0xff]  ;;  %v310_v46 = vld [vmem:[%s4391_s24 + $0x208] sm:$0xff]  ;;  %v312_v48 = vld [vmem:[%s4391_s24 + $0x218] sm:$0xff]  ;;  %v3161_v50 = vpack.c.bf16 %v301_v42, %v293_v41 }
  0x1b   : > { %3412 = vmatprep.subr.bf16.mxu1 %v3411_v30  ;;  %v303_v45 = vld [vmem:[%s4391_s24 + $0x1d0] sm:$0xff]  ;;  %v318_v47 = vld [vmem:[%s4391_s24 + $0x248] sm:$0xff]  ;;  %v320_v49 = vld [vmem:[%s4391_s24 + $0x258] sm:$0xff] }
  0x1c   : > { %v3417_v51 = vpack.c.bf16 %v303_v45, %v295_v44  ;;  %v3163_v52 = vpack.c.bf16 %v318_v47, %v310_v46  ;;  %v309_v53 = vld [vmem:[%s4391_s24 + $0x200] sm:$0xff]  ;;  %v311_v55 = vld [vmem:[%s4391_s24 + $0x210] sm:$0xff]  ;;  %v3419_v56 = vpack.c.bf16 %v320_v49, %v312_v48  ;;  %v326_v58 = vld [vmem:[%s4391_s24 + $0x288] sm:$0xff] }
  0x1d   : > { %3158 = vmatpush1.bf16.msra.mxu0 %v3157_v34  ;;  %v317_v54 = vld [vmem:[%s4391_s24 + $0x240] sm:$0xff]  ;;  %v319_v57 = vld [vmem:[%s4391_s24 + $0x250] sm:$0xff]  ;;  %v334_v59 = vld [vmem:[%s4391_s24 + $0x2c8] sm:$0xff] }
  0x1e   : > { %3414 = vmatpush1.bf16.msra.mxu1 %v3413_v38  ;;  %3160 = vmatprep.subr.bf16.mxu0 %v3159_v39  ;;  %v328_v60 = vld [vmem:[%s4391_s24 + $0x298] sm:$0xff]  ;;  %v3165_v62 = vpack.c.bf16 %v317_v54, %v309_v53  ;;  %v3421_v63 = vpack.c.bf16 %v319_v57, %v311_v55  ;;  %v3167_v0 = vpack.c.bf16 %v334_v59, %v326_v58  ;;  %v325_v1 = vld [vmem:[%s4391_s24 + $0x280] sm:$0xff]  ;;  %v327_v3 = vld [vmem:[%s4391_s24 + $0x290] sm:$0xff] }
  0x1f   : > { %3416 = vmatprep.subr.bf16.mxu1 %v3415_v43  ;;  %v336_v61 = vld [vmem:[%s4391_s24 + $0x2d8] sm:$0xff]  ;;  %v333_v2 = vld [vmem:[%s4391_s24 + $0x2c0] sm:$0xff]  ;;  %v335_v5 = vld [vmem:[%s4391_s24 + $0x2d0] sm:$0xff] }
  0x20   : > { %v3423_v4 = vpack.c.bf16 %v336_v61, %v328_v60  ;;  %v342_v6 = vld [vmem:[%s4391_s24 + $0x308] sm:$0xff]  ;;  %v344_v8 = vld [vmem:[%s4391_s24 + $0x318] sm:$0xff]  ;;  %v3169_v10 = vpack.c.bf16 %v333_v2, %v325_v1  ;;  %v3425_v11 = vpack.c.bf16 %v335_v5, %v327_v3  ;;  %v341_v13 = vld [vmem:[%s4391_s24 + $0x300] sm:$0xff] }
  0x21   : > { %3162 = vmatpush1.bf16.msra.mxu0 %v3161_v50  ;;  %v350_v7 = vld [vmem:[%s4391_s24 + $0x348] sm:$0xff]  ;;  %v352_v9 = vld [vmem:[%s4391_s24 + $0x358] sm:$0xff]  ;;  %v349_v14 = vld [vmem:[%s4391_s24 + $0x340] sm:$0xff] }
  0x22   : > { %3418 = vmatpush1.bf16.msra.mxu1 %v3417_v51  ;;  %3164 = vmatprep.subr.bf16.mxu0 %v3163_v52  ;;  %v3171_v12 = vpack.c.bf16 %v350_v7, %v342_v6  ;;  %v343_v15 = vld [vmem:[%s4391_s24 + $0x310] sm:$0xff]  ;;  %v3427_v16 = vpack.c.bf16 %v352_v9, %v344_v8  ;;  %v358_v18 = vld [vmem:[%s4391_s24 + $0x388] sm:$0xff]  ;;  %v360_v20 = vld [vmem:[%s4391_s24 + $0x398] sm:$0xff]  ;;  %v3173_v22 = vpack.c.bf16 %v349_v14, %v341_v13 }
  0x23   : > { %3420 = vmatprep.subr.bf16.mxu1 %v3419_v56  ;;  %v351_v17 = vld [vmem:[%s4391_s24 + $0x350] sm:$0xff]  ;;  %v366_v19 = vld [vmem:[%s4391_s24 + $0x3c8] sm:$0xff]  ;;  %v368_v21 = vld [vmem:[%s4391_s24 + $0x3d8] sm:$0xff] }
  0x24   : > { %v3429_v23 = vpack.c.bf16 %v351_v17, %v343_v15  ;;  %v3175_v24 = vpack.c.bf16 %v366_v19, %v358_v18  ;;  %v357_v25 = vld [vmem:[%s4391_s24 + $0x380] sm:$0xff]  ;;  %v359_v27 = vld [vmem:[%s4391_s24 + $0x390] sm:$0xff]  ;;  %v3431_v28 = vpack.c.bf16 %v368_v21, %v360_v20  ;;  %v374_v30 = vld [vmem:[%s4391_s24 + $0x408] sm:$0xff] }
  0x25   : > { %3166 = vmatpush1.bf16.msra.mxu0 %v3165_v62  ;;  %v365_v26 = vld [vmem:[%s4391_s24 + $0x3c0] sm:$0xff]  ;;  %v367_v29 = vld [vmem:[%s4391_s24 + $0x3d0] sm:$0xff]  ;;  %v382_v31 = vld [vmem:[%s4391_s24 + $0x448] sm:$0xff] }
  0x26   : > { %3422 = vmatpush1.bf16.msra.mxu1 %v3421_v63  ;;  %3168 = vmatprep.subr.bf16.mxu0 %v3167_v0  ;;  %v376_v32 = vld [vmem:[%s4391_s24 + $0x418] sm:$0xff]  ;;  %v3177_v34 = vpack.c.bf16 %v365_v26, %v357_v25  ;;  %v3433_v35 = vpack.c.bf16 %v367_v29, %v359_v27  ;;  %v3179_v36 = vpack.c.bf16 %v382_v31, %v374_v30  ;;  %v373_v37 = vld [vmem:[%s4391_s24 + $0x400] sm:$0xff]  ;;  %v375_v39 = vld [vmem:[%s4391_s24 + $0x410] sm:$0xff] }
  0x27   : > { %3424 = vmatprep.subr.bf16.mxu1 %v3423_v4  ;;  %v384_v33 = vld [vmem:[%s4391_s24 + $0x458] sm:$0xff]  ;;  %v381_v38 = vld [vmem:[%s4391_s24 + $0x440] sm:$0xff]  ;;  %v383_v41 = vld [vmem:[%s4391_s24 + $0x450] sm:$0xff] }
  0x28   : > { %v3435_v40 = vpack.c.bf16 %v384_v33, %v376_v32  ;;  %v390_v42 = vld [vmem:[%s4391_s24 + $0x488] sm:$0xff]  ;;  %v392_v44 = vld [vmem:[%s4391_s24 + $0x498] sm:$0xff]  ;;  %v3181_v46 = vpack.c.bf16 %v381_v38, %v373_v37  ;;  %v3437_v47 = vpack.c.bf16 %v383_v41, %v375_v39  ;;  %v389_v49 = vld [vmem:[%s4391_s24 + $0x480] sm:$0xff] }
  0x29   : > { %3170 = vmatpush1.bf16.msra.mxu0 %v3169_v10  ;;  %v398_v43 = vld [vmem:[%s4391_s24 + $0x4c8] sm:$0xff]  ;;  %v400_v45 = vld [vmem:[%s4391_s24 + $0x4d8] sm:$0xff]  ;;  %v397_v50 = vld [vmem:[%s4391_s24 + $0x4c0] sm:$0xff] }
  0x2a   : > { %3426 = vmatpush1.bf16.msra.mxu1 %v3425_v11  ;;  %3172 = vmatprep.subr.bf16.mxu0 %v3171_v12  ;;  %v3183_v48 = vpack.c.bf16 %v398_v43, %v390_v42  ;;  %v391_v51 = vld [vmem:[%s4391_s24 + $0x490] sm:$0xff]  ;;  %v3439_v52 = vpack.c.bf16 %v400_v45, %v392_v44  ;;  %v406_v54 = vld [vmem:[%s4391_s24 + $0x508] sm:$0xff]  ;;  %v408_v56 = vld [vmem:[%s4391_s24 + $0x518] sm:$0xff]  ;;  %v3185_v58 = vpack.c.bf16 %v397_v50, %v389_v49 }
  0x2b   : > { %3428 = vmatprep.subr.bf16.mxu1 %v3427_v16  ;;  %v399_v53 = vld [vmem:[%s4391_s24 + $0x4d0] sm:$0xff]  ;;  %v414_v55 = vld [vmem:[%s4391_s24 + $0x548] sm:$0xff]  ;;  %v416_v57 = vld [vmem:[%s4391_s24 + $0x558] sm:$0xff] }
  0x2c   : > { %v3441_v59 = vpack.c.bf16 %v399_v53, %v391_v51  ;;  %v3187_v60 = vpack.c.bf16 %v414_v55, %v406_v54  ;;  %v405_v61 = vld [vmem:[%s4391_s24 + $0x500] sm:$0xff]  ;;  %v407_v63 = vld [vmem:[%s4391_s24 + $0x510] sm:$0xff]  ;;  %v3443_v0 = vpack.c.bf16 %v416_v57, %v408_v56  ;;  %v422_v2 = vld [vmem:[%s4391_s24 + $0x588] sm:$0xff] }
  0x2d   : > { %3174 = vmatpush1.bf16.msra.mxu0 %v3173_v22  ;;  %v413_v62 = vld [vmem:[%s4391_s24 + $0x540] sm:$0xff]  ;;  %v415_v1 = vld [vmem:[%s4391_s24 + $0x550] sm:$0xff]  ;;  %v430_v3 = vld [vmem:[%s4391_s24 + $0x5c8] sm:$0xff] }
  0x2e   : > { %3430 = vmatpush1.bf16.msra.mxu1 %v3429_v23  ;;  %3176 = vmatprep.subr.bf16.mxu0 %v3175_v24  ;;  %v424_v4 = vld [vmem:[%s4391_s24 + $0x598] sm:$0xff]  ;;  %v3189_v6 = vpack.c.bf16 %v413_v62, %v405_v61  ;;  %v421_v7 = vld [vmem:[%s4391_s24 + $0x580] sm:$0xff]  ;;  %v3445_v8 = vpack.c.bf16 %v415_v1, %v407_v63  ;;  %v3191_v9 = vpack.c.bf16 %v430_v3, %v422_v2  ;;  %v423_v11 = vld [vmem:[%s4391_s24 + $0x590] sm:$0xff] }
  0x2f   : > { %3432 = vmatprep.subr.bf16.mxu1 %v3431_v28  ;;  %v432_v5 = vld [vmem:[%s4391_s24 + $0x5d8] sm:$0xff]  ;;  %v429_v10 = vld [vmem:[%s4391_s24 + $0x5c0] sm:$0xff]  ;;  %v431_v12 = vld [vmem:[%s4391_s24 + $0x5d0] sm:$0xff] }
  0x30   : > { %v3447_v13 = vpack.c.bf16 %v432_v5, %v424_v4  ;;  %v438_v14 = vld [vmem:[%s4391_s24 + $0x608] sm:$0xff]  ;;  %v440_v17 = vld [vmem:[%s4391_s24 + $0x618] sm:$0xff]  ;;  %v3193_v19 = vpack.c.bf16 %v429_v10, %v421_v7  ;;  %v3449_v20 = vpack.c.bf16 %v431_v12, %v423_v11  ;;  %v437_v22 = vld [vmem:[%s4391_s24 + $0x600] sm:$0xff] }
  0x31   : > { %3178 = vmatpush1.bf16.msra.mxu0 %v3177_v34  ;;  %v446_v15 = vld [vmem:[%s4391_s24 + $0x648] sm:$0xff]  ;;  %v448_v18 = vld [vmem:[%s4391_s24 + $0x658] sm:$0xff]  ;;  %v445_v23 = vld [vmem:[%s4391_s24 + $0x640] sm:$0xff] }
  0x32   : > { %3434 = vmatpush1.bf16.msra.mxu1 %v3433_v35  ;;  %3180 = vmatprep.subr.bf16.mxu0 %v3179_v36  ;;  %v238_v16 = vld [vmem:[%s4498_s30 + $0x8] sm:$0xff]  ;;  %v3195_v21 = vpack.c.bf16 %v446_v15, %v438_v14  ;;  %v439_v24 = vld [vmem:[%s4391_s24 + $0x610] sm:$0xff]  ;;  %v3451_v25 = vpack.c.bf16 %v448_v18, %v440_v17  ;;  %v456_v29 = vld [vmem:[%s4391_s24 + $0x698] sm:$0xff]  ;;  %v3197_v31 = vpack.c.bf16 %v445_v23, %v437_v22 }
  0x33   : > { %3436 = vmatprep.subr.bf16.mxu1 %v3435_v40  ;;  %1333 = vmatprep.mubr.f32.mxu0 %v238_v16  ;;  %v447_v26 = vld [vmem:[%s4391_s24 + $0x650] sm:$0xff]  ;;  %v454_v27 = vld [vmem:[%s4391_s24 + $0x688] sm:$0xff]  ;;  %v464_v30 = vld [vmem:[%s4391_s24 + $0x6d8] sm:$0xff] }
  0x34   : > { %1617 = vmatprep.mubr.f32.mxu1 %v238_v16  ;;  %v462_v28 = vld [vmem:[%s4391_s24 + $0x6c8] sm:$0xff]  ;;  %v3453_v32 = vpack.c.bf16 %v447_v26, %v439_v24  ;;  %v453_v34 = vld [vmem:[%s4391_s24 + $0x680] sm:$0xff]  ;;  %v455_v36 = vld [vmem:[%s4391_s24 + $0x690] sm:$0xff]  ;;  %v3455_v37 = vpack.c.bf16 %v464_v30, %v456_v29 }
  0x35   : > { %3182 = vmatpush1.bf16.msra.mxu0 %v3181_v46  ;;  %v3199_v33 = vpack.c.bf16 %v462_v28, %v454_v27  ;;  %v461_v35 = vld [vmem:[%s4391_s24 + $0x6c0] sm:$0xff]  ;;  %v463_v38 = vld [vmem:[%s4391_s24 + $0x6d0] sm:$0xff]  ;;  %v470_v39 = vld [vmem:[%s4391_s24 + $0x708] sm:$0xff] }
  0x36   : > { %3438 = vmatpush1.bf16.msra.mxu1 %v3437_v47  ;;  %3184 = vmatprep.subr.bf16.mxu0 %v3183_v48  ;;  %v478_v40 = vld [vmem:[%s4391_s24 + $0x748] sm:$0xff]  ;;  %v472_v41 = vld [vmem:[%s4391_s24 + $0x718] sm:$0xff]  ;;  %v3201_v43 = vpack.c.bf16 %v461_v35, %v453_v34  ;;  %v3457_v44 = vpack.c.bf16 %v463_v38, %v455_v36  ;;  %v469_v46 = vld [vmem:[%s4391_s24 + $0x700] sm:$0xff] }
  0x37   : > { %3440 = vmatprep.subr.bf16.mxu1 %v3439_v52  ;;  %v480_v42 = vld [vmem:[%s4391_s24 + $0x758] sm:$0xff]  ;;  %v3203_v45 = vpack.c.bf16 %v478_v40, %v470_v39  ;;  %v477_v47 = vld [vmem:[%s4391_s24 + $0x740] sm:$0xff]  ;;  %v471_v48 = vld [vmem:[%s4391_s24 + $0x710] sm:$0xff] }
  0x38   : > { %v3459_v49 = vpack.c.bf16 %v480_v42, %v472_v41  ;;  %v479_v50 = vld [vmem:[%s4391_s24 + $0x750] sm:$0xff]  ;;  %v486_v51 = vld [vmem:[%s4391_s24 + $0x788] sm:$0xff]  ;;  %v488_v53 = vld [vmem:[%s4391_s24 + $0x798] sm:$0xff]  ;;  %v3205_v55 = vpack.c.bf16 %v477_v47, %v469_v46 }
  0x39   : > { %3186 = vmatpush1.bf16.msra.mxu0 %v3185_v58  ;;  %v494_v52 = vld [vmem:[%s4391_s24 + $0x7c8] sm:$0xff]  ;;  %v496_v54 = vld [vmem:[%s4391_s24 + $0x7d8] sm:$0xff]  ;;  %v3461_v56 = vpack.c.bf16 %v479_v50, %v471_v48  ;;  %v485_v58 = vld [vmem:[%s4391_s24 + $0x780] sm:$0xff] }
  0x3a   : > { %3442 = vmatpush1.bf16.msra.mxu1 %v3441_v59  ;;  %3188 = vmatprep.subr.bf16.mxu0 %v3187_v60  ;;  %v3207_v57 = vpack.c.bf16 %v494_v52, %v486_v51  ;;  %v493_v59 = vld [vmem:[%s4391_s24 + $0x7c0] sm:$0xff]  ;;  %v487_v60 = vld [vmem:[%s4391_s24 + $0x790] sm:$0xff]  ;;  %v3463_v61 = vpack.c.bf16 %v496_v54, %v488_v53  ;;  %v502_v63 = vld [vmem:[%s4391_s24 + $0x808] sm:$0xff] }
  0x3b   : > { %3444 = vmatprep.subr.bf16.mxu1 %v3443_v0  ;;  %v495_v62 = vld [vmem:[%s4391_s24 + $0x7d0] sm:$0xff]  ;;  %v510_v0 = vld [vmem:[%s4391_s24 + $0x848] sm:$0xff]  ;;  %v504_v1 = vld [vmem:[%s4391_s24 + $0x818] sm:$0xff]  ;;  %v3209_v3 = vpack.c.bf16 %v493_v59, %v485_v58 }
  0x3c   : > { %v512_v2 = vld [vmem:[%s4391_s24 + $0x858] sm:$0xff]  ;;  %v3465_v4 = vpack.c.bf16 %v495_v62, %v487_v60  ;;  %v3211_v5 = vpack.c.bf16 %v510_v0, %v502_v63  ;;  %v509_v7 = vld [vmem:[%s4391_s24 + $0x840] sm:$0xff]  ;;  %v511_v10 = vld [vmem:[%s4391_s24 + $0x850] sm:$0xff] }
  0x3d   : > { %3190 = vmatpush1.bf16.msra.mxu0 %v3189_v6  ;;  %v501_v6 = vld [vmem:[%s4391_s24 + $0x800] sm:$0xff]  ;;  %v518_v11 = vld [vmem:[%s4391_s24 + $0x888] sm:$0xff]  ;;  %v528_v14 = vld [vmem:[%s4391_s24 + $0x8d8] sm:$0xff] }
  0x3e   : > { %3446 = vmatpush1.bf16.msra.mxu1 %v3445_v8  ;;  %3192 = vmatprep.subr.bf16.mxu0 %v3191_v9  ;;  %v503_v8 = vld [vmem:[%s4391_s24 + $0x810] sm:$0xff]  ;;  %v3467_v9 = vpack.c.bf16 %v512_v2, %v504_v1  ;;  %v526_v12 = vld [vmem:[%s4391_s24 + $0x8c8] sm:$0xff]  ;;  %v237_v15 = vld [vmem:[%s4498_s30] sm:$0xff]  ;;  %v3213_v16 = vpack.c.bf16 %v509_v7, %v501_v6 }
  0x3f   : > { %3448 = vmatprep.subr.bf16.mxu1 %v3447_v13  ;;  %v520_v13 = vld [vmem:[%s4391_s24 + $0x898] sm:$0xff]  ;;  %v3469_v17 = vpack.c.bf16 %v511_v10, %v503_v8  ;;  %v3215_v18 = vpack.c.bf16 %v526_v12, %v518_v11  ;;  %v527_v23 = vld [vmem:[%s4391_s24 + $0x8d0] sm:$0xff]  ;;  %v534_v24 = vld [vmem:[%s4391_s24 + $0x908] sm:$0xff] }
  0x40   : > { %v3471_v22 = vpack.c.bf16 %v528_v14, %v520_v13  ;;  %v536_v26 = vld [vmem:[%s4391_s24 + $0x918] sm:$0xff]  ;;  %v543_v35 = vld [vmem:[%s4391_s24 + $0x950] sm:$0xff]  ;;  %v550_v36 = vld [vmem:[%s4391_s24 + $0x988] sm:$0xff] }
  0x41   : > { %3194 = vmatpush1.bf16.msra.mxu0 %v3193_v19  ;;  %v517_v19 = vld [vmem:[%s4391_s24 + $0x880] sm:$0xff]  ;;  %v544_v27 = vld [vmem:[%s4391_s24 + $0x958] sm:$0xff]  ;;  %v559_v47 = vld [vmem:[%s4391_s24 + $0x9d0] sm:$0xff] }
  0x42   : > { %3450 = vmatpush1.bf16.msra.mxu1 %v3449_v20  ;;  %3196 = vmatprep.subr.bf16.mxu0 %v3195_v21  ;;  %v525_v20 = vld [vmem:[%s4391_s24 + $0x8c0] sm:$0xff]  ;;  %v519_v21 = vld [vmem:[%s4391_s24 + $0x890] sm:$0xff]  ;;  %v3475_v34 = vpack.c.bf16 %v544_v27, %v536_v26  ;;  %v552_v38 = vld [vmem:[%s4391_s24 + $0x998] sm:$0xff] }
  0x43   : > { %3452 = vmatprep.subr.bf16.mxu1 %v3451_v25  ;;  %v542_v25 = vld [vmem:[%s4391_s24 + $0x948] sm:$0xff]  ;;  %v3217_v28 = vpack.c.bf16 %v525_v20, %v517_v19  ;;  %v3473_v29 = vpack.c.bf16 %v527_v23, %v519_v21  ;;  %v560_v39 = vld [vmem:[%s4391_s24 + $0x9d8] sm:$0xff]  ;;  %v575_v59 = vld [vmem:[%s4391_s24 + $0xa50] sm:$0xff] }
  0x44   : > { %v3219_v30 = vpack.c.bf16 %v542_v25, %v534_v24  ;;  %v3479_v46 = vpack.c.bf16 %v560_v39, %v552_v38  ;;  %v566_v48 = vld [vmem:[%s4391_s24 + $0xa08] sm:$0xff]  ;;  %v568_v50 = vld [vmem:[%s4391_s24 + $0xa18] sm:$0xff]  ;;  %v591_v7 = vld [vmem:[%s4391_s24 + $0xad0] sm:$0xff] }
  0x45   : > { %3198 = vmatpush1.bf16.msra.mxu0 %v3197_v31  ;;  %v533_v31 = vld [vmem:[%s4391_s24 + $0x900] sm:$0xff]  ;;  %v576_v51 = vld [vmem:[%s4391_s24 + $0xa58] sm:$0xff]  ;;  %v582_v60 = vld [vmem:[%s4391_s24 + $0xa88] sm:$0xff] }
  0x46   : > { %3454 = vmatpush1.bf16.msra.mxu1 %v3453_v32  ;;  %3200 = vmatprep.subr.bf16.mxu0 %v3199_v33  ;;  %v541_v32 = vld [vmem:[%s4391_s24 + $0x940] sm:$0xff]  ;;  %v535_v33 = vld [vmem:[%s4391_s24 + $0x910] sm:$0xff]  ;;  %v3483_v58 = vpack.c.bf16 %v576_v51, %v568_v50  ;;  %v584_v62 = vld [vmem:[%s4391_s24 + $0xa98] sm:$0xff] }
  0x47   : > { %3456 = vmatprep.subr.bf16.mxu1 %v3455_v37  ;;  %v558_v37 = vld [vmem:[%s4391_s24 + $0x9c8] sm:$0xff]  ;;  %v3221_v40 = vpack.c.bf16 %v541_v32, %v533_v31  ;;  %v3477_v41 = vpack.c.bf16 %v543_v35, %v535_v33  ;;  %v592_v63 = vld [vmem:[%s4391_s24 + $0xad8] sm:$0xff]  ;;  %v597_v13 = vld [vmem:[%s4391_s24 + $0xb00] sm:$0xff] }
  0x48   : > { %v3223_v42 = vpack.c.bf16 %v558_v37, %v550_v36  ;;  %v3487_v6 = vpack.c.bf16 %v592_v63, %v584_v62  ;;  %v598_v8 = vld [vmem:[%s4391_s24 + $0xb08] sm:$0xff]  ;;  %v600_v10 = vld [vmem:[%s4391_s24 + $0xb18] sm:$0xff]  ;;  %v623_v32 = vld [vmem:[%s4391_s24 + $0xbd0] sm:$0xff] }
  0x49   : > { %3202 = vmatpush1.bf16.msra.mxu0 %v3201_v43  ;;  %v549_v43 = vld [vmem:[%s4391_s24 + $0x980] sm:$0xff]  ;;  %v608_v11 = vld [vmem:[%s4391_s24 + $0xb58] sm:$0xff]  ;;  %v614_v20 = vld [vmem:[%s4391_s24 + $0xb88] sm:$0xff] }
  0x4a   : > { %3458 = vmatpush1.bf16.msra.mxu1 %v3457_v44  ;;  %3204 = vmatprep.subr.bf16.mxu0 %v3203_v45  ;;  %v557_v44 = vld [vmem:[%s4391_s24 + $0x9c0] sm:$0xff]  ;;  %v551_v45 = vld [vmem:[%s4391_s24 + $0x990] sm:$0xff]  ;;  %v3491_v19 = vpack.c.bf16 %v608_v11, %v600_v10  ;;  %v622_v21 = vld [vmem:[%s4391_s24 + $0xbc8] sm:$0xff] }
  0x4b   : > { %3460 = vmatprep.subr.bf16.mxu1 %v3459_v49  ;;  %v574_v49 = vld [vmem:[%s4391_s24 + $0xa48] sm:$0xff]  ;;  %v3225_v52 = vpack.c.bf16 %v557_v44, %v549_v43  ;;  %v3481_v53 = vpack.c.bf16 %v559_v47, %v551_v45  ;;  %v616_v23 = vld [vmem:[%s4391_s24 + $0xb98] sm:$0xff]  ;;  %v3239_v27 = vpack.c.bf16 %v622_v21, %v614_v20  ;;  %v639_v44 = vld [vmem:[%s4391_s24 + $0xc50] sm:$0xff] }
  0x4c   : > { %v3227_v54 = vpack.c.bf16 %v574_v49, %v566_v48  ;;  %v624_v24 = vld [vmem:[%s4391_s24 + $0xbd8] sm:$0xff]  ;;  %v630_v33 = vld [vmem:[%s4391_s24 + $0xc08] sm:$0xff] }
  0x4d   : > { %3206 = vmatpush1.bf16.msra.mxu0 %v3205_v55  ;;  %v565_v55 = vld [vmem:[%s4391_s24 + $0xa00] sm:$0xff]  ;;  %v3495_v31 = vpack.c.bf16 %v624_v24, %v616_v23  ;;  %v632_v35 = vld [vmem:[%s4391_s24 + $0xc18] sm:$0xff]  ;;  %v646_v45 = vld [vmem:[%s4391_s24 + $0xc88] sm:$0xff] }
  0x4e   : > { %3462 = vmatpush1.bf16.msra.mxu1 %v3461_v56  ;;  %3208 = vmatprep.subr.bf16.mxu0 %v3207_v57  ;;  %v573_v56 = vld [vmem:[%s4391_s24 + $0xa40] sm:$0xff]  ;;  %v567_v57 = vld [vmem:[%s4391_s24 + $0xa10] sm:$0xff]  ;;  %v640_v36 = vld [vmem:[%s4391_s24 + $0xc58] sm:$0xff] }
  0x4f   : > { %3464 = vmatprep.subr.bf16.mxu1 %v3463_v61  ;;  %v590_v61 = vld [vmem:[%s4391_s24 + $0xac8] sm:$0xff]  ;;  %v3229_v0 = vpack.c.bf16 %v573_v56, %v565_v55  ;;  %v3485_v1 = vpack.c.bf16 %v575_v59, %v567_v57  ;;  %v3499_v43 = vpack.c.bf16 %v640_v36, %v632_v35  ;;  %v648_v47 = vld [vmem:[%s4391_s24 + $0xc98] sm:$0xff]  ;;  %v655_v56 = vld [vmem:[%s4391_s24 + $0xcd0] sm:$0xff] }
  0x50   : > { %v3231_v2 = vpack.c.bf16 %v590_v61, %v582_v60  ;;  %v656_v48 = vld [vmem:[%s4391_s24 + $0xcd8] sm:$0xff]  ;;  %v662_v57 = vld [vmem:[%s4391_s24 + $0xd08] sm:$0xff]  ;;  %v693_v24 = vld [vmem:[%s4391_s24 + $0xe00] sm:$0xff] }
  0x51   : > { %3210 = vmatpush1.bf16.msra.mxu0 %v3209_v3  ;;  %v581_v3 = vld [vmem:[%s4391_s24 + $0xa80] sm:$0xff]  ;;  %v3503_v55 = vpack.c.bf16 %v656_v48, %v648_v47  ;;  %v664_v59 = vld [vmem:[%s4391_s24 + $0xd18] sm:$0xff] }
  0x52   : > { %3466 = vmatpush1.bf16.msra.mxu1 %v3465_v4  ;;  %3212 = vmatprep.subr.bf16.mxu0 %v3211_v5  ;;  %v589_v4 = vld [vmem:[%s4391_s24 + $0xac0] sm:$0xff]  ;;  %v583_v5 = vld [vmem:[%s4391_s24 + $0xa90] sm:$0xff]  ;;  %v672_v60 = vld [vmem:[%s4391_s24 + $0xd58] sm:$0xff] }
  0x53   : > { %3468 = vmatprep.subr.bf16.mxu1 %v3467_v9  ;;  %v606_v9 = vld [vmem:[%s4391_s24 + $0xb48] sm:$0xff]  ;;  %v3233_v12 = vpack.c.bf16 %v589_v4, %v581_v3  ;;  %v3489_v14 = vpack.c.bf16 %v591_v7, %v583_v5  ;;  %v3507_v3 = vpack.c.bf16 %v672_v60, %v664_v59  ;;  %v671_v4 = vld [vmem:[%s4391_s24 + $0xd50] sm:$0xff]  ;;  %v680_v7 = vld [vmem:[%s4391_s24 + $0xd98] sm:$0xff] }
  0x54   : > { %1334 = vmatmul.mubr.f32.vlgmr.msra.gmra.mrb[0].mxu0 %v237_v15  ;;  %v678_v5 = vld [vmem:[%s4391_s24 + $0xd88] sm:$0xff]  ;;  %v704_v20 = vld [vmem:[%s4391_s24 + $0xe58] sm:$0xff]  ;;  %v709_v36 = vld [vmem:[%s4391_s24 + $0xe80] sm:$0xff] }
  0x55   : > { %3214 = vmatpush1.bf16.msra.mxu0 %v3213_v16  ;;  %1618 = vmatmul.mubr.f32.vlgmr.msra.gmra.mrb[0].mxu1 %v237_v15  ;;  %v3235_v15 = vpack.c.bf16 %v606_v9, %v598_v8  ;;  %v605_v16 = vld [vmem:[%s4391_s24 + $0xb40] sm:$0xff]  ;;  %v688_v8 = vld [vmem:[%s4391_s24 + $0xdd8] sm:$0xff] }
  0x56   : > { %3470 = vmatpush1.bf16.msra.mxu1 %v3469_v17  ;;  %3216 = vmatprep.subr.bf16.mxu0 %v3215_v18  ;;  %v599_v17 = vld [vmem:[%s4391_s24 + $0xb10] sm:$0xff]  ;;  %v3237_v25 = vpack.c.bf16 %v605_v16, %v597_v13  ;;  %v685_v13 = vld [vmem:[%s4391_s24 + $0xdc0] sm:$0xff] }
  0x57   : > { %3472 = vmatprep.subr.bf16.mxu1 %v3471_v22  ;;  %v607_v18 = vld [vmem:[%s4391_s24 + $0xb50] sm:$0xff]  ;;  %v240_v22 = vld [vmem:[%s4498_s30 + $0x18] sm:$0xff]  ;;  %v725_v48 = vld [vmem:[%s4391_s24 + $0xf00] sm:$0xff] }
  0x58   : > { %1404 = vmatprep.mubr.f32.mxu0 %v240_v22  ;;  %1688 = vmatprep.mubr.f32.mxu1 %v240_v22  ;;  %v3493_v26 = vpack.c.bf16 %v607_v18, %v599_v17  ;;  %v687_v16 = vld [vmem:[%s4391_s24 + $0xdd0] sm:$0xff]  ;;  %v694_v17 = vld [vmem:[%s4391_s24 + $0xe08] sm:$0xff]  ;;  %v741_v60 = vld [vmem:[%s4391_s24 + $0xf80] sm:$0xff] }
  0x59   : > { %3218 = vmatpush1.bf16.msra.mxu0 %v3217_v28  ;;  %v613_v28 = vld [vmem:[%s4391_s24 + $0xb80] sm:$0xff]  ;;  %v702_v18 = vld [vmem:[%s4391_s24 + $0xe48] sm:$0xff] }
  0x5a   : > { %3474 = vmatpush1.bf16.msra.mxu1 %v3473_v29  ;;  %3220 = vmatprep.subr.bf16.mxu0 %v3219_v30  ;;  %v621_v29 = vld [vmem:[%s4391_s24 + $0xbc0] sm:$0xff]  ;;  %v615_v30 = vld [vmem:[%s4391_s24 + $0xb90] sm:$0xff]  ;;  %v3259_v23 = vpack.c.bf16 %v702_v18, %v694_v17 }
  0x5b   : > { %3476 = vmatprep.subr.bf16.mxu1 %v3475_v34  ;;  %v638_v34 = vld [vmem:[%s4391_s24 + $0xc48] sm:$0xff]  ;;  %v3241_v37 = vpack.c.bf16 %v621_v29, %v613_v28  ;;  %v3497_v38 = vpack.c.bf16 %v623_v32, %v615_v30  ;;  %v703_v28 = vld [vmem:[%s4391_s24 + $0xe50] sm:$0xff]  ;;  %v720_v32 = vld [vmem:[%s4391_s24 + $0xed8] sm:$0xff] }
  0x5c   : > { %v3243_v39 = vpack.c.bf16 %v638_v34, %v630_v33  ;;  %v710_v29 = vld [vmem:[%s4391_s24 + $0xe88] sm:$0xff]  ;;  %v239_v17 = vld [vmem:[%s4498_s30 + $0x10] sm:$0xff] }
  0x5d   : > { %3222 = vmatpush1.bf16.msra.mxu0 %v3221_v40  ;;  %v629_v40 = vld [vmem:[%s4391_s24 + $0xc00] sm:$0xff]  ;;  %v718_v30 = vld [vmem:[%s4391_s24 + $0xec8] sm:$0xff] }
  0x5e   : > { %3478 = vmatpush1.bf16.msra.mxu1 %v3477_v41  ;;  %3224 = vmatprep.subr.bf16.mxu0 %v3223_v42  ;;  %v637_v41 = vld [vmem:[%s4391_s24 + $0xc40] sm:$0xff]  ;;  %v631_v42 = vld [vmem:[%s4391_s24 + $0xc10] sm:$0xff]  ;;  %v3263_v35 = vpack.c.bf16 %v718_v30, %v710_v29  ;;  %v800_v29 = vld [vmem:[%s4391_s24 + $0x1158] sm:$0xff] }
  0x5f   : > { %3480 = vmatprep.subr.bf16.mxu1 %v3479_v46  ;;  %v654_v46 = vld [vmem:[%s4391_s24 + $0xcc8] sm:$0xff]  ;;  %v3245_v49 = vpack.c.bf16 %v637_v41, %v629_v40  ;;  %v3501_v50 = vpack.c.bf16 %v639_v44, %v631_v42  ;;  %v719_v40 = vld [vmem:[%s4391_s24 + $0xed0] sm:$0xff]  ;;  %v736_v44 = vld [vmem:[%s4391_s24 + $0xf58] sm:$0xff] }
  0x60   : > { %v3247_v51 = vpack.c.bf16 %v654_v46, %v646_v45  ;;  %v726_v41 = vld [vmem:[%s4391_s24 + $0xf08] sm:$0xff] }
  0x61   : > { %3226 = vmatpush1.bf16.msra.mxu0 %v3225_v52  ;;  %v645_v52 = vld [vmem:[%s4391_s24 + $0xc80] sm:$0xff]  ;;  %v734_v42 = vld [vmem:[%s4391_s24 + $0xf48] sm:$0xff] }
  0x62   : > { %3482 = vmatpush1.bf16.msra.mxu1 %v3481_v53  ;;  %3228 = vmatprep.subr.bf16.mxu0 %v3227_v54  ;;  %v653_v53 = vld [vmem:[%s4391_s24 + $0xcc0] sm:$0xff]  ;;  %v647_v54 = vld [vmem:[%s4391_s24 + $0xc90] sm:$0xff]  ;;  %v3267_v47 = vpack.c.bf16 %v734_v42, %v726_v41  ;;  %v242_v30 = vld [vmem:[%s4498_s30 + $0x28] sm:$0xff] }
  0x63   : > { %3484 = vmatprep.subr.bf16.mxu1 %v3483_v58  ;;  %v670_v58 = vld [vmem:[%s4391_s24 + $0xd48] sm:$0xff]  ;;  %v3249_v61 = vpack.c.bf16 %v653_v53, %v645_v52  ;;  %v3505_v62 = vpack.c.bf16 %v655_v56, %v647_v54  ;;  %v735_v52 = vld [vmem:[%s4391_s24 + $0xf50] sm:$0xff]  ;;  %v752_v56 = vld [vmem:[%s4391_s24 + $0xfd8] sm:$0xff] }
  0x64   : > { %v3251_v63 = vpack.c.bf16 %v670_v58, %v662_v57  ;;  %v742_v53 = vld [vmem:[%s4391_s24 + $0xf88] sm:$0xff]  ;;  %v808_v41 = vld [vmem:[%s4391_s24 + $0x1198] sm:$0xff] }
  0x65   : > { %3230 = vmatpush1.bf16.msra.mxu0 %v3229_v0  ;;  %v661_v0 = vld [vmem:[%s4391_s24 + $0xd00] sm:$0xff]  ;;  %v750_v54 = vld [vmem:[%s4391_s24 + $0xfc8] sm:$0xff]  ;;  %v816_v42 = vld [vmem:[%s4391_s24 + $0x11d8] sm:$0xff] }
  0x66   : > { %3486 = vmatpush1.bf16.msra.mxu1 %v3485_v1  ;;  %3232 = vmatprep.subr.bf16.mxu0 %v3231_v2  ;;  %v669_v1 = vld [vmem:[%s4391_s24 + $0xd40] sm:$0xff]  ;;  %v663_v2 = vld [vmem:[%s4391_s24 + $0xd10] sm:$0xff]  ;;  %v3271_v59 = vpack.c.bf16 %v750_v54, %v742_v53  ;;  %v824_v53 = vld [vmem:[%s4391_s24 + $0x1218] sm:$0xff] }
  0x67   : > { %3488 = vmatprep.subr.bf16.mxu1 %v3487_v6  ;;  %v686_v6 = vld [vmem:[%s4391_s24 + $0xdc8] sm:$0xff]  ;;  %v3253_v9 = vpack.c.bf16 %v669_v1, %v661_v0  ;;  %v3509_v10 = vpack.c.bf16 %v671_v4, %v663_v2  ;;  %v751_v0 = vld [vmem:[%s4391_s24 + $0xfd0] sm:$0xff]  ;;  %v768_v4 = vld [vmem:[%s4391_s24 + $0x1058] sm:$0xff] }
  0x68   : > { %v3255_v11 = vpack.c.bf16 %v686_v6, %v678_v5  ;;  %v758_v1 = vld [vmem:[%s4391_s24 + $0x1008] sm:$0xff]  ;;  %v832_v54 = vld [vmem:[%s4391_s24 + $0x1258] sm:$0xff] }
  0x69   : > { %3234 = vmatpush1.bf16.msra.mxu0 %v3233_v12  ;;  %v677_v12 = vld [vmem:[%s4391_s24 + $0xd80] sm:$0xff]  ;;  %v766_v2 = vld [vmem:[%s4391_s24 + $0x1048] sm:$0xff] }
  0x6a   : > { %3490 = vmatpush1.bf16.msra.mxu1 %v3489_v14  ;;  %3236 = vmatprep.subr.bf16.mxu0 %v3235_v15  ;;  %v679_v14 = vld [vmem:[%s4391_s24 + $0xd90] sm:$0xff]  ;;  %v3511_v15 = vpack.c.bf16 %v688_v8, %v680_v7  ;;  %v3257_v21 = vpack.c.bf16 %v685_v13, %v677_v12  ;;  %v3275_v7 = vpack.c.bf16 %v766_v2, %v758_v1  ;;  %v757_v8 = vld [vmem:[%s4391_s24 + $0x1000] sm:$0xff]  ;;  %v774_v13 = vld [vmem:[%s4391_s24 + $0x1088] sm:$0xff] }
  0x6b   : > { %3492 = vmatprep.subr.bf16.mxu1 %v3491_v19  ;;  %v696_v19 = vld [vmem:[%s4391_s24 + $0xe18] sm:$0xff]  ;;  %v3513_v22 = vpack.c.bf16 %v687_v16, %v679_v14  ;;  %v767_v12 = vld [vmem:[%s4391_s24 + $0x1050] sm:$0xff]  ;;  %v782_v14 = vld [vmem:[%s4391_s24 + $0x10c8] sm:$0xff] }
  0x6c   : > { %v784_v16 = vld [vmem:[%s4391_s24 + $0x10d8] sm:$0xff] }
  0x6d   : > { %3238 = vmatpush1.bf16.msra.mxu0 %v3237_v25  ;;  %v701_v25 = vld [vmem:[%s4391_s24 + $0xe40] sm:$0xff]  ;;  %v840_v1 = vld [vmem:[%s4391_s24 + $0x1298] sm:$0xff] }
  0x6e   : > { %3494 = vmatpush1.bf16.msra.mxu1 %v3493_v26  ;;  %3240 = vmatprep.subr.bf16.mxu0 %v3239_v27  ;;  %v695_v26 = vld [vmem:[%s4391_s24 + $0xe10] sm:$0xff]  ;;  %v3515_v27 = vpack.c.bf16 %v704_v20, %v696_v19  ;;  %v3261_v33 = vpack.c.bf16 %v701_v25, %v693_v24  ;;  %v3279_v20 = vpack.c.bf16 %v782_v14, %v774_v13  ;;  %v848_v2 = vld [vmem:[%s4391_s24 + $0x12d8] sm:$0xff] }
  0x6f   : > { %3496 = vmatprep.subr.bf16.mxu1 %v3495_v31  ;;  %v712_v31 = vld [vmem:[%s4391_s24 + $0xe98] sm:$0xff]  ;;  %v3517_v34 = vpack.c.bf16 %v703_v28, %v695_v26  ;;  %v783_v25 = vld [vmem:[%s4391_s24 + $0x10d0] sm:$0xff]  ;;  %v790_v26 = vld [vmem:[%s4391_s24 + $0x1108] sm:$0xff] }
  0x70   : > { %v792_v28 = vld [vmem:[%s4391_s24 + $0x1118] sm:$0xff] }
  0x71   : > { %3242 = vmatpush1.bf16.msra.mxu0 %v3241_v37  ;;  %v717_v37 = vld [vmem:[%s4391_s24 + $0xec0] sm:$0xff]  ;;  %v856_v13 = vld [vmem:[%s4391_s24 + $0x1318] sm:$0xff] }
  0x72   : > { %3498 = vmatpush1.bf16.msra.mxu1 %v3497_v38  ;;  %3244 = vmatprep.subr.bf16.mxu0 %v3243_v39  ;;  %v711_v38 = vld [vmem:[%s4391_s24 + $0xe90] sm:$0xff]  ;;  %v3519_v39 = vpack.c.bf16 %v720_v32, %v712_v31  ;;  %v3265_v45 = vpack.c.bf16 %v717_v37, %v709_v36  ;;  %v3539_v37 = vpack.c.bf16 %v800_v29, %v792_v28  ;;  %v864_v14 = vld [vmem:[%s4391_s24 + $0x1358] sm:$0xff] }
  0x73   : > { %3500 = vmatprep.subr.bf16.mxu1 %v3499_v43  ;;  %v728_v43 = vld [vmem:[%s4391_s24 + $0xf18] sm:$0xff]  ;;  %v3521_v46 = vpack.c.bf16 %v719_v40, %v711_v38  ;;  %v791_v36 = vld [vmem:[%s4391_s24 + $0x1110] sm:$0xff]  ;;  %v814_v40 = vld [vmem:[%s4391_s24 + $0x11c8] sm:$0xff] }
  0x74   : > { %v799_v38 = vld [vmem:[%s4391_s24 + $0x1150] sm:$0xff] }
  0x75   : > { %3246 = vmatpush1.bf16.msra.mxu0 %v3245_v49  ;;  %v733_v49 = vld [vmem:[%s4391_s24 + $0xf40] sm:$0xff] }
  0x76   : > { %3502 = vmatpush1.bf16.msra.mxu1 %v3501_v50  ;;  %3248 = vmatprep.subr.bf16.mxu0 %v3247_v51  ;;  %v727_v50 = vld [vmem:[%s4391_s24 + $0xf10] sm:$0xff]  ;;  %v3523_v51 = vpack.c.bf16 %v736_v44, %v728_v43  ;;  %v3269_v57 = vpack.c.bf16 %v733_v49, %v725_v48  ;;  %v3541_v44 = vpack.c.bf16 %v799_v38, %v791_v36  ;;  %v894_v36 = vld [vmem:[%s4391_s24 + $0x1448] sm:$0xff]  ;;  %v896_v38 = vld [vmem:[%s4391_s24 + $0x1458] sm:$0xff] }
  0x77   : > { %3504 = vmatprep.subr.bf16.mxu1 %v3503_v55  ;;  %v744_v55 = vld [vmem:[%s4391_s24 + $0xf98] sm:$0xff]  ;;  %v3525_v58 = vpack.c.bf16 %v735_v52, %v727_v50  ;;  %v807_v48 = vld [vmem:[%s4391_s24 + $0x1190] sm:$0xff]  ;;  %v3543_v49 = vpack.c.bf16 %v816_v42, %v808_v41  ;;  %v830_v52 = vld [vmem:[%s4391_s24 + $0x1248] sm:$0xff] }
  0x78   : > { %v815_v50 = vld [vmem:[%s4391_s24 + $0x11d0] sm:$0xff]  ;;  %v885_v42 = vld [vmem:[%s4391_s24 + $0x1400] sm:$0xff] }
  0x79   : > { %3250 = vmatpush1.bf16.msra.mxu0 %v3249_v61  ;;  %v749_v61 = vld [vmem:[%s4391_s24 + $0xfc0] sm:$0xff] }
  0x7a   : > { %3506 = vmatpush1.bf16.msra.mxu1 %v3505_v62  ;;  %3252 = vmatprep.subr.bf16.mxu0 %v3251_v63  ;;  %v743_v62 = vld [vmem:[%s4391_s24 + $0xf90] sm:$0xff]  ;;  %v3527_v63 = vpack.c.bf16 %v752_v56, %v744_v55  ;;  %v3273_v5 = vpack.c.bf16 %v749_v61, %v741_v60  ;;  %v3545_v56 = vpack.c.bf16 %v815_v50, %v807_v48  ;;  %v910_v48 = vld [vmem:[%s4391_s24 + $0x14c8] sm:$0xff]  ;;  %v912_v50 = vld [vmem:[%s4391_s24 + $0x14d8] sm:$0xff] }
  0x7b   : > { %3508 = vmatprep.subr.bf16.mxu1 %v3507_v3  ;;  %v760_v3 = vld [vmem:[%s4391_s24 + $0x1018] sm:$0xff]  ;;  %v3529_v6 = vpack.c.bf16 %v751_v0, %v743_v62  ;;  %v823_v60 = vld [vmem:[%s4391_s24 + $0x1210] sm:$0xff]  ;;  %v3547_v61 = vpack.c.bf16 %v832_v54, %v824_v53  ;;  %v846_v0 = vld [vmem:[%s4391_s24 + $0x12c8] sm:$0xff] }
  0x7c   : > { %v831_v62 = vld [vmem:[%s4391_s24 + $0x1250] sm:$0xff]  ;;  %v901_v54 = vld [vmem:[%s4391_s24 + $0x1480] sm:$0xff] }
  0x7d   : > { %3254 = vmatpush1.bf16.msra.mxu0 %v3253_v9  ;;  %v765_v9 = vld [vmem:[%s4391_s24 + $0x1040] sm:$0xff] }
  0x7e   : > { %3510 = vmatpush1.bf16.msra.mxu1 %v3509_v10  ;;  %3256 = vmatprep.subr.bf16.mxu0 %v3255_v11  ;;  %v759_v10 = vld [vmem:[%s4391_s24 + $0x1010] sm:$0xff]  ;;  %v3531_v11 = vpack.c.bf16 %v768_v4, %v760_v3  ;;  %v3277_v18 = vpack.c.bf16 %v765_v9, %v757_v8  ;;  %v3549_v4 = vpack.c.bf16 %v831_v62, %v823_v60  ;;  %v926_v60 = vld [vmem:[%s4391_s24 + $0x1548] sm:$0xff]  ;;  %v928_v62 = vld [vmem:[%s4391_s24 + $0x1558] sm:$0xff] }
  0x7f   : > { %3512 = vmatprep.subr.bf16.mxu1 %v3511_v15  ;;  %v776_v15 = vld [vmem:[%s4391_s24 + $0x1098] sm:$0xff]  ;;  %v3533_v19 = vpack.c.bf16 %v767_v12, %v759_v10  ;;  %v839_v8 = vld [vmem:[%s4391_s24 + $0x1290] sm:$0xff]  ;;  %v3551_v9 = vpack.c.bf16 %v848_v2, %v840_v1  ;;  %v862_v12 = vld [vmem:[%s4391_s24 + $0x1348] sm:$0xff] }
  0x80   : > { %v3535_v24 = vpack.c.bf16 %v784_v16, %v776_v15  ;;  %v847_v10 = vld [vmem:[%s4391_s24 + $0x12d0] sm:$0xff]  ;;  %v917_v2 = vld [vmem:[%s4391_s24 + $0x1500] sm:$0xff] }
  0x81   : > { %3258 = vmatpush1.bf16.msra.mxu0 %v3257_v21  ;;  %v773_v21 = vld [vmem:[%s4391_s24 + $0x1080] sm:$0xff]  ;;  %v3553_v16 = vpack.c.bf16 %v847_v10, %v839_v8  ;;  %v942_v8 = vld [vmem:[%s4391_s24 + $0x15c8] sm:$0xff]  ;;  %v944_v10 = vld [vmem:[%s4391_s24 + $0x15d8] sm:$0xff] }
  0x82   : > { %3514 = vmatpush1.bf16.msra.mxu1 %v3513_v22  ;;  %3260 = vmatprep.subr.bf16.mxu0 %v3259_v23  ;;  %v781_v22 = vld [vmem:[%s4391_s24 + $0x10c0] sm:$0xff]  ;;  %v775_v23 = vld [vmem:[%s4391_s24 + $0x1090] sm:$0xff] }
  0x83   : > { %3516 = vmatprep.subr.bf16.mxu1 %v3515_v27  ;;  %v798_v27 = vld [vmem:[%s4391_s24 + $0x1148] sm:$0xff]  ;;  %v3281_v31 = vpack.c.bf16 %v781_v22, %v773_v21  ;;  %v3537_v32 = vpack.c.bf16 %v783_v25, %v775_v23  ;;  %v3555_v21 = vpack.c.bf16 %v864_v14, %v856_v13  ;;  %v863_v22 = vld [vmem:[%s4391_s24 + $0x1350] sm:$0xff]  ;;  %v872_v25 = vld [vmem:[%s4391_s24 + $0x1398] sm:$0xff] }
  0x84   : > { %v870_v23 = vld [vmem:[%s4391_s24 + $0x1388] sm:$0xff]  ;;  %v933_v14 = vld [vmem:[%s4391_s24 + $0x1580] sm:$0xff] }
  0x85   : > { %3262 = vmatpush1.bf16.msra.mxu0 %v3261_v33  ;;  %v3283_v33 = vpack.c.bf16 %v798_v27, %v790_v26  ;;  %v880_v26 = vld [vmem:[%s4391_s24 + $0x13d8] sm:$0xff] }
  0x86   : > { %3518 = vmatpush1.bf16.msra.mxu1 %v3517_v34  ;;  %3264 = vmatprep.subr.bf16.mxu0 %v3263_v35  ;;  %v789_v34 = vld [vmem:[%s4391_s24 + $0x1100] sm:$0xff] }
  0x87   : > { %3520 = vmatprep.subr.bf16.mxu1 %v3519_v39  ;;  %v797_v35 = vld [vmem:[%s4391_s24 + $0x1140] sm:$0xff]  ;;  %v806_v39 = vld [vmem:[%s4391_s24 + $0x1188] sm:$0xff] }
  0x88   : > { %v3285_v43 = vpack.c.bf16 %v797_v35, %v789_v34  ;;  %v879_v34 = vld [vmem:[%s4391_s24 + $0x13d0] sm:$0xff]  ;;  %v886_v35 = vld [vmem:[%s4391_s24 + $0x1408] sm:$0xff] }
  0x89   : > { %3266 = vmatpush1.bf16.msra.mxu0 %v3265_v45  ;;  %v3287_v45 = vpack.c.bf16 %v814_v40, %v806_v39  ;;  %v3307_v41 = vpack.c.bf16 %v894_v36, %v886_v35 }
  0x8a   : > { %3522 = vmatpush1.bf16.msra.mxu1 %v3521_v46  ;;  %3268 = vmatprep.subr.bf16.mxu0 %v3267_v47  ;;  %v805_v46 = vld [vmem:[%s4391_s24 + $0x1180] sm:$0xff] }
  0x8b   : > { %3524 = vmatprep.subr.bf16.mxu1 %v3523_v51  ;;  %v813_v47 = vld [vmem:[%s4391_s24 + $0x11c0] sm:$0xff]  ;;  %v822_v51 = vld [vmem:[%s4391_s24 + $0x1208] sm:$0xff] }
  0x8c   : > { %v3289_v55 = vpack.c.bf16 %v813_v47, %v805_v46  ;;  %v895_v46 = vld [vmem:[%s4391_s24 + $0x1450] sm:$0xff]  ;;  %v902_v47 = vld [vmem:[%s4391_s24 + $0x1488] sm:$0xff] }
  0x8d   : > { %3270 = vmatpush1.bf16.msra.mxu0 %v3269_v57  ;;  %v3291_v57 = vpack.c.bf16 %v830_v52, %v822_v51  ;;  %v3311_v53 = vpack.c.bf16 %v910_v48, %v902_v47 }
  0x8e   : > { %3526 = vmatpush1.bf16.msra.mxu1 %v3525_v58  ;;  %3272 = vmatprep.subr.bf16.mxu0 %v3271_v59  ;;  %v821_v58 = vld [vmem:[%s4391_s24 + $0x1200] sm:$0xff] }
  0x8f   : > { %3528 = vmatprep.subr.bf16.mxu1 %v3527_v63  ;;  %v829_v59 = vld [vmem:[%s4391_s24 + $0x1240] sm:$0xff]  ;;  %v838_v63 = vld [vmem:[%s4391_s24 + $0x1288] sm:$0xff] }
  0x90   : > { %v3293_v3 = vpack.c.bf16 %v829_v59, %v821_v58  ;;  %v911_v58 = vld [vmem:[%s4391_s24 + $0x14d0] sm:$0xff]  ;;  %v918_v59 = vld [vmem:[%s4391_s24 + $0x1508] sm:$0xff] }
  0x91   : > { %3274 = vmatpush1.bf16.msra.mxu0 %v3273_v5  ;;  %v3295_v5 = vpack.c.bf16 %v846_v0, %v838_v63  ;;  %v3315_v1 = vpack.c.bf16 %v926_v60, %v918_v59 }
  0x92   : > { %3530 = vmatpush1.bf16.msra.mxu1 %v3529_v6  ;;  %3276 = vmatprep.subr.bf16.mxu0 %v3275_v7  ;;  %v837_v6 = vld [vmem:[%s4391_s24 + $0x1280] sm:$0xff] }
  0x93   : > { %3532 = vmatprep.subr.bf16.mxu1 %v3531_v11  ;;  %v845_v7 = vld [vmem:[%s4391_s24 + $0x12c0] sm:$0xff]  ;;  %v854_v11 = vld [vmem:[%s4391_s24 + $0x1308] sm:$0xff] }
  0x94   : > { %1405 = vmatmul.mubr.f32.vlgmr.msra.gmra.mrb[0].mxu0 %v239_v17  ;;  %v3297_v15 = vpack.c.bf16 %v845_v7, %v837_v6  ;;  %v927_v6 = vld [vmem:[%s4391_s24 + $0x1550] sm:$0xff]  ;;  %v934_v7 = vld [vmem:[%s4391_s24 + $0x1588] sm:$0xff] }
  0x95   : > { %3278 = vmatpush1.bf16.msra.mxu0 %v3277_v18  ;;  %1689 = vmatmul.mubr.f32.vlgmr.msra.gmra.mrb[0].mxu1 %v239_v17  ;;  %v3299_v17 = vpack.c.bf16 %v862_v12, %v854_v11  ;;  %v853_v18 = vld [vmem:[%s4391_s24 + $0x1300] sm:$0xff]  ;;  %v3319_v13 = vpack.c.bf16 %v942_v8, %v934_v7 }
  0x96   : > { %3534 = vmatpush1.bf16.msra.mxu1 %v3533_v19  ;;  %3280 = vmatprep.subr.bf16.mxu0 %v3279_v20  ;;  %v861_v19 = vld [vmem:[%s4391_s24 + $0x1340] sm:$0xff]  ;;  %v855_v20 = vld [vmem:[%s4391_s24 + $0x1310] sm:$0xff] }
  0x97   : > { %3536 = vmatprep.subr.bf16.mxu1 %v3535_v24  ;;  %1475 = vmatprep.mubr.f32.mxu0 %v242_v30  ;;  %v878_v24 = vld [vmem:[%s4391_s24 + $0x13c8] sm:$0xff]  ;;  %v3301_v27 = vpack.c.bf16 %v861_v19, %v853_v18  ;;  %v3557_v28 = vpack.c.bf16 %v863_v22, %v855_v20  ;;  %v943_v18 = vld [vmem:[%s4391_s24 + $0x15d0] sm:$0xff]  ;;  %v960_v22 = vld [vmem:[%s4391_s24 + $0x1658] sm:$0xff] }
  0x98   : > { %1759 = vmatprep.mubr.f32.mxu1 %v242_v30  ;;  %v3303_v29 = vpack.c.bf16 %v878_v24, %v870_v23  ;;  %v869_v30 = vld [vmem:[%s4391_s24 + $0x1380] sm:$0xff]  ;;  %v950_v19 = vld [vmem:[%s4391_s24 + $0x1608] sm:$0xff] }
  0x99   : > { %3282 = vmatpush1.bf16.msra.mxu0 %v3281_v31  ;;  %v877_v31 = vld [vmem:[%s4391_s24 + $0x13c0] sm:$0xff]  ;;  %v958_v20 = vld [vmem:[%s4391_s24 + $0x1648] sm:$0xff] }
  0x9a   : > { %3538 = vmatpush1.bf16.msra.mxu1 %v3537_v32  ;;  %3284 = vmatprep.subr.bf16.mxu0 %v3283_v33  ;;  %v871_v32 = vld [vmem:[%s4391_s24 + $0x1390] sm:$0xff]  ;;  %v3559_v33 = vpack.c.bf16 %v880_v26, %v872_v25  ;;  %v3305_v39 = vpack.c.bf16 %v877_v31, %v869_v30  ;;  %v3323_v25 = vpack.c.bf16 %v958_v20, %v950_v19  ;;  %v949_v26 = vld [vmem:[%s4391_s24 + $0x1600] sm:$0xff]  ;;  %v966_v31 = vld [vmem:[%s4391_s24 + $0x1688] sm:$0xff] }
  0x9b   : > { %3540 = vmatprep.subr.bf16.mxu1 %v3539_v37  ;;  %v888_v37 = vld [vmem:[%s4391_s24 + $0x1418] sm:$0xff]  ;;  %v3561_v40 = vpack.c.bf16 %v879_v34, %v871_v32  ;;  %v959_v30 = vld [vmem:[%s4391_s24 + $0x1650] sm:$0xff]  ;;  %v974_v32 = vld [vmem:[%s4391_s24 + $0x16c8] sm:$0xff] }
  0x9c   : > { %v976_v34 = vld [vmem:[%s4391_s24 + $0x16d8] sm:$0xff]  ;;  %v241_v19 = vld [vmem:[%s4498_s30 + $0x20] sm:$0xff] }
  0x9d   : > { %3286 = vmatpush1.bf16.msra.mxu0 %v3285_v43  ;;  %v893_v43 = vld [vmem:[%s4391_s24 + $0x1440] sm:$0xff] }
  0x9e   : > { %3542 = vmatpush1.bf16.msra.mxu1 %v3541_v44  ;;  %3288 = vmatprep.subr.bf16.mxu0 %v3287_v45  ;;  %v887_v44 = vld [vmem:[%s4391_s24 + $0x1410] sm:$0xff]  ;;  %v3563_v45 = vpack.c.bf16 %v896_v38, %v888_v37  ;;  %v3309_v51 = vpack.c.bf16 %v893_v43, %v885_v42  ;;  %v3327_v37 = vpack.c.bf16 %v974_v32, %v966_v31  ;;  %v965_v38 = vld [vmem:[%s4391_s24 + $0x1680] sm:$0xff]  ;;  %v982_v43 = vld [vmem:[%s4391_s24 + $0x1708] sm:$0xff] }
  0x9f   : > { %3544 = vmatprep.subr.bf16.mxu1 %v3543_v49  ;;  %v904_v49 = vld [vmem:[%s4391_s24 + $0x1498] sm:$0xff]  ;;  %v3565_v52 = vpack.c.bf16 %v895_v46, %v887_v44  ;;  %v975_v42 = vld [vmem:[%s4391_s24 + $0x16d0] sm:$0xff]  ;;  %v990_v44 = vld [vmem:[%s4391_s24 + $0x1748] sm:$0xff] }
  0xa0   : > { %v992_v46 = vld [vmem:[%s4391_s24 + $0x1758] sm:$0xff] }
  0xa1   : > { %3290 = vmatpush1.bf16.msra.mxu0 %v3289_v55  ;;  %v909_v55 = vld [vmem:[%s4391_s24 + $0x14c0] sm:$0xff]  ;;  %v1056_v31 = vld [vmem:[%s4391_s24 + $0x1958] sm:$0xff] }
  0xa2   : > { %3546 = vmatpush1.bf16.msra.mxu1 %v3545_v56  ;;  %3292 = vmatprep.subr.bf16.mxu0 %v3291_v57  ;;  %v903_v56 = vld [vmem:[%s4391_s24 + $0x1490] sm:$0xff]  ;;  %v3567_v57 = vpack.c.bf16 %v912_v50, %v904_v49  ;;  %v3313_v63 = vpack.c.bf16 %v909_v55, %v901_v54  ;;  %v3331_v49 = vpack.c.bf16 %v990_v44, %v982_v43  ;;  %v981_v50 = vld [vmem:[%s4391_s24 + $0x1700] sm:$0xff]  ;;  %v998_v55 = vld [vmem:[%s4391_s24 + $0x1788] sm:$0xff] }
  0xa3   : > { %3548 = vmatprep.subr.bf16.mxu1 %v3547_v61  ;;  %v920_v61 = vld [vmem:[%s4391_s24 + $0x1518] sm:$0xff]  ;;  %v3569_v0 = vpack.c.bf16 %v911_v58, %v903_v56  ;;  %v991_v54 = vld [vmem:[%s4391_s24 + $0x1750] sm:$0xff]  ;;  %v1006_v56 = vld [vmem:[%s4391_s24 + $0x17c8] sm:$0xff] }
  0xa4   : > { %v1008_v58 = vld [vmem:[%s4391_s24 + $0x17d8] sm:$0xff] }
  0xa5   : > { %3294 = vmatpush1.bf16.msra.mxu0 %v3293_v3  ;;  %v925_v3 = vld [vmem:[%s4391_s24 + $0x1540] sm:$0xff]  ;;  %v244_v32 = vld [vmem:[%s4498_s30 + $0x38] sm:$0xff] }
  0xa6   : > { %3550 = vmatpush1.bf16.msra.mxu1 %v3549_v4  ;;  %3296 = vmatprep.subr.bf16.mxu0 %v3295_v5  ;;  %v919_v4 = vld [vmem:[%s4391_s24 + $0x1510] sm:$0xff]  ;;  %v3571_v5 = vpack.c.bf16 %v928_v62, %v920_v61  ;;  %v3317_v11 = vpack.c.bf16 %v925_v3, %v917_v2  ;;  %v3335_v61 = vpack.c.bf16 %v1006_v56, %v998_v55  ;;  %v997_v62 = vld [vmem:[%s4391_s24 + $0x1780] sm:$0xff]  ;;  %v1014_v3 = vld [vmem:[%s4391_s24 + $0x1808] sm:$0xff] }
  0xa7   : > { %3552 = vmatprep.subr.bf16.mxu1 %v3551_v9  ;;  %v936_v9 = vld [vmem:[%s4391_s24 + $0x1598] sm:$0xff]  ;;  %v3573_v12 = vpack.c.bf16 %v927_v6, %v919_v4  ;;  %v1007_v2 = vld [vmem:[%s4391_s24 + $0x17d0] sm:$0xff]  ;;  %v1022_v4 = vld [vmem:[%s4391_s24 + $0x1848] sm:$0xff] }
  0xa8   : > { %v1024_v6 = vld [vmem:[%s4391_s24 + $0x1858] sm:$0xff] }
  0xa9   : > { %3298 = vmatpush1.bf16.msra.mxu0 %v3297_v15  ;;  %v941_v15 = vld [vmem:[%s4391_s24 + $0x15c0] sm:$0xff]  ;;  %v1064_v43 = vld [vmem:[%s4391_s24 + $0x1998] sm:$0xff] }
  0xaa   : > { %3554 = vmatpush1.bf16.msra.mxu1 %v3553_v16  ;;  %3300 = vmatprep.subr.bf16.mxu0 %v3299_v17  ;;  %v935_v16 = vld [vmem:[%s4391_s24 + $0x1590] sm:$0xff]  ;;  %v3575_v17 = vpack.c.bf16 %v944_v10, %v936_v9  ;;  %v3321_v23 = vpack.c.bf16 %v941_v15, %v933_v14  ;;  %v3339_v9 = vpack.c.bf16 %v1022_v4, %v1014_v3  ;;  %v1013_v10 = vld [vmem:[%s4391_s24 + $0x1800] sm:$0xff]  ;;  %v1030_v15 = vld [vmem:[%s4391_s24 + $0x1888] sm:$0xff] }
  0xab   : > { %3556 = vmatprep.subr.bf16.mxu1 %v3555_v21  ;;  %v952_v21 = vld [vmem:[%s4391_s24 + $0x1618] sm:$0xff]  ;;  %v3577_v24 = vpack.c.bf16 %v943_v18, %v935_v16  ;;  %v1023_v14 = vld [vmem:[%s4391_s24 + $0x1850] sm:$0xff]  ;;  %v1038_v16 = vld [vmem:[%s4391_s24 + $0x18c8] sm:$0xff] }
  0xac   : > { %v1040_v18 = vld [vmem:[%s4391_s24 + $0x18d8] sm:$0xff] }
  0xad   : > { %3302 = vmatpush1.bf16.msra.mxu0 %v3301_v27  ;;  %v957_v27 = vld [vmem:[%s4391_s24 + $0x1640] sm:$0xff]  ;;  %v1072_v44 = vld [vmem:[%s4391_s24 + $0x19d8] sm:$0xff] }
  0xae   : > { %3558 = vmatpush1.bf16.msra.mxu1 %v3557_v28  ;;  %3304 = vmatprep.subr.bf16.mxu0 %v3303_v29  ;;  %v951_v28 = vld [vmem:[%s4391_s24 + $0x1610] sm:$0xff]  ;;  %v3579_v29 = vpack.c.bf16 %v960_v22, %v952_v21  ;;  %v3325_v35 = vpack.c.bf16 %v957_v27, %v949_v26  ;;  %v3343_v22 = vpack.c.bf16 %v1038_v16, %v1030_v15  ;;  %v1080_v55 = vld [vmem:[%s4391_s24 + $0x1a18] sm:$0xff] }
  0xaf   : > { %3560 = vmatprep.subr.bf16.mxu1 %v3559_v33  ;;  %v968_v33 = vld [vmem:[%s4391_s24 + $0x1698] sm:$0xff]  ;;  %v3581_v36 = vpack.c.bf16 %v959_v30, %v951_v28  ;;  %v1039_v27 = vld [vmem:[%s4391_s24 + $0x18d0] sm:$0xff]  ;;  %v1046_v28 = vld [vmem:[%s4391_s24 + $0x1908] sm:$0xff] }
  0xb0   : > { %v1048_v30 = vld [vmem:[%s4391_s24 + $0x1918] sm:$0xff] }
  0xb1   : > { %3306 = vmatpush1.bf16.msra.mxu0 %v3305_v39  ;;  %v973_v39 = vld [vmem:[%s4391_s24 + $0x16c0] sm:$0xff]  ;;  %v1088_v56 = vld [vmem:[%s4391_s24 + $0x1a58] sm:$0xff] }
  0xb2   : > { %3562 = vmatpush1.bf16.msra.mxu1 %v3561_v40  ;;  %3308 = vmatprep.subr.bf16.mxu0 %v3307_v41  ;;  %v967_v40 = vld [vmem:[%s4391_s24 + $0x1690] sm:$0xff]  ;;  %v3583_v41 = vpack.c.bf16 %v976_v34, %v968_v33  ;;  %v3329_v47 = vpack.c.bf16 %v973_v39, %v965_v38  ;;  %v3603_v39 = vpack.c.bf16 %v1056_v31, %v1048_v30  ;;  %v1096_v3 = vld [vmem:[%s4391_s24 + $0x1a98] sm:$0xff] }
  0xb3   : > { %3564 = vmatprep.subr.bf16.mxu1 %v3563_v45  ;;  %v984_v45 = vld [vmem:[%s4391_s24 + $0x1718] sm:$0xff]  ;;  %v3585_v48 = vpack.c.bf16 %v975_v42, %v967_v40  ;;  %v1047_v38 = vld [vmem:[%s4391_s24 + $0x1910] sm:$0xff]  ;;  %v1070_v42 = vld [vmem:[%s4391_s24 + $0x19c8] sm:$0xff] }
  0xb4   : > { %v1055_v40 = vld [vmem:[%s4391_s24 + $0x1950] sm:$0xff]  ;;  %v1104_v4 = vld [vmem:[%s4391_s24 + $0x1ad8] sm:$0xff] }
  0xb5   : > { %3310 = vmatpush1.bf16.msra.mxu0 %v3309_v51  ;;  %v989_v51 = vld [vmem:[%s4391_s24 + $0x1740] sm:$0xff]  ;;  %v1112_v15 = vld [vmem:[%s4391_s24 + $0x1b18] sm:$0xff] }
  0xb6   : > { %3566 = vmatpush1.bf16.msra.mxu1 %v3565_v52  ;;  %3312 = vmatprep.subr.bf16.mxu0 %v3311_v53  ;;  %v983_v52 = vld [vmem:[%s4391_s24 + $0x1710] sm:$0xff]  ;;  %v3587_v53 = vpack.c.bf16 %v992_v46, %v984_v45  ;;  %v3333_v59 = vpack.c.bf16 %v989_v51, %v981_v50  ;;  %v3605_v46 = vpack.c.bf16 %v1055_v40, %v1047_v38  ;;  %v1120_v16 = vld [vmem:[%s4391_s24 + $0x1b58] sm:$0xff]  ;;  %v1150_v38 = vld [vmem:[%s4391_s24 + $0x1c48] sm:$0xff] }
  0xb7   : > { %3568 = vmatprep.subr.bf16.mxu1 %v3567_v57  ;;  %v1000_v57 = vld [vmem:[%s4391_s24 + $0x1798] sm:$0xff]  ;;  %v3589_v60 = vpack.c.bf16 %v991_v54, %v983_v52  ;;  %v1063_v50 = vld [vmem:[%s4391_s24 + $0x1990] sm:$0xff]  ;;  %v3607_v51 = vpack.c.bf16 %v1072_v44, %v1064_v43  ;;  %v1086_v54 = vld [vmem:[%s4391_s24 + $0x1a48] sm:$0xff] }
  0xb8   : > { %v1071_v52 = vld [vmem:[%s4391_s24 + $0x19d0] sm:$0xff]  ;;  %v1152_v40 = vld [vmem:[%s4391_s24 + $0x1c58] sm:$0xff]  ;;  %v1141_v44 = vld [vmem:[%s4391_s24 + $0x1c00] sm:$0xff] }
  0xb9   : > { %3314 = vmatpush1.bf16.msra.mxu0 %v3313_v63  ;;  %v1005_v63 = vld [vmem:[%s4391_s24 + $0x17c0] sm:$0xff] }
  0xba   : > { %3570 = vmatpush1.bf16.msra.mxu1 %v3569_v0  ;;  %3316 = vmatprep.subr.bf16.mxu0 %v3315_v1  ;;  %v999_v0 = vld [vmem:[%s4391_s24 + $0x1790] sm:$0xff]  ;;  %v3591_v1 = vpack.c.bf16 %v1008_v58, %v1000_v57  ;;  %v3337_v7 = vpack.c.bf16 %v1005_v63, %v997_v62  ;;  %v3609_v58 = vpack.c.bf16 %v1071_v52, %v1063_v50  ;;  %v1166_v50 = vld [vmem:[%s4391_s24 + $0x1cc8] sm:$0xff]  ;;  %v1168_v52 = vld [vmem:[%s4391_s24 + $0x1cd8] sm:$0xff] }
  0xbb   : > { %3572 = vmatprep.subr.bf16.mxu1 %v3571_v5  ;;  %v1016_v5 = vld [vmem:[%s4391_s24 + $0x1818] sm:$0xff]  ;;  %v3593_v8 = vpack.c.bf16 %v1007_v2, %v999_v0  ;;  %v1079_v62 = vld [vmem:[%s4391_s24 + $0x1a10] sm:$0xff]  ;;  %v3611_v63 = vpack.c.bf16 %v1088_v56, %v1080_v55  ;;  %v1102_v2 = vld [vmem:[%s4391_s24 + $0x1ac8] sm:$0xff] }
  0xbc   : > { %v1087_v0 = vld [vmem:[%s4391_s24 + $0x1a50] sm:$0xff]  ;;  %v1157_v56 = vld [vmem:[%s4391_s24 + $0x1c80] sm:$0xff] }
  0xbd   : > { %3318 = vmatpush1.bf16.msra.mxu0 %v3317_v11  ;;  %v1021_v11 = vld [vmem:[%s4391_s24 + $0x1840] sm:$0xff] }
  0xbe   : > { %3574 = vmatpush1.bf16.msra.mxu1 %v3573_v12  ;;  %3320 = vmatprep.subr.bf16.mxu0 %v3319_v13  ;;  %v1015_v12 = vld [vmem:[%s4391_s24 + $0x1810] sm:$0xff]  ;;  %v3595_v13 = vpack.c.bf16 %v1024_v6, %v1016_v5  ;;  %v3341_v20 = vpack.c.bf16 %v1021_v11, %v1013_v10  ;;  %v3613_v6 = vpack.c.bf16 %v1087_v0, %v1079_v62  ;;  %v1182_v62 = vld [vmem:[%s4391_s24 + $0x1d48] sm:$0xff]  ;;  %v1184_v0 = vld [vmem:[%s4391_s24 + $0x1d58] sm:$0xff] }
  0xbf   : > { %3576 = vmatprep.subr.bf16.mxu1 %v3575_v17  ;;  %v1032_v17 = vld [vmem:[%s4391_s24 + $0x1898] sm:$0xff]  ;;  %v3597_v21 = vpack.c.bf16 %v1023_v14, %v1015_v12  ;;  %v1095_v10 = vld [vmem:[%s4391_s24 + $0x1a90] sm:$0xff]  ;;  %v3615_v11 = vpack.c.bf16 %v1104_v4, %v1096_v3  ;;  %v1118_v14 = vld [vmem:[%s4391_s24 + $0x1b48] sm:$0xff] }
  0xc0   : > { %v3599_v26 = vpack.c.bf16 %v1040_v18, %v1032_v17  ;;  %v1103_v12 = vld [vmem:[%s4391_s24 + $0x1ad0] sm:$0xff]  ;;  %v1173_v4 = vld [vmem:[%s4391_s24 + $0x1d00] sm:$0xff] }
  0xc1   : > { %3322 = vmatpush1.bf16.msra.mxu0 %v3321_v23  ;;  %v1029_v23 = vld [vmem:[%s4391_s24 + $0x1880] sm:$0xff]  ;;  %v3617_v18 = vpack.c.bf16 %v1103_v12, %v1095_v10  ;;  %v1198_v10 = vld [vmem:[%s4391_s24 + $0x1dc8] sm:$0xff]  ;;  %v1200_v12 = vld [vmem:[%s4391_s24 + $0x1dd8] sm:$0xff] }
  0xc2   : > { %3578 = vmatpush1.bf16.msra.mxu1 %v3577_v24  ;;  %3324 = vmatprep.subr.bf16.mxu0 %v3323_v25  ;;  %v1037_v24 = vld [vmem:[%s4391_s24 + $0x18c0] sm:$0xff]  ;;  %v1031_v25 = vld [vmem:[%s4391_s24 + $0x1890] sm:$0xff] }
  0xc3   : > { %3580 = vmatprep.subr.bf16.mxu1 %v3579_v29  ;;  %v1054_v29 = vld [vmem:[%s4391_s24 + $0x1948] sm:$0xff]  ;;  %v3345_v33 = vpack.c.bf16 %v1037_v24, %v1029_v23  ;;  %v3601_v34 = vpack.c.bf16 %v1039_v27, %v1031_v25  ;;  %v3619_v23 = vpack.c.bf16 %v1120_v16, %v1112_v15  ;;  %v1119_v24 = vld [vmem:[%s4391_s24 + $0x1b50] sm:$0xff]  ;;  %v1128_v27 = vld [vmem:[%s4391_s24 + $0x1b98] sm:$0xff] }
  0xc4   : > { %v1126_v25 = vld [vmem:[%s4391_s24 + $0x1b88] sm:$0xff]  ;;  %v1189_v16 = vld [vmem:[%s4391_s24 + $0x1d80] sm:$0xff] }
  0xc5   : > { %3326 = vmatpush1.bf16.msra.mxu0 %v3325_v35  ;;  %v3347_v35 = vpack.c.bf16 %v1054_v29, %v1046_v28  ;;  %v1136_v28 = vld [vmem:[%s4391_s24 + $0x1bd8] sm:$0xff] }
  0xc6   : > { %3582 = vmatpush1.bf16.msra.mxu1 %v3581_v36  ;;  %3328 = vmatprep.subr.bf16.mxu0 %v3327_v37  ;;  %v1045_v36 = vld [vmem:[%s4391_s24 + $0x1900] sm:$0xff] }
  0xc7   : > { %3584 = vmatprep.subr.bf16.mxu1 %v3583_v41  ;;  %v1053_v37 = vld [vmem:[%s4391_s24 + $0x1940] sm:$0xff]  ;;  %v1062_v41 = vld [vmem:[%s4391_s24 + $0x1988] sm:$0xff] }
  0xc8   : > { %v3349_v45 = vpack.c.bf16 %v1053_v37, %v1045_v36  ;;  %v1135_v36 = vld [vmem:[%s4391_s24 + $0x1bd0] sm:$0xff]  ;;  %v1142_v37 = vld [vmem:[%s4391_s24 + $0x1c08] sm:$0xff] }
  0xc9   : > { %3330 = vmatpush1.bf16.msra.mxu0 %v3329_v47  ;;  %v3351_v47 = vpack.c.bf16 %v1070_v42, %v1062_v41  ;;  %v3371_v43 = vpack.c.bf16 %v1150_v38, %v1142_v37 }
  0xca   : > { %3586 = vmatpush1.bf16.msra.mxu1 %v3585_v48  ;;  %3332 = vmatprep.subr.bf16.mxu0 %v3331_v49  ;;  %v1061_v48 = vld [vmem:[%s4391_s24 + $0x1980] sm:$0xff] }
  0xcb   : > { %3588 = vmatprep.subr.bf16.mxu1 %v3587_v53  ;;  %v1069_v49 = vld [vmem:[%s4391_s24 + $0x19c0] sm:$0xff]  ;;  %v1078_v53 = vld [vmem:[%s4391_s24 + $0x1a08] sm:$0xff] }
  0xcc   : > { %v3353_v57 = vpack.c.bf16 %v1069_v49, %v1061_v48  ;;  %v1151_v48 = vld [vmem:[%s4391_s24 + $0x1c50] sm:$0xff]  ;;  %v1158_v49 = vld [vmem:[%s4391_s24 + $0x1c88] sm:$0xff] }
  0xcd   : > { %3334 = vmatpush1.bf16.msra.mxu0 %v3333_v59  ;;  %v3355_v59 = vpack.c.bf16 %v1086_v54, %v1078_v53  ;;  %v3375_v55 = vpack.c.bf16 %v1166_v50, %v1158_v49 }
  0xce   : > { %3590 = vmatpush1.bf16.msra.mxu1 %v3589_v60  ;;  %3336 = vmatprep.subr.bf16.mxu0 %v3335_v61  ;;  %v1077_v60 = vld [vmem:[%s4391_s24 + $0x1a00] sm:$0xff] }
  0xcf   : > { %3592 = vmatprep.subr.bf16.mxu1 %v3591_v1  ;;  %v1085_v61 = vld [vmem:[%s4391_s24 + $0x1a40] sm:$0xff]  ;;  %v1094_v1 = vld [vmem:[%s4391_s24 + $0x1a88] sm:$0xff] }
  0xd0   : > { %v3357_v5 = vpack.c.bf16 %v1085_v61, %v1077_v60  ;;  %v1167_v60 = vld [vmem:[%s4391_s24 + $0x1cd0] sm:$0xff]  ;;  %v1174_v61 = vld [vmem:[%s4391_s24 + $0x1d08] sm:$0xff] }
  0xd1   : > { %3338 = vmatpush1.bf16.msra.mxu0 %v3337_v7  ;;  %v3359_v7 = vpack.c.bf16 %v1102_v2, %v1094_v1  ;;  %v3379_v3 = vpack.c.bf16 %v1182_v62, %v1174_v61 }
  0xd2   : > { %3594 = vmatpush1.bf16.msra.mxu1 %v3593_v8  ;;  %3340 = vmatprep.subr.bf16.mxu0 %v3339_v9  ;;  %v1093_v8 = vld [vmem:[%s4391_s24 + $0x1a80] sm:$0xff] }
  0xd3   : > { %3596 = vmatprep.subr.bf16.mxu1 %v3595_v13  ;;  %v1101_v9 = vld [vmem:[%s4391_s24 + $0x1ac0] sm:$0xff]  ;;  %v1110_v13 = vld [vmem:[%s4391_s24 + $0x1b08] sm:$0xff] }
  0xd4   : > { %1476 = vmatmul.mubr.f32.vlgmr.msra.gmra.mrb[0].mxu0 %v241_v19  ;;  %v3361_v17 = vpack.c.bf16 %v1101_v9, %v1093_v8  ;;  %v1183_v8 = vld [vmem:[%s4391_s24 + $0x1d50] sm:$0xff]  ;;  %v1190_v9 = vld [vmem:[%s4391_s24 + $0x1d88] sm:$0xff] }
  0xd5   : > { %3342 = vmatpush1.bf16.msra.mxu0 %v3341_v20  ;;  %1760 = vmatmul.mubr.f32.vlgmr.msra.gmra.mrb[0].mxu1 %v241_v19  ;;  %v3363_v19 = vpack.c.bf16 %v1118_v14, %v1110_v13  ;;  %v1109_v20 = vld [vmem:[%s4391_s24 + $0x1b00] sm:$0xff]  ;;  %v3383_v15 = vpack.c.bf16 %v1198_v10, %v1190_v9 }
  0xd6   : > { %3598 = vmatpush1.bf16.msra.mxu1 %v3597_v21  ;;  %3344 = vmatprep.subr.bf16.mxu0 %v3343_v22  ;;  %v1117_v21 = vld [vmem:[%s4391_s24 + $0x1b40] sm:$0xff]  ;;  %v1111_v22 = vld [vmem:[%s4391_s24 + $0x1b10] sm:$0xff] }
  0xd7   : > { %3600 = vmatprep.subr.bf16.mxu1 %v3599_v26  ;;  %1546 = vmatprep.mubr.f32.mxu0 %v244_v32  ;;  %v1134_v26 = vld [vmem:[%s4391_s24 + $0x1bc8] sm:$0xff]  ;;  %v3365_v29 = vpack.c.bf16 %v1117_v21, %v1109_v20  ;;  %v3621_v30 = vpack.c.bf16 %v1119_v24, %v1111_v22  ;;  %v1199_v20 = vld [vmem:[%s4391_s24 + $0x1dd0] sm:$0xff]  ;;  %v1216_v24 = vld [vmem:[%s4391_s24 + $0x1e58] sm:$0xff] }
  0xd8   : > { %1830 = vmatprep.mubr.f32.mxu1 %v244_v32  ;;  %v3367_v31 = vpack.c.bf16 %v1134_v26, %v1126_v25  ;;  %v1125_v32 = vld [vmem:[%s4391_s24 + $0x1b80] sm:$0xff]  ;;  %v1206_v21 = vld [vmem:[%s4391_s24 + $0x1e08] sm:$0xff] }
  0xd9   : > { %3346 = vmatpush1.bf16.msra.mxu0 %v3345_v33  ;;  %v1133_v33 = vld [vmem:[%s4391_s24 + $0x1bc0] sm:$0xff]  ;;  %v1214_v22 = vld [vmem:[%s4391_s24 + $0x1e48] sm:$0xff] }
  0xda   : > { %3602 = vmatpush1.bf16.msra.mxu1 %v3601_v34  ;;  %3348 = vmatprep.subr.bf16.mxu0 %v3347_v35  ;;  %v1127_v34 = vld [vmem:[%s4391_s24 + $0x1b90] sm:$0xff]  ;;  %v3623_v35 = vpack.c.bf16 %v1136_v28, %v1128_v27  ;;  %v3369_v41 = vpack.c.bf16 %v1133_v33, %v1125_v32  ;;  %v3387_v27 = vpack.c.bf16 %v1214_v22, %v1206_v21  ;;  %v1205_v28 = vld [vmem:[%s4391_s24 + $0x1e00] sm:$0xff]  ;;  %v1222_v33 = vld [vmem:[%s4391_s24 + $0x1e88] sm:$0xff] }
  0xdb   : > { %3604 = vmatprep.subr.bf16.mxu1 %v3603_v39  ;;  %v1144_v39 = vld [vmem:[%s4391_s24 + $0x1c18] sm:$0xff]  ;;  %v3625_v42 = vpack.c.bf16 %v1135_v36, %v1127_v34  ;;  %v1215_v32 = vld [vmem:[%s4391_s24 + $0x1e50] sm:$0xff]  ;;  %v1230_v34 = vld [vmem:[%s4391_s24 + $0x1ec8] sm:$0xff] }
  0xdc   : > { %v1232_v36 = vld [vmem:[%s4391_s24 + $0x1ed8] sm:$0xff]  ;;  %v243_v21 = vld [vmem:[%s4498_s30 + $0x30] sm:$0xff] }
  0xdd   : > { %3350 = vmatpush1.bf16.msra.mxu0 %v3349_v45  ;;  %v1149_v45 = vld [vmem:[%s4391_s24 + $0x1c40] sm:$0xff] }
  0xde   : > { %3606 = vmatpush1.bf16.msra.mxu1 %v3605_v46  ;;  %3352 = vmatprep.subr.bf16.mxu0 %v3351_v47  ;;  %v1143_v46 = vld [vmem:[%s4391_s24 + $0x1c10] sm:$0xff]  ;;  %v3627_v47 = vpack.c.bf16 %v1152_v40, %v1144_v39  ;;  %v3373_v53 = vpack.c.bf16 %v1149_v45, %v1141_v44  ;;  %v3391_v39 = vpack.c.bf16 %v1230_v34, %v1222_v33  ;;  %v1221_v40 = vld [vmem:[%s4391_s24 + $0x1e80] sm:$0xff]  ;;  %v1238_v45 = vld [vmem:[%s4391_s24 + $0x1f08] sm:$0xff] }
  0xdf   : > { %3608 = vmatprep.subr.bf16.mxu1 %v3607_v51  ;;  %v1160_v51 = vld [vmem:[%s4391_s24 + $0x1c98] sm:$0xff]  ;;  %v3629_v54 = vpack.c.bf16 %v1151_v48, %v1143_v46  ;;  %v1231_v44 = vld [vmem:[%s4391_s24 + $0x1ed0] sm:$0xff]  ;;  %v1246_v46 = vld [vmem:[%s4391_s24 + $0x1f48] sm:$0xff] }
  0xe0   : > { %v1248_v48 = vld [vmem:[%s4391_s24 + $0x1f58] sm:$0xff] }
  0xe1   : > { %3354 = vmatpush1.bf16.msra.mxu0 %v3353_v57  ;;  %v1165_v57 = vld [vmem:[%s4391_s24 + $0x1cc0] sm:$0xff]  ;;  %v292_v33 = vld [vmem:[%s4391_s24 + $0x178] sm:$0xff] }
  0xe2   : > { %3610 = vmatpush1.bf16.msra.mxu1 %v3609_v58  ;;  %3356 = vmatprep.subr.bf16.mxu0 %v3355_v59  ;;  %v1159_v58 = vld [vmem:[%s4391_s24 + $0x1c90] sm:$0xff]  ;;  %v3631_v59 = vpack.c.bf16 %v1168_v52, %v1160_v51  ;;  %v3377_v1 = vpack.c.bf16 %v1165_v57, %v1157_v56  ;;  %v3395_v51 = vpack.c.bf16 %v1246_v46, %v1238_v45  ;;  %v1237_v52 = vld [vmem:[%s4391_s24 + $0x1f00] sm:$0xff]  ;;  %v1254_v57 = vld [vmem:[%s4391_s24 + $0x1f88] sm:$0xff] }
  0xe3   : > { %3612 = vmatprep.subr.bf16.mxu1 %v3611_v63  ;;  %v1176_v63 = vld [vmem:[%s4391_s24 + $0x1d18] sm:$0xff]  ;;  %v3633_v2 = vpack.c.bf16 %v1167_v60, %v1159_v58  ;;  %v1247_v56 = vld [vmem:[%s4391_s24 + $0x1f50] sm:$0xff]  ;;  %v1262_v58 = vld [vmem:[%s4391_s24 + $0x1fc8] sm:$0xff] }
  0xe4   : > { %v1264_v60 = vld [vmem:[%s4391_s24 + $0x1fd8] sm:$0xff] }
  0xe5   : > { %3358 = vmatpush1.bf16.msra.mxu0 %v3357_v5  ;;  %v1181_v5 = vld [vmem:[%s4391_s24 + $0x1d40] sm:$0xff]  ;;  %v300_v45 = vld [vmem:[%s4391_s24 + $0x1b8] sm:$0xff] }
  0xe6   : > { %3614 = vmatpush1.bf16.msra.mxu1 %v3613_v6  ;;  %3360 = vmatprep.subr.bf16.mxu0 %v3359_v7  ;;  %v1175_v6 = vld [vmem:[%s4391_s24 + $0x1d10] sm:$0xff]  ;;  %v3635_v7 = vpack.c.bf16 %v1184_v0, %v1176_v63  ;;  %v3381_v13 = vpack.c.bf16 %v1181_v5, %v1173_v4  ;;  %v3399_v63 = vpack.c.bf16 %v1262_v58, %v1254_v57  ;;  %v1253_v0 = vld [vmem:[%s4391_s24 + $0x1f80] sm:$0xff]  ;;  %v250_v5 = vld [vmem:[%s4391_s24 + $0x28] sm:$0xff] }
  0xe7   : > { %3616 = vmatprep.subr.bf16.mxu1 %v3615_v11  ;;  %v1192_v11 = vld [vmem:[%s4391_s24 + $0x1d98] sm:$0xff]  ;;  %v3637_v14 = vpack.c.bf16 %v1183_v8, %v1175_v6  ;;  %v1263_v4 = vld [vmem:[%s4391_s24 + $0x1fd0] sm:$0xff]  ;;  %v258_v6 = vld [vmem:[%s4391_s24 + $0x68] sm:$0xff] }
  0xe8   : > { %v260_v8 = vld [vmem:[%s4391_s24 + $0x78] sm:$0xff] }
  0xe9   : > { %3362 = vmatpush1.bf16.msra.mxu0 %v3361_v17  ;;  %v1197_v17 = vld [vmem:[%s4391_s24 + $0x1dc0] sm:$0xff]  ;;  %v308_v46 = vld [vmem:[%s4391_s24 + $0x1f8] sm:$0xff] }
  0xea   : > { %3618 = vmatpush1.bf16.msra.mxu1 %v3617_v18  ;;  %3364 = vmatprep.subr.bf16.mxu0 %v3363_v19  ;;  %v1191_v18 = vld [vmem:[%s4391_s24 + $0x1d90] sm:$0xff]  ;;  %v3639_v19 = vpack.c.bf16 %v1200_v12, %v1192_v11  ;;  %v3385_v25 = vpack.c.bf16 %v1197_v17, %v1189_v16  ;;  %v3659_v11 = vpack.c.bf16 %v258_v6, %v250_v5  ;;  %v249_v12 = vld [vmem:[%s4391_s24 + $0x20] sm:$0xff]  ;;  %v266_v17 = vld [vmem:[%s4391_s24 + $0xa8] sm:$0xff] }
  0xeb   : > { %3620 = vmatprep.subr.bf16.mxu1 %v3619_v23  ;;  %v1208_v23 = vld [vmem:[%s4391_s24 + $0x1e18] sm:$0xff]  ;;  %v3641_v26 = vpack.c.bf16 %v1199_v20, %v1191_v18  ;;  %v259_v16 = vld [vmem:[%s4391_s24 + $0x70] sm:$0xff]  ;;  %v274_v18 = vld [vmem:[%s4391_s24 + $0xe8] sm:$0xff] }
  0xec   : > { %v276_v20 = vld [vmem:[%s4391_s24 + $0xf8] sm:$0xff] }
  0xed   : > { %3366 = vmatpush1.bf16.msra.mxu0 %v3365_v29  ;;  %v1213_v29 = vld [vmem:[%s4391_s24 + $0x1e40] sm:$0xff]  ;;  %v316_v57 = vld [vmem:[%s4391_s24 + $0x238] sm:$0xff] }
  0xee   : > { %3622 = vmatpush1.bf16.msra.mxu1 %v3621_v30  ;;  %3368 = vmatprep.subr.bf16.mxu0 %v3367_v31  ;;  %v1207_v30 = vld [vmem:[%s4391_s24 + $0x1e10] sm:$0xff]  ;;  %v3643_v31 = vpack.c.bf16 %v1216_v24, %v1208_v23  ;;  %v3389_v37 = vpack.c.bf16 %v1213_v29, %v1205_v28  ;;  %v3663_v24 = vpack.c.bf16 %v274_v18, %v266_v17  ;;  %v324_v58 = vld [vmem:[%s4391_s24 + $0x278] sm:$0xff] }
  0xef   : > { %3624 = vmatprep.subr.bf16.mxu1 %v3623_v35  ;;  %v1224_v35 = vld [vmem:[%s4391_s24 + $0x1e98] sm:$0xff]  ;;  %v3645_v38 = vpack.c.bf16 %v1215_v32, %v1207_v30  ;;  %v275_v29 = vld [vmem:[%s4391_s24 + $0xf0] sm:$0xff]  ;;  %v282_v30 = vld [vmem:[%s4391_s24 + $0x128] sm:$0xff] }
  0xf0   : > { %v284_v32 = vld [vmem:[%s4391_s24 + $0x138] sm:$0xff] }
  0xf1   : > { %3370 = vmatpush1.bf16.msra.mxu0 %v3369_v41  ;;  %v1229_v41 = vld [vmem:[%s4391_s24 + $0x1ec0] sm:$0xff]  ;;  %v332_v5 = vld [vmem:[%s4391_s24 + $0x2b8] sm:$0xff] }
  0xf2   : > { %3626 = vmatpush1.bf16.msra.mxu1 %v3625_v42  ;;  %3372 = vmatprep.subr.bf16.mxu0 %v3371_v43  ;;  %v1223_v42 = vld [vmem:[%s4391_s24 + $0x1e90] sm:$0xff]  ;;  %v3647_v43 = vpack.c.bf16 %v1232_v36, %v1224_v35  ;;  %v3393_v49 = vpack.c.bf16 %v1229_v41, %v1221_v40  ;;  %v3923_v40 = vpack.c.bf16 %v292_v33, %v284_v32  ;;  %v340_v6 = vld [vmem:[%s4391_s24 + $0x2f8] sm:$0xff] }
  0xf3   : > { %3628 = vmatprep.subr.bf16.mxu1 %v3627_v47  ;;  %v1240_v47 = vld [vmem:[%s4391_s24 + $0x1f18] sm:$0xff]  ;;  %v3649_v50 = vpack.c.bf16 %v1231_v44, %v1223_v42  ;;  %v291_v41 = vld [vmem:[%s4391_s24 + $0x170] sm:$0xff]  ;;  %v298_v42 = vld [vmem:[%s4391_s24 + $0x1a8] sm:$0xff] }
  0xf4   : > { %v4331_v44 = vld [vmem:[%s4498_s30 + $0x8] sm:$0xff]  ;;  %v348_v17 = vld [vmem:[%s4391_s24 + $0x338] sm:$0xff] }
  0xf5   : > { %3374 = vmatpush1.bf16.msra.mxu0 %v3373_v53  ;;  %v1245_v53 = vld [vmem:[%s4391_s24 + $0x1f40] sm:$0xff]  ;;  %v356_v18 = vld [vmem:[%s4391_s24 + $0x378] sm:$0xff] }
  0xf6   : > { %3630 = vmatpush1.bf16.msra.mxu1 %v3629_v54  ;;  %3376 = vmatprep.subr.bf16.mxu0 %v3375_v55  ;;  %v1239_v54 = vld [vmem:[%s4391_s24 + $0x1f10] sm:$0xff]  ;;  %v3651_v55 = vpack.c.bf16 %v1248_v48, %v1240_v47  ;;  %v3397_v61 = vpack.c.bf16 %v1245_v53, %v1237_v52  ;;  %v3927_v53 = vpack.c.bf16 %v308_v46, %v300_v45  ;;  %v377_v46 = vld [vmem:[%s4391_s24 + $0x420] sm:$0xff] }
  0xf7   : > { %3632 = vmatprep.subr.bf16.mxu1 %v3631_v59  ;;  %v1256_v59 = vld [vmem:[%s4391_s24 + $0x1f98] sm:$0xff]  ;;  %v3653_v62 = vpack.c.bf16 %v1247_v56, %v1239_v54  ;;  %v299_v52 = vld [vmem:[%s4391_s24 + $0x1b0] sm:$0xff]  ;;  %v322_v56 = vld [vmem:[%s4391_s24 + $0x268] sm:$0xff] }
  0xf8   : > { %v307_v54 = vld [vmem:[%s4391_s24 + $0x1f0] sm:$0xff] }
  0xf9   : > { %3378 = vmatpush1.bf16.msra.mxu0 %v3377_v1  ;;  %v1261_v1 = vld [vmem:[%s4391_s24 + $0x1fc0] sm:$0xff] }
  0xfa   : > { %3634 = vmatpush1.bf16.msra.mxu1 %v3633_v2  ;;  %3380 = vmatprep.subr.bf16.mxu0 %v3379_v3  ;;  %v1255_v2 = vld [vmem:[%s4391_s24 + $0x1f90] sm:$0xff]  ;;  %v3655_v3 = vpack.c.bf16 %v1264_v60, %v1256_v59  ;;  %v3401_v9 = vpack.c.bf16 %v1261_v1, %v1253_v0  ;;  %v3929_v60 = vpack.c.bf16 %v307_v54, %v299_v52  ;;  %v402_v52 = vld [vmem:[%s4391_s24 + $0x4e8] sm:$0xff]  ;;  %v404_v54 = vld [vmem:[%s4391_s24 + $0x4f8] sm:$0xff] }
  0xfb   : > { %3636 = vmatprep.subr.bf16.mxu1 %v3635_v7  ;;  %v252_v7 = vld [vmem:[%s4391_s24 + $0x38] sm:$0xff]  ;;  %v3657_v10 = vpack.c.bf16 %v1263_v4, %v1255_v2  ;;  %v315_v0 = vld [vmem:[%s4391_s24 + $0x230] sm:$0xff]  ;;  %v3931_v1 = vpack.c.bf16 %v324_v58, %v316_v57  ;;  %v338_v4 = vld [vmem:[%s4391_s24 + $0x2e8] sm:$0xff] }
  0xfc   : > { %v323_v2 = vld [vmem:[%s4391_s24 + $0x270] sm:$0xff]  ;;  %v393_v58 = vld [vmem:[%s4391_s24 + $0x4a0] sm:$0xff] }
  0xfd   : > { %3382 = vmatpush1.bf16.msra.mxu0 %v3381_v13  ;;  %v257_v13 = vld [vmem:[%s4391_s24 + $0x60] sm:$0xff] }
  0xfe   : > { %3638 = vmatpush1.bf16.msra.mxu1 %v3637_v14  ;;  %3384 = vmatprep.subr.bf16.mxu0 %v3383_v15  ;;  %v251_v14 = vld [vmem:[%s4391_s24 + $0x30] sm:$0xff]  ;;  %v3915_v15 = vpack.c.bf16 %v260_v8, %v252_v7  ;;  %v3661_v22 = vpack.c.bf16 %v257_v13, %v249_v12  ;;  %v3933_v8 = vpack.c.bf16 %v323_v2, %v315_v0  ;;  %v418_v0 = vld [vmem:[%s4391_s24 + $0x568] sm:$0xff]  ;;  %v420_v2 = vld [vmem:[%s4391_s24 + $0x578] sm:$0xff] }
  0xff   : > { %3640 = vmatprep.subr.bf16.mxu1 %v3639_v19  ;;  %v268_v19 = vld [vmem:[%s4391_s24 + $0xb8] sm:$0xff]  ;;  %v3917_v23 = vpack.c.bf16 %v259_v16, %v251_v14  ;;  %v331_v12 = vld [vmem:[%s4391_s24 + $0x2b0] sm:$0xff]  ;;  %v3935_v13 = vpack.c.bf16 %v340_v6, %v332_v5  ;;  %v354_v16 = vld [vmem:[%s4391_s24 + $0x368] sm:$0xff] }
 0x100   : > { %v3919_v28 = vpack.c.bf16 %v276_v20, %v268_v19  ;;  %v339_v14 = vld [vmem:[%s4391_s24 + $0x2f0] sm:$0xff]  ;;  %v409_v6 = vld [vmem:[%s4391_s24 + $0x520] sm:$0xff] }
 0x101   : > { %3386 = vmatpush1.bf16.msra.mxu0 %v3385_v25  ;;  %v265_v25 = vld [vmem:[%s4391_s24 + $0xa0] sm:$0xff]  ;;  %v3937_v20 = vpack.c.bf16 %v339_v14, %v331_v12  ;;  %v434_v12 = vld [vmem:[%s4391_s24 + $0x5e8] sm:$0xff]  ;;  %v436_v14 = vld [vmem:[%s4391_s24 + $0x5f8] sm:$0xff] }
 0x102   : > { %3642 = vmatpush1.bf16.msra.mxu1 %v3641_v26  ;;  %3388 = vmatprep.subr.bf16.mxu0 %v3387_v27  ;;  %v273_v26 = vld [vmem:[%s4391_s24 + $0xe0] sm:$0xff]  ;;  %v267_v27 = vld [vmem:[%s4391_s24 + $0xb0] sm:$0xff] }
 0x103   : > { %3644 = vmatprep.subr.bf16.mxu1 %v3643_v31  ;;  %v290_v31 = vld [vmem:[%s4391_s24 + $0x168] sm:$0xff]  ;;  %v3665_v34 = vpack.c.bf16 %v273_v26, %v265_v25  ;;  %v3921_v35 = vpack.c.bf16 %v275_v29, %v267_v27  ;;  %v3939_v25 = vpack.c.bf16 %v356_v18, %v348_v17  ;;  %v355_v26 = vld [vmem:[%s4391_s24 + $0x370] sm:$0xff]  ;;  %v364_v29 = vld [vmem:[%s4391_s24 + $0x3b8] sm:$0xff] }
 0x104   : > { %v3667_v36 = vpack.c.bf16 %v290_v31, %v282_v30  ;;  %v362_v27 = vld [vmem:[%s4391_s24 + $0x3a8] sm:$0xff]  ;;  %v372_v30 = vld [vmem:[%s4391_s24 + $0x3f8] sm:$0xff]  ;;  %v425_v18 = vld [vmem:[%s4391_s24 + $0x5a0] sm:$0xff] }
 0x105   : > { %3390 = vmatpush1.bf16.msra.mxu0 %v3389_v37  ;;  %v281_v37 = vld [vmem:[%s4391_s24 + $0x120] sm:$0xff] }
 0x106   : > { %3646 = vmatpush1.bf16.msra.mxu1 %v3645_v38  ;;  %3392 = vmatprep.subr.bf16.mxu0 %v3391_v39  ;;  %v289_v38 = vld [vmem:[%s4391_s24 + $0x160] sm:$0xff]  ;;  %v283_v39 = vld [vmem:[%s4391_s24 + $0x130] sm:$0xff] }
 0x107   : > { %3648 = vmatprep.subr.bf16.mxu1 %v3647_v43  ;;  %v306_v43 = vld [vmem:[%s4391_s24 + $0x1e8] sm:$0xff]  ;;  %v3669_v47 = vpack.c.bf16 %v289_v38, %v281_v37  ;;  %v3925_v48 = vpack.c.bf16 %v291_v41, %v283_v39  ;;  %v3943_v37 = vpack.c.bf16 %v372_v30, %v364_v29  ;;  %v371_v38 = vld [vmem:[%s4391_s24 + $0x3f0] sm:$0xff]  ;;  %v380_v41 = vld [vmem:[%s4391_s24 + $0x438] sm:$0xff] }
 0x108   : > { %v378_v39 = vld [vmem:[%s4391_s24 + $0x428] sm:$0xff]  ;;  %v441_v30 = vld [vmem:[%s4391_s24 + $0x620] sm:$0xff] }
 0x109   : > { %3394 = vmatpush1.bf16.msra.mxu0 %v3393_v49  ;;  %v3671_v49 = vpack.c.bf16 %v306_v43, %v298_v42  ;;  %v388_v42 = vld [vmem:[%s4391_s24 + $0x478] sm:$0xff] }
 0x10a   : > { %3650 = vmatpush1.bf16.msra.mxu1 %v3649_v50  ;;  %3396 = vmatprep.subr.bf16.mxu0 %v3395_v51  ;;  %v297_v50 = vld [vmem:[%s4391_s24 + $0x1a0] sm:$0xff] }
 0x10b   : > { %3652 = vmatprep.subr.bf16.mxu1 %v3651_v55  ;;  %v305_v51 = vld [vmem:[%s4391_s24 + $0x1e0] sm:$0xff]  ;;  %v314_v55 = vld [vmem:[%s4391_s24 + $0x228] sm:$0xff] }
 0x10c   : > { %v3673_v59 = vpack.c.bf16 %v305_v51, %v297_v50  ;;  %v387_v50 = vld [vmem:[%s4391_s24 + $0x470] sm:$0xff]  ;;  %v394_v51 = vld [vmem:[%s4391_s24 + $0x4a8] sm:$0xff] }
 0x10d   : > { %3398 = vmatpush1.bf16.msra.mxu0 %v3397_v61  ;;  %v3675_v61 = vpack.c.bf16 %v322_v56, %v314_v55  ;;  %v3695_v57 = vpack.c.bf16 %v402_v52, %v394_v51 }
 0x10e   : > { %3654 = vmatpush1.bf16.msra.mxu1 %v3653_v62  ;;  %3400 = vmatprep.subr.bf16.mxu0 %v3399_v63  ;;  %v313_v62 = vld [vmem:[%s4391_s24 + $0x220] sm:$0xff] }
 0x10f   : > { %3656 = vmatprep.subr.bf16.mxu1 %v3655_v3  ;;  %v321_v63 = vld [vmem:[%s4391_s24 + $0x260] sm:$0xff]  ;;  %v330_v3 = vld [vmem:[%s4391_s24 + $0x2a8] sm:$0xff] }
 0x110   : > { %v3677_v7 = vpack.c.bf16 %v321_v63, %v313_v62  ;;  %v403_v62 = vld [vmem:[%s4391_s24 + $0x4f0] sm:$0xff]  ;;  %v410_v63 = vld [vmem:[%s4391_s24 + $0x528] sm:$0xff] }
 0x111   : > { %3402 = vmatpush1.bf16.msra.mxu0 %v3401_v9  ;;  %v3679_v9 = vpack.c.bf16 %v338_v4, %v330_v3  ;;  %v3699_v5 = vpack.c.bf16 %v418_v0, %v410_v63 }
 0x112   : > { %3658 = vmatpush1.bf16.msra.mxu1 %v3657_v10  ;;  %3660 = vmatprep.subr.bf16.mxu0 %v3659_v11  ;;  %v329_v10 = vld [vmem:[%s4391_s24 + $0x2a0] sm:$0xff] }
 0x113   : > { %3916 = vmatprep.subr.bf16.mxu1 %v3915_v15  ;;  %v337_v11 = vld [vmem:[%s4391_s24 + $0x2e0] sm:$0xff]  ;;  %v346_v15 = vld [vmem:[%s4391_s24 + $0x328] sm:$0xff] }
 0x114   : > { %1547 = vmatmul.mubr.f32.vlgmr.msra.gmra.mrb[0].mxu0 %v243_v21  ;;  %v3681_v19 = vpack.c.bf16 %v337_v11, %v329_v10  ;;  %v419_v10 = vld [vmem:[%s4391_s24 + $0x570] sm:$0xff]  ;;  %v426_v11 = vld [vmem:[%s4391_s24 + $0x5a8] sm:$0xff] }
 0x115   : > { %1831 = vmatmul.mubr.f32.vlgmr.msra.gmra.mrb[0].mxu1 %v243_v21  ;;  %3662 = vmatpush1.bf16.msra.mxu0 %v3661_v22  ;;  %v3683_v21 = vpack.c.bf16 %v354_v16, %v346_v15  ;;  %v345_v22 = vld [vmem:[%s4391_s24 + $0x320] sm:$0xff]  ;;  %v3703_v17 = vpack.c.bf16 %v434_v12, %v426_v11 }
 0x116   : > { %3918 = vmatpush1.bf16.msra.mxu1 %v3917_v23  ;;  %3664 = vmatprep.subr.bf16.mxu0 %v3663_v24  ;;  %v353_v23 = vld [vmem:[%s4391_s24 + $0x360] sm:$0xff]  ;;  %v347_v24 = vld [vmem:[%s4391_s24 + $0x330] sm:$0xff] }
 0x117   : > { %3920 = vmatprep.subr.bf16.mxu1 %v3919_v28  ;;  %1901 = vmatprep.mubr.f32.mxu0 %v4331_v44  ;;  %v370_v28 = vld [vmem:[%s4391_s24 + $0x3e8] sm:$0xff]  ;;  %v3685_v31 = vpack.c.bf16 %v353_v23, %v345_v22  ;;  %v3941_v32 = vpack.c.bf16 %v355_v26, %v347_v24  ;;  %v435_v22 = vld [vmem:[%s4391_s24 + $0x5f0] sm:$0xff]  ;;  %v452_v26 = vld [vmem:[%s4391_s24 + $0x678] sm:$0xff] }
 0x118   : > { %2185 = vmatprep.mubr.f32.mxu1 %v4331_v44  ;;  %v3687_v33 = vpack.c.bf16 %v370_v28, %v362_v27  ;;  %v442_v23 = vld [vmem:[%s4391_s24 + $0x628] sm:$0xff] }
 0x119   : > { %3666 = vmatpush1.bf16.msra.mxu0 %v3665_v34  ;;  %v361_v34 = vld [vmem:[%s4391_s24 + $0x3a0] sm:$0xff]  ;;  %v450_v24 = vld [vmem:[%s4391_s24 + $0x668] sm:$0xff] }
 0x11a   : > { %3922 = vmatpush1.bf16.msra.mxu1 %v3921_v35  ;;  %3668 = vmatprep.subr.bf16.mxu0 %v3667_v36  ;;  %v369_v35 = vld [vmem:[%s4391_s24 + $0x3e0] sm:$0xff]  ;;  %v363_v36 = vld [vmem:[%s4391_s24 + $0x3b0] sm:$0xff]  ;;  %v3707_v29 = vpack.c.bf16 %v450_v24, %v442_v23 }
 0x11b   : > { %3924 = vmatprep.subr.bf16.mxu1 %v3923_v40  ;;  %v386_v40 = vld [vmem:[%s4391_s24 + $0x468] sm:$0xff]  ;;  %v3689_v43 = vpack.c.bf16 %v369_v35, %v361_v34  ;;  %v3945_v44 = vpack.c.bf16 %v371_v38, %v363_v36  ;;  %v451_v34 = vld [vmem:[%s4391_s24 + $0x670] sm:$0xff]  ;;  %v468_v38 = vld [vmem:[%s4391_s24 + $0x6f8] sm:$0xff] }
 0x11c   : > { %v3691_v45 = vpack.c.bf16 %v386_v40, %v378_v39  ;;  %v458_v35 = vld [vmem:[%s4391_s24 + $0x6a8] sm:$0xff] }
 0x11d   : > { %3670 = vmatpush1.bf16.msra.mxu0 %v3669_v47  ;;  %v385_v47 = vld [vmem:[%s4391_s24 + $0x460] sm:$0xff]  ;;  %v466_v36 = vld [vmem:[%s4391_s24 + $0x6e8] sm:$0xff] }
 0x11e   : > { %3926 = vmatpush1.bf16.msra.mxu1 %v3925_v48  ;;  %3672 = vmatprep.subr.bf16.mxu0 %v3671_v49  ;;  %v379_v48 = vld [vmem:[%s4391_s24 + $0x430] sm:$0xff]  ;;  %v3947_v49 = vpack.c.bf16 %v388_v42, %v380_v41  ;;  %v3693_v55 = vpack.c.bf16 %v385_v47, %v377_v46  ;;  %v3711_v41 = vpack.c.bf16 %v466_v36, %v458_v35  ;;  %v457_v42 = vld [vmem:[%s4391_s24 + $0x6a0] sm:$0xff]  ;;  %v474_v47 = vld [vmem:[%s4391_s24 + $0x728] sm:$0xff] }
 0x11f   : > { %3928 = vmatprep.subr.bf16.mxu1 %v3927_v53  ;;  %v396_v53 = vld [vmem:[%s4391_s24 + $0x4b8] sm:$0xff]  ;;  %v3949_v56 = vpack.c.bf16 %v387_v50, %v379_v48  ;;  %v467_v46 = vld [vmem:[%s4391_s24 + $0x6f0] sm:$0xff]  ;;  %v482_v48 = vld [vmem:[%s4391_s24 + $0x768] sm:$0xff] }
 0x120   : > { %v484_v50 = vld [vmem:[%s4391_s24 + $0x778] sm:$0xff] }
 0x121   : > { %3674 = vmatpush1.bf16.msra.mxu0 %v3673_v59  ;;  %v401_v59 = vld [vmem:[%s4391_s24 + $0x4e0] sm:$0xff]  ;;  %v548_v35 = vld [vmem:[%s4391_s24 + $0x978] sm:$0xff] }
 0x122   : > { %3930 = vmatpush1.bf16.msra.mxu1 %v3929_v60  ;;  %3676 = vmatprep.subr.bf16.mxu0 %v3675_v61  ;;  %v395_v60 = vld [vmem:[%s4391_s24 + $0x4b0] sm:$0xff]  ;;  %v3951_v61 = vpack.c.bf16 %v404_v54, %v396_v53  ;;  %v3697_v3 = vpack.c.bf16 %v401_v59, %v393_v58  ;;  %v3715_v53 = vpack.c.bf16 %v482_v48, %v474_v47  ;;  %v473_v54 = vld [vmem:[%s4391_s24 + $0x720] sm:$0xff]  ;;  %v490_v59 = vld [vmem:[%s4391_s24 + $0x7a8] sm:$0xff] }
 0x123   : > { %3932 = vmatprep.subr.bf16.mxu1 %v3931_v1  ;;  %v412_v1 = vld [vmem:[%s4391_s24 + $0x538] sm:$0xff]  ;;  %v3953_v4 = vpack.c.bf16 %v403_v62, %v395_v60  ;;  %v483_v58 = vld [vmem:[%s4391_s24 + $0x770] sm:$0xff]  ;;  %v498_v60 = vld [vmem:[%s4391_s24 + $0x7e8] sm:$0xff] }
 0x124   : > { %v500_v62 = vld [vmem:[%s4391_s24 + $0x7f8] sm:$0xff] }
 0x125   : > { %3678 = vmatpush1.bf16.msra.mxu0 %v3677_v7  ;;  %v417_v7 = vld [vmem:[%s4391_s24 + $0x560] sm:$0xff]  ;;  %v556_v47 = vld [vmem:[%s4391_s24 + $0x9b8] sm:$0xff] }
 0x126   : > { %3934 = vmatpush1.bf16.msra.mxu1 %v3933_v8  ;;  %3680 = vmatprep.subr.bf16.mxu0 %v3679_v9  ;;  %v411_v8 = vld [vmem:[%s4391_s24 + $0x530] sm:$0xff]  ;;  %v3955_v9 = vpack.c.bf16 %v420_v2, %v412_v1  ;;  %v3701_v15 = vpack.c.bf16 %v417_v7, %v409_v6  ;;  %v3719_v1 = vpack.c.bf16 %v498_v60, %v490_v59  ;;  %v489_v2 = vld [vmem:[%s4391_s24 + $0x7a0] sm:$0xff]  ;;  %v506_v7 = vld [vmem:[%s4391_s24 + $0x828] sm:$0xff] }
 0x127   : > { %3936 = vmatprep.subr.bf16.mxu1 %v3935_v13  ;;  %v428_v13 = vld [vmem:[%s4391_s24 + $0x5b8] sm:$0xff]  ;;  %v3957_v16 = vpack.c.bf16 %v419_v10, %v411_v8  ;;  %v499_v6 = vld [vmem:[%s4391_s24 + $0x7f0] sm:$0xff]  ;;  %v514_v8 = vld [vmem:[%s4391_s24 + $0x868] sm:$0xff] }
 0x128   : > { %v516_v10 = vld [vmem:[%s4391_s24 + $0x878] sm:$0xff] }
 0x129   : > { %3682 = vmatpush1.bf16.msra.mxu0 %v3681_v19  ;;  %v433_v19 = vld [vmem:[%s4391_s24 + $0x5e0] sm:$0xff]  ;;  %v564_v48 = vld [vmem:[%s4391_s24 + $0x9f8] sm:$0xff] }
 0x12a   : > { %3938 = vmatpush1.bf16.msra.mxu1 %v3937_v20  ;;  %3684 = vmatprep.subr.bf16.mxu0 %v3683_v21  ;;  %v427_v20 = vld [vmem:[%s4391_s24 + $0x5b0] sm:$0xff]  ;;  %v3959_v21 = vpack.c.bf16 %v436_v14, %v428_v13  ;;  %v3705_v27 = vpack.c.bf16 %v433_v19, %v425_v18  ;;  %v3723_v13 = vpack.c.bf16 %v514_v8, %v506_v7  ;;  %v505_v14 = vld [vmem:[%s4391_s24 + $0x820] sm:$0xff]  ;;  %v522_v19 = vld [vmem:[%s4391_s24 + $0x8a8] sm:$0xff] }
 0x12b   : > { %3940 = vmatprep.subr.bf16.mxu1 %v3939_v25  ;;  %v444_v25 = vld [vmem:[%s4391_s24 + $0x638] sm:$0xff]  ;;  %v3961_v28 = vpack.c.bf16 %v435_v22, %v427_v20  ;;  %v515_v18 = vld [vmem:[%s4391_s24 + $0x870] sm:$0xff]  ;;  %v530_v20 = vld [vmem:[%s4391_s24 + $0x8e8] sm:$0xff] }
 0x12c   : > { %v532_v22 = vld [vmem:[%s4391_s24 + $0x8f8] sm:$0xff] }
 0x12d   : > { %3686 = vmatpush1.bf16.msra.mxu0 %v3685_v31  ;;  %v449_v31 = vld [vmem:[%s4391_s24 + $0x660] sm:$0xff]  ;;  %v572_v59 = vld [vmem:[%s4391_s24 + $0xa38] sm:$0xff] }
 0x12e   : > { %3942 = vmatpush1.bf16.msra.mxu1 %v3941_v32  ;;  %3688 = vmatprep.subr.bf16.mxu0 %v3687_v33  ;;  %v443_v32 = vld [vmem:[%s4391_s24 + $0x630] sm:$0xff]  ;;  %v3963_v33 = vpack.c.bf16 %v452_v26, %v444_v25  ;;  %v3709_v39 = vpack.c.bf16 %v449_v31, %v441_v30  ;;  %v3727_v25 = vpack.c.bf16 %v530_v20, %v522_v19  ;;  %v521_v26 = vld [vmem:[%s4391_s24 + $0x8a0] sm:$0xff]  ;;  %v538_v31 = vld [vmem:[%s4391_s24 + $0x928] sm:$0xff] }
 0x12f   : > { %3944 = vmatprep.subr.bf16.mxu1 %v3943_v37  ;;  %v460_v37 = vld [vmem:[%s4391_s24 + $0x6b8] sm:$0xff]  ;;  %v3965_v40 = vpack.c.bf16 %v451_v34, %v443_v32  ;;  %v531_v30 = vld [vmem:[%s4391_s24 + $0x8f0] sm:$0xff]  ;;  %v546_v32 = vld [vmem:[%s4391_s24 + $0x968] sm:$0xff] }
 0x130   : > { %v540_v34 = vld [vmem:[%s4391_s24 + $0x938] sm:$0xff] }
 0x131   : > { %3690 = vmatpush1.bf16.msra.mxu0 %v3689_v43  ;;  %v465_v43 = vld [vmem:[%s4391_s24 + $0x6e0] sm:$0xff]  ;;  %v580_v60 = vld [vmem:[%s4391_s24 + $0xa78] sm:$0xff] }
 0x132   : > { %3946 = vmatpush1.bf16.msra.mxu1 %v3945_v44  ;;  %3692 = vmatprep.subr.bf16.mxu0 %v3691_v45  ;;  %v459_v44 = vld [vmem:[%s4391_s24 + $0x6b0] sm:$0xff]  ;;  %v3967_v45 = vpack.c.bf16 %v468_v38, %v460_v37  ;;  %v3713_v51 = vpack.c.bf16 %v465_v43, %v457_v42  ;;  %v3731_v38 = vpack.c.bf16 %v546_v32, %v538_v31  ;;  %v588_v7 = vld [vmem:[%s4391_s24 + $0xab8] sm:$0xff] }
 0x133   : > { %3948 = vmatprep.subr.bf16.mxu1 %v3947_v49  ;;  %v476_v49 = vld [vmem:[%s4391_s24 + $0x738] sm:$0xff]  ;;  %v3969_v52 = vpack.c.bf16 %v467_v46, %v459_v44  ;;  %v3987_v42 = vpack.c.bf16 %v548_v35, %v540_v34  ;;  %v547_v43 = vld [vmem:[%s4391_s24 + $0x970] sm:$0xff]  ;;  %v554_v44 = vld [vmem:[%s4391_s24 + $0x9a8] sm:$0xff] }
 0x134   : > { %v4333_v46 = vld [vmem:[%s4498_s30 + $0x18] sm:$0xff] }
 0x135   : > { %3694 = vmatpush1.bf16.msra.mxu0 %v3693_v55  ;;  %v481_v55 = vld [vmem:[%s4391_s24 + $0x760] sm:$0xff]  ;;  %v596_v8 = vld [vmem:[%s4391_s24 + $0xaf8] sm:$0xff] }
 0x136   : > { %3950 = vmatpush1.bf16.msra.mxu1 %v3949_v56  ;;  %3696 = vmatprep.subr.bf16.mxu0 %v3695_v57  ;;  %v475_v56 = vld [vmem:[%s4391_s24 + $0x730] sm:$0xff]  ;;  %v3971_v57 = vpack.c.bf16 %v484_v50, %v476_v49  ;;  %v3717_v63 = vpack.c.bf16 %v481_v55, %v473_v54  ;;  %v3991_v55 = vpack.c.bf16 %v564_v48, %v556_v47  ;;  %v604_v19 = vld [vmem:[%s4391_s24 + $0xb38] sm:$0xff]  ;;  %v633_v48 = vld [vmem:[%s4391_s24 + $0xc20] sm:$0xff] }
 0x137   : > { %3952 = vmatprep.subr.bf16.mxu1 %v3951_v61  ;;  %v492_v61 = vld [vmem:[%s4391_s24 + $0x7b8] sm:$0xff]  ;;  %v3973_v0 = vpack.c.bf16 %v483_v58, %v475_v56  ;;  %v555_v54 = vld [vmem:[%s4391_s24 + $0x9b0] sm:$0xff]  ;;  %v578_v58 = vld [vmem:[%s4391_s24 + $0xa68] sm:$0xff] }
 0x138   : > { %v563_v56 = vld [vmem:[%s4391_s24 + $0x9f0] sm:$0xff]  ;;  %v612_v20 = vld [vmem:[%s4391_s24 + $0xb78] sm:$0xff] }
 0x139   : > { %3698 = vmatpush1.bf16.msra.mxu0 %v3697_v3  ;;  %v497_v3 = vld [vmem:[%s4391_s24 + $0x7e0] sm:$0xff]  ;;  %v620_v31 = vld [vmem:[%s4391_s24 + $0xbb8] sm:$0xff] }
 0x13a   : > { %3954 = vmatpush1.bf16.msra.mxu1 %v3953_v4  ;;  %3700 = vmatprep.subr.bf16.mxu0 %v3699_v5  ;;  %v491_v4 = vld [vmem:[%s4391_s24 + $0x7b0] sm:$0xff]  ;;  %v3975_v5 = vpack.c.bf16 %v500_v62, %v492_v61  ;;  %v3721_v11 = vpack.c.bf16 %v497_v3, %v489_v2  ;;  %v3993_v62 = vpack.c.bf16 %v563_v56, %v555_v54  ;;  %v628_v32 = vld [vmem:[%s4391_s24 + $0xbf8] sm:$0xff]  ;;  %v658_v54 = vld [vmem:[%s4391_s24 + $0xce8] sm:$0xff] }
 0x13b   : > { %3956 = vmatprep.subr.bf16.mxu1 %v3955_v9  ;;  %v508_v9 = vld [vmem:[%s4391_s24 + $0x838] sm:$0xff]  ;;  %v3977_v12 = vpack.c.bf16 %v499_v6, %v491_v4  ;;  %v571_v2 = vld [vmem:[%s4391_s24 + $0xa30] sm:$0xff]  ;;  %v3995_v3 = vpack.c.bf16 %v580_v60, %v572_v59  ;;  %v594_v6 = vld [vmem:[%s4391_s24 + $0xae8] sm:$0xff] }
 0x13c   : > { %v579_v4 = vld [vmem:[%s4391_s24 + $0xa70] sm:$0xff]  ;;  %v660_v56 = vld [vmem:[%s4391_s24 + $0xcf8] sm:$0xff]  ;;  %v649_v60 = vld [vmem:[%s4391_s24 + $0xca0] sm:$0xff] }
 0x13d   : > { %3702 = vmatpush1.bf16.msra.mxu0 %v3701_v15  ;;  %v513_v15 = vld [vmem:[%s4391_s24 + $0x860] sm:$0xff] }
 0x13e   : > { %3958 = vmatpush1.bf16.msra.mxu1 %v3957_v16  ;;  %3704 = vmatprep.subr.bf16.mxu0 %v3703_v17  ;;  %v507_v16 = vld [vmem:[%s4391_s24 + $0x830] sm:$0xff]  ;;  %v3979_v17 = vpack.c.bf16 %v516_v10, %v508_v9  ;;  %v3725_v23 = vpack.c.bf16 %v513_v15, %v505_v14  ;;  %v3997_v10 = vpack.c.bf16 %v579_v4, %v571_v2  ;;  %v674_v2 = vld [vmem:[%s4391_s24 + $0xd68] sm:$0xff]  ;;  %v676_v4 = vld [vmem:[%s4391_s24 + $0xd78] sm:$0xff] }
 0x13f   : > { %3960 = vmatprep.subr.bf16.mxu1 %v3959_v21  ;;  %v524_v21 = vld [vmem:[%s4391_s24 + $0x8b8] sm:$0xff]  ;;  %v3981_v24 = vpack.c.bf16 %v515_v18, %v507_v16  ;;  %v587_v14 = vld [vmem:[%s4391_s24 + $0xab0] sm:$0xff]  ;;  %v3999_v15 = vpack.c.bf16 %v596_v8, %v588_v7  ;;  %v610_v18 = vld [vmem:[%s4391_s24 + $0xb68] sm:$0xff] }
 0x140   : > { %v595_v16 = vld [vmem:[%s4391_s24 + $0xaf0] sm:$0xff]  ;;  %v665_v8 = vld [vmem:[%s4391_s24 + $0xd20] sm:$0xff] }
 0x141   : > { %3706 = vmatpush1.bf16.msra.mxu0 %v3705_v27  ;;  %v529_v27 = vld [vmem:[%s4391_s24 + $0x8e0] sm:$0xff] }
 0x142   : > { %3962 = vmatpush1.bf16.msra.mxu1 %v3961_v28  ;;  %3708 = vmatprep.subr.bf16.mxu0 %v3707_v29  ;;  %v523_v28 = vld [vmem:[%s4391_s24 + $0x8b0] sm:$0xff]  ;;  %v3983_v29 = vpack.c.bf16 %v532_v22, %v524_v21  ;;  %v3729_v36 = vpack.c.bf16 %v529_v27, %v521_v26  ;;  %v4001_v22 = vpack.c.bf16 %v595_v16, %v587_v14  ;;  %v690_v14 = vld [vmem:[%s4391_s24 + $0xde8] sm:$0xff]  ;;  %v692_v16 = vld [vmem:[%s4391_s24 + $0xdf8] sm:$0xff] }
 0x143   : > { %3964 = vmatprep.subr.bf16.mxu1 %v3963_v33  ;;  %v4332_v33 = vld [vmem:[%s4498_s30] sm:$0xff]  ;;  %v3985_v37 = vpack.c.bf16 %v531_v30, %v523_v28  ;;  %v603_v26 = vld [vmem:[%s4391_s24 + $0xb30] sm:$0xff]  ;;  %v4003_v27 = vpack.c.bf16 %v612_v20, %v604_v19  ;;  %v626_v30 = vld [vmem:[%s4391_s24 + $0xbe8] sm:$0xff] }
 0x144   : > { %v611_v28 = vld [vmem:[%s4391_s24 + $0xb70] sm:$0xff]  ;;  %v681_v20 = vld [vmem:[%s4391_s24 + $0xda0] sm:$0xff] }
 0x145   : > { %3710 = vmatpush1.bf16.msra.mxu0 %v3709_v39  ;;  %v537_v39 = vld [vmem:[%s4391_s24 + $0x920] sm:$0xff]  ;;  %v4005_v34 = vpack.c.bf16 %v611_v28, %v603_v26  ;;  %v706_v26 = vld [vmem:[%s4391_s24 + $0xe68] sm:$0xff]  ;;  %v708_v28 = vld [vmem:[%s4391_s24 + $0xe78] sm:$0xff] }
 0x146   : > { %3966 = vmatpush1.bf16.msra.mxu1 %v3965_v40  ;;  %3712 = vmatprep.subr.bf16.mxu0 %v3711_v41  ;;  %v545_v40 = vld [vmem:[%s4391_s24 + $0x960] sm:$0xff]  ;;  %v539_v41 = vld [vmem:[%s4391_s24 + $0x930] sm:$0xff] }
 0x147   : > { %3968 = vmatprep.subr.bf16.mxu1 %v3967_v45  ;;  %v562_v45 = vld [vmem:[%s4391_s24 + $0x9e8] sm:$0xff]  ;;  %v3733_v49 = vpack.c.bf16 %v545_v40, %v537_v39  ;;  %v3989_v50 = vpack.c.bf16 %v547_v43, %v539_v41  ;;  %v4007_v39 = vpack.c.bf16 %v628_v32, %v620_v31  ;;  %v627_v40 = vld [vmem:[%s4391_s24 + $0xbf0] sm:$0xff]  ;;  %v636_v43 = vld [vmem:[%s4391_s24 + $0xc38] sm:$0xff] }
 0x148   : > { %v634_v41 = vld [vmem:[%s4391_s24 + $0xc28] sm:$0xff]  ;;  %v697_v32 = vld [vmem:[%s4391_s24 + $0xe20] sm:$0xff] }
 0x149   : > { %3714 = vmatpush1.bf16.msra.mxu0 %v3713_v51  ;;  %v3735_v51 = vpack.c.bf16 %v562_v45, %v554_v44  ;;  %v644_v44 = vld [vmem:[%s4391_s24 + $0xc78] sm:$0xff] }
 0x14a   : > { %3970 = vmatpush1.bf16.msra.mxu1 %v3969_v52  ;;  %3716 = vmatprep.subr.bf16.mxu0 %v3715_v53  ;;  %v553_v52 = vld [vmem:[%s4391_s24 + $0x9a0] sm:$0xff] }
 0x14b   : > { %3972 = vmatprep.subr.bf16.mxu1 %v3971_v57  ;;  %v561_v53 = vld [vmem:[%s4391_s24 + $0x9e0] sm:$0xff]  ;;  %v570_v57 = vld [vmem:[%s4391_s24 + $0xa28] sm:$0xff] }
 0x14c   : > { %v3737_v61 = vpack.c.bf16 %v561_v53, %v553_v52  ;;  %v643_v52 = vld [vmem:[%s4391_s24 + $0xc70] sm:$0xff]  ;;  %v650_v53 = vld [vmem:[%s4391_s24 + $0xca8] sm:$0xff] }
 0x14d   : > { %3718 = vmatpush1.bf16.msra.mxu0 %v3717_v63  ;;  %v3739_v63 = vpack.c.bf16 %v578_v58, %v570_v57  ;;  %v3759_v59 = vpack.c.bf16 %v658_v54, %v650_v53 }
 0x14e   : > { %3974 = vmatpush1.bf16.msra.mxu1 %v3973_v0  ;;  %3720 = vmatprep.subr.bf16.mxu0 %v3719_v1  ;;  %v569_v0 = vld [vmem:[%s4391_s24 + $0xa20] sm:$0xff] }
 0x14f   : > { %3976 = vmatprep.subr.bf16.mxu1 %v3975_v5  ;;  %v577_v1 = vld [vmem:[%s4391_s24 + $0xa60] sm:$0xff]  ;;  %v586_v5 = vld [vmem:[%s4391_s24 + $0xaa8] sm:$0xff] }
 0x150   : > { %v3741_v9 = vpack.c.bf16 %v577_v1, %v569_v0  ;;  %v659_v0 = vld [vmem:[%s4391_s24 + $0xcf0] sm:$0xff]  ;;  %v666_v1 = vld [vmem:[%s4391_s24 + $0xd28] sm:$0xff] }
 0x151   : > { %3722 = vmatpush1.bf16.msra.mxu0 %v3721_v11  ;;  %v3743_v11 = vpack.c.bf16 %v594_v6, %v586_v5  ;;  %v3763_v7 = vpack.c.bf16 %v674_v2, %v666_v1 }
 0x152   : > { %3978 = vmatpush1.bf16.msra.mxu1 %v3977_v12  ;;  %3724 = vmatprep.subr.bf16.mxu0 %v3723_v13  ;;  %v585_v12 = vld [vmem:[%s4391_s24 + $0xaa0] sm:$0xff] }
 0x153   : > { %3980 = vmatprep.subr.bf16.mxu1 %v3979_v17  ;;  %v593_v13 = vld [vmem:[%s4391_s24 + $0xae0] sm:$0xff]  ;;  %v602_v17 = vld [vmem:[%s4391_s24 + $0xb28] sm:$0xff] }
 0x154   : > { %1902 = vmatmul.mubr.f32.vlgmr.msra.gmra.mrb[2].mxu0 %v4332_v33  ;;  %v3745_v21 = vpack.c.bf16 %v593_v13, %v585_v12  ;;  %v675_v12 = vld [vmem:[%s4391_s24 + $0xd70] sm:$0xff]  ;;  %v682_v13 = vld [vmem:[%s4391_s24 + $0xda8] sm:$0xff] }
 0x155   : > { %3726 = vmatpush1.bf16.msra.mxu0 %v3725_v23  ;;  %2186 = vmatmul.mubr.f32.vlgmr.msra.gmra.mrb[2].mxu1 %v4332_v33  ;;  %v3747_v23 = vpack.c.bf16 %v610_v18, %v602_v17  ;;  %v3767_v19 = vpack.c.bf16 %v690_v14, %v682_v13 }
 0x156   : > { %3982 = vmatpush1.bf16.msra.mxu1 %v3981_v24  ;;  %3728 = vmatprep.subr.bf16.mxu0 %v3727_v25  ;;  %v601_v24 = vld [vmem:[%s4391_s24 + $0xb20] sm:$0xff] }
 0x157   : > { %3984 = vmatprep.subr.bf16.mxu1 %v3983_v29  ;;  %1972 = vmatprep.mubr.f32.mxu0 %v4333_v46  ;;  %v609_v25 = vld [vmem:[%s4391_s24 + $0xb60] sm:$0xff]  ;;  %v618_v29 = vld [vmem:[%s4391_s24 + $0xba8] sm:$0xff] }
 0x158   : > { %2256 = vmatprep.mubr.f32.mxu1 %v4333_v46  ;;  %v3749_v33 = vpack.c.bf16 %v609_v25, %v601_v24  ;;  %v3751_v35 = vpack.c.bf16 %v626_v30, %v618_v29  ;;  %v691_v24 = vld [vmem:[%s4391_s24 + $0xdf0] sm:$0xff]  ;;  %v698_v25 = vld [vmem:[%s4391_s24 + $0xe28] sm:$0xff] }
 0x159   : > { %3730 = vmatpush1.bf16.msra.mxu0 %v3729_v36  ;;  %v617_v36 = vld [vmem:[%s4391_s24 + $0xba0] sm:$0xff]  ;;  %v3771_v31 = vpack.c.bf16 %v706_v26, %v698_v25 }
 0x15a   : > { %3986 = vmatpush1.bf16.msra.mxu1 %v3985_v37  ;;  %3732 = vmatprep.subr.bf16.mxu0 %v3731_v38  ;;  %v625_v37 = vld [vmem:[%s4391_s24 + $0xbe0] sm:$0xff]  ;;  %v619_v38 = vld [vmem:[%s4391_s24 + $0xbb0] sm:$0xff] }
 0x15b   : > { %3988 = vmatprep.subr.bf16.mxu1 %v3987_v42  ;;  %v642_v42 = vld [vmem:[%s4391_s24 + $0xc68] sm:$0xff]  ;;  %v3753_v45 = vpack.c.bf16 %v625_v37, %v617_v36  ;;  %v4009_v46 = vpack.c.bf16 %v627_v40, %v619_v38  ;;  %v707_v36 = vld [vmem:[%s4391_s24 + $0xe70] sm:$0xff]  ;;  %v724_v40 = vld [vmem:[%s4391_s24 + $0xef8] sm:$0xff] }
 0x15c   : > { %v3755_v47 = vpack.c.bf16 %v642_v42, %v634_v41  ;;  %v714_v37 = vld [vmem:[%s4391_s24 + $0xea8] sm:$0xff] }
 0x15d   : > { %3734 = vmatpush1.bf16.msra.mxu0 %v3733_v49  ;;  %v641_v49 = vld [vmem:[%s4391_s24 + $0xc60] sm:$0xff]  ;;  %v722_v38 = vld [vmem:[%s4391_s24 + $0xee8] sm:$0xff] }
 0x15e   : > { %3990 = vmatpush1.bf16.msra.mxu1 %v3989_v50  ;;  %3736 = vmatprep.subr.bf16.mxu0 %v3735_v51  ;;  %v635_v50 = vld [vmem:[%s4391_s24 + $0xc30] sm:$0xff]  ;;  %v4011_v51 = vpack.c.bf16 %v644_v44, %v636_v43  ;;  %v3757_v57 = vpack.c.bf16 %v641_v49, %v633_v48  ;;  %v3775_v43 = vpack.c.bf16 %v722_v38, %v714_v37  ;;  %v713_v44 = vld [vmem:[%s4391_s24 + $0xea0] sm:$0xff]  ;;  %v730_v49 = vld [vmem:[%s4391_s24 + $0xf28] sm:$0xff] }
 0x15f   : > { %3992 = vmatprep.subr.bf16.mxu1 %v3991_v55  ;;  %v652_v55 = vld [vmem:[%s4391_s24 + $0xcb8] sm:$0xff]  ;;  %v4013_v58 = vpack.c.bf16 %v643_v52, %v635_v50  ;;  %v723_v48 = vld [vmem:[%s4391_s24 + $0xef0] sm:$0xff]  ;;  %v738_v50 = vld [vmem:[%s4391_s24 + $0xf68] sm:$0xff] }
 0x160   : > { %v740_v52 = vld [vmem:[%s4391_s24 + $0xf78] sm:$0xff] }
 0x161   : > { %3738 = vmatpush1.bf16.msra.mxu0 %v3737_v61  ;;  %v657_v61 = vld [vmem:[%s4391_s24 + $0xce0] sm:$0xff]  ;;  %v804_v37 = vld [vmem:[%s4391_s24 + $0x1178] sm:$0xff] }
 0x162   : > { %3994 = vmatpush1.bf16.msra.mxu1 %v3993_v62  ;;  %3740 = vmatprep.subr.bf16.mxu0 %v3739_v63  ;;  %v651_v62 = vld [vmem:[%s4391_s24 + $0xcb0] sm:$0xff]  ;;  %v4015_v63 = vpack.c.bf16 %v660_v56, %v652_v55  ;;  %v3761_v5 = vpack.c.bf16 %v657_v61, %v649_v60  ;;  %v3779_v55 = vpack.c.bf16 %v738_v50, %v730_v49  ;;  %v729_v56 = vld [vmem:[%s4391_s24 + $0xf20] sm:$0xff]  ;;  %v746_v61 = vld [vmem:[%s4391_s24 + $0xfa8] sm:$0xff] }
 0x163   : > { %3996 = vmatprep.subr.bf16.mxu1 %v3995_v3  ;;  %v668_v3 = vld [vmem:[%s4391_s24 + $0xd38] sm:$0xff]  ;;  %v4017_v6 = vpack.c.bf16 %v659_v0, %v651_v62  ;;  %v739_v60 = vld [vmem:[%s4391_s24 + $0xf70] sm:$0xff]  ;;  %v754_v62 = vld [vmem:[%s4391_s24 + $0xfe8] sm:$0xff] }
 0x164   : > { %v756_v0 = vld [vmem:[%s4391_s24 + $0xff8] sm:$0xff] }
 0x165   : > { %3742 = vmatpush1.bf16.msra.mxu0 %v3741_v9  ;;  %v673_v9 = vld [vmem:[%s4391_s24 + $0xd60] sm:$0xff]  ;;  %v812_v49 = vld [vmem:[%s4391_s24 + $0x11b8] sm:$0xff] }
 0x166   : > { %3998 = vmatpush1.bf16.msra.mxu1 %v3997_v10  ;;  %3744 = vmatprep.subr.bf16.mxu0 %v3743_v11  ;;  %v667_v10 = vld [vmem:[%s4391_s24 + $0xd30] sm:$0xff]  ;;  %v4019_v11 = vpack.c.bf16 %v676_v4, %v668_v3  ;;  %v3765_v17 = vpack.c.bf16 %v673_v9, %v665_v8  ;;  %v3783_v3 = vpack.c.bf16 %v754_v62, %v746_v61  ;;  %v745_v4 = vld [vmem:[%s4391_s24 + $0xfa0] sm:$0xff]  ;;  %v762_v9 = vld [vmem:[%s4391_s24 + $0x1028] sm:$0xff] }
 0x167   : > { %4000 = vmatprep.subr.bf16.mxu1 %v3999_v15  ;;  %v684_v15 = vld [vmem:[%s4391_s24 + $0xdb8] sm:$0xff]  ;;  %v4021_v18 = vpack.c.bf16 %v675_v12, %v667_v10  ;;  %v755_v8 = vld [vmem:[%s4391_s24 + $0xff0] sm:$0xff]  ;;  %v770_v10 = vld [vmem:[%s4391_s24 + $0x1068] sm:$0xff] }
 0x168   : > { %v772_v12 = vld [vmem:[%s4391_s24 + $0x1078] sm:$0xff] }
 0x169   : > { %3746 = vmatpush1.bf16.msra.mxu0 %v3745_v21  ;;  %v689_v21 = vld [vmem:[%s4391_s24 + $0xde0] sm:$0xff]  ;;  %v820_v50 = vld [vmem:[%s4391_s24 + $0x11f8] sm:$0xff] }
 0x16a   : > { %4002 = vmatpush1.bf16.msra.mxu1 %v4001_v22  ;;  %3748 = vmatprep.subr.bf16.mxu0 %v3747_v23  ;;  %v683_v22 = vld [vmem:[%s4391_s24 + $0xdb0] sm:$0xff]  ;;  %v4023_v23 = vpack.c.bf16 %v692_v16, %v684_v15  ;;  %v3769_v29 = vpack.c.bf16 %v689_v21, %v681_v20  ;;  %v3787_v15 = vpack.c.bf16 %v770_v10, %v762_v9  ;;  %v761_v16 = vld [vmem:[%s4391_s24 + $0x1020] sm:$0xff]  ;;  %v778_v21 = vld [vmem:[%s4391_s24 + $0x10a8] sm:$0xff] }
 0x16b   : > { %4004 = vmatprep.subr.bf16.mxu1 %v4003_v27  ;;  %v700_v27 = vld [vmem:[%s4391_s24 + $0xe38] sm:$0xff]  ;;  %v4025_v30 = vpack.c.bf16 %v691_v24, %v683_v22  ;;  %v771_v20 = vld [vmem:[%s4391_s24 + $0x1070] sm:$0xff]  ;;  %v786_v22 = vld [vmem:[%s4391_s24 + $0x10e8] sm:$0xff] }
 0x16c   : > { %v788_v24 = vld [vmem:[%s4391_s24 + $0x10f8] sm:$0xff] }
 0x16d   : > { %3750 = vmatpush1.bf16.msra.mxu0 %v3749_v33  ;;  %v705_v33 = vld [vmem:[%s4391_s24 + $0xe60] sm:$0xff]  ;;  %v828_v61 = vld [vmem:[%s4391_s24 + $0x1238] sm:$0xff] }
 0x16e   : > { %4006 = vmatpush1.bf16.msra.mxu1 %v4005_v34  ;;  %3752 = vmatprep.subr.bf16.mxu0 %v3751_v35  ;;  %v699_v34 = vld [vmem:[%s4391_s24 + $0xe30] sm:$0xff]  ;;  %v4027_v35 = vpack.c.bf16 %v708_v28, %v700_v27  ;;  %v3773_v41 = vpack.c.bf16 %v705_v33, %v697_v32  ;;  %v3791_v27 = vpack.c.bf16 %v786_v22, %v778_v21  ;;  %v777_v28 = vld [vmem:[%s4391_s24 + $0x10a0] sm:$0xff]  ;;  %v794_v33 = vld [vmem:[%s4391_s24 + $0x1128] sm:$0xff] }
 0x16f   : > { %4008 = vmatprep.subr.bf16.mxu1 %v4007_v39  ;;  %v716_v39 = vld [vmem:[%s4391_s24 + $0xeb8] sm:$0xff]  ;;  %v4029_v42 = vpack.c.bf16 %v707_v36, %v699_v34  ;;  %v787_v32 = vld [vmem:[%s4391_s24 + $0x10f0] sm:$0xff]  ;;  %v802_v34 = vld [vmem:[%s4391_s24 + $0x1168] sm:$0xff] }
 0x170   : > { %v796_v36 = vld [vmem:[%s4391_s24 + $0x1138] sm:$0xff] }
 0x171   : > { %3754 = vmatpush1.bf16.msra.mxu0 %v3753_v45  ;;  %v721_v45 = vld [vmem:[%s4391_s24 + $0xee0] sm:$0xff]  ;;  %v836_v62 = vld [vmem:[%s4391_s24 + $0x1278] sm:$0xff] }
 0x172   : > { %4010 = vmatpush1.bf16.msra.mxu1 %v4009_v46  ;;  %3756 = vmatprep.subr.bf16.mxu0 %v3755_v47  ;;  %v715_v46 = vld [vmem:[%s4391_s24 + $0xeb0] sm:$0xff]  ;;  %v4031_v47 = vpack.c.bf16 %v724_v40, %v716_v39  ;;  %v3777_v53 = vpack.c.bf16 %v721_v45, %v713_v44  ;;  %v3795_v40 = vpack.c.bf16 %v802_v34, %v794_v33  ;;  %v844_v9 = vld [vmem:[%s4391_s24 + $0x12b8] sm:$0xff] }
 0x173   : > { %4012 = vmatprep.subr.bf16.mxu1 %v4011_v51  ;;  %v732_v51 = vld [vmem:[%s4391_s24 + $0xf38] sm:$0xff]  ;;  %v4033_v54 = vpack.c.bf16 %v723_v48, %v715_v46  ;;  %v4051_v44 = vpack.c.bf16 %v804_v37, %v796_v36  ;;  %v803_v45 = vld [vmem:[%s4391_s24 + $0x1170] sm:$0xff]  ;;  %v810_v46 = vld [vmem:[%s4391_s24 + $0x11a8] sm:$0xff] }
 0x174   : > { %v4335_v48 = vld [vmem:[%s4498_s30 + $0x28] sm:$0xff]  ;;  %v852_v10 = vld [vmem:[%s4391_s24 + $0x12f8] sm:$0xff] }
 0x175   : > { %3758 = vmatpush1.bf16.msra.mxu0 %v3757_v57  ;;  %v737_v57 = vld [vmem:[%s4391_s24 + $0xf60] sm:$0xff]  ;;  %v860_v21 = vld [vmem:[%s4391_s24 + $0x1338] sm:$0xff] }
 0x176   : > { %4014 = vmatpush1.bf16.msra.mxu1 %v4013_v58  ;;  %3760 = vmatprep.subr.bf16.mxu0 %v3759_v59  ;;  %v731_v58 = vld [vmem:[%s4391_s24 + $0xf30] sm:$0xff]  ;;  %v4035_v59 = vpack.c.bf16 %v740_v52, %v732_v51  ;;  %v3781_v1 = vpack.c.bf16 %v737_v57, %v729_v56  ;;  %v4055_v57 = vpack.c.bf16 %v820_v50, %v812_v49  ;;  %v868_v22 = vld [vmem:[%s4391_s24 + $0x1378] sm:$0xff]  ;;  %v889_v50 = vld [vmem:[%s4391_s24 + $0x1420] sm:$0xff] }
 0x177   : > { %4016 = vmatprep.subr.bf16.mxu1 %v4015_v63  ;;  %v748_v63 = vld [vmem:[%s4391_s24 + $0xfb8] sm:$0xff]  ;;  %v4037_v2 = vpack.c.bf16 %v739_v60, %v731_v58  ;;  %v811_v56 = vld [vmem:[%s4391_s24 + $0x11b0] sm:$0xff]  ;;  %v834_v60 = vld [vmem:[%s4391_s24 + $0x1268] sm:$0xff] }
 0x178   : > { %v819_v58 = vld [vmem:[%s4391_s24 + $0x11f0] sm:$0xff]  ;;  %v876_v33 = vld [vmem:[%s4391_s24 + $0x13b8] sm:$0xff] }
 0x179   : > { %3762 = vmatpush1.bf16.msra.mxu0 %v3761_v5  ;;  %v753_v5 = vld [vmem:[%s4391_s24 + $0xfe0] sm:$0xff]  ;;  %v884_v34 = vld [vmem:[%s4391_s24 + $0x13f8] sm:$0xff] }
 0x17a   : > { %4018 = vmatpush1.bf16.msra.mxu1 %v4017_v6  ;;  %3764 = vmatprep.subr.bf16.mxu0 %v3763_v7  ;;  %v747_v6 = vld [vmem:[%s4391_s24 + $0xfb0] sm:$0xff]  ;;  %v4039_v7 = vpack.c.bf16 %v756_v0, %v748_v63  ;;  %v3785_v13 = vpack.c.bf16 %v753_v5, %v745_v4  ;;  %v4057_v0 = vpack.c.bf16 %v819_v58, %v811_v56  ;;  %v914_v56 = vld [vmem:[%s4391_s24 + $0x14e8] sm:$0xff]  ;;  %v916_v58 = vld [vmem:[%s4391_s24 + $0x14f8] sm:$0xff] }
 0x17b   : > { %4020 = vmatprep.subr.bf16.mxu1 %v4019_v11  ;;  %v764_v11 = vld [vmem:[%s4391_s24 + $0x1038] sm:$0xff]  ;;  %v4041_v14 = vpack.c.bf16 %v755_v8, %v747_v6  ;;  %v827_v4 = vld [vmem:[%s4391_s24 + $0x1230] sm:$0xff]  ;;  %v4059_v5 = vpack.c.bf16 %v836_v62, %v828_v61  ;;  %v850_v8 = vld [vmem:[%s4391_s24 + $0x12e8] sm:$0xff] }
 0x17c   : > { %v835_v6 = vld [vmem:[%s4391_s24 + $0x1270] sm:$0xff]  ;;  %v905_v62 = vld [vmem:[%s4391_s24 + $0x14a0] sm:$0xff] }
 0x17d   : > { %3766 = vmatpush1.bf16.msra.mxu0 %v3765_v17  ;;  %v769_v17 = vld [vmem:[%s4391_s24 + $0x1060] sm:$0xff] }
 0x17e   : > { %4022 = vmatpush1.bf16.msra.mxu1 %v4021_v18  ;;  %3768 = vmatprep.subr.bf16.mxu0 %v3767_v19  ;;  %v763_v18 = vld [vmem:[%s4391_s24 + $0x1030] sm:$0xff]  ;;  %v4043_v19 = vpack.c.bf16 %v772_v12, %v764_v11  ;;  %v3789_v25 = vpack.c.bf16 %v769_v17, %v761_v16  ;;  %v4061_v12 = vpack.c.bf16 %v835_v6, %v827_v4  ;;  %v930_v4 = vld [vmem:[%s4391_s24 + $0x1568] sm:$0xff]  ;;  %v932_v6 = vld [vmem:[%s4391_s24 + $0x1578] sm:$0xff] }
 0x17f   : > { %4024 = vmatprep.subr.bf16.mxu1 %v4023_v23  ;;  %v780_v23 = vld [vmem:[%s4391_s24 + $0x10b8] sm:$0xff]  ;;  %v4045_v26 = vpack.c.bf16 %v771_v20, %v763_v18  ;;  %v843_v16 = vld [vmem:[%s4391_s24 + $0x12b0] sm:$0xff]  ;;  %v4063_v17 = vpack.c.bf16 %v852_v10, %v844_v9  ;;  %v866_v20 = vld [vmem:[%s4391_s24 + $0x1368] sm:$0xff] }
 0x180   : > { %v851_v18 = vld [vmem:[%s4391_s24 + $0x12f0] sm:$0xff]  ;;  %v921_v10 = vld [vmem:[%s4391_s24 + $0x1520] sm:$0xff] }
 0x181   : > { %3770 = vmatpush1.bf16.msra.mxu0 %v3769_v29  ;;  %v785_v29 = vld [vmem:[%s4391_s24 + $0x10e0] sm:$0xff] }
 0x182   : > { %4026 = vmatpush1.bf16.msra.mxu1 %v4025_v30  ;;  %3772 = vmatprep.subr.bf16.mxu0 %v3771_v31  ;;  %v779_v30 = vld [vmem:[%s4391_s24 + $0x10b0] sm:$0xff]  ;;  %v4047_v31 = vpack.c.bf16 %v788_v24, %v780_v23  ;;  %v3793_v38 = vpack.c.bf16 %v785_v29, %v777_v28  ;;  %v4065_v24 = vpack.c.bf16 %v851_v18, %v843_v16  ;;  %v946_v16 = vld [vmem:[%s4391_s24 + $0x15e8] sm:$0xff]  ;;  %v948_v18 = vld [vmem:[%s4391_s24 + $0x15f8] sm:$0xff] }
 0x183   : > { %4028 = vmatprep.subr.bf16.mxu1 %v4027_v35  ;;  %v4334_v35 = vld [vmem:[%s4498_s30 + $0x10] sm:$0xff]  ;;  %v4049_v39 = vpack.c.bf16 %v787_v32, %v779_v30  ;;  %v4067_v29 = vpack.c.bf16 %v868_v22, %v860_v21  ;;  %v882_v32 = vld [vmem:[%s4391_s24 + $0x13e8] sm:$0xff]  ;;  %v937_v22 = vld [vmem:[%s4391_s24 + $0x15a0] sm:$0xff] }
 0x184   : > { %v859_v28 = vld [vmem:[%s4391_s24 + $0x1330] sm:$0xff] }
 0x185   : > { %3774 = vmatpush1.bf16.msra.mxu0 %v3773_v41  ;;  %v793_v41 = vld [vmem:[%s4391_s24 + $0x1120] sm:$0xff]  ;;  %v867_v30 = vld [vmem:[%s4391_s24 + $0x1370] sm:$0xff] }
 0x186   : > { %4030 = vmatpush1.bf16.msra.mxu1 %v4029_v42  ;;  %3776 = vmatprep.subr.bf16.mxu0 %v3775_v43  ;;  %v801_v42 = vld [vmem:[%s4391_s24 + $0x1160] sm:$0xff]  ;;  %v795_v43 = vld [vmem:[%s4391_s24 + $0x1130] sm:$0xff]  ;;  %v4069_v36 = vpack.c.bf16 %v867_v30, %v859_v28  ;;  %v962_v28 = vld [vmem:[%s4391_s24 + $0x1668] sm:$0xff] }
 0x187   : > { %4032 = vmatprep.subr.bf16.mxu1 %v4031_v47  ;;  %v818_v47 = vld [vmem:[%s4391_s24 + $0x11e8] sm:$0xff]  ;;  %v3797_v51 = vpack.c.bf16 %v801_v42, %v793_v41  ;;  %v4053_v52 = vpack.c.bf16 %v803_v45, %v795_v43  ;;  %v4071_v41 = vpack.c.bf16 %v884_v34, %v876_v33  ;;  %v883_v42 = vld [vmem:[%s4391_s24 + $0x13f0] sm:$0xff]  ;;  %v892_v45 = vld [vmem:[%s4391_s24 + $0x1438] sm:$0xff] }
 0x188   : > { %v890_v43 = vld [vmem:[%s4391_s24 + $0x1428] sm:$0xff]  ;;  %v964_v30 = vld [vmem:[%s4391_s24 + $0x1678] sm:$0xff]  ;;  %v953_v34 = vld [vmem:[%s4391_s24 + $0x1620] sm:$0xff] }
 0x189   : > { %3778 = vmatpush1.bf16.msra.mxu0 %v3777_v53  ;;  %v3799_v53 = vpack.c.bf16 %v818_v47, %v810_v46  ;;  %v900_v46 = vld [vmem:[%s4391_s24 + $0x1478] sm:$0xff] }
 0x18a   : > { %4034 = vmatpush1.bf16.msra.mxu1 %v4033_v54  ;;  %3780 = vmatprep.subr.bf16.mxu0 %v3779_v55  ;;  %v809_v54 = vld [vmem:[%s4391_s24 + $0x11a0] sm:$0xff] }
 0x18b   : > { %4036 = vmatprep.subr.bf16.mxu1 %v4035_v59  ;;  %v817_v55 = vld [vmem:[%s4391_s24 + $0x11e0] sm:$0xff]  ;;  %v826_v59 = vld [vmem:[%s4391_s24 + $0x1228] sm:$0xff] }
 0x18c   : > { %v3801_v63 = vpack.c.bf16 %v817_v55, %v809_v54  ;;  %v899_v54 = vld [vmem:[%s4391_s24 + $0x1470] sm:$0xff]  ;;  %v906_v55 = vld [vmem:[%s4391_s24 + $0x14a8] sm:$0xff] }
 0x18d   : > { %3782 = vmatpush1.bf16.msra.mxu0 %v3781_v1  ;;  %v3803_v1 = vpack.c.bf16 %v834_v60, %v826_v59  ;;  %v3823_v61 = vpack.c.bf16 %v914_v56, %v906_v55 }
 0x18e   : > { %4038 = vmatpush1.bf16.msra.mxu1 %v4037_v2  ;;  %3784 = vmatprep.subr.bf16.mxu0 %v3783_v3  ;;  %v825_v2 = vld [vmem:[%s4391_s24 + $0x1220] sm:$0xff] }
 0x18f   : > { %4040 = vmatprep.subr.bf16.mxu1 %v4039_v7  ;;  %v833_v3 = vld [vmem:[%s4391_s24 + $0x1260] sm:$0xff]  ;;  %v842_v7 = vld [vmem:[%s4391_s24 + $0x12a8] sm:$0xff] }
 0x190   : > { %v3805_v11 = vpack.c.bf16 %v833_v3, %v825_v2  ;;  %v915_v2 = vld [vmem:[%s4391_s24 + $0x14f0] sm:$0xff]  ;;  %v922_v3 = vld [vmem:[%s4391_s24 + $0x1528] sm:$0xff] }
 0x191   : > { %3786 = vmatpush1.bf16.msra.mxu0 %v3785_v13  ;;  %v3807_v13 = vpack.c.bf16 %v850_v8, %v842_v7  ;;  %v3827_v9 = vpack.c.bf16 %v930_v4, %v922_v3 }
 0x192   : > { %4042 = vmatpush1.bf16.msra.mxu1 %v4041_v14  ;;  %3788 = vmatprep.subr.bf16.mxu0 %v3787_v15  ;;  %v841_v14 = vld [vmem:[%s4391_s24 + $0x12a0] sm:$0xff] }
 0x193   : > { %4044 = vmatprep.subr.bf16.mxu1 %v4043_v19  ;;  %v849_v15 = vld [vmem:[%s4391_s24 + $0x12e0] sm:$0xff]  ;;  %v858_v19 = vld [vmem:[%s4391_s24 + $0x1328] sm:$0xff] }
 0x194   : > { %1973 = vmatmul.mubr.f32.vlgmr.msra.gmra.mrb[2].mxu0 %v4334_v35  ;;  %v3809_v23 = vpack.c.bf16 %v849_v15, %v841_v14  ;;  %v931_v14 = vld [vmem:[%s4391_s24 + $0x1570] sm:$0xff]  ;;  %v938_v15 = vld [vmem:[%s4391_s24 + $0x15a8] sm:$0xff] }
 0x195   : > { %3790 = vmatpush1.bf16.msra.mxu0 %v3789_v25  ;;  %2257 = vmatmul.mubr.f32.vlgmr.msra.gmra.mrb[2].mxu1 %v4334_v35  ;;  %v3811_v25 = vpack.c.bf16 %v866_v20, %v858_v19  ;;  %v3831_v21 = vpack.c.bf16 %v946_v16, %v938_v15 }
 0x196   : > { %4046 = vmatpush1.bf16.msra.mxu1 %v4045_v26  ;;  %3792 = vmatprep.subr.bf16.mxu0 %v3791_v27  ;;  %v857_v26 = vld [vmem:[%s4391_s24 + $0x1320] sm:$0xff] }
 0x197   : > { %4048 = vmatprep.subr.bf16.mxu1 %v4047_v31  ;;  %2043 = vmatprep.mubr.f32.mxu0 %v4335_v48  ;;  %v865_v27 = vld [vmem:[%s4391_s24 + $0x1360] sm:$0xff]  ;;  %v874_v31 = vld [vmem:[%s4391_s24 + $0x13a8] sm:$0xff] }
 0x198   : > { %2327 = vmatprep.mubr.f32.mxu1 %v4335_v48  ;;  %v3813_v35 = vpack.c.bf16 %v865_v27, %v857_v26  ;;  %v3815_v37 = vpack.c.bf16 %v882_v32, %v874_v31  ;;  %v947_v26 = vld [vmem:[%s4391_s24 + $0x15f0] sm:$0xff]  ;;  %v954_v27 = vld [vmem:[%s4391_s24 + $0x1628] sm:$0xff] }
 0x199   : > { %3794 = vmatpush1.bf16.msra.mxu0 %v3793_v38  ;;  %v873_v38 = vld [vmem:[%s4391_s24 + $0x13a0] sm:$0xff]  ;;  %v3835_v33 = vpack.c.bf16 %v962_v28, %v954_v27 }
 0x19a   : > { %4050 = vmatpush1.bf16.msra.mxu1 %v4049_v39  ;;  %3796 = vmatprep.subr.bf16.mxu0 %v3795_v40  ;;  %v881_v39 = vld [vmem:[%s4391_s24 + $0x13e0] sm:$0xff]  ;;  %v875_v40 = vld [vmem:[%s4391_s24 + $0x13b0] sm:$0xff] }
 0x19b   : > { %4052 = vmatprep.subr.bf16.mxu1 %v4051_v44  ;;  %v898_v44 = vld [vmem:[%s4391_s24 + $0x1468] sm:$0xff]  ;;  %v3817_v47 = vpack.c.bf16 %v881_v39, %v873_v38  ;;  %v4073_v48 = vpack.c.bf16 %v883_v42, %v875_v40  ;;  %v963_v38 = vld [vmem:[%s4391_s24 + $0x1670] sm:$0xff]  ;;  %v980_v42 = vld [vmem:[%s4391_s24 + $0x16f8] sm:$0xff] }
 0x19c   : > { %v3819_v49 = vpack.c.bf16 %v898_v44, %v890_v43  ;;  %v970_v39 = vld [vmem:[%s4391_s24 + $0x16a8] sm:$0xff] }
 0x19d   : > { %3798 = vmatpush1.bf16.msra.mxu0 %v3797_v51  ;;  %v897_v51 = vld [vmem:[%s4391_s24 + $0x1460] sm:$0xff]  ;;  %v978_v40 = vld [vmem:[%s4391_s24 + $0x16e8] sm:$0xff] }
 0x19e   : > { %4054 = vmatpush1.bf16.msra.mxu1 %v4053_v52  ;;  %3800 = vmatprep.subr.bf16.mxu0 %v3799_v53  ;;  %v891_v52 = vld [vmem:[%s4391_s24 + $0x1430] sm:$0xff]  ;;  %v4075_v53 = vpack.c.bf16 %v900_v46, %v892_v45  ;;  %v3821_v59 = vpack.c.bf16 %v897_v51, %v889_v50  ;;  %v3839_v45 = vpack.c.bf16 %v978_v40, %v970_v39  ;;  %v969_v46 = vld [vmem:[%s4391_s24 + $0x16a0] sm:$0xff]  ;;  %v986_v51 = vld [vmem:[%s4391_s24 + $0x1728] sm:$0xff] }
 0x19f   : > { %4056 = vmatprep.subr.bf16.mxu1 %v4055_v57  ;;  %v908_v57 = vld [vmem:[%s4391_s24 + $0x14b8] sm:$0xff]  ;;  %v4077_v60 = vpack.c.bf16 %v899_v54, %v891_v52  ;;  %v979_v50 = vld [vmem:[%s4391_s24 + $0x16f0] sm:$0xff]  ;;  %v994_v52 = vld [vmem:[%s4391_s24 + $0x1768] sm:$0xff] }
 0x1a0   : > { %v996_v54 = vld [vmem:[%s4391_s24 + $0x1778] sm:$0xff] }
 0x1a1   : > { %3802 = vmatpush1.bf16.msra.mxu0 %v3801_v63  ;;  %v913_v63 = vld [vmem:[%s4391_s24 + $0x14e0] sm:$0xff]  ;;  %v1060_v39 = vld [vmem:[%s4391_s24 + $0x1978] sm:$0xff] }
 0x1a2   : > { %4058 = vmatpush1.bf16.msra.mxu1 %v4057_v0  ;;  %3804 = vmatprep.subr.bf16.mxu0 %v3803_v1  ;;  %v907_v0 = vld [vmem:[%s4391_s24 + $0x14b0] sm:$0xff]  ;;  %v4079_v1 = vpack.c.bf16 %v916_v58, %v908_v57  ;;  %v3825_v7 = vpack.c.bf16 %v913_v63, %v905_v62  ;;  %v3843_v57 = vpack.c.bf16 %v994_v52, %v986_v51  ;;  %v985_v58 = vld [vmem:[%s4391_s24 + $0x1720] sm:$0xff]  ;;  %v1002_v63 = vld [vmem:[%s4391_s24 + $0x17a8] sm:$0xff] }
 0x1a3   : > { %4060 = vmatprep.subr.bf16.mxu1 %v4059_v5  ;;  %v924_v5 = vld [vmem:[%s4391_s24 + $0x1538] sm:$0xff]  ;;  %v4081_v8 = vpack.c.bf16 %v915_v2, %v907_v0  ;;  %v995_v62 = vld [vmem:[%s4391_s24 + $0x1770] sm:$0xff]  ;;  %v1010_v0 = vld [vmem:[%s4391_s24 + $0x17e8] sm:$0xff] }
 0x1a4   : > { %v1012_v2 = vld [vmem:[%s4391_s24 + $0x17f8] sm:$0xff] }
 0x1a5   : > { %3806 = vmatpush1.bf16.msra.mxu0 %v3805_v11  ;;  %v929_v11 = vld [vmem:[%s4391_s24 + $0x1560] sm:$0xff]  ;;  %v1068_v51 = vld [vmem:[%s4391_s24 + $0x19b8] sm:$0xff] }
 0x1a6   : > { %4062 = vmatpush1.bf16.msra.mxu1 %v4061_v12  ;;  %3808 = vmatprep.subr.bf16.mxu0 %v3807_v13  ;;  %v923_v12 = vld [vmem:[%s4391_s24 + $0x1530] sm:$0xff]  ;;  %v4083_v13 = vpack.c.bf16 %v932_v6, %v924_v5  ;;  %v3829_v19 = vpack.c.bf16 %v929_v11, %v921_v10  ;;  %v3847_v5 = vpack.c.bf16 %v1010_v0, %v1002_v63  ;;  %v1001_v6 = vld [vmem:[%s4391_s24 + $0x17a0] sm:$0xff]  ;;  %v1018_v11 = vld [vmem:[%s4391_s24 + $0x1828] sm:$0xff] }
 0x1a7   : > { %4064 = vmatprep.subr.bf16.mxu1 %v4063_v17  ;;  %v940_v17 = vld [vmem:[%s4391_s24 + $0x15b8] sm:$0xff]  ;;  %v4085_v20 = vpack.c.bf16 %v931_v14, %v923_v12  ;;  %v1011_v10 = vld [vmem:[%s4391_s24 + $0x17f0] sm:$0xff]  ;;  %v1026_v12 = vld [vmem:[%s4391_s24 + $0x1868] sm:$0xff] }
 0x1a8   : > { %v1028_v14 = vld [vmem:[%s4391_s24 + $0x1878] sm:$0xff] }
 0x1a9   : > { %3810 = vmatpush1.bf16.msra.mxu0 %v3809_v23  ;;  %v945_v23 = vld [vmem:[%s4391_s24 + $0x15e0] sm:$0xff]  ;;  %v1076_v52 = vld [vmem:[%s4391_s24 + $0x19f8] sm:$0xff] }
 0x1aa   : > { %4066 = vmatpush1.bf16.msra.mxu1 %v4065_v24  ;;  %3812 = vmatprep.subr.bf16.mxu0 %v3811_v25  ;;  %v939_v24 = vld [vmem:[%s4391_s24 + $0x15b0] sm:$0xff]  ;;  %v4087_v25 = vpack.c.bf16 %v948_v18, %v940_v17  ;;  %v3833_v31 = vpack.c.bf16 %v945_v23, %v937_v22  ;;  %v3851_v17 = vpack.c.bf16 %v1026_v12, %v1018_v11  ;;  %v1017_v18 = vld [vmem:[%s4391_s24 + $0x1820] sm:$0xff]  ;;  %v1034_v23 = vld [vmem:[%s4391_s24 + $0x18a8] sm:$0xff] }
 0x1ab   : > { %4068 = vmatprep.subr.bf16.mxu1 %v4067_v29  ;;  %v956_v29 = vld [vmem:[%s4391_s24 + $0x1638] sm:$0xff]  ;;  %v4089_v32 = vpack.c.bf16 %v947_v26, %v939_v24  ;;  %v1027_v22 = vld [vmem:[%s4391_s24 + $0x1870] sm:$0xff]  ;;  %v1042_v24 = vld [vmem:[%s4391_s24 + $0x18e8] sm:$0xff] }
 0x1ac   : > { %v1044_v26 = vld [vmem:[%s4391_s24 + $0x18f8] sm:$0xff] }
 0x1ad   : > { %3814 = vmatpush1.bf16.msra.mxu0 %v3813_v35  ;;  %v961_v35 = vld [vmem:[%s4391_s24 + $0x1660] sm:$0xff]  ;;  %v1084_v63 = vld [vmem:[%s4391_s24 + $0x1a38] sm:$0xff] }
 0x1ae   : > { %4070 = vmatpush1.bf16.msra.mxu1 %v4069_v36  ;;  %3816 = vmatprep.subr.bf16.mxu0 %v3815_v37  ;;  %v955_v36 = vld [vmem:[%s4391_s24 + $0x1630] sm:$0xff]  ;;  %v4091_v37 = vpack.c.bf16 %v964_v30, %v956_v29  ;;  %v3837_v43 = vpack.c.bf16 %v961_v35, %v953_v34  ;;  %v3855_v29 = vpack.c.bf16 %v1042_v24, %v1034_v23  ;;  %v1033_v30 = vld [vmem:[%s4391_s24 + $0x18a0] sm:$0xff]  ;;  %v1050_v35 = vld [vmem:[%s4391_s24 + $0x1928] sm:$0xff] }
 0x1af   : > { %4072 = vmatprep.subr.bf16.mxu1 %v4071_v41  ;;  %v972_v41 = vld [vmem:[%s4391_s24 + $0x16b8] sm:$0xff]  ;;  %v4093_v44 = vpack.c.bf16 %v963_v38, %v955_v36  ;;  %v1043_v34 = vld [vmem:[%s4391_s24 + $0x18f0] sm:$0xff]  ;;  %v1058_v36 = vld [vmem:[%s4391_s24 + $0x1968] sm:$0xff] }
 0x1b0   : > { %v1052_v38 = vld [vmem:[%s4391_s24 + $0x1938] sm:$0xff] }
 0x1b1   : > { %3818 = vmatpush1.bf16.msra.mxu0 %v3817_v47  ;;  %v977_v47 = vld [vmem:[%s4391_s24 + $0x16e0] sm:$0xff]  ;;  %v1092_v0 = vld [vmem:[%s4391_s24 + $0x1a78] sm:$0xff] }
 0x1b2   : > { %4074 = vmatpush1.bf16.msra.mxu1 %v4073_v48  ;;  %3820 = vmatprep.subr.bf16.mxu0 %v3819_v49  ;;  %v971_v48 = vld [vmem:[%s4391_s24 + $0x16b0] sm:$0xff]  ;;  %v4095_v49 = vpack.c.bf16 %v980_v42, %v972_v41  ;;  %v3841_v55 = vpack.c.bf16 %v977_v47, %v969_v46  ;;  %v3859_v42 = vpack.c.bf16 %v1058_v36, %v1050_v35  ;;  %v1100_v11 = vld [vmem:[%s4391_s24 + $0x1ab8] sm:$0xff]  ;;  %v1138_v35 = vld [vmem:[%s4391_s24 + $0x1be8] sm:$0xff] }
 0x1b3   : > { %4076 = vmatprep.subr.bf16.mxu1 %v4075_v53  ;;  %v988_v53 = vld [vmem:[%s4391_s24 + $0x1738] sm:$0xff]  ;;  %v4097_v56 = vpack.c.bf16 %v979_v50, %v971_v48  ;;  %v4115_v46 = vpack.c.bf16 %v1060_v39, %v1052_v38  ;;  %v1059_v47 = vld [vmem:[%s4391_s24 + $0x1970] sm:$0xff]  ;;  %v1066_v48 = vld [vmem:[%s4391_s24 + $0x19a8] sm:$0xff] }
 0x1b4   : > { %v4337_v50 = vld [vmem:[%s4498_s30 + $0x38] sm:$0xff] }
 0x1b5   : > { %3822 = vmatpush1.bf16.msra.mxu0 %v3821_v59  ;;  %v993_v59 = vld [vmem:[%s4391_s24 + $0x1760] sm:$0xff]  ;;  %v1108_v12 = vld [vmem:[%s4391_s24 + $0x1af8] sm:$0xff] }
 0x1b6   : > { %4078 = vmatpush1.bf16.msra.mxu1 %v4077_v60  ;;  %3824 = vmatprep.subr.bf16.mxu0 %v3823_v61  ;;  %v987_v60 = vld [vmem:[%s4391_s24 + $0x1730] sm:$0xff]  ;;  %v4099_v61 = vpack.c.bf16 %v996_v54, %v988_v53  ;;  %v3845_v3 = vpack.c.bf16 %v993_v59, %v985_v58  ;;  %v4119_v59 = vpack.c.bf16 %v1076_v52, %v1068_v51  ;;  %v1116_v23 = vld [vmem:[%s4391_s24 + $0x1b38] sm:$0xff] }
 0x1b7   : > { %4080 = vmatprep.subr.bf16.mxu1 %v4079_v1  ;;  %v1004_v1 = vld [vmem:[%s4391_s24 + $0x17b8] sm:$0xff]  ;;  %v4101_v4 = vpack.c.bf16 %v995_v62, %v987_v60  ;;  %v1067_v58 = vld [vmem:[%s4391_s24 + $0x19b0] sm:$0xff]  ;;  %v1090_v62 = vld [vmem:[%s4391_s24 + $0x1a68] sm:$0xff] }
 0x1b8   : > { %v1075_v60 = vld [vmem:[%s4391_s24 + $0x19f0] sm:$0xff]  ;;  %v1124_v24 = vld [vmem:[%s4391_s24 + $0x1b78] sm:$0xff] }
 0x1b9   : > { %3826 = vmatpush1.bf16.msra.mxu0 %v3825_v7  ;;  %v1009_v7 = vld [vmem:[%s4391_s24 + $0x17e0] sm:$0xff]  ;;  %v1132_v38 = vld [vmem:[%s4391_s24 + $0x1bb8] sm:$0xff] }
 0x1ba   : > { %4082 = vmatpush1.bf16.msra.mxu1 %v4081_v8  ;;  %3828 = vmatprep.subr.bf16.mxu0 %v3827_v9  ;;  %v1003_v8 = vld [vmem:[%s4391_s24 + $0x17b0] sm:$0xff]  ;;  %v4103_v9 = vpack.c.bf16 %v1012_v2, %v1004_v1  ;;  %v3849_v15 = vpack.c.bf16 %v1009_v7, %v1001_v6  ;;  %v4121_v2 = vpack.c.bf16 %v1075_v60, %v1067_v58  ;;  %v1140_v39 = vld [vmem:[%s4391_s24 + $0x1bf8] sm:$0xff] }
 0x1bb   : > { %4084 = vmatprep.subr.bf16.mxu1 %v4083_v13  ;;  %v1020_v13 = vld [vmem:[%s4391_s24 + $0x1838] sm:$0xff]  ;;  %v4105_v16 = vpack.c.bf16 %v1011_v10, %v1003_v8  ;;  %v1083_v6 = vld [vmem:[%s4391_s24 + $0x1a30] sm:$0xff]  ;;  %v4123_v7 = vpack.c.bf16 %v1092_v0, %v1084_v63  ;;  %v1106_v10 = vld [vmem:[%s4391_s24 + $0x1ae8] sm:$0xff] }
 0x1bc   : > { %v1091_v8 = vld [vmem:[%s4391_s24 + $0x1a70] sm:$0xff]  ;;  %v1148_v51 = vld [vmem:[%s4391_s24 + $0x1c38] sm:$0xff] }
 0x1bd   : > { %3830 = vmatpush1.bf16.msra.mxu0 %v3829_v19  ;;  %v1025_v19 = vld [vmem:[%s4391_s24 + $0x1860] sm:$0xff]  ;;  %v1156_v52 = vld [vmem:[%s4391_s24 + $0x1c78] sm:$0xff]  ;;  %v1147_v58 = vld [vmem:[%s4391_s24 + $0x1c30] sm:$0xff] }
 0x1be   : > { %4086 = vmatpush1.bf16.msra.mxu1 %v4085_v20  ;;  %3832 = vmatprep.subr.bf16.mxu0 %v3831_v21  ;;  %v1019_v20 = vld [vmem:[%s4391_s24 + $0x1830] sm:$0xff]  ;;  %v4107_v21 = vpack.c.bf16 %v1028_v14, %v1020_v13  ;;  %v3853_v27 = vpack.c.bf16 %v1025_v19, %v1017_v18  ;;  %v4125_v14 = vpack.c.bf16 %v1091_v8, %v1083_v6  ;;  %v1164_v63 = vld [vmem:[%s4391_s24 + $0x1cb8] sm:$0xff] }
 0x1bf   : > { %4088 = vmatprep.subr.bf16.mxu1 %v4087_v25  ;;  %v1036_v25 = vld [vmem:[%s4391_s24 + $0x18b8] sm:$0xff]  ;;  %v4109_v28 = vpack.c.bf16 %v1027_v22, %v1019_v20  ;;  %v1099_v18 = vld [vmem:[%s4391_s24 + $0x1ab0] sm:$0xff]  ;;  %v4127_v19 = vpack.c.bf16 %v1108_v12, %v1100_v11  ;;  %v1122_v22 = vld [vmem:[%s4391_s24 + $0x1b68] sm:$0xff] }
 0x1c0   : > { %v1107_v20 = vld [vmem:[%s4391_s24 + $0x1af0] sm:$0xff]  ;;  %v1172_v0 = vld [vmem:[%s4391_s24 + $0x1cf8] sm:$0xff] }
 0x1c1   : > { %3834 = vmatpush1.bf16.msra.mxu0 %v3833_v31  ;;  %v1041_v31 = vld [vmem:[%s4391_s24 + $0x18e0] sm:$0xff]  ;;  %v1155_v60 = vld [vmem:[%s4391_s24 + $0x1c70] sm:$0xff]  ;;  %v1180_v11 = vld [vmem:[%s4391_s24 + $0x1d38] sm:$0xff] }
 0x1c2   : > { %4090 = vmatpush1.bf16.msra.mxu1 %v4089_v32  ;;  %3836 = vmatprep.subr.bf16.mxu0 %v3835_v33  ;;  %v1035_v32 = vld [vmem:[%s4391_s24 + $0x18b0] sm:$0xff]  ;;  %v4111_v33 = vpack.c.bf16 %v1044_v26, %v1036_v25  ;;  %v3857_v40 = vpack.c.bf16 %v1041_v31, %v1033_v30  ;;  %v4129_v26 = vpack.c.bf16 %v1107_v20, %v1099_v18  ;;  %v1188_v12 = vld [vmem:[%s4391_s24 + $0x1d78] sm:$0xff] }
 0x1c3   : > { %4092 = vmatprep.subr.bf16.mxu1 %v4091_v37  ;;  %v4336_v37 = vld [vmem:[%s4498_s30 + $0x20] sm:$0xff]  ;;  %v4113_v41 = vpack.c.bf16 %v1043_v34, %v1035_v32  ;;  %v1115_v30 = vld [vmem:[%s4391_s24 + $0x1b30] sm:$0xff]  ;;  %v4131_v32 = vpack.c.bf16 %v1124_v24, %v1116_v23  ;;  %v1130_v34 = vld [vmem:[%s4391_s24 + $0x1ba8] sm:$0xff] }
 0x1c4   : > { %v1163_v6 = vld [vmem:[%s4391_s24 + $0x1cb0] sm:$0xff]  ;;  %v1196_v23 = vld [vmem:[%s4391_s24 + $0x1db8] sm:$0xff] }
 0x1c5   : > { %3838 = vmatpush1.bf16.msra.mxu0 %v3837_v43  ;;  %v1049_v43 = vld [vmem:[%s4391_s24 + $0x1920] sm:$0xff]  ;;  %v1171_v8 = vld [vmem:[%s4391_s24 + $0x1cf0] sm:$0xff]  ;;  %v1204_v24 = vld [vmem:[%s4391_s24 + $0x1df8] sm:$0xff] }
 0x1c6   : > { %4094 = vmatpush1.bf16.msra.mxu1 %v4093_v44  ;;  %3840 = vmatprep.subr.bf16.mxu0 %v3839_v45  ;;  %v1057_v44 = vld [vmem:[%s4391_s24 + $0x1960] sm:$0xff]  ;;  %v1051_v45 = vld [vmem:[%s4391_s24 + $0x1930] sm:$0xff] }
 0x1c7   : > { %4096 = vmatprep.subr.bf16.mxu1 %v4095_v49  ;;  %v1074_v49 = vld [vmem:[%s4391_s24 + $0x19e8] sm:$0xff]  ;;  %v3861_v53 = vpack.c.bf16 %v1057_v44, %v1049_v43  ;;  %v4117_v54 = vpack.c.bf16 %v1059_v47, %v1051_v45  ;;  %v3879_v43 = vpack.c.bf16 %v1138_v35, %v1130_v34  ;;  %v1129_v44 = vld [vmem:[%s4391_s24 + $0x1ba0] sm:$0xff]  ;;  %v4135_v47 = vpack.c.bf16 %v1140_v39, %v1132_v38  ;;  %v1179_v18 = vld [vmem:[%s4391_s24 + $0x1d30] sm:$0xff] }
 0x1c8   : > { %v1137_v45 = vld [vmem:[%s4391_s24 + $0x1be0] sm:$0xff]  ;;  %v1187_v20 = vld [vmem:[%s4391_s24 + $0x1d70] sm:$0xff]  ;;  %v1210_v34 = vld [vmem:[%s4391_s24 + $0x1e28] sm:$0xff] }
 0x1c9   : > { %3842 = vmatpush1.bf16.msra.mxu0 %v3841_v55  ;;  %v3863_v55 = vpack.c.bf16 %v1074_v49, %v1066_v48  ;;  %v1139_v48 = vld [vmem:[%s4391_s24 + $0x1bf0] sm:$0xff]  ;;  %v1146_v49 = vld [vmem:[%s4391_s24 + $0x1c28] sm:$0xff]  ;;  %v1212_v38 = vld [vmem:[%s4391_s24 + $0x1e38] sm:$0xff] }
 0x1ca   : > { %4098 = vmatpush1.bf16.msra.mxu1 %v4097_v56  ;;  %3844 = vmatprep.subr.bf16.mxu0 %v3843_v57  ;;  %v1065_v56 = vld [vmem:[%s4391_s24 + $0x19a0] sm:$0xff]  ;;  %v1218_v35 = vld [vmem:[%s4391_s24 + $0x1e68] sm:$0xff]  ;;  %v1220_v39 = vld [vmem:[%s4391_s24 + $0x1e78] sm:$0xff] }
 0x1cb   : > { %4100 = vmatprep.subr.bf16.mxu1 %v4099_v61  ;;  %v1073_v57 = vld [vmem:[%s4391_s24 + $0x19e0] sm:$0xff]  ;;  %v1082_v61 = vld [vmem:[%s4391_s24 + $0x1a28] sm:$0xff] }
 0x1cc   : > { %v3865_v1 = vpack.c.bf16 %v1073_v57, %v1065_v56  ;;  %v1145_v56 = vld [vmem:[%s4391_s24 + $0x1c20] sm:$0xff] }
 0x1cd   : > { %3846 = vmatpush1.bf16.msra.mxu0 %v3845_v3  ;;  %v3867_v3 = vpack.c.bf16 %v1090_v62, %v1082_v61  ;;  %v1153_v57 = vld [vmem:[%s4391_s24 + $0x1c60] sm:$0xff]  ;;  %v1162_v61 = vld [vmem:[%s4391_s24 + $0x1ca8] sm:$0xff] }
 0x1ce   : > { %4102 = vmatpush1.bf16.msra.mxu1 %v4101_v4  ;;  %3848 = vmatprep.subr.bf16.mxu0 %v3847_v5  ;;  %v1081_v4 = vld [vmem:[%s4391_s24 + $0x1a20] sm:$0xff]  ;;  %v1170_v62 = vld [vmem:[%s4391_s24 + $0x1ce8] sm:$0xff] }
 0x1cf   : > { %4104 = vmatprep.subr.bf16.mxu1 %v4103_v9  ;;  %v1089_v5 = vld [vmem:[%s4391_s24 + $0x1a60] sm:$0xff]  ;;  %v1098_v9 = vld [vmem:[%s4391_s24 + $0x1aa8] sm:$0xff] }
 0x1d0   : > { %v3869_v13 = vpack.c.bf16 %v1089_v5, %v1081_v4  ;;  %v1161_v4 = vld [vmem:[%s4391_s24 + $0x1ca0] sm:$0xff] }
 0x1d1   : > { %3850 = vmatpush1.bf16.msra.mxu0 %v3849_v15  ;;  %v3871_v15 = vpack.c.bf16 %v1106_v10, %v1098_v9  ;;  %v1169_v5 = vld [vmem:[%s4391_s24 + $0x1ce0] sm:$0xff]  ;;  %v1178_v9 = vld [vmem:[%s4391_s24 + $0x1d28] sm:$0xff] }
 0x1d2   : > { %4106 = vmatpush1.bf16.msra.mxu1 %v4105_v16  ;;  %3852 = vmatprep.subr.bf16.mxu0 %v3851_v17  ;;  %v1097_v16 = vld [vmem:[%s4391_s24 + $0x1aa0] sm:$0xff]  ;;  %v1186_v10 = vld [vmem:[%s4391_s24 + $0x1d68] sm:$0xff] }
 0x1d3   : > { %4108 = vmatprep.subr.bf16.mxu1 %v4107_v21  ;;  %v1105_v17 = vld [vmem:[%s4391_s24 + $0x1ae0] sm:$0xff]  ;;  %v1114_v21 = vld [vmem:[%s4391_s24 + $0x1b28] sm:$0xff] }
 0x1d4   : > { %2044 = vmatmul.mubr.f32.vlgmr.msra.gmra.mrb[2].mxu0 %v4336_v37  ;;  %v3873_v25 = vpack.c.bf16 %v1105_v17, %v1097_v16  ;;  %v1177_v16 = vld [vmem:[%s4391_s24 + $0x1d20] sm:$0xff] }
 0x1d5   : > { %3854 = vmatpush1.bf16.msra.mxu0 %v3853_v27  ;;  %2328 = vmatmul.mubr.f32.vlgmr.msra.gmra.mrb[2].mxu1 %v4336_v37  ;;  %v3875_v27 = vpack.c.bf16 %v1122_v22, %v1114_v21  ;;  %v1185_v17 = vld [vmem:[%s4391_s24 + $0x1d60] sm:$0xff]  ;;  %v1194_v21 = vld [vmem:[%s4391_s24 + $0x1da8] sm:$0xff] }
 0x1d6   : > { %4110 = vmatpush1.bf16.msra.mxu1 %v4109_v28  ;;  %3856 = vmatprep.subr.bf16.mxu0 %v3855_v29  ;;  %v1113_v28 = vld [vmem:[%s4391_s24 + $0x1b20] sm:$0xff]  ;;  %v1202_v22 = vld [vmem:[%s4391_s24 + $0x1de8] sm:$0xff] }
 0x1d7   : > { %4112 = vmatprep.subr.bf16.mxu1 %v4111_v33  ;;  %2114 = vmatprep.mubr.f32.mxu0 %v4337_v50  ;;  %v1121_v29 = vld [vmem:[%s4391_s24 + $0x1b60] sm:$0xff]  ;;  %v1123_v33 = vld [vmem:[%s4391_s24 + $0x1b70] sm:$0xff] }
 0x1d8   : > { %2398 = vmatprep.mubr.f32.mxu1 %v4337_v50  ;;  %v1154_v50 = vld [vmem:[%s4391_s24 + $0x1c68] sm:$0xff] }
 0x1d9   : > { %3858 = vmatpush1.bf16.msra.mxu0 %v3857_v40 }
 0x1da   : > { %4114 = vmatpush1.bf16.msra.mxu1 %v4113_v41  ;;  %3860 = vmatprep.subr.bf16.mxu0 %v3859_v42  ;;  %v3877_v41 = vpack.c.bf16 %v1121_v29, %v1113_v28  ;;  %v4133_v42 = vpack.c.bf16 %v1123_v33, %v1115_v30  ;;  %v1193_v28 = vld [vmem:[%s4391_s24 + $0x1da0] sm:$0xff]  ;;  %v1195_v30 = vld [vmem:[%s4391_s24 + $0x1db0] sm:$0xff] }
 0x1db   : > { %4116 = vmatprep.subr.bf16.mxu1 %v4115_v46  ;;  %v1131_v46 = vld [vmem:[%s4391_s24 + $0x1bb0] sm:$0xff]  ;;  %v1201_v29 = vld [vmem:[%s4391_s24 + $0x1de0] sm:$0xff] }
 0x1dc   : > { %v1203_v33 = vld [vmem:[%s4391_s24 + $0x1df0] sm:$0xff] }
 0x1dd   : > { %3862 = vmatpush1.bf16.msra.mxu0 %v3861_v53  ;;  %v3881_v53 = vpack.c.bf16 %v1137_v45, %v1129_v44  ;;  %v1209_v44 = vld [vmem:[%s4391_s24 + $0x1e20] sm:$0xff] }
 0x1de   : > { %4118 = vmatpush1.bf16.msra.mxu1 %v4117_v54  ;;  %3864 = vmatprep.subr.bf16.mxu0 %v3863_v55  ;;  %v4137_v54 = vpack.c.bf16 %v1139_v48, %v1131_v46  ;;  %v3883_v55 = vpack.c.bf16 %v1154_v50, %v1146_v49  ;;  %v1217_v45 = vld [vmem:[%s4391_s24 + $0x1e60] sm:$0xff]  ;;  %v1211_v46 = vld [vmem:[%s4391_s24 + $0x1e30] sm:$0xff]  ;;  %v1226_v49 = vld [vmem:[%s4391_s24 + $0x1ea8] sm:$0xff] }
 0x1df   : > { %4120 = vmatprep.subr.bf16.mxu1 %v4119_v59  ;;  %v4139_v59 = vpack.c.bf16 %v1156_v52, %v1148_v51  ;;  %v1219_v48 = vld [vmem:[%s4391_s24 + $0x1e70] sm:$0xff]  ;;  %v1234_v50 = vld [vmem:[%s4391_s24 + $0x1ee8] sm:$0xff]  ;;  %v1228_v51 = vld [vmem:[%s4391_s24 + $0x1eb8] sm:$0xff] }
 0x1e0   : > { %v1236_v52 = vld [vmem:[%s4391_s24 + $0x1ef8] sm:$0xff] }
 0x1e1   : > { %3866 = vmatpush1.bf16.msra.mxu0 %v3865_v1  ;;  %v3885_v1 = vpack.c.bf16 %v1153_v57, %v1145_v56  ;;  %v1225_v56 = vld [vmem:[%s4391_s24 + $0x1ea0] sm:$0xff] }
 0x1e2   : > { %4122 = vmatpush1.bf16.msra.mxu1 %v4121_v2  ;;  %3868 = vmatprep.subr.bf16.mxu0 %v3867_v3  ;;  %v4141_v2 = vpack.c.bf16 %v1155_v60, %v1147_v58  ;;  %v3887_v3 = vpack.c.bf16 %v1170_v62, %v1162_v61  ;;  %v1233_v57 = vld [vmem:[%s4391_s24 + $0x1ee0] sm:$0xff]  ;;  %v1227_v58 = vld [vmem:[%s4391_s24 + $0x1eb0] sm:$0xff]  ;;  %v1242_v61 = vld [vmem:[%s4391_s24 + $0x1f28] sm:$0xff] }
 0x1e3   : > { %4124 = vmatprep.subr.bf16.mxu1 %v4123_v7  ;;  %v4143_v7 = vpack.c.bf16 %v1172_v0, %v1164_v63  ;;  %v1235_v60 = vld [vmem:[%s4391_s24 + $0x1ef0] sm:$0xff]  ;;  %v1250_v62 = vld [vmem:[%s4391_s24 + $0x1f68] sm:$0xff]  ;;  %v1244_v63 = vld [vmem:[%s4391_s24 + $0x1f38] sm:$0xff] }
 0x1e4   : > { %v1252_v0 = vld [vmem:[%s4391_s24 + $0x1f78] sm:$0xff] }
 0x1e5   : > { %3870 = vmatpush1.bf16.msra.mxu0 %v3869_v13  ;;  %v3889_v13 = vpack.c.bf16 %v1169_v5, %v1161_v4  ;;  %v1241_v4 = vld [vmem:[%s4391_s24 + $0x1f20] sm:$0xff] }
 0x1e6   : > { %4126 = vmatpush1.bf16.msra.mxu1 %v4125_v14  ;;  %3872 = vmatprep.subr.bf16.mxu0 %v3871_v15  ;;  %v4145_v14 = vpack.c.bf16 %v1171_v8, %v1163_v6  ;;  %v3891_v15 = vpack.c.bf16 %v1186_v10, %v1178_v9  ;;  %v1249_v5 = vld [vmem:[%s4391_s24 + $0x1f60] sm:$0xff]  ;;  %v1243_v6 = vld [vmem:[%s4391_s24 + $0x1f30] sm:$0xff]  ;;  %v1258_v9 = vld [vmem:[%s4391_s24 + $0x1fa8] sm:$0xff] }
 0x1e7   : > { %v5374_v31 = vpop.f32.mrb[0].mxu0  ;;  %4128 = vmatprep.subr.bf16.mxu1 %v4127_v19  ;;  %v4147_v19 = vpack.c.bf16 %v1188_v12, %v1180_v11  ;;  %v1251_v8 = vld [vmem:[%s4391_s24 + $0x1f70] sm:$0xff]  ;;  %v1266_v10 = vld [vmem:[%s4391_s24 + $0x1fe8] sm:$0xff]  ;;  %v1260_v11 = vld [vmem:[%s4391_s24 + $0x1fb8] sm:$0xff] }
 0x1e8   : > { %v5379_v36 = vpop.f32.mrb[0].mxu1  ;;  %v5381_v37 = vpop.f32.mrb[1].mxu0  ;;  %v1268_v12 = vld [vmem:[%s4391_s24 + $0x1ff8] sm:$0xff]  ;;  %2409 = vst [vmem:[#allocation2] sm:$0xff] (!%p3000_p5), %v5374_v31 }
 0x1e9   : > { %v5385_v40 = vpop.f32.mrb[1].mxu1  ;;  %3874 = vmatpush1.bf16.msra.mxu0 %v3873_v25  ;;  %v3893_v25 = vpack.c.bf16 %v1185_v17, %v1177_v16  ;;  %v1257_v16 = vld [vmem:[%s4391_s24 + $0x1fa0] sm:$0xff]  ;;  %2410 = vst [vmem:[#allocation2 + $0x8] sm:$0xff] (!%p3000_p5), %v5381_v37  ;;  %2411 = vst [vmem:[#allocation2 + $0x10] sm:$0xff] (!%p3000_p5), %v5379_v36 }
 0x1ea   : > { %4130 = vmatpush1.bf16.msra.mxu1 %v4129_v26  ;;  %3876 = vmatprep.subr.bf16.mxu0 %v3875_v27  ;;  %v4149_v26 = vpack.c.bf16 %v1187_v20, %v1179_v18  ;;  %v3895_v27 = vpack.c.bf16 %v1202_v22, %v1194_v21  ;;  %v1265_v17 = vld [vmem:[%s4391_s24 + $0x1fe0] sm:$0xff]  ;;  %v4167_v18 = vpack.c.bf16 %v1268_v12, %v1260_v11  ;;  %v1267_v20 = vld [vmem:[%s4391_s24 + $0x1ff0] sm:$0xff] }
 0x1eb   : > { %4132 = vmatprep.subr.bf16.mxu1 %v4131_v32  ;;  %v4151_v32 = vpack.c.bf16 %v1204_v24, %v1196_v23  ;;  %v3913_v21 = vpack.c.bf16 %v1265_v17, %v1257_v16  ;;  %v4338_v23 = vld [vmem:[%s4498_s30 + $0x30] sm:$0xff]  ;;  %2412 = vst [vmem:[#allocation2 + $0x18] sm:$0xff] (!%p3000_p5), %v5385_v40 }
 0x1ed   : > { %3878 = vmatpush1.bf16.msra.mxu0 %v3877_v41  ;;  %v3897_v41 = vpack.c.bf16 %v1201_v29, %v1193_v28 }
 0x1ee   : > { %4134 = vmatpush1.bf16.msra.mxu1 %v4133_v42  ;;  %3880 = vmatprep.subr.bf16.mxu0 %v3879_v43  ;;  %v4153_v42 = vpack.c.bf16 %v1203_v33, %v1195_v30  ;;  %v3899_v43 = vpack.c.bf16 %v1218_v35, %v1210_v34 }
 0x1ef   : > { %4136 = vmatprep.subr.bf16.mxu1 %v4135_v47  ;;  %v4155_v47 = vpack.c.bf16 %v1220_v39, %v1212_v38 }
 0x1f1   : > { %3882 = vmatpush1.bf16.msra.mxu0 %v3881_v53  ;;  %v3901_v53 = vpack.c.bf16 %v1217_v45, %v1209_v44 }
 0x1f2   : > { %4138 = vmatpush1.bf16.msra.mxu1 %v4137_v54  ;;  %3884 = vmatprep.subr.bf16.mxu0 %v3883_v55  ;;  %v4157_v54 = vpack.c.bf16 %v1219_v48, %v1211_v46  ;;  %v3903_v55 = vpack.c.bf16 %v1234_v50, %v1226_v49 }
 0x1f3   : > { %4140 = vmatprep.subr.bf16.mxu1 %v4139_v59  ;;  %v4159_v59 = vpack.c.bf16 %v1236_v52, %v1228_v51 }
 0x1f5   : > { %3886 = vmatpush1.bf16.msra.mxu0 %v3885_v1  ;;  %v3905_v1 = vpack.c.bf16 %v1233_v57, %v1225_v56 }
 0x1f6   : > { %4142 = vmatpush1.bf16.msra.mxu1 %v4141_v2  ;;  %3888 = vmatprep.subr.bf16.mxu0 %v3887_v3  ;;  %v4161_v2 = vpack.c.bf16 %v1235_v60, %v1227_v58  ;;  %v3907_v3 = vpack.c.bf16 %v1250_v62, %v1242_v61 }
 0x1f7   : > { %4144 = vmatprep.subr.bf16.mxu1 %v4143_v7  ;;  %v4163_v7 = vpack.c.bf16 %v1252_v0, %v1244_v63 }
 0x1f9   : > { %3890 = vmatpush1.bf16.msra.mxu0 %v3889_v13  ;;  %v3909_v13 = vpack.c.bf16 %v1249_v5, %v1241_v4 }
 0x1fa   : > { %4146 = vmatpush1.bf16.msra.mxu1 %v4145_v14  ;;  %3892 = vmatprep.subr.bf16.mxu0 %v3891_v15  ;;  %v4165_v14 = vpack.c.bf16 %v1251_v8, %v1243_v6  ;;  %v3911_v15 = vpack.c.bf16 %v1266_v10, %v1258_v9 }
 0x1fb   : > { %4148 = vmatprep.subr.bf16.mxu1 %v4147_v19  ;;  %v1259_v19 = vld [vmem:[%s4391_s24 + $0x1fb0] sm:$0xff] }
 0x1fc   : > { %v4169_v22 = vpack.c.bf16 %v1267_v20, %v1259_v19 }
 0x1fd   : > { %3894 = vmatpush1.bf16.msra.mxu0 %v3893_v25 }
 0x1fe   : > { %4150 = vmatpush1.bf16.msra.mxu1 %v4149_v26  ;;  %3896 = vmatprep.subr.bf16.mxu0 %v3895_v27 }
 0x1ff   : > { %4152 = vmatprep.subr.bf16.mxu1 %v4151_v32 }
 0x201   : > { %3898 = vmatpush1.bf16.msra.mxu0 %v3897_v41 }
 0x202   : > { %4154 = vmatpush1.bf16.msra.mxu1 %v4153_v42  ;;  %3900 = vmatprep.subr.bf16.mxu0 %v3899_v43 }
 0x203   : > { %4156 = vmatprep.subr.bf16.mxu1 %v4155_v47 }
 0x205   : > { %3902 = vmatpush1.bf16.msra.mxu0 %v3901_v53 }
 0x206   : > { %4158 = vmatpush1.bf16.msra.mxu1 %v4157_v54  ;;  %3904 = vmatprep.subr.bf16.mxu0 %v3903_v55 }
 0x207   : > { %4160 = vmatprep.subr.bf16.mxu1 %v4159_v59 }
 0x209   : > { %3906 = vmatpush1.bf16.msra.mxu0 %v3905_v1 }
 0x20a   : > { %4162 = vmatpush1.bf16.msra.mxu1 %v4161_v2  ;;  %3908 = vmatprep.subr.bf16.mxu0 %v3907_v3 }
 0x20b   : > { %4164 = vmatprep.subr.bf16.mxu1 %v4163_v7 }
 0x20d   : > { %3910 = vmatpush1.bf16.msra.mxu0 %v3909_v13 }
 0x20e   : > { %4166 = vmatpush1.bf16.msra.mxu1 %v4165_v14  ;;  %3912 = vmatprep.subr.bf16.mxu0 %v3911_v15 }
 0x20f   : > { %4168 = vmatprep.subr.bf16.mxu1 %v4167_v18 }
 0x211   : > { %3914 = vmatpush1.bf16.msra.mxu0 %v3913_v21 }
 0x212   : > { %4170 = vmatpush1.bf16.msra.mxu1 %v4169_v22 }
 0x214   : > { %2115 = vmatmul.mubr.f32.vlgmr.msra.gmra.mrb[2].mxu0 %v4338_v23 }
 0x215   : > { %2399 = vmatmul.mubr.f32.vlgmr.msra.gmra.mrb[2].mxu1 %v4338_v23 }
 0x2e3   : > { %2408 = sbr.rel (%p3000_p5) target bundleno = 747 (0x2eb), region = 44 }
 0x2e7   : > { %v2116_v24 = vpop.f32.mrb[2].mxu0 }
 0x2e8   : > { %v2400_v25 = vpop.f32.mrb[2].mxu1  ;;  %v2118_v26 = vpop.f32.mrb[3].mxu0  ;;  %2413 = vst [vmem:[#allocation2 + $0x20] sm:$0xff] (!%p3000_p5), %v2116_v24 }
 0x2e9   : > { %v2402_v27 = vpop.f32.mrb[3].mxu1  ;;  %2414 = vst [vmem:[#allocation2 + $0x28] sm:$0xff] (!%p3000_p5), %v2118_v26  ;;  %2415 = vst [vmem:[#allocation2 + $0x30] sm:$0xff] (!%p3000_p5), %v2400_v25 }
 0x2ea   : > { %2416 = vst [vmem:[#allocation2 + $0x38] sm:$0xff] %v2402_v27 }
 0x2eb PF: > { %p3001_p6 = scmp.eq.s32.totalorder %s4383_s19, 0 }
 0x2ec   : > { %v2421_v28 = vld [vmem:[#allocation2] sm:$0xff] (!%p3001_p6)  ;;  %v2422_v29 = vld [vmem:[#allocation2 + $0x8] sm:$0xff] (!%p3001_p6)  ;;  %v2423_v30 = vld [vmem:[#allocation2 + $0x10] sm:$0xff] (!%p3001_p6) }
 0x2ed   : > { %2420 = sbr.rel (%p3001_p6) target bundleno = 758 (0x2f6), region = 48  ;;  %v2429_v32 = vadd.f32 (!%p3001_p6), %v2421_v28, %v5374_v31  ;;  %v2430_v33 = vadd.f32 (!%p3001_p6), %v2422_v29, %v5381_v37  ;;  %v2431_v34 = vadd.f32 (!%p3001_p6), %v2423_v30, %v5379_v36  ;;  %v2424_v35 = vld [vmem:[#allocation2 + $0x18] sm:$0xff] (!%p3001_p6) }
 0x2ee   : > { %v2432_v41 = vadd.f32 (!%p3001_p6), %v2424_v35, %v5385_v40 }
 0x2ef   : > { %2437 = vst [vmem:[#allocation2] sm:$0xff] (!%p3001_p6), %v2429_v32  ;;  %2438 = vst [vmem:[#allocation2 + $0x8] sm:$0xff] (!%p3001_p6), %v2430_v33 }
 0x2f0   : > { %v2425_v38 = vld [vmem:[#allocation2 + $0x20] sm:$0xff] (!%p3001_p6)  ;;  %2439 = vst [vmem:[#allocation2 + $0x10] sm:$0xff] (!%p3001_p6), %v2431_v34  ;;  %2440 = vst [vmem:[#allocation2 + $0x18] sm:$0xff] (!%p3001_p6), %v2432_v41 }
 0x2f1   : > { %v2426_v39 = vld [vmem:[#allocation2 + $0x28] sm:$0xff] (!%p3001_p6)  ;;  %v2433_v42 = vadd.f32 (!%p3001_p6), %v2425_v38, %v2116_v24  ;;  %v2427_v44 = vld [vmem:[#allocation2 + $0x30] sm:$0xff] (!%p3001_p6)  ;;  %v2428_v45 = vld [vmem:[#allocation2 + $0x38] sm:$0xff] (!%p3001_p6) }
 0x2f2   : > { %v2434_v43 = vadd.f32 (!%p3001_p6), %v2426_v39, %v2118_v26  ;;  %v2435_v46 = vadd.f32 (!%p3001_p6), %v2427_v44, %v2400_v25  ;;  %v2436_v47 = vadd.f32 (!%p3001_p6), %v2428_v45, %v2402_v27 }
 0x2f3   : > { %2441 = vst [vmem:[#allocation2 + $0x20] sm:$0xff] (!%p3001_p6), %v2433_v42 }
 0x2f4   : > { %2442 = vst [vmem:[#allocation2 + $0x28] sm:$0xff] %v2434_v43  ;;  %2443 = vst [vmem:[#allocation2 + $0x30] sm:$0xff] %v2435_v46 }
 0x2f5   : > { %2444 = vst [vmem:[#allocation2 + $0x38] sm:$0xff] %v2436_v47 }
 0x2f6 PF: > { %p3002_p7 = scmp.ne.s32.totalorder %s4383_s19, 1 }
 0x2f7   : > { %v2547_v31 = vld [vmem:[%s5887_s3 + $0x80] sm:$0xff] (!%p3002_p7)  ;;  %v2548_v36 = vld [vmem:[%s5887_s3 + $0x88] sm:$0xff] (!%p3002_p7)  ;;  %v2549_v55 = vld [vmem:[%s5887_s3 + $0x90] sm:$0xff] (!%p3002_p7)  ;;  %v2459_v27 = vlaneseq (!%p3002_p7)  ;;  %vm2949_vm9 = vcmask (!%p3002_p7), 15360  }
 0x2f8   : > { %2448 = sbr.rel (%p3002_p7) target bundleno = 1049 (0x419), region = 52  ;;  %v2531_v37 = vld [vmem:[%s5887_s3] sm:$0xff] (!%p3002_p7)  ;;  %v4171_v40 = vpack.c.bf16 (!%p3002_p7), %v2548_v36, %v2547_v31  ;;  %v2532_v48 = vld [vmem:[%s5887_s3 + $0x8] sm:$0xff] (!%p3002_p7)  ;;  %v2550_v57 = vld [vmem:[%s5887_s3 + $0x98] sm:$0xff] (!%p3002_p7) }
 0x2f9   : > { %v2579_v49 = vld [vmem:[%s5887_s3 + $0x180] sm:$0xff] (!%p3002_p7)  ;;  %v2580_v50 = vld [vmem:[%s5887_s3 + $0x188] sm:$0xff] (!%p3002_p7)  ;;  %v4173_v51 = vpack.c.bf16 (!%p3002_p7), %v2532_v48, %v2531_v37  ;;  %v2533_v58 = vld [vmem:[%s5887_s3 + $0x10] sm:$0xff] (!%p3002_p7)  ;;  %v4175_v60 = vpack.c.bf16 (!%p3002_p7), %v2550_v57, %v2549_v55  ;;  %v5593_v45 = vshrl.u32 (!%p3002_p7), %v2459_v27, 7 }
 0x2fa   : > { %v4203_v52 = vpack.c.bf16 (!%p3002_p7), %v2580_v50, %v2579_v49  ;;  %v2563_v53 = vld [vmem:[%s5887_s3 + $0x100] sm:$0xff] (!%p3002_p7)  ;;  %v2564_v54 = vld [vmem:[%s5887_s3 + $0x108] sm:$0xff] (!%p3002_p7)  ;;  %4172 = vmatprep.subr.bf16.mxu0 (!%p3002_p7), %v4171_v40  ;;  %v2534_v59 = vld [vmem:[%s5887_s3 + $0x18] sm:$0xff] (!%p3002_p7) }
 0x2fb   : > { %v4205_v56 = vpack.c.bf16 (!%p3002_p7), %v2564_v54, %v2563_v53  ;;  %4174 = vmatpush3.bf16.msra.mxu0 (!%p3002_p7), %v4173_v51  ;;  %v4177_v61 = vpack.c.bf16 (!%p3002_p7), %v2534_v59, %v2533_v58  ;;  %v2581_v62 = vld [vmem:[%s5887_s3 + $0x190] sm:$0xff] (!%p3002_p7)  ;;  %v2582_v63 = vld [vmem:[%s5887_s3 + $0x198] sm:$0xff] (!%p3002_p7)  ;;  %v2551_v3 = vld [vmem:[%s5887_s3 + $0xa0] sm:$0xff] (!%p3002_p7)  ;;  %v2465_v54 = vsub.s32 (!%p3002_p7), 1, %v5593_v45  ;;  %v2461_v55 = vsub.s32 (!%p3002_p7), 0, %v5593_v45 }
 0x2fc   : > { %4204 = vmatprep.subr.bf16.mxu1 (!%p3002_p7), %v4203_v52  ;;  %v2565_v0 = vld [vmem:[%s5887_s3 + $0x110] sm:$0xff] (!%p3002_p7)  ;;  %v4207_v1 = vpack.c.bf16 (!%p3002_p7), %v2582_v63, %v2581_v62  ;;  %v2566_v2 = vld [vmem:[%s5887_s3 + $0x118] sm:$0xff] (!%p3002_p7)  ;;  %v2552_v4 = vld [vmem:[%s5887_s3 + $0xa8] sm:$0xff] (!%p3002_p7)  ;;  %4176 = vmatprep.subr.bf16.mxu0 (!%p3002_p7), %v4175_v60  ;;  %v2469_v59 = vsub.s32 (!%p3002_p7), 2, %v5593_v45 }
 0x2fd   : > { %4206 = vmatpush3.bf16.msra.mxu1 (!%p3002_p7), %v4205_v56  ;;  %v4209_v5 = vpack.c.bf16 (!%p3002_p7), %v2566_v2, %v2565_v0  ;;  %v4179_v6 = vpack.c.bf16 (!%p3002_p7), %v2552_v4, %v2551_v3  ;;  %v2535_v7 = vld [vmem:[%s5887_s3 + $0x20] sm:$0xff] (!%p3002_p7)  ;;  %v2536_v8 = vld [vmem:[%s5887_s3 + $0x28] sm:$0xff] (!%p3002_p7)  ;;  %v2553_v15 = vld [vmem:[%s5887_s3 + $0xb0] sm:$0xff] (!%p3002_p7)  ;;  %v2473_v56 = vsub.s32 (!%p3002_p7), 3, %v5593_v45 }
 0x2fe   : > { %v2583_v9 = vld [vmem:[%s5887_s3 + $0x1a0] sm:$0xff] (!%p3002_p7)  ;;  %4208 = vmatprep.subr.bf16.mxu1 (!%p3002_p7), %v4207_v1  ;;  %v2584_v10 = vld [vmem:[%s5887_s3 + $0x1a8] sm:$0xff] (!%p3002_p7)  ;;  %v4181_v13 = vpack.c.bf16 (!%p3002_p7), %v2536_v8, %v2535_v7  ;;  %v2554_v16 = vld [vmem:[%s5887_s3 + $0xb8] sm:$0xff] (!%p3002_p7) }
 0x2ff   : > { %v2567_v11 = vld [vmem:[%s5887_s3 + $0x120] sm:$0xff]  ;;  %v2568_v12 = vld [vmem:[%s5887_s3 + $0x128] sm:$0xff]  ;;  %4178 = vmatpush3.bf16.msra.mxu0 %v4177_v61  ;;  %v4211_v14 = vpack.c.bf16 %v2584_v10, %v2583_v9  ;;  %v2537_v17 = vld [vmem:[%s5887_s3 + $0x30] sm:$0xff]  ;;  %v4183_v19 = vpack.c.bf16 %v2554_v16, %v2553_v15 }
 0x300   : > { %4180 = vmatprep.subr.bf16.mxu0 %v4179_v6  ;;  %v4213_v18 = vpack.c.bf16 %v2568_v12, %v2567_v11  ;;  %v2538_v20 = vld [vmem:[%s5887_s3 + $0x38] sm:$0xff]  ;;  %v2585_v21 = vld [vmem:[%s5887_s3 + $0x1b0] sm:$0xff]  ;;  %v2555_v26 = vld [vmem:[%s5887_s3 + $0xc0] sm:$0xff] }
 0x301   : > { %4210 = vmatpush3.bf16.msra.mxu1 %v4209_v5  ;;  %v2586_v22 = vld [vmem:[%s5887_s3 + $0x1b8] sm:$0xff]  ;;  %v2569_v24 = vld [vmem:[%s5887_s3 + $0x130] sm:$0xff]  ;;  %v2556_v28 = vld [vmem:[%s5887_s3 + $0xc8] sm:$0xff]  ;;  %v4185_v29 = vpack.c.bf16 %v2538_v20, %v2537_v17 }
 0x302   : > { %4212 = vmatprep.subr.bf16.mxu1 %v4211_v14  ;;  %v4215_v23 = vpack.c.bf16 %v2586_v22, %v2585_v21  ;;  %v2570_v25 = vld [vmem:[%s5887_s3 + $0x138] sm:$0xff]  ;;  %v2587_v30 = vld [vmem:[%s5887_s3 + $0x1c0] sm:$0xff]  ;;  %v2588_v32 = vld [vmem:[%s5887_s3 + $0x1c8] sm:$0xff]  ;;  %v4187_v34 = vpack.c.bf16 %v2556_v28, %v2555_v26 }
 0x303   : > { %4182 = vmatpush3.bf16.msra.mxu0 %v4181_v13  ;;  %v4217_v33 = vpack.c.bf16 %v2570_v25, %v2569_v24  ;;  %v2539_v35 = vld [vmem:[%s5887_s3 + $0x40] sm:$0xff]  ;;  %v2540_v38 = vld [vmem:[%s5887_s3 + $0x48] sm:$0xff]  ;;  %v4219_v41 = vpack.c.bf16 %v2588_v32, %v2587_v30  ;;  %v2557_v43 = vld [vmem:[%s5887_s3 + $0xd0] sm:$0xff] }
 0x304   : > { %4184 = vmatprep.subr.bf16.mxu0 %v4183_v19  ;;  %v2571_v39 = vld [vmem:[%s5887_s3 + $0x140] sm:$0xff]  ;;  %v2572_v42 = vld [vmem:[%s5887_s3 + $0x148] sm:$0xff]  ;;  %v2558_v44 = vld [vmem:[%s5887_s3 + $0xd8] sm:$0xff]  ;;  %v4189_v31 = vpack.c.bf16 %v2540_v38, %v2539_v35 }
 0x305   : > { %4214 = vmatpush3.bf16.msra.mxu1 %v4213_v18  ;;  %v2589_v46 = vld [vmem:[%s5887_s3 + $0x1d0] sm:$0xff]  ;;  %v2590_v47 = vld [vmem:[%s5887_s3 + $0x1d8] sm:$0xff]  ;;  %v4221_v36 = vpack.c.bf16 %v2572_v42, %v2571_v39  ;;  %v4191_v37 = vpack.c.bf16 %v2558_v44, %v2557_v43  ;;  %v2559_v52 = vld [vmem:[%s5887_s3 + $0xe0] sm:$0xff] }
 0x306   : > { %4216 = vmatprep.subr.bf16.mxu1 %v4215_v23  ;;  %v2541_v40 = vld [vmem:[%s5887_s3 + $0x50] sm:$0xff]  ;;  %v2542_v48 = vld [vmem:[%s5887_s3 + $0x58] sm:$0xff]  ;;  %v4223_v50 = vpack.c.bf16 %v2590_v47, %v2589_v46  ;;  %v2560_v53 = vld [vmem:[%s5887_s3 + $0xe8] sm:$0xff] }
 0x307   : > { %4186 = vmatpush3.bf16.msra.mxu0 %v4185_v29  ;;  %v2573_v49 = vld [vmem:[%s5887_s3 + $0x150] sm:$0xff]  ;;  %v2574_v51 = vld [vmem:[%s5887_s3 + $0x158] sm:$0xff]  ;;  %v2591_v57 = vld [vmem:[%s5887_s3 + $0x1e0] sm:$0xff]  ;;  %v4193_v60 = vpack.c.bf16 %v2542_v48, %v2541_v40  ;;  %v4195_v1 = vpack.c.bf16 %v2560_v53, %v2559_v52 }
 0x308   : > { %4188 = vmatprep.subr.bf16.mxu0 %v4187_v34  ;;  %v2592_v58 = vld [vmem:[%s5887_s3 + $0x1e8] sm:$0xff]  ;;  %v2543_v61 = vld [vmem:[%s5887_s3 + $0x60] sm:$0xff]  ;;  %v4225_v0 = vpack.c.bf16 %v2574_v51, %v2573_v49  ;;  %v2561_v6 = vld [vmem:[%s5887_s3 + $0xf0] sm:$0xff] }
 0x309   : > { %4218 = vmatpush3.bf16.msra.mxu1 %v4217_v33  ;;  %v2544_v62 = vld [vmem:[%s5887_s3 + $0x68] sm:$0xff]  ;;  %v2575_v63 = vld [vmem:[%s5887_s3 + $0x160] sm:$0xff]  ;;  %v4227_v5 = vpack.c.bf16 %v2592_v58, %v2591_v57  ;;  %v2562_v7 = vld [vmem:[%s5887_s3 + $0xf8] sm:$0xff] }
 0x30a   : > { %4220 = vmatprep.subr.bf16.mxu1 %v4219_v41  ;;  %v2576_v2 = vld [vmem:[%s5887_s3 + $0x168] sm:$0xff]  ;;  %v5644_v4 = vld [vmem:[%s5886_s2] sm:$0xff]  ;;  %v2593_v12 = vld [vmem:[%s5887_s3 + $0x1f0] sm:$0xff]  ;;  %v4197_v16 = vpack.c.bf16 %v2544_v62, %v2543_v61  ;;  %v4199_v23 = vpack.c.bf16 %v2562_v7, %v2561_v6 }
 0x30b   : > { %4190 = vmatpush3.bf16.msra.mxu0 %v4189_v31  ;;  %v2450_v3 = vld [vmem:[#allocation2 + $0x8] sm:$0xff]  ;;  %v2466_v8 = vrot.slane %v5644_v4, %v2465_v54  ;;  %v2449_v9 = vld [vmem:[#allocation2] sm:$0xff]  ;;  %v2462_v10 = vrot.slane %v5644_v4, %v2461_v55  ;;  %v2474_v11 = vrot.slane %v5644_v4, %v2473_v56  ;;  %v2594_v13 = vld [vmem:[%s5887_s3 + $0x1f8] sm:$0xff]  ;;  %v2470_v15 = vrot.slane %v5644_v4, %v2469_v59 }
 0x30c   : > { %4192 = vmatprep.subr.bf16.mxu0 %v4191_v37  ;;  %v2452_v14 = vld [vmem:[#allocation2 + $0x18] sm:$0xff]  ;;  %v2545_v17 = vld [vmem:[%s5887_s3 + $0x70] sm:$0xff]  ;;  %v4229_v22 = vpack.c.bf16 %v2576_v2, %v2575_v63  ;;  %v4231_v28 = vpack.c.bf16 %v2594_v13, %v2593_v12  ;;  %v2611_v30 = vld [vmem:[%s5887_s3 + $0x280] sm:$0xff] }
 0x30d   : > { %4222 = vmatpush3.bf16.msra.mxu1 %v4221_v36  ;;  %v2500_v18 = vadd.f32 %v2466_v8, %v2450_v3  ;;  %v2499_v19 = vadd.f32 %v2462_v10, %v2449_v9  ;;  %v2502_v20 = vadd.f32 %v2474_v11, %v2452_v14  ;;  %v2451_v21 = vld [vmem:[#allocation2 + $0x10] sm:$0xff]  ;;  %v2546_v24 = vld [vmem:[%s5887_s3 + $0x78] sm:$0xff]  ;;  %v2612_v32 = vld [vmem:[%s5887_s3 + $0x288] sm:$0xff] }
 0x30e   : > { %4224 = vmatprep.subr.bf16.mxu1 %v4223_v50  ;;  %v2577_v25 = vld [vmem:[%s5887_s3 + $0x170] sm:$0xff]  ;;  %v2578_v26 = vld [vmem:[%s5887_s3 + $0x178] sm:$0xff]  ;;  %v2501_v27 = vadd.f32 %v2470_v15, %v2451_v21  ;;  %v2643_v34 = vld [vmem:[%s5887_s3 + $0x380] sm:$0xff]  ;;  %v4201_v38 = vpack.c.bf16 %v2546_v24, %v2545_v17  ;;  %v4235_v43 = vpack.c.bf16 %v2612_v32, %v2611_v30  ;;  %v2481_v15 = vsub.s32 5, %v5593_v45 }
 0x30f   : > { %4194 = vmatpush3.bf16.msra.mxu0 %v4193_v60  ;;  %vm2508_vm0 = vcmp.ge.f32.partialorder %v2500_v18, 0.0  ;;  %v2516_v29 = vmul.f32 0.01, %v2500_v18  ;;  %vm2510_vm1 = vcmp.ge.f32.partialorder %v2502_v20, 0.0  ;;  %v2518_v33 = vmul.f32 0.01, %v2502_v20 }
 0x310   : > { %4196 = vmatprep.subr.bf16.mxu0 %v4195_v1  ;;  %v2644_v35 = vld [vmem:[%s5887_s3 + $0x388] sm:$0xff]  ;;  %v4233_v39 = vpack.c.bf16 %v2578_v26, %v2577_v25  ;;  %v2515_v42 = vmul.f32 0.01, %v2499_v19  ;;  %vm2507_vm2 = vcmp.ge.f32.partialorder %v2499_v19, 0.0  ;;  %v2595_v46 = vld [vmem:[%s5887_s3 + $0x200] sm:$0xff]  ;;  %vm2509_vm3 = vcmp.ge.f32.partialorder %v2501_v27, 0.0 }
 0x311   : > { %4226 = vmatpush3.bf16.msra.mxu1 %v4225_v0  ;;  %v2524_v41 = vsel %vm2508_vm0, %v2500_v18, %v2516_v29  ;;  %v2526_v44 = vsel %vm2510_vm1, %v2502_v20, %v2518_v33  ;;  %v2596_v47 = vld [vmem:[%s5887_s3 + $0x208] sm:$0xff]  ;;  %v2517_v31 = vmul.f32 0.01, %v2501_v27  ;;  %v2627_v36 = vld [vmem:[%s5887_s3 + $0x300] sm:$0xff]  ;;  %v4267_v37 = vpack.c.bf16 %v2644_v35, %v2643_v34  ;;  %v2613_v48 = vld [vmem:[%s5887_s3 + $0x290] sm:$0xff] }
 0x312   : > { %4228 = vmatprep.subr.bf16.mxu1 %v4227_v5  ;;  %2730 = vmatprep.mubr.f32.mxu0 %v2524_v41  ;;  %v2628_v40 = vld [vmem:[%s5887_s3 + $0x308] sm:$0xff]  ;;  %v2614_v49 = vld [vmem:[%s5887_s3 + $0x298] sm:$0xff]  ;;  %v2645_v50 = vld [vmem:[%s5887_s3 + $0x390] sm:$0xff]  ;;  %v2523_v52 = vsel %vm2507_vm2, %v2499_v19, %v2515_v42  ;;  %v4237_v53 = vpack.c.bf16 %v2596_v47, %v2595_v46  ;;  %v2489_v17 = vsub.s32 7, %v5593_v45  ;;  %v2482_v29 = vrot.slane %v5644_v4, %v2481_v15 }
 0x313   : > { %4198 = vmatpush3.bf16.msra.mxu0 %v4197_v16  ;;  %2800 = vmatprep.mubr.f32.mxu1 %v2526_v44  ;;  %v2646_v51 = vld [vmem:[%s5887_s3 + $0x398] sm:$0xff]  ;;  %v2525_v54 = vsel %vm2509_vm3, %v2501_v27, %v2517_v31  ;;  %v4269_v55 = vpack.c.bf16 %v2628_v40, %v2627_v36  ;;  %v4239_v56 = vpack.c.bf16 %v2614_v49, %v2613_v48  ;;  %v2597_v57 = vld [vmem:[%s5887_s3 + $0x210] sm:$0xff]  ;;  %v2615_v62 = vld [vmem:[%s5887_s3 + $0x2a0] sm:$0xff]  ;;  %v2477_v48 = vsub.s32 4, %v5593_v45 }
 0x314   : > { %4200 = vmatprep.subr.bf16.mxu0 %v4199_v23  ;;  %v2598_v58 = vld [vmem:[%s5887_s3 + $0x218] sm:$0xff]  ;;  %v2629_v59 = vld [vmem:[%s5887_s3 + $0x310] sm:$0xff]  ;;  %v4271_v60 = vpack.c.bf16 %v2646_v51, %v2645_v50  ;;  %v2616_v63 = vld [vmem:[%s5887_s3 + $0x2a8] sm:$0xff]  ;;  %v2490_v33 = vrot.slane %v5644_v4, %v2489_v17  ;;  %v2485_v50 = vsub.s32 6, %v5593_v45 }
 0x315   : > { %4230 = vmatpush3.bf16.msra.mxu1 %v4229_v22  ;;  %v2630_v61 = vld [vmem:[%s5887_s3 + $0x318] sm:$0xff]  ;;  %v2647_v0 = vld [vmem:[%s5887_s3 + $0x3a0] sm:$0xff]  ;;  %v2648_v1 = vld [vmem:[%s5887_s3 + $0x3a8] sm:$0xff]  ;;  %v4241_v2 = vpack.c.bf16 %v2598_v58, %v2597_v57  ;;  %v4243_v5 = vpack.c.bf16 %v2616_v63, %v2615_v62 }
 0x316   : > { %4232 = vmatprep.subr.bf16.mxu1 %v4231_v28  ;;  %v4273_v3 = vpack.c.bf16 %v2630_v61, %v2629_v59  ;;  %v2599_v6 = vld [vmem:[%s5887_s3 + $0x220] sm:$0xff]  ;;  %v2600_v7 = vld [vmem:[%s5887_s3 + $0x228] sm:$0xff]  ;;  %v4275_v9 = vpack.c.bf16 %v2648_v1, %v2647_v0  ;;  %v2617_v11 = vld [vmem:[%s5887_s3 + $0x2b0] sm:$0xff] }
 0x317   : > { %4202 = vmatpush3.bf16.msra.mxu0 %v4201_v38  ;;  %v2631_v8 = vld [vmem:[%s5887_s3 + $0x320] sm:$0xff]  ;;  %v2632_v10 = vld [vmem:[%s5887_s3 + $0x328] sm:$0xff]  ;;  %v2618_v12 = vld [vmem:[%s5887_s3 + $0x2b8] sm:$0xff]  ;;  %v4245_v16 = vpack.c.bf16 %v2600_v7, %v2599_v6 }
 0x318   : > { %4236 = vmatprep.subr.bf16.mxu0 %v4235_v43  ;;  %v2649_v13 = vld [vmem:[%s5887_s3 + $0x3b0] sm:$0xff]  ;;  %v2650_v14 = vld [vmem:[%s5887_s3 + $0x3b8] sm:$0xff]  ;;  %v4277_v18 = vpack.c.bf16 %v2632_v10, %v2631_v8  ;;  %v4247_v19 = vpack.c.bf16 %v2618_v12, %v2617_v11  ;;  %v2619_v25 = vld [vmem:[%s5887_s3 + $0x2c0] sm:$0xff]  ;;  %v2486_v11 = vrot.slane %v5644_v4, %v2485_v50 }
 0x319   : > { %4234 = vmatpush3.bf16.msra.mxu1 %v4233_v39  ;;  %v2601_v20 = vld [vmem:[%s5887_s3 + $0x230] sm:$0xff]  ;;  %v2602_v21 = vld [vmem:[%s5887_s3 + $0x238] sm:$0xff]  ;;  %v4279_v23 = vpack.c.bf16 %v2650_v14, %v2649_v13  ;;  %v2620_v26 = vld [vmem:[%s5887_s3 + $0x2c8] sm:$0xff] }
 0x31a   : > { %4268 = vmatprep.subr.bf16.mxu1 %v4267_v37  ;;  %2731 = vmatmul.mubr.f32.vlgmr.msra.gmra.mrb[0].mxu0 %v2523_v52  ;;  %v2633_v22 = vld [vmem:[%s5887_s3 + $0x330] sm:$0xff]  ;;  %v2634_v24 = vld [vmem:[%s5887_s3 + $0x338] sm:$0xff]  ;;  %v2651_v27 = vld [vmem:[%s5887_s3 + $0x3c0] sm:$0xff]  ;;  %v4249_v30 = vpack.c.bf16 %v2602_v21, %v2601_v20  ;;  %v4251_v35 = vpack.c.bf16 %v2620_v26, %v2619_v25 }
 0x31b   : > { %4238 = vmatpush3.bf16.msra.mxu0 %v4237_v53  ;;  %v2652_v28 = vld [vmem:[%s5887_s3 + $0x3c8] sm:$0xff]  ;;  %v2603_v32 = vld [vmem:[%s5887_s3 + $0x240] sm:$0xff]  ;;  %v4281_v34 = vpack.c.bf16 %v2634_v24, %v2633_v22  ;;  %v2621_v43 = vld [vmem:[%s5887_s3 + $0x2d0] sm:$0xff] }
 0x31c   : > { %2801 = vmatmul.mubr.f32.vlgmr.msra.gmra.mrb[0].mxu1 %v2525_v54  ;;  %4240 = vmatprep.subr.bf16.mxu0 %v4239_v56  ;;  %v2604_v38 = vld [vmem:[%s5887_s3 + $0x248] sm:$0xff]  ;;  %v2635_v39 = vld [vmem:[%s5887_s3 + $0x340] sm:$0xff]  ;;  %v4283_v42 = vpack.c.bf16 %v2652_v28, %v2651_v27  ;;  %v2622_v44 = vld [vmem:[%s5887_s3 + $0x2d8] sm:$0xff] }
 0x31d   : > { %4270 = vmatpush3.bf16.msra.mxu1 %v4269_v55  ;;  %v2636_v41 = vld [vmem:[%s5887_s3 + $0x348] sm:$0xff]  ;;  %v2653_v47 = vld [vmem:[%s5887_s3 + $0x3d0] sm:$0xff]  ;;  %v2654_v31 = vld [vmem:[%s5887_s3 + $0x3d8] sm:$0xff]  ;;  %v4253_v40 = vpack.c.bf16 %v2604_v38, %v2603_v32  ;;  %v4255_v52 = vpack.c.bf16 %v2622_v44, %v2621_v43 }
 0x31e   : > { %4272 = vmatprep.subr.bf16.mxu1 %v4271_v60  ;;  %v2454_v46 = vld [vmem:[#allocation2 + $0x28] sm:$0xff]  ;;  %v2456_v37 = vld [vmem:[#allocation2 + $0x38] sm:$0xff]  ;;  %v4285_v51 = vpack.c.bf16 %v2636_v41, %v2635_v39  ;;  %v2605_v53 = vld [vmem:[%s5887_s3 + $0x250] sm:$0xff]  ;;  %v4287_v45 = vpack.c.bf16 %v2654_v31, %v2653_v47 }
 0x31f   : > { %4242 = vmatpush3.bf16.msra.mxu0 %v4241_v2  ;;  %v2504_v36 = vadd.f32 %v2482_v29, %v2454_v46  ;;  %v2506_v49 = vadd.f32 %v2490_v33, %v2456_v37  ;;  %v2606_v54 = vld [vmem:[%s5887_s3 + $0x258] sm:$0xff]  ;;  %v2637_v55 = vld [vmem:[%s5887_s3 + $0x350] sm:$0xff]  ;;  %v2623_v58 = vld [vmem:[%s5887_s3 + $0x2e0] sm:$0xff] }
 0x320   : > { %4244 = vmatprep.subr.bf16.mxu0 %v4243_v5  ;;  %v2638_v57 = vld [vmem:[%s5887_s3 + $0x358] sm:$0xff]  ;;  %v2624_v59 = vld [vmem:[%s5887_s3 + $0x2e8] sm:$0xff]  ;;  %v2655_v61 = vld [vmem:[%s5887_s3 + $0x3e0] sm:$0xff]  ;;  %v4257_v0 = vpack.c.bf16 %v2606_v54, %v2605_v53 }
 0x321   : > { %4274 = vmatpush3.bf16.msra.mxu1 %v4273_v3  ;;  %vm2512_vm4 = vcmp.ge.f32.partialorder %v2504_v36, 0.0  ;;  %v2520_v56 = vmul.f32 0.01, %v2504_v36  ;;  %vm2514_vm5 = vcmp.ge.f32.partialorder %v2506_v49, 0.0  ;;  %v2522_v60 = vmul.f32 0.01, %v2506_v49 }
 0x322   : > { %4276 = vmatprep.subr.bf16.mxu1 %v4275_v9  ;;  %v2656_v62 = vld [vmem:[%s5887_s3 + $0x3e8] sm:$0xff]  ;;  %v2607_v1 = vld [vmem:[%s5887_s3 + $0x260] sm:$0xff]  ;;  %v2478_v3 = vrot.slane %v5644_v4, %v2477_v48  ;;  %v4289_v6 = vpack.c.bf16 %v2638_v57, %v2637_v55  ;;  %v4259_v7 = vpack.c.bf16 %v2624_v59, %v2623_v58  ;;  %v2625_v13 = vld [vmem:[%s5887_s3 + $0x2f0] sm:$0xff] }
 0x323   : > { %4246 = vmatpush3.bf16.msra.mxu0 %v4245_v16  ;;  %v2528_v63 = vsel %vm2512_vm4, %v2504_v36, %v2520_v56  ;;  %v2608_v2 = vld [vmem:[%s5887_s3 + $0x268] sm:$0xff]  ;;  %v2530_v5 = vsel %vm2514_vm5, %v2506_v49, %v2522_v60  ;;  %v2639_v8 = vld [vmem:[%s5887_s3 + $0x360] sm:$0xff]  ;;  %v4291_v12 = vpack.c.bf16 %v2656_v62, %v2655_v61  ;;  %v2626_v14 = vld [vmem:[%s5887_s3 + $0x2f8] sm:$0xff] }
 0x324   : > { %4248 = vmatprep.subr.bf16.mxu0 %v4247_v19  ;;  %2870 = vmatprep.mubr.f32.mxu0 %v2528_v63  ;;  %v2640_v9 = vld [vmem:[%s5887_s3 + $0x368] sm:$0xff]  ;;  %v2453_v10 = vld [vmem:[#allocation2 + $0x20] sm:$0xff]  ;;  %v2455_v15 = vld [vmem:[#allocation2 + $0x30] sm:$0xff]  ;;  %v4261_v17 = vpack.c.bf16 %v2608_v2, %v2607_v1  ;;  %v4263_v20 = vpack.c.bf16 %v2626_v14, %v2625_v13 }
 0x325   : > { %4278 = vmatpush3.bf16.msra.mxu1 %v4277_v18  ;;  %2940 = vmatprep.mubr.f32.mxu1 %v2530_v5  ;;  %v2657_v16 = vld [vmem:[%s5887_s3 + $0x3f0] sm:$0xff]  ;;  %v2658_v4 = vld [vmem:[%s5887_s3 + $0x3f8] sm:$0xff]  ;;  %v2503_v18 = vadd.f32 %v2478_v3, %v2453_v10  ;;  %v4293_v19 = vpack.c.bf16 %v2640_v9, %v2639_v8 }
 0x326   : > { %4280 = vmatprep.subr.bf16.mxu1 %v4279_v23  ;;  %v2609_v21 = vld [vmem:[%s5887_s3 + $0x270] sm:$0xff]  ;;  %v2610_v22 = vld [vmem:[%s5887_s3 + $0x278] sm:$0xff]  ;;  %v2505_v23 = vadd.f32 %v2486_v11, %v2455_v15  ;;  %v4295_v24 = vpack.c.bf16 %v2658_v4, %v2657_v16 }
 0x327   : > { %4250 = vmatpush3.bf16.msra.mxu0 %v4249_v30  ;;  %v2641_v25 = vld [vmem:[%s5887_s3 + $0x370] sm:$0xff]  ;;  %v2642_v26 = vld [vmem:[%s5887_s3 + $0x378] sm:$0xff]  ;;  %v4265_v27 = vpack.c.bf16 %v2610_v22, %v2609_v21  ;;  %v2519_v28 = vmul.f32 0.01, %v2503_v18  ;;  %vm2511_vm6 = vcmp.ge.f32.partialorder %v2503_v18, 0.0 }
 0x328   : > { %4252 = vmatprep.subr.bf16.mxu0 %v4251_v35  ;;  %v4297_v29 = vpack.c.bf16 %v2642_v26, %v2641_v25  ;;  %v2521_v30 = vmul.f32 0.01, %v2505_v23  ;;  %vm2513_vm7 = vcmp.ge.f32.partialorder %v2505_v23, 0.0  ;;  %v3003_v35 = vld [vmem:[%s5888_s4] ss:$0 sm:$0xff] }
 0x329   : > { %4282 = vmatpush3.bf16.msra.mxu1 %v4281_v34  ;;  %v2527_v32 = vsel %vm2511_vm6, %v2503_v18, %v2519_v28 }
 0x32a   : > { %4284 = vmatprep.subr.bf16.mxu1 %v4283_v42  ;;  %v2529_v33 = vsel %vm2513_vm7, %v2505_v23, %v2521_v30 }
 0x32b   : > { %4254 = vmatpush3.bf16.msra.mxu0 %v4253_v40 }
 0x32c   : > { %4256 = vmatprep.subr.bf16.mxu0 %v4255_v52 }
 0x32d   : > { %4286 = vmatpush3.bf16.msra.mxu1 %v4285_v51 }
 0x32e   : > { %4288 = vmatprep.subr.bf16.mxu1 %v4287_v45 }
 0x32f   : > { %4258 = vmatpush3.bf16.msra.mxu0 %v4257_v0 }
 0x330   : > { %4260 = vmatprep.subr.bf16.mxu0 %v4259_v7 }
 0x331   : > { %4290 = vmatpush3.bf16.msra.mxu1 %v4289_v6 }
 0x332   : > { %4292 = vmatprep.subr.bf16.mxu1 %v4291_v12 }
 0x333   : > { %4262 = vmatpush3.bf16.msra.mxu0 %v4261_v17 }
 0x334   : > { %4264 = vmatprep.subr.bf16.mxu0 %v4263_v20 }
 0x335   : > { %4294 = vmatpush3.bf16.msra.mxu1 %v4293_v19 }
 0x336   : > { %4296 = vmatprep.subr.bf16.mxu1 %v4295_v24 }
 0x337   : > { %4266 = vmatpush3.bf16.msra.mxu0 %v4265_v27 }
 0x339   : > { %4298 = vmatpush3.bf16.msra.mxu1 %v4297_v29 }
 0x33a   : > { %2871 = vmatmul.mubr.f32.vlgmr.msra.gmra.mrb[2].mxu0 %v2527_v32 }
 0x33c   : > { %2941 = vmatmul.mubr.f32.vlgmr.msra.gmra.mrb[2].mxu1 %v2529_v33 }
 0x3ed   : > { %v3039_v34 = vpop.f32.mrb[0].mxu0 }
 0x3ee   : > { %v3040_v38 = vpop.f32.mrb[1].mxu0 }
 0x3ef   : > { %v3074_v39 = vpop.f32.mrb[0].mxu1  ;;  %v3041_v41 = vadd.f32 %v3040_v38, %v3039_v34 }
 0x3f0   : > { %v3075_v42 = vpop.f32.mrb[1].mxu1 }
 0x3f1   : > { %v3076_v43 = vadd.f32 %v3075_v42, %v3074_v39  ;;  %v2733_v44 = vadd.f32 %v3041_v41, %v3003_v35 }
 0x3f3   : > { %v2803_v46 = vadd.f32 %v3076_v43, %v2733_v44 }
 0x40d   : > { %v3109_v47 = vpop.f32.mrb[2].mxu0 }
 0x40e   : > { %v3110_v31 = vpop.f32.mrb[3].mxu0 }
 0x40f   : > { %v3144_v36 = vpop.f32.mrb[2].mxu1  ;;  %v3111_v37 = vadd.f32 %v3110_v31, %v3109_v47 }
 0x410   : > { %v3145_v40 = vpop.f32.mrb[3].mxu1 }
 0x411   : > { %v3146_v48 = vadd.f32 %v3145_v40, %v3144_v36  ;;  %v2873_v49 = vadd.f32 %v3111_v37, %v2803_v46 }
 0x413   : > { %v2943_v50 = vadd.f32 %v3146_v48, %v2873_v49 }
 0x415   : > { %vm2946_vm8 = vcmp.ge.f32.partialorder %v2943_v50, 0.0  ;;  %v2947_v51 = vmul.f32 0.01, %v2943_v50 }
 0x417   : > { %v2948_v52 = vsel %vm2946_vm8, %v2943_v50, %v2947_v51 }
 0x418   : > { %2950 = vst.msk [vmem:[%s5889_s5] sm:$0xff] %vm2949_vm9, %v2948_v52 }
 0x419 PF: > { %s15_s18 = sadd.s32 1, %s4345_s18  }
 0x41a   : > { %p12_p8 = scmp.ge.s32.totalorder %s15_s18, 4  }
 0x41c   :  { %14 = sbr.rel (!%p12_p8) target bundleno = 1 (0x1), region = 81 }

</bundles_post_ra>
